<compile_context>
chip_gen: v5e
topology: v5e:2x2
jax: 0.10.0
libtpu: 0.0.40
codegen_flags: <defaults>
</compile_context>

<pallas_src>
import functools

import jax
import jax.numpy as jnp
from jax.experimental import pallas as pl
from jax.experimental.pallas import tpu as pltpu

EPS = 1e-5


def _round_up(x, m):
    return (x + m - 1) // m * m


# ------------------------------ Pallas kernel ------------------------------

def _fused_cff_kernel(a_ref, xl_ref, xh_ref, w1l_ref, w1h_ref, b1_ref,
                      w2_ref, wsl_ref, wsh_ref, b2_ref, o_ref,
                      up_ref, mid_ref, acc_ref, *,
                      offsets, mout, W, Wp, base):
    """Whole CFF forward for one image, entirely in VMEM.

    Stage 1: bilinear upsample (align_corners=True) of x_low as one GEMM
             against a zero-padded interpolation matrix -> padded-flat layout.
    Stage 2: conv1 3x3 + folded BN + ReLU as 9 shifted-window GEMM pairs
             (low/high channel halves), emitted directly in conv2's
             zero-padded flat layout (wrap columns masked, border rows zero).
    Stage 3: conv2 3x3 + folded BN, 1x1 shortcut (+BN) fused as an extra tap
             at offset Wp+1, final ReLU.  Lane-dense f32 store.
    """
    f32 = jnp.float32
    bf16 = jnp.bfloat16

    # ---- stage 1: upsample low -> zero-padded flat (Lf, Cl) f32 scratch ----
    up_ref[...] = jnp.dot(a_ref[...], xl_ref[0], preferred_element_type=f32)

    # ---- stage 2: conv1 (3x3 + BN + ReLU) in padded-flat layout ------------
    for t, off in enumerate(offsets):
        part = jnp.dot(up_ref[off:off + mout, :].astype(bf16), w1l_ref[t],
                       preferred_element_type=f32)
        part += jnp.dot(xh_ref[0, off:off + mout, :].astype(bf16), w1h_ref[t],
                        preferred_element_type=f32)
        if t == 0:
            acc_ref[...] = part
        else:
            acc_ref[...] += part
    y1 = jnp.maximum(acc_ref[...] + b1_ref[...], 0.0)
    # zero the 2 wrap-around garbage columns per flat row (x >= W), so conv2's
    # windows only ever see valid (or zero-pad) data.
    col = jax.lax.broadcasted_iota(jnp.int32, y1.shape, 0) % Wp
    y1 = jnp.where(col < W, y1, 0.0)
    mid_ref[...] = jnp.zeros_like(mid_ref)          # border rows + tail = 0
    mid_ref[base:base + mout, :] = y1               # interior at offset Wp+1

    # ---- stage 3: conv2 + fused 1x1 shortcut + final ReLU ------------------
    # shortcut = concat(up, xh)[window at base] @ ws  (split into two GEMMs)
    acc_ref[...] = jnp.dot(up_ref[base:base + mout, :].astype(bf16),
                           wsl_ref[...], preferred_element_type=f32)
    acc_ref[...] += jnp.dot(xh_ref[0, base:base + mout, :].astype(bf16),
                            wsh_ref[...], preferred_element_type=f32)
    for t, off in enumerate(offsets):
        acc_ref[...] += jnp.dot(mid_ref[off:off + mout, :].astype(bf16),
                                w2_ref[t], preferred_element_type=f32)
    o_ref[0] = jnp.maximum(acc_ref[...] + b2_ref[...], 0.0).astype(o_ref.dtype)


# ----------------------------- forward wrapper ------------------------------

def _bilinear_matrix(out_size, in_size):
    """1-D interpolation matrix matching F.interpolate(..., align_corners=True)."""
    if in_size == 1:
        return jnp.ones((out_size, 1), jnp.float32)
    if out_size == 1:
        return jnp.zeros((1, in_size), jnp.float32).at[0, 0].set(1.0)
    src = jnp.arange(out_size, dtype=jnp.float32) * (
        (in_size - 1.0) / (out_size - 1.0))
    i0 = jnp.clip(jnp.floor(src).astype(jnp.int32), 0, in_size - 2)
    frac = src - i0.astype(jnp.float32)
    rows = jnp.arange(out_size)
    m = jnp.zeros((out_size, in_size), jnp.float32)
    m = m.at[rows, i0].add(1.0 - frac)
    m = m.at[rows, i0 + 1].add(frac)
    return m


def feature_fusion_forward(x_high, x_low, params, out_channel):
    """Matches FeatureFusion.forward; one fused Pallas kernel per image."""
    N, Ch, H, W = x_high.shape
    Nl, Cl, h, w = x_low.shape
    assert Nl == N
    assert params['w1l'].shape[1] == Cl and params['w1h'].shape[1] == Ch
    Cp = params['b1'].shape[-1]                       # padded out channels (x128)

    Hp, Wp = H + 2, W + 2
    Lcore = Hp * Wp
    Lf = _round_up(Lcore + 2, 16)                     # room for largest tap slice
    mout = H * Wp                                     # rows per conv output slab
    base = Wp + 1                                     # interior offset in padded grid
    offsets = tuple(dy * Wp + dx for dy in range(3) for dx in range(3))

    # NCHW -> NHWC (input marshalling; the only XLA glue left)
    xh = jnp.transpose(x_high, (0, 2, 3, 1)).astype(jnp.float32)
    xl = jnp.transpose(x_low, (0, 2, 3, 1)).astype(jnp.bfloat16)

    # zero-padded, row-flattened high-res input (shared by conv1 and shortcut)
    xh_flat = jnp.pad(xh, ((0, 0), (1, 1), (1, 1), (0, 0))).reshape(N, Lcore, Ch)
    xh_flat = jnp.pad(xh_flat, ((0, 0), (0, Lf - Lcore), (0, 0)))
    xl_flat = xl.reshape(N, h * w, Cl)

    # interpolation matrix already laid out in the zero-padded flat geometry
    A = jnp.kron(_bilinear_matrix(H, h), _bilinear_matrix(W, w))      # (H*W, h*w)
    A = jnp.pad(A.reshape(H, W, h * w), ((1, 1), (1, 1), (0, 0)))
    A = jnp.pad(A.reshape(Lcore, h * w), ((0, Lf - Lcore), (0, 0)))
    A = A.astype(jnp.bfloat16)

    b2s = params['b2'] + params['bs']                 # conv2 BN bias + shortcut BN bias

    kernel = functools.partial(_fused_cff_kernel, offsets=offsets, mout=mout,
                               W=W, Wp=Wp, base=base)

    blk_bytes = (A.nbytes + xl_flat.nbytes // N + xh_flat.nbytes // N
                 + params['w1l'].nbytes + params['w1h'].nbytes
                 + params['w2'].nbytes + params['wsl'].nbytes
                 + params['wsh'].nbytes + params['b1'].nbytes + b2s.nbytes
                 + mout * Cp * 4                                  # output block
                 + Lf * Cl * 4 + Lf * Cp * 4 + mout * Cp * 4)     # scratches

    # TODO(synk): mark the constant-index weight/bias specs pipeline_mode=
    #             pl.Buffered(1) once we can verify it on this jax version.
    out = pl.pallas_call(
        kernel,
        out_shape=jax.ShapeDtypeStruct((N, mout, Cp), jnp.float32),
        grid=(N,),
        in_specs=[
            pl.BlockSpec((Lf, h * w), lambda n: (0, 0)),          # A (resident)
            pl.BlockSpec((1, h * w, Cl), lambda n: (n, 0, 0)),    # x_low
            pl.BlockSpec((1, Lf, Ch), lambda n: (n, 0, 0)),       # x_high (padded)
            pl.BlockSpec((9, Cl, Cp), lambda n: (0, 0, 0)),       # w1 low half
            pl.BlockSpec((9, Ch, Cp), lambda n: (0, 0, 0)),       # w1 high half
            pl.BlockSpec((1, Cp), lambda n: (0, 0)),              # b1
            pl.BlockSpec((9, Cp, Cp), lambda n: (0, 0, 0)),       # w2
            pl.BlockSpec((Cl, Cp), lambda n: (0, 0)),             # ws low half
            pl.BlockSpec((Ch, Cp), lambda n: (0, 0)),             # ws high half
            pl.BlockSpec((1, Cp), lambda n: (0, 0)),              # b2 + bs
        ],
        out_specs=pl.BlockSpec((1, mout, Cp), lambda n: (n, 0, 0)),
        scratch_shapes=[
            pltpu.VMEM((Lf, Cl), jnp.float32),        # upsampled low, padded flat
            pltpu.VMEM((Lf, Cp), jnp.float32),        # conv1 out, padded flat
            pltpu.VMEM((mout, Cp), jnp.float32),      # shared f32 accumulator
        ],
        compiler_params=pltpu.CompilerParams(
            dimension_semantics=("parallel",),
            vmem_limit_bytes=int(min(48 << 20,
                                     max(2 * blk_bytes + (2 << 20), 8 << 20)))),
    )(A, xl_flat, xh_flat, params['w1l'], params['w1h'], params['b1'],
      params['w2'], params['wsl'], params['wsh'], b2s)

    out = out.reshape(N, H, Wp, Cp)[:, :, :W, :out_channel]
    return jnp.transpose(out, (0, 3, 1, 2))           # NHWC -> NCHW


# ----------------------------- parameters -----------------------------------

def init_params(key, c_low, c_high, out_channel):
    """Deterministic synthetic ResBlock weights with inference BN folded in."""
    in_channel = c_low + c_high
    it = iter(jax.random.split(key, 16))

    def conv_w(cout, cin, k):
        fan_in = cin * k * k
        return jax.random.normal(next(it), (cout, cin, k, k),
                                 jnp.float32) / jnp.sqrt(float(fan_in))

    def bn(c):
        gamma = 1.0 + 0.1 * jax.random.normal(next(it), (c,), jnp.float32)
        beta = 0.05 * jax.random.normal(next(it), (c,), jnp.float32)
        mean = 0.1 * jax.random.normal(next(it), (c,), jnp.float32)
        var = 1.0 + 0.1 * jnp.abs(jax.random.normal(next(it), (c,), jnp.float32))
        scale = gamma / jnp.sqrt(var + EPS)
        return scale, beta - mean * scale

    cp = _round_up(out_channel, 128)                  # lane-dense output channels

    def prep3x3(wt4, scale, bias, cin_pad):
        cout, cin = wt4.shape[0], wt4.shape[1]
        wt = jnp.transpose(wt4, (2, 3, 1, 0)).reshape(9, cin, cout)   # tap = dy*3+dx
        wt = wt * scale.reshape(1, 1, cout)
        wt = jnp.pad(wt, ((0, 0), (0, cin_pad - cin), (0, cp - cout)))
        b = jnp.pad(bias, (0, cp - cout)).reshape(1, cp)
        return wt.astype(jnp.bfloat16), b.astype(jnp.float32)

    w1 = conv_w(out_channel, in_channel, 3); s1, b1 = bn(out_channel)
    w2 = conv_w(out_channel, out_channel, 3); s2, b2 = bn(out_channel)
    ws = conv_w(out_channel, in_channel, 1); ss, bs = bn(out_channel)

    p = {}
    w1t, p['b1'] = prep3x3(w1, s1, b1, in_channel)
    p['w1l'], p['w1h'] = w1t[:, :c_low, :], w1t[:, c_low:, :]
    p['w2'], p['b2'] = prep3x3(w2, s2, b2, cp)        # consumes channel-padded mid
    wst = ws[:, :, 0, 0].T * ss.reshape(1, out_channel)
    wst = jnp.pad(wst, ((0, 0), (0, cp - out_channel))).astype(jnp.bfloat16)
    p['wsl'], p['wsh'] = wst[:c_low, :], wst[c_low:, :]
    p['bs'] = jnp.pad(bs, (0, cp - out_channel)).reshape(1, cp).astype(jnp.float32)
    return p


# ----------------------------- pure-JAX reference ---------------------------
# Mirrors the kernel's bf16 rounding points exactly (inputs, interpolation
# matrix, upsample result, conv1 output) so a tight tolerance is meaningful.

def _reference_forward(x_high, x_low, params, out_channel):
    f32 = jnp.float32
    hi = jax.lax.Precision.HIGHEST
    xh = jnp.transpose(x_high, (0, 2, 3, 1)).astype(jnp.bfloat16).astype(f32)
    xl = jnp.transpose(x_low, (0, 2, 3, 1)).astype(jnp.bfloat16).astype(f32)
    N, h, w, Cl = xl.shape
    H, W = xh.shape[1], xh.shape[2]
    A = jnp.kron(_bilinear_matrix(H, h), _bilinear_matrix(W, w))
    A = A.astype(jnp.bfloat16).astype(f32)
    up = jnp.einsum('pq,nqc->npc', A, xl.reshape(N, h * w, Cl), precision=hi)
    up = up.astype(jnp.bfloat16).astype(f32).reshape(N, H, W, Cl)
    x = jnp.concatenate([up, xh], axis=-1)

    def conv(xin, w_taps, k):
        cin = w_taps.shape[1]
        w_hwio = w_taps.astype(f32).reshape(k, k, cin, w_taps.shape[-1])
        pad = (k - 1) // 2
        return jax.lax.conv_general_dilated(
            xin, w_hwio, (1, 1), ((pad, pad), (pad, pad)),
            dimension_numbers=('NHWC', 'HWIO', 'NHWC'), precision=hi)

    w1 = jnp.concatenate([params['w1l'], params['w1h']], axis=1)
    ws = jnp.concatenate([params['wsl'], params['wsh']], axis=0)[None]   # (1,Cin,Cp)

    o1 = jax.nn.relu(conv(x, w1, 3) + params['b1'].reshape(1, 1, 1, -1))
    o1 = o1.astype(jnp.bfloat16).astype(f32)          # mirror bf16 MXU input staging
    o2 = conv(o1, params['w2'], 3) + params['b2'].reshape(1, 1, 1, -1)
    rs = conv(x, ws, 1) + params['bs'].reshape(1, 1, 1, -1)
    y = jax.nn.relu(o2 + rs)[..., :out_channel]
    return jnp.transpose(y, (0, 3, 1, 2))


# ----------------------------- main ------------------------------------------

if __name__ == "__main__":
    key = jax.random.PRNGKey(0)
    kp, kh, kl = jax.random.split(key, 3)

    # small shapes consistent with a CFF unit:
    #   x_high: (N, 64, 16, 16)   x_low: (N, 64, 8, 8)
    #   in_channel = 128 (concat), out_channel = 64
    N, c_high, c_low = 2, 64, 64
    H = W = 16
    h = w = 8
    out_channel = 64

    params = init_params(kp, c_low, c_high, out_channel)
    x_high = jax.random.normal(kh, (N, c_high, H, W), jnp.float32)
    x_low = jax.random.normal(kl, (N, c_low, h, w), jnp.float32)

    fwd = jax.jit(lambda a, b: feature_fusion_forward(a, b, params, out_channel))
    y = fwd(x_high, x_low)
    jax.block_until_ready(y)

    assert y.shape == (N, out_channel, H, W), y.shape
    assert bool(jnp.all(jnp.isfinite(y)))

    y_ref = _reference_forward(x_high, x_low, params, out_channel)
    err = float(jnp.max(jnp.abs(y - y_ref)))
    assert err < 5e-3, f"max abs err vs reference: {err}"

    print("KERNEL_OK")
</pallas_src>

<mosaic_0001>
module attributes {stable_mosaic.version = 11 : i64} {
  func.func @_fused_cff_kernel(%arg0: i32, %arg1: memref<336x64xbf16, #tpu.memory_space<vmem>>, %arg2: memref<1x64x64xbf16, #tpu.memory_space<vmem>>, %arg3: memref<1x336x64xf32, #tpu.memory_space<vmem>>, %arg4: memref<9x64x128xbf16, #tpu.memory_space<vmem>>, %arg5: memref<9x64x128xbf16, #tpu.memory_space<vmem>>, %arg6: memref<1x128xf32, #tpu.memory_space<vmem>>, %arg7: memref<9x128x128xbf16, #tpu.memory_space<vmem>>, %arg8: memref<64x128xbf16, #tpu.memory_space<vmem>>, %arg9: memref<64x128xbf16, #tpu.memory_space<vmem>>, %arg10: memref<1x128xf32, #tpu.memory_space<vmem>>, %arg11: memref<1x288x128xf32, #tpu.memory_space<vmem>>, %arg12: memref<336x64xf32, #tpu.memory_space<vmem>>, %arg13: memref<336x128xf32, #tpu.memory_space<vmem>>, %arg14: memref<288x128xf32, #tpu.memory_space<vmem>>) attributes {dimension_semantics = [#tpu.dimension_semantics<parallel>], iteration_bounds = array<i64: 2>, scalar_prefetch = 0 : i64, scratch_operands = 3 : i64, tpu.core_type = #tpu.core_type<tc>, window_params = [{pipeline_mode = #tpu.pipeline_mode<synchronous>, transform_indices = @transform_0, window_bounds = array<i64: 336, 64>}, {transform_indices = @transform_1, window_bounds = array<i64: 1, 64, 64>}, {transform_indices = @transform_2, window_bounds = array<i64: 1, 336, 64>}, {pipeline_mode = #tpu.pipeline_mode<synchronous>, transform_indices = @transform_3, window_bounds = array<i64: 9, 64, 128>}, {pipeline_mode = #tpu.pipeline_mode<synchronous>, transform_indices = @transform_4, window_bounds = array<i64: 9, 64, 128>}, {pipeline_mode = #tpu.pipeline_mode<synchronous>, transform_indices = @transform_5, window_bounds = array<i64: 1, 128>}, {pipeline_mode = #tpu.pipeline_mode<synchronous>, transform_indices = @transform_6, window_bounds = array<i64: 9, 128, 128>}, {pipeline_mode = #tpu.pipeline_mode<synchronous>, transform_indices = @transform_7, window_bounds = array<i64: 64, 128>}, {pipeline_mode = #tpu.pipeline_mode<synchronous>, transform_indices = @transform_8, window_bounds = array<i64: 64, 128>}, {pipeline_mode = #tpu.pipeline_mode<synchronous>, transform_indices = @transform_9, window_bounds = array<i64: 1, 128>}, {transform_indices = @transform_10, window_bounds = array<i64: 1, 288, 128>}]} {
    %c0 = arith.constant 0 : index
    %c0_0 = arith.constant 0 : index
    %0 = vector.load %arg1[%c0, %c0_0] : memref<336x64xbf16, #tpu.memory_space<vmem>>, vector<336x64xbf16>
    %c0_1 = arith.constant 0 : index
    %c0_2 = arith.constant 0 : index
    %c0_3 = arith.constant 0 : index
    %1 = vector.load %arg2[%c0_1, %c0_2, %c0_3] : memref<1x64x64xbf16, #tpu.memory_space<vmem>>, vector<1x64x64xbf16>
    %2 = vector.shape_cast %1 : vector<1x64x64xbf16> to vector<64x64xbf16>
    %cst = arith.constant dense<0.000000e+00> : vector<336x64xf32>
    %3 = tpu.matmul %0, %2, %cst {dimension_numbers = #tpu.dot_dimension_numbers<[1], [0], [0], [1], [0, 0, 1, 1], [], []>} : vector<336x64xbf16>, vector<64x64xbf16>, vector<336x64xf32> -> vector<336x64xf32>
    %c0_4 = arith.constant 0 : index
    %c0_5 = arith.constant 0 : index
    %4 = vector.load %arg12[%c0_4, %c0_5] : memref<336x64xf32, #tpu.memory_space<vmem>>, vector<336x64xf32>
    tpu.vector_store %arg12[%c0_4, %c0_5], %3 {strides = array<i32>} : memref<336x64xf32, #tpu.memory_space<vmem>>, vector<336x64xf32>,
    %c0_6 = arith.constant 0 : index
    %c0_7 = arith.constant 0 : index
    %5 = vector.load %arg12[%c0_6, %c0_7] : memref<336x64xf32, #tpu.memory_space<vmem>>, vector<288x64xf32>
    %6 = arith.truncf %5 : vector<288x64xf32> to vector<288x64xbf16>
    %c0_8 = arith.constant 0 : index
    %c0_9 = arith.constant 0 : index
    %c0_10 = arith.constant 0 : index
    %7 = vector.load %arg4[%c0_8, %c0_9, %c0_10] : memref<9x64x128xbf16, #tpu.memory_space<vmem>>, vector<1x64x128xbf16>
    %8 = vector.shape_cast %7 : vector<1x64x128xbf16> to vector<64x128xbf16>
    %cst_11 = arith.constant dense<0.000000e+00> : vector<288x128xf32>
    %9 = tpu.matmul %6, %8, %cst_11 {dimension_numbers = #tpu.dot_dimension_numbers<[1], [0], [0], [1], [0, 0, 1, 1], [], []>} : vector<288x64xbf16>, vector<64x128xbf16>, vector<288x128xf32> -> vector<288x128xf32>
    %c0_12 = arith.constant 0 : index
    %c0_13 = arith.constant 0 : index
    %c0_14 = arith.constant 0 : index
    %10 = vector.load %arg3[%c0_12, %c0_13, %c0_14] : memref<1x336x64xf32, #tpu.memory_space<vmem>>, vector<1x288x64xf32>
    %11 = vector.shape_cast %10 : vector<1x288x64xf32> to vector<288x64xf32>
    %12 = arith.truncf %11 : vector<288x64xf32> to vector<288x64xbf16>
    %c0_15 = arith.constant 0 : index
    %c0_16 = arith.constant 0 : index
    %c0_17 = arith.constant 0 : index
    %13 = vector.load %arg5[%c0_15, %c0_16, %c0_17] : memref<9x64x128xbf16, #tpu.memory_space<vmem>>, vector<1x64x128xbf16>
    %14 = vector.shape_cast %13 : vector<1x64x128xbf16> to vector<64x128xbf16>
    %cst_18 = arith.constant dense<0.000000e+00> : vector<288x128xf32>
    %15 = tpu.matmul %12, %14, %cst_18 {dimension_numbers = #tpu.dot_dimension_numbers<[1], [0], [0], [1], [0, 0, 1, 1], [], []>} : vector<288x64xbf16>, vector<64x128xbf16>, vector<288x128xf32> -> vector<288x128xf32>
    %16 = arith.addf %9, %15 : vector<288x128xf32>
    %c0_19 = arith.constant 0 : index
    %c0_20 = arith.constant 0 : index
    %17 = vector.load %arg14[%c0_19, %c0_20] : memref<288x128xf32, #tpu.memory_space<vmem>>, vector<288x128xf32>
    tpu.vector_store %arg14[%c0_19, %c0_20], %16 {strides = array<i32>} : memref<288x128xf32, #tpu.memory_space<vmem>>, vector<288x128xf32>,
    %c1 = arith.constant 1 : index
    %c0_21 = arith.constant 0 : index
    %18 = vector.load %arg12[%c1, %c0_21] : memref<336x64xf32, #tpu.memory_space<vmem>>, vector<288x64xf32>
    %19 = arith.truncf %18 : vector<288x64xf32> to vector<288x64xbf16>
    %c1_22 = arith.constant 1 : index
    %c0_23 = arith.constant 0 : index
    %c0_24 = arith.constant 0 : index
    %20 = vector.load %arg4[%c1_22, %c0_23, %c0_24] : memref<9x64x128xbf16, #tpu.memory_space<vmem>>, vector<1x64x128xbf16>
    %21 = vector.shape_cast %20 : vector<1x64x128xbf16> to vector<64x128xbf16>
    %cst_25 = arith.constant dense<0.000000e+00> : vector<288x128xf32>
    %22 = tpu.matmul %19, %21, %cst_25 {dimension_numbers = #tpu.dot_dimension_numbers<[1], [0], [0], [1], [0, 0, 1, 1], [], []>} : vector<288x64xbf16>, vector<64x128xbf16>, vector<288x128xf32> -> vector<288x128xf32>
    %c0_26 = arith.constant 0 : index
    %c1_27 = arith.constant 1 : index
    %c0_28 = arith.constant 0 : index
    %23 = vector.load %arg3[%c0_26, %c1_27, %c0_28] : memref<1x336x64xf32, #tpu.memory_space<vmem>>, vector<1x288x64xf32>
    %24 = vector.shape_cast %23 : vector<1x288x64xf32> to vector<288x64xf32>
    %25 = arith.truncf %24 : vector<288x64xf32> to vector<288x64xbf16>
    %c1_29 = arith.constant 1 : index
    %c0_30 = arith.constant 0 : index
    %c0_31 = arith.constant 0 : index
    %26 = vector.load %arg5[%c1_29, %c0_30, %c0_31] : memref<9x64x128xbf16, #tpu.memory_space<vmem>>, vector<1x64x128xbf16>
    %27 = vector.shape_cast %26 : vector<1x64x128xbf16> to vector<64x128xbf16>
    %cst_32 = arith.constant dense<0.000000e+00> : vector<288x128xf32>
    %28 = tpu.matmul %25, %27, %cst_32 {dimension_numbers = #tpu.dot_dimension_numbers<[1], [0], [0], [1], [0, 0, 1, 1], [], []>} : vector<288x64xbf16>, vector<64x128xbf16>, vector<288x128xf32> -> vector<288x128xf32>
    %29 = arith.addf %22, %28 : vector<288x128xf32>
    %c0_33 = arith.constant 0 : index
    %c0_34 = arith.constant 0 : index
    %30 = vector.load %arg14[%c0_33, %c0_34] : memref<288x128xf32, #tpu.memory_space<vmem>>, vector<288x128xf32>
    %31 = arith.addf %30, %29 : vector<288x128xf32>
    %c0_35 = arith.constant 0 : index
    %c0_36 = arith.constant 0 : index
    %32 = vector.load %arg14[%c0_35, %c0_36] : memref<288x128xf32, #tpu.memory_space<vmem>>, vector<288x128xf32>
    tpu.vector_store %arg14[%c0_35, %c0_36], %31 {strides = array<i32>} : memref<288x128xf32, #tpu.memory_space<vmem>>, vector<288x128xf32>,
    %c2 = arith.constant 2 : index
    %c0_37 = arith.constant 0 : index
    %33 = vector.load %arg12[%c2, %c0_37] : memref<336x64xf32, #tpu.memory_space<vmem>>, vector<288x64xf32>
    %34 = arith.truncf %33 : vector<288x64xf32> to vector<288x64xbf16>
    %c2_38 = arith.constant 2 : index
    %c0_39 = arith.constant 0 : index
    %c0_40 = arith.constant 0 : index
    %35 = vector.load %arg4[%c2_38, %c0_39, %c0_40] : memref<9x64x128xbf16, #tpu.memory_space<vmem>>, vector<1x64x128xbf16>
    %36 = vector.shape_cast %35 : vector<1x64x128xbf16> to vector<64x128xbf16>
    %cst_41 = arith.constant dense<0.000000e+00> : vector<288x128xf32>
    %37 = tpu.matmul %34, %36, %cst_41 {dimension_numbers = #tpu.dot_dimension_numbers<[1], [0], [0], [1], [0, 0, 1, 1], [], []>} : vector<288x64xbf16>, vector<64x128xbf16>, vector<288x128xf32> -> vector<288x128xf32>
    %c0_42 = arith.constant 0 : index
    %c2_43 = arith.constant 2 : index
    %c0_44 = arith.constant 0 : index
    %38 = vector.load %arg3[%c0_42, %c2_43, %c0_44] : memref<1x336x64xf32, #tpu.memory_space<vmem>>, vector<1x288x64xf32>
    %39 = vector.shape_cast %38 : vector<1x288x64xf32> to vector<288x64xf32>
    %40 = arith.truncf %39 : vector<288x64xf32> to vector<288x64xbf16>
    %c2_45 = arith.constant 2 : index
    %c0_46 = arith.constant 0 : index
    %c0_47 = arith.constant 0 : index
    %41 = vector.load %arg5[%c2_45, %c0_46, %c0_47] : memref<9x64x128xbf16, #tpu.memory_space<vmem>>, vector<1x64x128xbf16>
    %42 = vector.shape_cast %41 : vector<1x64x128xbf16> to vector<64x128xbf16>
    %cst_48 = arith.constant dense<0.000000e+00> : vector<288x128xf32>
    %43 = tpu.matmul %40, %42, %cst_48 {dimension_numbers = #tpu.dot_dimension_numbers<[1], [0], [0], [1], [0, 0, 1, 1], [], []>} : vector<288x64xbf16>, vector<64x128xbf16>, vector<288x128xf32> -> vector<288x128xf32>
    %44 = arith.addf %37, %43 : vector<288x128xf32>
    %c0_49 = arith.constant 0 : index
    %c0_50 = arith.constant 0 : index
    %45 = vector.load %arg14[%c0_49, %c0_50] : memref<288x128xf32, #tpu.memory_space<vmem>>, vector<288x128xf32>
    %46 = arith.addf %45, %44 : vector<288x128xf32>
    %c0_51 = arith.constant 0 : index
    %c0_52 = arith.constant 0 : index
    %47 = vector.load %arg14[%c0_51, %c0_52] : memref<288x128xf32, #tpu.memory_space<vmem>>, vector<288x128xf32>
    tpu.vector_store %arg14[%c0_51, %c0_52], %46 {strides = array<i32>} : memref<288x128xf32, #tpu.memory_space<vmem>>, vector<288x128xf32>,
    %c18 = arith.constant 18 : index
    %c0_53 = arith.constant 0 : index
    %48 = vector.load %arg12[%c18, %c0_53] : memref<336x64xf32, #tpu.memory_space<vmem>>, vector<288x64xf32>
    %49 = arith.truncf %48 : vector<288x64xf32> to vector<288x64xbf16>
    %c3 = arith.constant 3 : index
    %c0_54 = arith.constant 0 : index
    %c0_55 = arith.constant 0 : index
    %50 = vector.load %arg4[%c3, %c0_54, %c0_55] : memref<9x64x128xbf16, #tpu.memory_space<vmem>>, vector<1x64x128xbf16>
    %51 = vector.shape_cast %50 : vector<1x64x128xbf16> to vector<64x128xbf16>
    %cst_56 = arith.constant dense<0.000000e+00> : vector<288x128xf32>
    %52 = tpu.matmul %49, %51, %cst_56 {dimension_numbers = #tpu.dot_dimension_numbers<[1], [0], [0], [1], [0, 0, 1, 1], [], []>} : vector<288x64xbf16>, vector<64x128xbf16>, vector<288x128xf32> -> vector<288x128xf32>
    %c0_57 = arith.constant 0 : index
    %c18_58 = arith.constant 18 : index
    %c0_59 = arith.constant 0 : index
    %53 = vector.load %arg3[%c0_57, %c18_58, %c0_59] : memref<1x336x64xf32, #tpu.memory_space<vmem>>, vector<1x288x64xf32>
    %54 = vector.shape_cast %53 : vector<1x288x64xf32> to vector<288x64xf32>
    %55 = arith.truncf %54 : vector<288x64xf32> to vector<288x64xbf16>
    %c3_60 = arith.constant 3 : index
    %c0_61 = arith.constant 0 : index
    %c0_62 = arith.constant 0 : index
    %56 = vector.load %arg5[%c3_60, %c0_61, %c0_62] : memref<9x64x128xbf16, #tpu.memory_space<vmem>>, vector<1x64x128xbf16>
    %57 = vector.shape_cast %56 : vector<1x64x128xbf16> to vector<64x128xbf16>
    %cst_63 = arith.constant dense<0.000000e+00> : vector<288x128xf32>
    %58 = tpu.matmul %55, %57, %cst_63 {dimension_numbers = #tpu.dot_dimension_numbers<[1], [0], [0], [1], [0, 0, 1, 1], [], []>} : vector<288x64xbf16>, vector<64x128xbf16>, vector<288x128xf32> -> vector<288x128xf32>
    %59 = arith.addf %52, %58 : vector<288x128xf32>
    %c0_64 = arith.constant 0 : index
    %c0_65 = arith.constant 0 : index
    %60 = vector.load %arg14[%c0_64, %c0_65] : memref<288x128xf32, #tpu.memory_space<vmem>>, vector<288x128xf32>
    %61 = arith.addf %60, %59 : vector<288x128xf32>
    %c0_66 = arith.constant 0 : index
    %c0_67 = arith.constant 0 : index
    %62 = vector.load %arg14[%c0_66, %c0_67] : memref<288x128xf32, #tpu.memory_space<vmem>>, vector<288x128xf32>
    tpu.vector_store %arg14[%c0_66, %c0_67], %61 {strides = array<i32>} : memref<288x128xf32, #tpu.memory_space<vmem>>, vector<288x128xf32>,
    %c19 = arith.constant 19 : index
    %c0_68 = arith.constant 0 : index
    %63 = vector.load %arg12[%c19, %c0_68] : memref<336x64xf32, #tpu.memory_space<vmem>>, vector<288x64xf32>
    %64 = arith.truncf %63 : vector<288x64xf32> to vector<288x64xbf16>
    %c4 = arith.constant 4 : index
    %c0_69 = arith.constant 0 : index
    %c0_70 = arith.constant 0 : index
    %65 = vector.load %arg4[%c4, %c0_69, %c0_70] : memref<9x64x128xbf16, #tpu.memory_space<vmem>>, vector<1x64x128xbf16>
    %66 = vector.shape_cast %65 : vector<1x64x128xbf16> to vector<64x128xbf16>
    %cst_71 = arith.constant dense<0.000000e+00> : vector<288x128xf32>
    %67 = tpu.matmul %64, %66, %cst_71 {dimension_numbers = #tpu.dot_dimension_numbers<[1], [0], [0], [1], [0, 0, 1, 1], [], []>} : vector<288x64xbf16>, vector<64x128xbf16>, vector<288x128xf32> -> vector<288x128xf32>
    %c0_72 = arith.constant 0 : index
    %c19_73 = arith.constant 19 : index
    %c0_74 = arith.constant 0 : index
    %68 = vector.load %arg3[%c0_72, %c19_73, %c0_74] : memref<1x336x64xf32, #tpu.memory_space<vmem>>, vector<1x288x64xf32>
    %69 = vector.shape_cast %68 : vector<1x288x64xf32> to vector<288x64xf32>
    %70 = arith.truncf %69 : vector<288x64xf32> to vector<288x64xbf16>
    %c4_75 = arith.constant 4 : index
    %c0_76 = arith.constant 0 : index
    %c0_77 = arith.constant 0 : index
    %71 = vector.load %arg5[%c4_75, %c0_76, %c0_77] : memref<9x64x128xbf16, #tpu.memory_space<vmem>>, vector<1x64x128xbf16>
    %72 = vector.shape_cast %71 : vector<1x64x128xbf16> to vector<64x128xbf16>
    %cst_78 = arith.constant dense<0.000000e+00> : vector<288x128xf32>
    %73 = tpu.matmul %70, %72, %cst_78 {dimension_numbers = #tpu.dot_dimension_numbers<[1], [0], [0], [1], [0, 0, 1, 1], [], []>} : vector<288x64xbf16>, vector<64x128xbf16>, vector<288x128xf32> -> vector<288x128xf32>
    %74 = arith.addf %67, %73 : vector<288x128xf32>
    %c0_79 = arith.constant 0 : index
    %c0_80 = arith.constant 0 : index
    %75 = vector.load %arg14[%c0_79, %c0_80] : memref<288x128xf32, #tpu.memory_space<vmem>>, vector<288x128xf32>
    %76 = arith.addf %75, %74 : vector<288x128xf32>
    %c0_81 = arith.constant 0 : index
    %c0_82 = arith.constant 0 : index
    %77 = vector.load %arg14[%c0_81, %c0_82] : memref<288x128xf32, #tpu.memory_space<vmem>>, vector<288x128xf32>
    tpu.vector_store %arg14[%c0_81, %c0_82], %76 {strides = array<i32>} : memref<288x128xf32, #tpu.memory_space<vmem>>, vector<288x128xf32>,
    %c20 = arith.constant 20 : index
    %c0_83 = arith.constant 0 : index
    %78 = vector.load %arg12[%c20, %c0_83] : memref<336x64xf32, #tpu.memory_space<vmem>>, vector<288x64xf32>
    %79 = arith.truncf %78 : vector<288x64xf32> to vector<288x64xbf16>
    %c5 = arith.constant 5 : index
    %c0_84 = arith.constant 0 : index
    %c0_85 = arith.constant 0 : index
    %80 = vector.load %arg4[%c5, %c0_84, %c0_85] : memref<9x64x128xbf16, #tpu.memory_space<vmem>>, vector<1x64x128xbf16>
    %81 = vector.shape_cast %80 : vector<1x64x128xbf16> to vector<64x128xbf16>
    %cst_86 = arith.constant dense<0.000000e+00> : vector<288x128xf32>
    %82 = tpu.matmul %79, %81, %cst_86 {dimension_numbers = #tpu.dot_dimension_numbers<[1], [0], [0], [1], [0, 0, 1, 1], [], []>} : vector<288x64xbf16>, vector<64x128xbf16>, vector<288x128xf32> -> vector<288x128xf32>
    %c0_87 = arith.constant 0 : index
    %c20_88 = arith.constant 20 : index
    %c0_89 = arith.constant 0 : index
    %83 = vector.load %arg3[%c0_87, %c20_88, %c0_89] : memref<1x336x64xf32, #tpu.memory_space<vmem>>, vector<1x288x64xf32>
    %84 = vector.shape_cast %83 : vector<1x288x64xf32> to vector<288x64xf32>
    %85 = arith.truncf %84 : vector<288x64xf32> to vector<288x64xbf16>
    %c5_90 = arith.constant 5 : index
    %c0_91 = arith.constant 0 : index
    %c0_92 = arith.constant 0 : index
    %86 = vector.load %arg5[%c5_90, %c0_91, %c0_92] : memref<9x64x128xbf16, #tpu.memory_space<vmem>>, vector<1x64x128xbf16>
    %87 = vector.shape_cast %86 : vector<1x64x128xbf16> to vector<64x128xbf16>
    %cst_93 = arith.constant dense<0.000000e+00> : vector<288x128xf32>
    %88 = tpu.matmul %85, %87, %cst_93 {dimension_numbers = #tpu.dot_dimension_numbers<[1], [0], [0], [1], [0, 0, 1, 1], [], []>} : vector<288x64xbf16>, vector<64x128xbf16>, vector<288x128xf32> -> vector<288x128xf32>
    %89 = arith.addf %82, %88 : vector<288x128xf32>
    %c0_94 = arith.constant 0 : index
    %c0_95 = arith.constant 0 : index
    %90 = vector.load %arg14[%c0_94, %c0_95] : memref<288x128xf32, #tpu.memory_space<vmem>>, vector<288x128xf32>
    %91 = arith.addf %90, %89 : vector<288x128xf32>
    %c0_96 = arith.constant 0 : index
    %c0_97 = arith.constant 0 : index
    %92 = vector.load %arg14[%c0_96, %c0_97] : memref<288x128xf32, #tpu.memory_space<vmem>>, vector<288x128xf32>
    tpu.vector_store %arg14[%c0_96, %c0_97], %91 {strides = array<i32>} : memref<288x128xf32, #tpu.memory_space<vmem>>, vector<288x128xf32>,
    %c36 = arith.constant 36 : index
    %c0_98 = arith.constant 0 : index
    %93 = vector.load %arg12[%c36, %c0_98] : memref<336x64xf32, #tpu.memory_space<vmem>>, vector<288x64xf32>
    %94 = arith.truncf %93 : vector<288x64xf32> to vector<288x64xbf16>
    %c6 = arith.constant 6 : index
    %c0_99 = arith.constant 0 : index
    %c0_100 = arith.constant 0 : index
    %95 = vector.load %arg4[%c6, %c0_99, %c0_100] : memref<9x64x128xbf16, #tpu.memory_space<vmem>>, vector<1x64x128xbf16>
    %96 = vector.shape_cast %95 : vector<1x64x128xbf16> to vector<64x128xbf16>
    %cst_101 = arith.constant dense<0.000000e+00> : vector<288x128xf32>
    %97 = tpu.matmul %94, %96, %cst_101 {dimension_numbers = #tpu.dot_dimension_numbers<[1], [0], [0], [1], [0, 0, 1, 1], [], []>} : vector<288x64xbf16>, vector<64x128xbf16>, vector<288x128xf32> -> vector<288x128xf32>
    %c0_102 = arith.constant 0 : index
    %c36_103 = arith.constant 36 : index
    %c0_104 = arith.constant 0 : index
    %98 = vector.load %arg3[%c0_102, %c36_103, %c0_104] : memref<1x336x64xf32, #tpu.memory_space<vmem>>, vector<1x288x64xf32>
    %99 = vector.shape_cast %98 : vector<1x288x64xf32> to vector<288x64xf32>
    %100 = arith.truncf %99 : vector<288x64xf32> to vector<288x64xbf16>
    %c6_105 = arith.constant 6 : index
    %c0_106 = arith.constant 0 : index
    %c0_107 = arith.constant 0 : index
    %101 = vector.load %arg5[%c6_105, %c0_106, %c0_107] : memref<9x64x128xbf16, #tpu.memory_space<vmem>>, vector<1x64x128xbf16>
    %102 = vector.shape_cast %101 : vector<1x64x128xbf16> to vector<64x128xbf16>
    %cst_108 = arith.constant dense<0.000000e+00> : vector<288x128xf32>
    %103 = tpu.matmul %100, %102, %cst_108 {dimension_numbers = #tpu.dot_dimension_numbers<[1], [0], [0], [1], [0, 0, 1, 1], [], []>} : vector<288x64xbf16>, vector<64x128xbf16>, vector<288x128xf32> -> vector<288x128xf32>
    %104 = arith.addf %97, %103 : vector<288x128xf32>
    %c0_109 = arith.constant 0 : index
    %c0_110 = arith.constant 0 : index
    %105 = vector.load %arg14[%c0_109, %c0_110] : memref<288x128xf32, #tpu.memory_space<vmem>>, vector<288x128xf32>
    %106 = arith.addf %105, %104 : vector<288x128xf32>
    %c0_111 = arith.constant 0 : index
    %c0_112 = arith.constant 0 : index
    %107 = vector.load %arg14[%c0_111, %c0_112] : memref<288x128xf32, #tpu.memory_space<vmem>>, vector<288x128xf32>
    tpu.vector_store %arg14[%c0_111, %c0_112], %106 {strides = array<i32>} : memref<288x128xf32, #tpu.memory_space<vmem>>, vector<288x128xf32>,
    %c37 = arith.constant 37 : index
    %c0_113 = arith.constant 0 : index
    %108 = vector.load %arg12[%c37, %c0_113] : memref<336x64xf32, #tpu.memory_space<vmem>>, vector<288x64xf32>
    %109 = arith.truncf %108 : vector<288x64xf32> to vector<288x64xbf16>
    %c7 = arith.constant 7 : index
    %c0_114 = arith.constant 0 : index
    %c0_115 = arith.constant 0 : index
    %110 = vector.load %arg4[%c7, %c0_114, %c0_115] : memref<9x64x128xbf16, #tpu.memory_space<vmem>>, vector<1x64x128xbf16>
    %111 = vector.shape_cast %110 : vector<1x64x128xbf16> to vector<64x128xbf16>
    %cst_116 = arith.constant dense<0.000000e+00> : vector<288x128xf32>
    %112 = tpu.matmul %109, %111, %cst_116 {dimension_numbers = #tpu.dot_dimension_numbers<[1], [0], [0], [1], [0, 0, 1, 1], [], []>} : vector<288x64xbf16>, vector<64x128xbf16>, vector<288x128xf32> -> vector<288x128xf32>
    %c0_117 = arith.constant 0 : index
    %c37_118 = arith.constant 37 : index
    %c0_119 = arith.constant 0 : index
    %113 = vector.load %arg3[%c0_117, %c37_118, %c0_119] : memref<1x336x64xf32, #tpu.memory_space<vmem>>, vector<1x288x64xf32>
    %114 = vector.shape_cast %113 : vector<1x288x64xf32> to vector<288x64xf32>
    %115 = arith.truncf %114 : vector<288x64xf32> to vector<288x64xbf16>
    %c7_120 = arith.constant 7 : index
    %c0_121 = arith.constant 0 : index
    %c0_122 = arith.constant 0 : index
    %116 = vector.load %arg5[%c7_120, %c0_121, %c0_122] : memref<9x64x128xbf16, #tpu.memory_space<vmem>>, vector<1x64x128xbf16>
    %117 = vector.shape_cast %116 : vector<1x64x128xbf16> to vector<64x128xbf16>
    %cst_123 = arith.constant dense<0.000000e+00> : vector<288x128xf32>
    %118 = tpu.matmul %115, %117, %cst_123 {dimension_numbers = #tpu.dot_dimension_numbers<[1], [0], [0], [1], [0, 0, 1, 1], [], []>} : vector<288x64xbf16>, vector<64x128xbf16>, vector<288x128xf32> -> vector<288x128xf32>
    %119 = arith.addf %112, %118 : vector<288x128xf32>
    %c0_124 = arith.constant 0 : index
    %c0_125 = arith.constant 0 : index
    %120 = vector.load %arg14[%c0_124, %c0_125] : memref<288x128xf32, #tpu.memory_space<vmem>>, vector<288x128xf32>
    %121 = arith.addf %120, %119 : vector<288x128xf32>
    %c0_126 = arith.constant 0 : index
    %c0_127 = arith.constant 0 : index
    %122 = vector.load %arg14[%c0_126, %c0_127] : memref<288x128xf32, #tpu.memory_space<vmem>>, vector<288x128xf32>
    tpu.vector_store %arg14[%c0_126, %c0_127], %121 {strides = array<i32>} : memref<288x128xf32, #tpu.memory_space<vmem>>, vector<288x128xf32>,
    %c38 = arith.constant 38 : index
    %c0_128 = arith.constant 0 : index
    %123 = vector.load %arg12[%c38, %c0_128] : memref<336x64xf32, #tpu.memory_space<vmem>>, vector<288x64xf32>
    %124 = arith.truncf %123 : vector<288x64xf32> to vector<288x64xbf16>
    %c8 = arith.constant 8 : index
    %c0_129 = arith.constant 0 : index
    %c0_130 = arith.constant 0 : index
    %125 = vector.load %arg4[%c8, %c0_129, %c0_130] : memref<9x64x128xbf16, #tpu.memory_space<vmem>>, vector<1x64x128xbf16>
    %126 = vector.shape_cast %125 : vector<1x64x128xbf16> to vector<64x128xbf16>
    %cst_131 = arith.constant dense<0.000000e+00> : vector<288x128xf32>
    %127 = tpu.matmul %124, %126, %cst_131 {dimension_numbers = #tpu.dot_dimension_numbers<[1], [0], [0], [1], [0, 0, 1, 1], [], []>} : vector<288x64xbf16>, vector<64x128xbf16>, vector<288x128xf32> -> vector<288x128xf32>
    %c0_132 = arith.constant 0 : index
    %c38_133 = arith.constant 38 : index
    %c0_134 = arith.constant 0 : index
    %128 = vector.load %arg3[%c0_132, %c38_133, %c0_134] : memref<1x336x64xf32, #tpu.memory_space<vmem>>, vector<1x288x64xf32>
    %129 = vector.shape_cast %128 : vector<1x288x64xf32> to vector<288x64xf32>
    %130 = arith.truncf %129 : vector<288x64xf32> to vector<288x64xbf16>
    %c8_135 = arith.constant 8 : index
    %c0_136 = arith.constant 0 : index
    %c0_137 = arith.constant 0 : index
    %131 = vector.load %arg5[%c8_135, %c0_136, %c0_137] : memref<9x64x128xbf16, #tpu.memory_space<vmem>>, vector<1x64x128xbf16>
    %132 = vector.shape_cast %131 : vector<1x64x128xbf16> to vector<64x128xbf16>
    %cst_138 = arith.constant dense<0.000000e+00> : vector<288x128xf32>
    %133 = tpu.matmul %130, %132, %cst_138 {dimension_numbers = #tpu.dot_dimension_numbers<[1], [0], [0], [1], [0, 0, 1, 1], [], []>} : vector<288x64xbf16>, vector<64x128xbf16>, vector<288x128xf32> -> vector<288x128xf32>
    %134 = arith.addf %127, %133 : vector<288x128xf32>
    %c0_139 = arith.constant 0 : index
    %c0_140 = arith.constant 0 : index
    %135 = vector.load %arg14[%c0_139, %c0_140] : memref<288x128xf32, #tpu.memory_space<vmem>>, vector<288x128xf32>
    %136 = arith.addf %135, %134 : vector<288x128xf32>
    %c0_141 = arith.constant 0 : index
    %c0_142 = arith.constant 0 : index
    %137 = vector.load %arg14[%c0_141, %c0_142] : memref<288x128xf32, #tpu.memory_space<vmem>>, vector<288x128xf32>
    tpu.vector_store %arg14[%c0_141, %c0_142], %136 {strides = array<i32>} : memref<288x128xf32, #tpu.memory_space<vmem>>, vector<288x128xf32>,
    %c0_143 = arith.constant 0 : index
    %c0_144 = arith.constant 0 : index
    %138 = vector.load %arg14[%c0_143, %c0_144] : memref<288x128xf32, #tpu.memory_space<vmem>>, vector<288x128xf32>
    %c0_145 = arith.constant 0 : index
    %c0_146 = arith.constant 0 : index
    %139 = vector.load %arg6[%c0_145, %c0_146] : memref<1x128xf32, #tpu.memory_space<vmem>>, vector<1x128xf32>
    %140 = vector.broadcast %139 : vector<1x128xf32> to vector<288x128xf32>
    %141 = arith.addf %138, %140 : vector<288x128xf32>
    %cst_147 = arith.constant 0.000000e+00 : f32
    %142 = vector.broadcast %cst_147 : f32 to vector<288x128xf32>
    %143 = arith.maximumf %141, %142 : vector<288x128xf32>
    %144 = tpu.iota {dimensions = array<i32: 0>} : vector<288x128xi32>
    %c18_i32 = arith.constant 18 : i32
    %c0_i32 = arith.constant 0 : i32
    %145 = arith.cmpi eq, %c18_i32, %c0_i32 : i32
    %c1_i32 = arith.constant 1 : i32
    %146 = arith.select %145, %c1_i32, %c18_i32 : i32
    %147 = vector.broadcast %146 : i32 to vector<288x128xi32>
    %148 = arith.remsi %144, %147 : vector<288x128xi32>
    %c0_i32_148 = arith.constant 0 : i32
    %149 = vector.broadcast %c0_i32_148 : i32 to vector<288x128xi32>
    %150 = arith.cmpi ne, %148, %149 : vector<288x128xi32>
    %c0_i32_149 = arith.constant 0 : i32
    %151 = vector.broadcast %c0_i32_149 : i32 to vector<288x128xi32>
    %152 = arith.cmpi slt, %148, %151 : vector<288x128xi32>
    %c0_i32_150 = arith.constant 0 : i32
    %153 = arith.cmpi slt, %146, %c0_i32_150 : i32
    %154 = vector.broadcast %153 : i1 to vector<288x128xi1>
    %155 = vector.broadcast %154 : vector<288x128xi1> to vector<288x128xi1>
    %156 = arith.xori %152, %155 : vector<288x128xi1>
    %157 = arith.andi %156, %150 : vector<288x128xi1>
    %158 = vector.broadcast %146 : i32 to vector<288x128xi32>
    %159 = arith.addi %148, %158 : vector<288x128xi32>
    %160 = arith.select %157, %159, %148 : vector<288x128xi1>, vector<288x128xi32>
    %c16_i32 = arith.constant 16 : i32
    %161 = vector.broadcast %c16_i32 : i32 to vector<288x128xi32>
    %162 = arith.cmpi slt, %160, %161 : vector<288x128xi32>
    %cst_151 = arith.constant 0.000000e+00 : f32
    %163 = vector.broadcast %cst_151 : f32 to vector<288x128xf32>
    %164 = arith.select %162, %143, %163 : vector<288x128xi1>, vector<288x128xf32>
    %cst_152 = arith.constant 0.000000e+00 : f32
    %165 = vector.broadcast %cst_152 : f32 to vector<336x128xf32>
    %c0_153 = arith.constant 0 : index
    %c0_154 = arith.constant 0 : index
    %166 = vector.load %arg13[%c0_153, %c0_154] : memref<336x128xf32, #tpu.memory_space<vmem>>, vector<336x128xf32>
    tpu.vector_store %arg13[%c0_153, %c0_154], %165 {strides = array<i32>} : memref<336x128xf32, #tpu.memory_space<vmem>>, vector<336x128xf32>,
    %c19_155 = arith.constant 19 : index
    %c0_156 = arith.constant 0 : index
    %167 = vector.load %arg13[%c19_155, %c0_156] : memref<336x128xf32, #tpu.memory_space<vmem>>, vector<288x128xf32>
    tpu.vector_store %arg13[%c19_155, %c0_156], %164 {strides = array<i32>} : memref<336x128xf32, #tpu.memory_space<vmem>>, vector<288x128xf32>,
    %c19_157 = arith.constant 19 : index
    %c0_158 = arith.constant 0 : index
    %168 = vector.load %arg12[%c19_157, %c0_158] : memref<336x64xf32, #tpu.memory_space<vmem>>, vector<288x64xf32>
    %169 = arith.truncf %168 : vector<288x64xf32> to vector<288x64xbf16>
    %c0_159 = arith.constant 0 : index
    %c0_160 = arith.constant 0 : index
    %170 = vector.load %arg8[%c0_159, %c0_160] : memref<64x128xbf16, #tpu.memory_space<vmem>>, vector<64x128xbf16>
    %cst_161 = arith.constant dense<0.000000e+00> : vector<288x128xf32>
    %171 = tpu.matmul %169, %170, %cst_161 {dimension_numbers = #tpu.dot_dimension_numbers<[1], [0], [0], [1], [0, 0, 1, 1], [], []>} : vector<288x64xbf16>, vector<64x128xbf16>, vector<288x128xf32> -> vector<288x128xf32>
    %c0_162 = arith.constant 0 : index
    %c0_163 = arith.constant 0 : index
    %172 = vector.load %arg14[%c0_162, %c0_163] : memref<288x128xf32, #tpu.memory_space<vmem>>, vector<288x128xf32>
    tpu.vector_store %arg14[%c0_162, %c0_163], %171 {strides = array<i32>} : memref<288x128xf32, #tpu.memory_space<vmem>>, vector<288x128xf32>,
    %c0_164 = arith.constant 0 : index
    %c0_165 = arith.constant 0 : index
    %173 = vector.load %arg14[%c0_164, %c0_165] : memref<288x128xf32, #tpu.memory_space<vmem>>, vector<288x128xf32>
    %c0_166 = arith.constant 0 : index
    %c19_167 = arith.constant 19 : index
    %c0_168 = arith.constant 0 : index
    %174 = vector.load %arg3[%c0_166, %c19_167, %c0_168] : memref<1x336x64xf32, #tpu.memory_space<vmem>>, vector<1x288x64xf32>
    %175 = vector.shape_cast %174 : vector<1x288x64xf32> to vector<288x64xf32>
    %176 = arith.truncf %175 : vector<288x64xf32> to vector<288x64xbf16>
    %c0_169 = arith.constant 0 : index
    %c0_170 = arith.constant 0 : index
    %177 = vector.load %arg9[%c0_169, %c0_170] : memref<64x128xbf16, #tpu.memory_space<vmem>>, vector<64x128xbf16>
    %cst_171 = arith.constant dense<0.000000e+00> : vector<288x128xf32>
    %178 = tpu.matmul %176, %177, %cst_171 {dimension_numbers = #tpu.dot_dimension_numbers<[1], [0], [0], [1], [0, 0, 1, 1], [], []>} : vector<288x64xbf16>, vector<64x128xbf16>, vector<288x128xf32> -> vector<288x128xf32>
    %179 = arith.addf %173, %178 : vector<288x128xf32>
    %c0_172 = arith.constant 0 : index
    %c0_173 = arith.constant 0 : index
    %180 = vector.load %arg14[%c0_172, %c0_173] : memref<288x128xf32, #tpu.memory_space<vmem>>, vector<288x128xf32>
    tpu.vector_store %arg14[%c0_172, %c0_173], %179 {strides = array<i32>} : memref<288x128xf32, #tpu.memory_space<vmem>>, vector<288x128xf32>,
    %c0_174 = arith.constant 0 : index
    %c0_175 = arith.constant 0 : index
    %181 = vector.load %arg14[%c0_174, %c0_175] : memref<288x128xf32, #tpu.memory_space<vmem>>, vector<288x128xf32>
    %c0_176 = arith.constant 0 : index
    %c0_177 = arith.constant 0 : index
    %182 = vector.load %arg13[%c0_176, %c0_177] : memref<336x128xf32, #tpu.memory_space<vmem>>, vector<288x128xf32>
    %183 = arith.truncf %182 : vector<288x128xf32> to vector<288x128xbf16>
    %c0_178 = arith.constant 0 : index
    %c0_179 = arith.constant 0 : index
    %c0_180 = arith.constant 0 : index
    %184 = vector.load %arg7[%c0_178, %c0_179, %c0_180] : memref<9x128x128xbf16, #tpu.memory_space<vmem>>, vector<1x128x128xbf16>
    %185 = vector.shape_cast %184 : vector<1x128x128xbf16> to vector<128x128xbf16>
    %cst_181 = arith.constant dense<0.000000e+00> : vector<288x128xf32>
    %186 = tpu.matmul %183, %185, %cst_181 {dimension_numbers = #tpu.dot_dimension_numbers<[1], [0], [0], [1], [0, 0, 1, 1], [], []>} : vector<288x128xbf16>, vector<128x128xbf16>, vector<288x128xf32> -> vector<288x128xf32>
    %187 = arith.addf %181, %186 : vector<288x128xf32>
    %c0_182 = arith.constant 0 : index
    %c0_183 = arith.constant 0 : index
    %188 = vector.load %arg14[%c0_182, %c0_183] : memref<288x128xf32, #tpu.memory_space<vmem>>, vector<288x128xf32>
    tpu.vector_store %arg14[%c0_182, %c0_183], %187 {strides = array<i32>} : memref<288x128xf32, #tpu.memory_space<vmem>>, vector<288x128xf32>,
    %c0_184 = arith.constant 0 : index
    %c0_185 = arith.constant 0 : index
    %189 = vector.load %arg14[%c0_184, %c0_185] : memref<288x128xf32, #tpu.memory_space<vmem>>, vector<288x128xf32>
    %c1_186 = arith.constant 1 : index
    %c0_187 = arith.constant 0 : index
    %190 = vector.load %arg13[%c1_186, %c0_187] : memref<336x128xf32, #tpu.memory_space<vmem>>, vector<288x128xf32>
    %191 = arith.truncf %190 : vector<288x128xf32> to vector<288x128xbf16>
    %c1_188 = arith.constant 1 : index
    %c0_189 = arith.constant 0 : index
    %c0_190 = arith.constant 0 : index
    %192 = vector.load %arg7[%c1_188, %c0_189, %c0_190] : memref<9x128x128xbf16, #tpu.memory_space<vmem>>, vector<1x128x128xbf16>
    %193 = vector.shape_cast %192 : vector<1x128x128xbf16> to vector<128x128xbf16>
    %cst_191 = arith.constant dense<0.000000e+00> : vector<288x128xf32>
    %194 = tpu.matmul %191, %193, %cst_191 {dimension_numbers = #tpu.dot_dimension_numbers<[1], [0], [0], [1], [0, 0, 1, 1], [], []>} : vector<288x128xbf16>, vector<128x128xbf16>, vector<288x128xf32> -> vector<288x128xf32>
    %195 = arith.addf %189, %194 : vector<288x128xf32>
    %c0_192 = arith.constant 0 : index
    %c0_193 = arith.constant 0 : index
    %196 = vector.load %arg14[%c0_192, %c0_193] : memref<288x128xf32, #tpu.memory_space<vmem>>, vector<288x128xf32>
    tpu.vector_store %arg14[%c0_192, %c0_193], %195 {strides = array<i32>} : memref<288x128xf32, #tpu.memory_space<vmem>>, vector<288x128xf32>,
    %c0_194 = arith.constant 0 : index
    %c0_195 = arith.constant 0 : index
    %197 = vector.load %arg14[%c0_194, %c0_195] : memref<288x128xf32, #tpu.memory_space<vmem>>, vector<288x128xf32>
    %c2_196 = arith.constant 2 : index
    %c0_197 = arith.constant 0 : index
    %198 = vector.load %arg13[%c2_196, %c0_197] : memref<336x128xf32, #tpu.memory_space<vmem>>, vector<288x128xf32>
    %199 = arith.truncf %198 : vector<288x128xf32> to vector<288x128xbf16>
    %c2_198 = arith.constant 2 : index
    %c0_199 = arith.constant 0 : index
    %c0_200 = arith.constant 0 : index
    %200 = vector.load %arg7[%c2_198, %c0_199, %c0_200] : memref<9x128x128xbf16, #tpu.memory_space<vmem>>, vector<1x128x128xbf16>
    %201 = vector.shape_cast %200 : vector<1x128x128xbf16> to vector<128x128xbf16>
    %cst_201 = arith.constant dense<0.000000e+00> : vector<288x128xf32>
    %202 = tpu.matmul %199, %201, %cst_201 {dimension_numbers = #tpu.dot_dimension_numbers<[1], [0], [0], [1], [0, 0, 1, 1], [], []>} : vector<288x128xbf16>, vector<128x128xbf16>, vector<288x128xf32> -> vector<288x128xf32>
    %203 = arith.addf %197, %202 : vector<288x128xf32>
    %c0_202 = arith.constant 0 : index
    %c0_203 = arith.constant 0 : index
    %204 = vector.load %arg14[%c0_202, %c0_203] : memref<288x128xf32, #tpu.memory_space<vmem>>, vector<288x128xf32>
    tpu.vector_store %arg14[%c0_202, %c0_203], %203 {strides = array<i32>} : memref<288x128xf32, #tpu.memory_space<vmem>>, vector<288x128xf32>,
    %c0_204 = arith.constant 0 : index
    %c0_205 = arith.constant 0 : index
    %205 = vector.load %arg14[%c0_204, %c0_205] : memref<288x128xf32, #tpu.memory_space<vmem>>, vector<288x128xf32>
    %c18_206 = arith.constant 18 : index
    %c0_207 = arith.constant 0 : index
    %206 = vector.load %arg13[%c18_206, %c0_207] : memref<336x128xf32, #tpu.memory_space<vmem>>, vector<288x128xf32>
    %207 = arith.truncf %206 : vector<288x128xf32> to vector<288x128xbf16>
    %c3_208 = arith.constant 3 : index
    %c0_209 = arith.constant 0 : index
    %c0_210 = arith.constant 0 : index
    %208 = vector.load %arg7[%c3_208, %c0_209, %c0_210] : memref<9x128x128xbf16, #tpu.memory_space<vmem>>, vector<1x128x128xbf16>
    %209 = vector.shape_cast %208 : vector<1x128x128xbf16> to vector<128x128xbf16>
    %cst_211 = arith.constant dense<0.000000e+00> : vector<288x128xf32>
    %210 = tpu.matmul %207, %209, %cst_211 {dimension_numbers = #tpu.dot_dimension_numbers<[1], [0], [0], [1], [0, 0, 1, 1], [], []>} : vector<288x128xbf16>, vector<128x128xbf16>, vector<288x128xf32> -> vector<288x128xf32>
    %211 = arith.addf %205, %210 : vector<288x128xf32>
    %c0_212 = arith.constant 0 : index
    %c0_213 = arith.constant 0 : index
    %212 = vector.load %arg14[%c0_212, %c0_213] : memref<288x128xf32, #tpu.memory_space<vmem>>, vector<288x128xf32>
    tpu.vector_store %arg14[%c0_212, %c0_213], %211 {strides = array<i32>} : memref<288x128xf32, #tpu.memory_space<vmem>>, vector<288x128xf32>,
    %c0_214 = arith.constant 0 : index
    %c0_215 = arith.constant 0 : index
    %213 = vector.load %arg14[%c0_214, %c0_215] : memref<288x128xf32, #tpu.memory_space<vmem>>, vector<288x128xf32>
    %c19_216 = arith.constant 19 : index
    %c0_217 = arith.constant 0 : index
    %214 = vector.load %arg13[%c19_216, %c0_217] : memref<336x128xf32, #tpu.memory_space<vmem>>, vector<288x128xf32>
    %215 = arith.truncf %214 : vector<288x128xf32> to vector<288x128xbf16>
    %c4_218 = arith.constant 4 : index
    %c0_219 = arith.constant 0 : index
    %c0_220 = arith.constant 0 : index
    %216 = vector.load %arg7[%c4_218, %c0_219, %c0_220] : memref<9x128x128xbf16, #tpu.memory_space<vmem>>, vector<1x128x128xbf16>
    %217 = vector.shape_cast %216 : vector<1x128x128xbf16> to vector<128x128xbf16>
    %cst_221 = arith.constant dense<0.000000e+00> : vector<288x128xf32>
    %218 = tpu.matmul %215, %217, %cst_221 {dimension_numbers = #tpu.dot_dimension_numbers<[1], [0], [0], [1], [0, 0, 1, 1], [], []>} : vector<288x128xbf16>, vector<128x128xbf16>, vector<288x128xf32> -> vector<288x128xf32>
    %219 = arith.addf %213, %218 : vector<288x128xf32>
    %c0_222 = arith.constant 0 : index
    %c0_223 = arith.constant 0 : index
    %220 = vector.load %arg14[%c0_222, %c0_223] : memref<288x128xf32, #tpu.memory_space<vmem>>, vector<288x128xf32>
    tpu.vector_store %arg14[%c0_222, %c0_223], %219 {strides = array<i32>} : memref<288x128xf32, #tpu.memory_space<vmem>>, vector<288x128xf32>,
    %c0_224 = arith.constant 0 : index
    %c0_225 = arith.constant 0 : index
    %221 = vector.load %arg14[%c0_224, %c0_225] : memref<288x128xf32, #tpu.memory_space<vmem>>, vector<288x128xf32>
    %c20_226 = arith.constant 20 : index
    %c0_227 = arith.constant 0 : index
    %222 = vector.load %arg13[%c20_226, %c0_227] : memref<336x128xf32, #tpu.memory_space<vmem>>, vector<288x128xf32>
    %223 = arith.truncf %222 : vector<288x128xf32> to vector<288x128xbf16>
    %c5_228 = arith.constant 5 : index
    %c0_229 = arith.constant 0 : index
    %c0_230 = arith.constant 0 : index
    %224 = vector.load %arg7[%c5_228, %c0_229, %c0_230] : memref<9x128x128xbf16, #tpu.memory_space<vmem>>, vector<1x128x128xbf16>
    %225 = vector.shape_cast %224 : vector<1x128x128xbf16> to vector<128x128xbf16>
    %cst_231 = arith.constant dense<0.000000e+00> : vector<288x128xf32>
    %226 = tpu.matmul %223, %225, %cst_231 {dimension_numbers = #tpu.dot_dimension_numbers<[1], [0], [0], [1], [0, 0, 1, 1], [], []>} : vector<288x128xbf16>, vector<128x128xbf16>, vector<288x128xf32> -> vector<288x128xf32>
    %227 = arith.addf %221, %226 : vector<288x128xf32>
    %c0_232 = arith.constant 0 : index
    %c0_233 = arith.constant 0 : index
    %228 = vector.load %arg14[%c0_232, %c0_233] : memref<288x128xf32, #tpu.memory_space<vmem>>, vector<288x128xf32>
    tpu.vector_store %arg14[%c0_232, %c0_233], %227 {strides = array<i32>} : memref<288x128xf32, #tpu.memory_space<vmem>>, vector<288x128xf32>,
    %c0_234 = arith.constant 0 : index
    %c0_235 = arith.constant 0 : index
    %229 = vector.load %arg14[%c0_234, %c0_235] : memref<288x128xf32, #tpu.memory_space<vmem>>, vector<288x128xf32>
    %c36_236 = arith.constant 36 : index
    %c0_237 = arith.constant 0 : index
    %230 = vector.load %arg13[%c36_236, %c0_237] : memref<336x128xf32, #tpu.memory_space<vmem>>, vector<288x128xf32>
    %231 = arith.truncf %230 : vector<288x128xf32> to vector<288x128xbf16>
    %c6_238 = arith.constant 6 : index
    %c0_239 = arith.constant 0 : index
    %c0_240 = arith.constant 0 : index
    %232 = vector.load %arg7[%c6_238, %c0_239, %c0_240] : memref<9x128x128xbf16, #tpu.memory_space<vmem>>, vector<1x128x128xbf16>
    %233 = vector.shape_cast %232 : vector<1x128x128xbf16> to vector<128x128xbf16>
    %cst_241 = arith.constant dense<0.000000e+00> : vector<288x128xf32>
    %234 = tpu.matmul %231, %233, %cst_241 {dimension_numbers = #tpu.dot_dimension_numbers<[1], [0], [0], [1], [0, 0, 1, 1], [], []>} : vector<288x128xbf16>, vector<128x128xbf16>, vector<288x128xf32> -> vector<288x128xf32>
    %235 = arith.addf %229, %234 : vector<288x128xf32>
    %c0_242 = arith.constant 0 : index
    %c0_243 = arith.constant 0 : index
    %236 = vector.load %arg14[%c0_242, %c0_243] : memref<288x128xf32, #tpu.memory_space<vmem>>, vector<288x128xf32>
    tpu.vector_store %arg14[%c0_242, %c0_243], %235 {strides = array<i32>} : memref<288x128xf32, #tpu.memory_space<vmem>>, vector<288x128xf32>,
    %c0_244 = arith.constant 0 : index
    %c0_245 = arith.constant 0 : index
    %237 = vector.load %arg14[%c0_244, %c0_245] : memref<288x128xf32, #tpu.memory_space<vmem>>, vector<288x128xf32>
    %c37_246 = arith.constant 37 : index
    %c0_247 = arith.constant 0 : index
    %238 = vector.load %arg13[%c37_246, %c0_247] : memref<336x128xf32, #tpu.memory_space<vmem>>, vector<288x128xf32>
    %239 = arith.truncf %238 : vector<288x128xf32> to vector<288x128xbf16>
    %c7_248 = arith.constant 7 : index
    %c0_249 = arith.constant 0 : index
    %c0_250 = arith.constant 0 : index
    %240 = vector.load %arg7[%c7_248, %c0_249, %c0_250] : memref<9x128x128xbf16, #tpu.memory_space<vmem>>, vector<1x128x128xbf16>
    %241 = vector.shape_cast %240 : vector<1x128x128xbf16> to vector<128x128xbf16>
    %cst_251 = arith.constant dense<0.000000e+00> : vector<288x128xf32>
    %242 = tpu.matmul %239, %241, %cst_251 {dimension_numbers = #tpu.dot_dimension_numbers<[1], [0], [0], [1], [0, 0, 1, 1], [], []>} : vector<288x128xbf16>, vector<128x128xbf16>, vector<288x128xf32> -> vector<288x128xf32>
    %243 = arith.addf %237, %242 : vector<288x128xf32>
    %c0_252 = arith.constant 0 : index
    %c0_253 = arith.constant 0 : index
    %244 = vector.load %arg14[%c0_252, %c0_253] : memref<288x128xf32, #tpu.memory_space<vmem>>, vector<288x128xf32>
    tpu.vector_store %arg14[%c0_252, %c0_253], %243 {strides = array<i32>} : memref<288x128xf32, #tpu.memory_space<vmem>>, vector<288x128xf32>,
    %c0_254 = arith.constant 0 : index
    %c0_255 = arith.constant 0 : index
    %245 = vector.load %arg14[%c0_254, %c0_255] : memref<288x128xf32, #tpu.memory_space<vmem>>, vector<288x128xf32>
    %c38_256 = arith.constant 38 : index
    %c0_257 = arith.constant 0 : index
    %246 = vector.load %arg13[%c38_256, %c0_257] : memref<336x128xf32, #tpu.memory_space<vmem>>, vector<288x128xf32>
    %247 = arith.truncf %246 : vector<288x128xf32> to vector<288x128xbf16>
    %c8_258 = arith.constant 8 : index
    %c0_259 = arith.constant 0 : index
    %c0_260 = arith.constant 0 : index
    %248 = vector.load %arg7[%c8_258, %c0_259, %c0_260] : memref<9x128x128xbf16, #tpu.memory_space<vmem>>, vector<1x128x128xbf16>
    %249 = vector.shape_cast %248 : vector<1x128x128xbf16> to vector<128x128xbf16>
    %cst_261 = arith.constant dense<0.000000e+00> : vector<288x128xf32>
    %250 = tpu.matmul %247, %249, %cst_261 {dimension_numbers = #tpu.dot_dimension_numbers<[1], [0], [0], [1], [0, 0, 1, 1], [], []>} : vector<288x128xbf16>, vector<128x128xbf16>, vector<288x128xf32> -> vector<288x128xf32>
    %251 = arith.addf %245, %250 : vector<288x128xf32>
    %c0_262 = arith.constant 0 : index
    %c0_263 = arith.constant 0 : index
    %252 = vector.load %arg14[%c0_262, %c0_263] : memref<288x128xf32, #tpu.memory_space<vmem>>, vector<288x128xf32>
    tpu.vector_store %arg14[%c0_262, %c0_263], %251 {strides = array<i32>} : memref<288x128xf32, #tpu.memory_space<vmem>>, vector<288x128xf32>,
    %c0_264 = arith.constant 0 : index
    %c0_265 = arith.constant 0 : index
    %253 = vector.load %arg14[%c0_264, %c0_265] : memref<288x128xf32, #tpu.memory_space<vmem>>, vector<288x128xf32>
    %c0_266 = arith.constant 0 : index
    %c0_267 = arith.constant 0 : index
    %254 = vector.load %arg10[%c0_266, %c0_267] : memref<1x128xf32, #tpu.memory_space<vmem>>, vector<1x128xf32>
    %255 = vector.broadcast %254 : vector<1x128xf32> to vector<288x128xf32>
    %256 = arith.addf %253, %255 : vector<288x128xf32>
    %cst_268 = arith.constant 0.000000e+00 : f32
    %257 = vector.broadcast %cst_268 : f32 to vector<288x128xf32>
    %258 = arith.maximumf %256, %257 : vector<288x128xf32>
    %c0_269 = arith.constant 0 : index
    %c0_270 = arith.constant 0 : index
    %c0_271 = arith.constant 0 : index
    %259 = vector.load %arg11[%c0_269, %c0_270, %c0_271] : memref<1x288x128xf32, #tpu.memory_space<vmem>>, vector<1x288x128xf32>
    %260 = vector.shape_cast %259 : vector<1x288x128xf32> to vector<288x128xf32>
    %261 = vector.shape_cast %258 : vector<288x128xf32> to vector<1x288x128xf32>
    tpu.vector_store %arg11[%c0_269, %c0_270, %c0_271], %261 {strides = array<i32>} : memref<1x288x128xf32, #tpu.memory_space<vmem>>, vector<1x288x128xf32>,
    return
  }
  func.func @transform_0(%arg0: i32) -> (i32, i32) {
    %c0_i32 = arith.constant 0 : i32
    %c0_i32_0 = arith.constant 0 : i32
    %c0_i32_1 = arith.constant 0 : i32
    return %c0_i32, %c0_i32_0 : i32, i32
  }
  func.func @transform_1(%arg0: i32) -> (i32, i32, i32) {
    %c0_i32 = arith.constant 0 : i32
    %c0_i32_0 = arith.constant 0 : i32
    %c0_i32_1 = arith.constant 0 : i32
    return %arg0, %c0_i32, %c0_i32_0 : i32, i32, i32
  }
  func.func @transform_2(%arg0: i32) -> (i32, i32, i32) {
    %c0_i32 = arith.constant 0 : i32
    %c0_i32_0 = arith.constant 0 : i32
    %c0_i32_1 = arith.constant 0 : i32
    return %arg0, %c0_i32, %c0_i32_0 : i32, i32, i32
  }
  func.func @transform_3(%arg0: i32) -> (i32, i32, i32) {
    %c0_i32 = arith.constant 0 : i32
    %c0_i32_0 = arith.constant 0 : i32
    %c0_i32_1 = arith.constant 0 : i32
    %c0_i32_2 = arith.constant 0 : i32
    return %c0_i32, %c0_i32_0, %c0_i32_1 : i32, i32, i32
  }
  func.func @transform_4(%arg0: i32) -> (i32, i32, i32) {
    %c0_i32 = arith.constant 0 : i32
    %c0_i32_0 = arith.constant 0 : i32
    %c0_i32_1 = arith.constant 0 : i32
    %c0_i32_2 = arith.constant 0 : i32
    return %c0_i32, %c0_i32_0, %c0_i32_1 : i32, i32, i32
  }
  func.func @transform_5(%arg0: i32) -> (i32, i32) {
    %c0_i32 = arith.constant 0 : i32
    %c0_i32_0 = arith.constant 0 : i32
    %c0_i32_1 = arith.constant 0 : i32
    return %c0_i32, %c0_i32_0 : i32, i32
  }
  func.func @transform_6(%arg0: i32) -> (i32, i32, i32) {
    %c0_i32 = arith.constant 0 : i32
    %c0_i32_0 = arith.constant 0 : i32
    %c0_i32_1 = arith.constant 0 : i32
    %c0_i32_2 = arith.constant 0 : i32
    return %c0_i32, %c0_i32_0, %c0_i32_1 : i32, i32, i32
  }
  func.func @transform_7(%arg0: i32) -> (i32, i32) {
    %c0_i32 = arith.constant 0 : i32
    %c0_i32_0 = arith.constant 0 : i32
    %c0_i32_1 = arith.constant 0 : i32
    return %c0_i32, %c0_i32_0 : i32, i32
  }
  func.func @transform_8(%arg0: i32) -> (i32, i32) {
    %c0_i32 = arith.constant 0 : i32
    %c0_i32_0 = arith.constant 0 : i32
    %c0_i32_1 = arith.constant 0 : i32
    return %c0_i32, %c0_i32_0 : i32, i32
  }
  func.func @transform_9(%arg0: i32) -> (i32, i32) {
    %c0_i32 = arith.constant 0 : i32
    %c0_i32_0 = arith.constant 0 : i32
    %c0_i32_1 = arith.constant 0 : i32
    return %c0_i32, %c0_i32_0 : i32, i32
  }
  func.func @transform_10(%arg0: i32) -> (i32, i32, i32) {
    %c0_i32 = arith.constant 0 : i32
    %c0_i32_0 = arith.constant 0 : i32
    %c0_i32_1 = arith.constant 0 : i32
    return %arg0, %c0_i32, %c0_i32_0 : i32, i32, i32
  }
}

</mosaic_0001>

<bundles_post_ra>
// kernel: _lambda_.1
= control target key start
LH: loop header
LB: loop body
LE: loop exit
PB: predicated region body
PF: predicated region fallthrough
CT: control target
= control target key end

     0   :  { %s12920_s13 = smov 0   ;;  %s16881_s0 = inlined_call_operand.vmem [shape: bf16[336,64], index: 0, kind: input, shape index: {}]   ;;  %s16882_s1 = inlined_call_operand.vmem [shape: bf16[2,64,64], index: 1, kind: input, shape index: {}]   ;;  %s16883_s2 = inlined_call_operand.vmem [shape: f32[2,336,64], index: 2, kind: input, shape index: {}]   ;;  %s16884_s3 = inlined_call_operand.vmem [shape: bf16[9,64,128], index: 3, kind: input, shape index: {}]   ;;  %s16885_s4 = inlined_call_operand.vmem [shape: bf16[9,64,128], index: 4, kind: input, shape index: {}]   ;;  %s16886_s5 = inlined_call_operand.vmem [shape: f32[1,128], index: 5, kind: input, shape index: {}]   ;;  %s16887_s6 = inlined_call_operand.vmem [shape: bf16[9,128,128], index: 6, kind: input, shape index: {}]   ;;  %s16888_s7 = inlined_call_operand.vmem [shape: bf16[64,128], index: 7, kind: input, shape index: {}]   ;;  %s16889_s8 = inlined_call_operand.vmem [shape: bf16[64,128], index: 8, kind: input, shape index: {}]   ;;  %s16890_s9 = inlined_call_operand.vmem [shape: f32[1,128], index: 9, kind: input, shape index: {}]   ;;  %s16891_s10 = inlined_call_operand.vmem [shape: f32[2,288,128], index: 10, kind: output, shape index: {}]  }
   0x1 LB: > { %s11291_s14 = sadd.s32 4294967295, %s12861_s13   ;;  %p11295_p0 = scmp.ge.s32.totalorder %s12861_s13, 1  ;;  %s12861_s13 = sphi %s12920_s13, %s20_s13  }
   0x2   : > { %p322_p1 = scmp.lt.s32.totalorder %s12861_s13, 3 }
   0x4   : > { %p323_p2 = pnand %p11295_p0, %p322_p1 }
   0x6   : > { %326 = sbr.rel (%p323_p2) target bundleno = 2624 (0xa40), region = 60 }
   0xb   : > { %v12680_v0 = vld [vmem:[%s16885_s4 + $0x18] sm:$0xff]  ;;  %p365_p3 = scmp.lt.s32.totalorder %s11291_s14, 1  ;;  %v12679_v1 = vld [vmem:[%s16885_s4 + $0x10] sm:$0xff]  ;;  %v12678_v3 = vld [vmem:[%s16885_s4 + $0x8] sm:$0xff]  ;;  %vm560_vm0 = vcmask 523264  }
   0xc   : > { %986 = vmatpush.bf16.msra.mxu1 %v12680_v0  ;;  %v12677_v5 = vld [vmem:[%s16885_s4] sm:$0xff]  ;;  %v12649_v18 = vld [vmem:[%s16881_s0 + $0x8] sm:$0xff]  ;;  %v12650_v25 = vld [vmem:[%s16881_s0 + $0x10] sm:$0xff] }
   0xd   : > { %s17213_s14 = smov (!%p365_p3, %s11291_s14), 1  ;;  %v12648_v11 = vld [vmem:[%s16881_s0] sm:$0xff]  ;;  %v12651_v32 = vld [vmem:[%s16881_s0 + $0x18] sm:$0xff]  ;;  %v12653_v46 = vld [vmem:[%s16881_s0 + $0x28] sm:$0xff] }
   0xe   : > { %s12647_s19 = sshll.u32 %s17213_s14, 5  ;;  %s12837_s20 = smul.u32 336, %s17213_s14  ;;  %v12668_v12 = vld [vmem:[%s16881_s0 + $0xa0] sm:$0xff]  ;;  %v12654_v53 = vld [vmem:[%s16881_s0 + $0x30] sm:$0xff]  ;;  %v12688_v55 = vld [vmem:[%s16885_s4 + $0x38] sm:$0xff] }
   0xf   : > { %s369_s23 = scalar_lea.vmem %s16882_s1, %s12647_s19  ;;  %v12652_v39 = vld [vmem:[%s16881_s0 + $0x20] sm:$0xff]  ;;  %v12687_v58 = vld [vmem:[%s16885_s4 + $0x30] sm:$0xff]  ;;  %v12686_v60 = vld [vmem:[%s16885_s4 + $0x28] sm:$0xff] }
  0x10   : > { %987 = vmatpush.bf16.msra.mxu1 %v12679_v1  ;;  %v12672_v2 = vld [vmem:[%s369_s23 + $0x18] sm:$0xff]  ;;  %s12947_s28 = scalar_lea.vmem %s16883_s2, %s12837_s20  ;;  %v12671_v4 = vld [vmem:[%s369_s23 + $0x10] sm:$0xff]  ;;  %v12670_v8 = vld [vmem:[%s369_s23 + $0x8] sm:$0xff] }
  0x11   : > { %628 = vmatpush.bf16.msra.mxu0 %v12672_v2  ;;  %12825 = vmatpush.bf16.msra.mxu3 %v12672_v2  ;;  %v842_v6 = vld [vmem:[%s12947_s28] sm:$0xff]  ;;  %v843_v7 = vld [vmem:[%s12947_s28 + $0x8] sm:$0xff]  ;;  %v844_v13 = vld [vmem:[%s12947_s28 + $0x10] sm:$0xff] }
  0x12   : > { %v878_v9 = vpack.c.bf16 %v843_v7, %v842_v6  ;;  %v12669_v10 = vld [vmem:[%s369_s23] sm:$0xff]  ;;  %v845_v14 = vld [vmem:[%s12947_s28 + $0x18] sm:$0xff]  ;;  %v863_v17 = vld [vmem:[%s12947_s28 + $0xa8] sm:$0xff] }
  0x13   : > { %v879_v15 = vpack.c.bf16 %v845_v14, %v844_v13  ;;  %v862_v16 = vld [vmem:[%s12947_s28 + $0xa0] sm:$0xff]  ;;  %v847_v21 = vld [vmem:[%s12947_s28 + $0x28] sm:$0xff]  ;;  %v864_v23 = vld [vmem:[%s12947_s28 + $0xb0] sm:$0xff] }
  0x14   : > { %988 = vmatpush.bf16.msra.mxu1 %v12678_v3  ;;  %v888_v19 = vpack.c.bf16 %v863_v17, %v862_v16  ;;  %v846_v20 = vld [vmem:[%s12947_s28 + $0x20] sm:$0xff]  ;;  %v865_v24 = vld [vmem:[%s12947_s28 + $0xb8] sm:$0xff]  ;;  %v848_v27 = vld [vmem:[%s12947_s28 + $0x30] sm:$0xff] }
  0x15   : > { %629 = vmatpush.bf16.msra.mxu0 %v12671_v4  ;;  %12826 = vmatpush.bf16.msra.mxu3 %v12671_v4  ;;  %v880_v22 = vpack.c.bf16 %v847_v21, %v846_v20  ;;  %v889_v26 = vpack.c.bf16 %v865_v24, %v864_v23  ;;  %v849_v28 = vld [vmem:[%s12947_s28 + $0x38] sm:$0xff]  ;;  %v866_v30 = vld [vmem:[%s12947_s28 + $0xc0] sm:$0xff]  ;;  %v867_v31 = vld [vmem:[%s12947_s28 + $0xc8] sm:$0xff] }
  0x16   : > { %v881_v29 = vpack.c.bf16 %v849_v28, %v848_v27  ;;  %v890_v33 = vpack.c.bf16 %v867_v31, %v866_v30  ;;  %v850_v34 = vld [vmem:[%s12947_s28 + $0x40] sm:$0xff]  ;;  %v851_v35 = vld [vmem:[%s12947_s28 + $0x48] sm:$0xff]  ;;  %v868_v37 = vld [vmem:[%s12947_s28 + $0xd0] sm:$0xff] }
  0x17   : > { %v882_v36 = vpack.c.bf16 %v851_v35, %v850_v34  ;;  %v869_v38 = vld [vmem:[%s12947_s28 + $0xd8] sm:$0xff]  ;;  %v852_v41 = vld [vmem:[%s12947_s28 + $0x50] sm:$0xff]  ;;  %v870_v44 = vld [vmem:[%s12947_s28 + $0xe0] sm:$0xff] }
  0x18   : > { %989 = vmatpush.bf16.msra.mxu1 %v12677_v5  ;;  %v891_v40 = vpack.c.bf16 %v869_v38, %v868_v37  ;;  %v853_v42 = vld [vmem:[%s12947_s28 + $0x58] sm:$0xff]  ;;  %v871_v45 = vld [vmem:[%s12947_s28 + $0xe8] sm:$0xff]  ;;  %v854_v48 = vld [vmem:[%s12947_s28 + $0x60] sm:$0xff] }
  0x19   : > { %630 = vmatpush.bf16.msra.mxu0 %v12670_v8  ;;  %12827 = vmatpush.bf16.msra.mxu3 %v12670_v8  ;;  %v883_v43 = vpack.c.bf16 %v853_v42, %v852_v41  ;;  %v892_v47 = vpack.c.bf16 %v871_v45, %v870_v44  ;;  %v855_v49 = vld [vmem:[%s12947_s28 + $0x68] sm:$0xff]  ;;  %v872_v51 = vld [vmem:[%s12947_s28 + $0xf0] sm:$0xff]  ;;  %v873_v52 = vld [vmem:[%s12947_s28 + $0xf8] sm:$0xff] }
  0x1a   : > { %v884_v50 = vpack.c.bf16 %v855_v49, %v854_v48  ;;  %v893_v54 = vpack.c.bf16 %v873_v52, %v872_v51  ;;  %v856_v56 = vld [vmem:[%s12947_s28 + $0x70] sm:$0xff]  ;;  %v857_v57 = vld [vmem:[%s12947_s28 + $0x78] sm:$0xff]  ;;  %v874_v61 = vld [vmem:[%s12947_s28 + $0x100] sm:$0xff] }
  0x1b   : > { %11437 = vmatmul.msk.bf16.vlgmr.msra.gmra.mxu1 %vm560_vm0, %v878_v9  ;;  %v885_v59 = vpack.c.bf16 %v857_v57, %v856_v56  ;;  %v875_v62 = vld [vmem:[%s12947_s28 + $0x108] sm:$0xff]  ;;  %v12684_v63 = vld [vmem:[%s16884_s3 + $0x38] sm:$0xff]  ;;  %v12681_v7 = vld [vmem:[%s16884_s3 + $0x20] sm:$0xff] }
  0x1c   : > { %1679 = vmatpush.bf16.msrb.mxu1 %v12684_v63  ;;  %v894_v2 = vpack.c.bf16 %v875_v62, %v874_v61  ;;  %v12682_v4 = vld [vmem:[%s16884_s3 + $0x28] sm:$0xff]  ;;  %v860_v17 = vld [vmem:[%s12947_s28 + $0x90] sm:$0xff]  ;;  %v12659_v51 = vld [vmem:[%s16881_s0 + $0x58] sm:$0xff] }
  0x1d   : > { %631 = vmatpush.bf16.msra.mxu0 %v12669_v10  ;;  %12828 = vmatpush.bf16.msra.mxu3 %v12669_v10  ;;  %v859_v6 = vld [vmem:[%s12947_s28 + $0x88] sm:$0xff]  ;;  %v876_v10 = vld [vmem:[%s12947_s28 + $0x110] sm:$0xff]  ;;  %v1364_v62 = vld [vmem:[%s12947_s28 + $0x39] sm:$0xff] }
  0x1e   : > { %v1358_v23 = vld [vmem:[%s12947_s28 + $0x9] sm:$0xff]  ;;  %v1359_v35 = vld [vmem:[%s12947_s28 + $0x11] sm:$0xff]  ;;  %v1361_v48 = vld [vmem:[%s12947_s28 + $0x21] sm:$0xff] }
  0x1f   : > { %v12658_v38 = vld [vmem:[%s16881_s0 + $0x50] sm:$0xff] }
  0x20   : > { %11400 = vmatmul.msk.bf16.vlgmr.msra.gmra.mxu0 %vm560_vm0, %v12648_v11  ;;  %11420 = vmatmul.msk.bf16.vlgmr.msra.gmra.mxu3 %vm560_vm0, %v12668_v12  ;;  %v877_v11 = vld [vmem:[%s12947_s28 + $0x118] sm:$0xff]  ;;  %v12656_v12 = vld [vmem:[%s16881_s0 + $0x40] sm:$0xff]  ;;  %v1362_v49 = vld [vmem:[%s12947_s28 + $0x29] sm:$0xff] }
  0x21   : > { %12829 = vmatpush.bf16.msrb.mxu3 %v12680_v0  ;;  %v12685_v0 = vld [vmem:[%s16885_s4 + $0x20] sm:$0xff]  ;;  %v895_v13 = vpack.c.bf16 %v877_v11, %v876_v10  ;;  %v1395_v52 = vpack.c.bf16 %v1362_v49, %v1361_v48  ;;  %v1363_v61 = vld [vmem:[%s12947_s28 + $0x31] sm:$0xff] }
  0x22   : > { %v1365_v11 = vld [vmem:[%s12947_s28 + $0x41] sm:$0xff] }
  0x23   : > { %v1369_v49 = vld [vmem:[%s12947_s28 + $0x61] sm:$0xff] }
  0x25   : > { %12830 = vmatpush.bf16.msrb.mxu3 %v12679_v1  ;;  %v12655_v1 = vld [vmem:[%s16881_s0 + $0x38] sm:$0xff] }
  0x29   : > { %12831 = vmatpush.bf16.msrb.mxu3 %v12678_v3  ;;  %v12683_v3 = vld [vmem:[%s16884_s3 + $0x30] sm:$0xff] }
  0x2a   : > { %1680 = vmatpush.bf16.msrb.mxu1 %v12683_v3 }
  0x2b   : > { %11438 = vmatmul.msk.bf16.gmra.mxu1 %vm560_vm0, %v879_v15 }
  0x2d   : > { %12832 = vmatpush.bf16.msrb.mxu3 %v12677_v5  ;;  %v858_v5 = vld [vmem:[%s12947_s28 + $0x80] sm:$0xff] }
  0x2e   : > { %1681 = vmatpush.bf16.msrb.mxu1 %v12682_v4  ;;  %v886_v8 = vpack.c.bf16 %v859_v6, %v858_v5 }
  0x30   : > { %11401 = vmatmul.msk.bf16.gmra.mxu0 %vm560_vm0, %v12649_v18  ;;  %11447 = vmatmul.msk.bf16.vlgmr.msrb.gmra.mxu3 %vm560_vm0, %v888_v19  ;;  %v861_v18 = vld [vmem:[%s12947_s28 + $0x98] sm:$0xff] }
  0x31   : > { %1502 = vmatpush.bf16.msra.mxu3 %v12688_v55  ;;  %v887_v20 = vpack.c.bf16 %v861_v18, %v860_v17 }
  0x32   : > { %1682 = vmatpush.bf16.msrb.mxu1 %v12681_v7 }
  0x35   : > { %1503 = vmatpush.bf16.msra.mxu3 %v12687_v58 }
  0x39   : > { %1504 = vmatpush.bf16.msra.mxu3 %v12686_v60 }
  0x3b   : > { %11439 = vmatmul.msk.bf16.gmra.mxu1 %vm560_vm0, %v880_v22  ;;  %v1357_v22 = vld [vmem:[%s12947_s28 + $0x1] sm:$0xff] }
  0x3d   : > { %1505 = vmatpush.bf16.msra.mxu3 %v12685_v0  ;;  %v12660_v0 = vld [vmem:[%s16881_s0 + $0x60] sm:$0xff] }
  0x40   : > { %11402 = vmatmul.msk.bf16.gmra.mxu0 %vm560_vm0, %v12650_v25  ;;  %11448 = vmatmul.msk.bf16.gmra.mxu3 %vm560_vm0, %v889_v26  ;;  %v12657_v25 = vld [vmem:[%s16881_s0 + $0x48] sm:$0xff]  ;;  %v1393_v26 = vpack.c.bf16 %v1358_v23, %v1357_v22 }
  0x4b   : > { %11440 = vmatmul.msk.bf16.gmra.mxu1 %vm560_vm0, %v881_v29 }
  0x50   : > { %11403 = vmatmul.msk.bf16.gmra.mxu0 %vm560_vm0, %v12651_v32  ;;  %11449 = vmatmul.msk.bf16.gmra.mxu3 %vm560_vm0, %v890_v33 }
  0x5b   : > { %11441 = vmatmul.msk.bf16.gmra.mxu1 %vm560_vm0, %v882_v36  ;;  %v1360_v36 = vld [vmem:[%s12947_s28 + $0x19] sm:$0xff] }
  0x60   : > { %11404 = vmatmul.msk.bf16.gmra.mxu0 %vm560_vm0, %v12652_v39  ;;  %11450 = vmatmul.msk.bf16.gmra.mxu3 %vm560_vm0, %v891_v40  ;;  %v1394_v39 = vpack.c.bf16 %v1360_v36, %v1359_v35  ;;  %v12676_v36 = vld [vmem:[%s16884_s3 + $0x18] sm:$0xff] }
  0x61   : > { %12833 = vmatpush.bf16.msra.mxu2 %v12676_v36  ;;  %1163 = vmatpush.bf16.msrb.mxu0 %v12676_v36 }
  0x6b   : > { %11442 = vmatmul.msk.bf16.gmra.mxu1 %vm560_vm0, %v883_v43 }
  0x70   : > { %11405 = vmatmul.msk.bf16.gmra.mxu0 %vm560_vm0, %v12653_v46  ;;  %11451 = vmatmul.msk.bf16.gmra.mxu3 %vm560_vm0, %v892_v47 }
  0x7b   : > { %11443 = vmatmul.msk.bf16.gmra.mxu1 %vm560_vm0, %v884_v50 }
  0x80   : > { %11406 = vmatmul.msk.bf16.gmra.mxu0 %vm560_vm0, %v12654_v53  ;;  %11452 = vmatmul.msk.bf16.gmra.mxu3 %vm560_vm0, %v893_v54 }
  0x8b   : > { %11444 = vmatmul.msk.bf16.gmra.mxu1 %vm560_vm0, %v885_v59 }
  0x90   : > { %11407 = vmatmul.msk.bf16.gmra.mxu0 %vm560_vm0, %v12655_v1  ;;  %11453 = vmatmul.msk.bf16.gmra.mxu3 %vm560_vm0, %v894_v2  ;;  %v1396_v1 = vpack.c.bf16 %v1364_v62, %v1363_v61  ;;  %v12696_v61 = vld [vmem:[%s16885_s4 + $0x58] sm:$0xff] }
  0x98   : > { %v13059_v9 = vpop.f32.mrf.mxu1 }
  0x9b   : > { %11445 = vmatmul.msk.bf16.gmra.mxu1 %vm560_vm0, %v886_v8 }
  0x9d   : > { %v633_v14 = vpop.f32.mrf.mxu0 }
  0x9e   : > { %738 = vst.msk [vmem:[#allocation2] sm:$0xff] %vm560_vm0, %v633_v14  ;;  %v12661_v14 = vld [vmem:[%s16881_s0 + $0x68] sm:$0xff] }
  0xa0   : > { %v13068_v15 = vpop.f32.mrf.mxu1  ;;  %11408 = vmatmul.msk.bf16.gmra.mxu0 %vm560_vm0, %v12656_v12  ;;  %11454 = vmatmul.msk.bf16.gmra.mxu3 %vm560_vm0, %v895_v13  ;;  %v1366_v12 = vld [vmem:[%s12947_s28 + $0x49] sm:$0xff] }
  0xa3   : > { %v733_v16 = vpop.f32.mrf.mxu3 }
  0xa4   : > { %778 = vst.msk [vmem:[#allocation2 + $0x140] sm:$0xff] %vm560_vm0, %v733_v16  ;;  %v1397_v16 = vpack.c.bf16 %v1366_v12, %v1365_v11  ;;  %v12664_v12 = vld [vmem:[%s16881_s0 + $0x80] sm:$0xff] }
  0xa5   : > { %v635_v19 = vpop.f32.mrf.mxu0 }
  0xa6   : > { %739 = vst.msk [vmem:[#allocation2 + $0x8] sm:$0xff] %vm560_vm0, %v635_v19 }
  0xa8   : > { %v13076_v21 = vpop.f32.mrf.mxu1 }
  0xab   : > { %11446 = vmatmul.msk.bf16.gmra.mxu1 %vm560_vm0, %v887_v20  ;;  %v735_v24 = vpop.f32.mrf.mxu3 }
  0xad   : > { %v638_v27 = vpop.f32.mrf.mxu0  ;;  %v1294_v33 = vld [vmem:[#allocation2 + $0x1] sm:$0xff] }
  0xae   : > { %740 = vst.msk [vmem:[#allocation2 + $0x10] sm:$0xff] %vm560_vm0, %v638_v27  ;;  %v1368_v27 = vld [vmem:[%s12947_s28 + $0x59] sm:$0xff] }
  0xb0   : > { %v13085_v28 = vpop.f32.mrf.mxu1  ;;  %11409 = vmatmul.msk.bf16.gmra.mxu0 %vm560_vm0, %v12657_v25  ;;  %11521 = vmatmul.msk.bf16.vlgmr.msra.gmra.mxu3 %vm560_vm0, %v1393_v26  ;;  %v1367_v26 = vld [vmem:[%s12947_s28 + $0x51] sm:$0xff] }
  0xb3   : > { %v13089_v29 = vpop.f32.mrf.mxu3 }
  0xb5   : > { %v640_v30 = vpop.f32.mrf.mxu0  ;;  %v1295_v31 = vld [vmem:[#allocation2 + $0x9] sm:$0xff] }
  0xb6   : > { %741 = vst.msk [vmem:[#allocation2 + $0x18] sm:$0xff] %vm560_vm0, %v640_v30  ;;  %v1330_v34 = vpack.c.bf16 %v1295_v31, %v1294_v33  ;;  %v12662_v31 = vld [vmem:[%s16881_s0 + $0x70] sm:$0xff]  ;;  %v1398_v33 = vpack.c.bf16 %v1368_v27, %v1367_v26 }
  0xb8   : > { %v13092_v32 = vpop.f32.mrf.mxu1 }
  0xbb   : > { %11555 = vmatmul.msk.bf16.vlgmr.msrb.gmra.mxu1 %vm560_vm0, %v1330_v34  ;;  %v13097_v37 = vpop.f32.mrf.mxu3 }
  0xbd   : > { %v643_v40 = vpop.f32.mrf.mxu0  ;;  %v1296_v46 = vld [vmem:[#allocation2 + $0x11] sm:$0xff] }
  0xbe   : > { %742 = vst.msk [vmem:[#allocation2 + $0x20] sm:$0xff] %vm560_vm0, %v643_v40 }
  0xc0   : > { %v13103_v41 = vpop.f32.mrf.mxu1  ;;  %11410 = vmatmul.msk.bf16.gmra.mxu0 %vm560_vm0, %v12658_v38  ;;  %11522 = vmatmul.msk.bf16.gmra.mxu3 %vm560_vm0, %v1394_v39  ;;  %v12675_v39 = vld [vmem:[%s16884_s3 + $0x10] sm:$0xff] }
  0xc1   : > { %12834 = vmatpush.bf16.msra.mxu2 %v12675_v39  ;;  %1164 = vmatpush.bf16.msrb.mxu0 %v12675_v39  ;;  %v12665_v39 = vld [vmem:[%s16881_s0 + $0x88] sm:$0xff] }
  0xc3   : > { %v13107_v42 = vpop.f32.mrf.mxu3 }
  0xc5   : > { %v645_v43 = vpop.f32.mrf.mxu0  ;;  %v1297_v44 = vld [vmem:[#allocation2 + $0x19] sm:$0xff] }
  0xc6   : > { %743 = vst.msk [vmem:[#allocation2 + $0x28] sm:$0xff] %vm560_vm0, %v645_v43  ;;  %v1331_v47 = vpack.c.bf16 %v1297_v44, %v1296_v46 }
  0xc8   : > { %v13110_v45 = vpop.f32.mrf.mxu1 }
  0xcb   : > { %11556 = vmatmul.msk.bf16.gmra.mxu1 %vm560_vm0, %v1331_v47  ;;  %v13115_v50 = vpop.f32.mrf.mxu3  ;;  %v12674_v47 = vld [vmem:[%s16884_s3 + $0x8] sm:$0xff] }
  0xcc   : > { %12835 = vmatpush.bf16.msra.mxu2 %v12674_v47  ;;  %1165 = vmatpush.bf16.msrb.mxu0 %v12674_v47 }
  0xcd   : > { %v648_v53 = vpop.f32.mrf.mxu0  ;;  %v1298_v59 = vld [vmem:[#allocation2 + $0x21] sm:$0xff] }
  0xce   : > { %744 = vst.msk [vmem:[#allocation2 + $0x30] sm:$0xff] %vm560_vm0, %v648_v53  ;;  %v12673_v53 = vld [vmem:[%s16884_s3] sm:$0xff] }
  0xd0   : > { %v13121_v54 = vpop.f32.mrf.mxu1  ;;  %11411 = vmatmul.msk.bf16.gmra.mxu0 %vm560_vm0, %v12659_v51  ;;  %11523 = vmatmul.msk.bf16.gmra.mxu3 %vm560_vm0, %v1395_v52  ;;  %v1370_v51 = vld [vmem:[%s12947_s28 + $0x69] sm:$0xff] }
  0xd1   : > { %12836 = vmatpush.bf16.msra.mxu2 %v12673_v53  ;;  %1166 = vmatpush.bf16.msrb.mxu0 %v12673_v53 }
  0xd3   : > { %v13125_v55 = vpop.f32.mrf.mxu3 }
  0xd5   : > { %v650_v56 = vpop.f32.mrf.mxu0  ;;  %v1299_v57 = vld [vmem:[#allocation2 + $0x29] sm:$0xff]  ;;  %2090 = vmatpush.bf16.msrb.mxu2 %v12696_v61 }
  0xd6   : > { %745 = vst.msk [vmem:[#allocation2 + $0x38] sm:$0xff] %vm560_vm0, %v650_v56  ;;  %v1332_v60 = vpack.c.bf16 %v1299_v57, %v1298_v59  ;;  %v12663_v56 = vld [vmem:[%s16881_s0 + $0x78] sm:$0xff]  ;;  %v1399_v57 = vpack.c.bf16 %v1370_v51, %v1369_v49 }
  0xd8   : > { %v13128_v58 = vpop.f32.mrf.mxu1 }
  0xdb   : > { %11557 = vmatmul.msk.bf16.gmra.mxu1 %vm560_vm0, %v1332_v60  ;;  %v13133_v63 = vpop.f32.mrf.mxu3 }
  0xdd   : > { %v653_v2 = vpop.f32.mrf.mxu0  ;;  %v1300_v8 = vld [vmem:[#allocation2 + $0x31] sm:$0xff] }
  0xde   : > { %746 = vst.msk [vmem:[#allocation2 + $0x40] sm:$0xff] %vm560_vm0, %v653_v2 }
  0xe0   : > { %v13139_v3 = vpop.f32.mrf.mxu1  ;;  %11412 = vmatmul.msk.bf16.gmra.mxu0 %vm560_vm0, %v12660_v0  ;;  %11524 = vmatmul.msk.bf16.gmra.mxu3 %vm560_vm0, %v1396_v1 }
  0xe3   : > { %v13143_v4 = vpop.f32.mrf.mxu3 }
  0xe5   : > { %v655_v5 = vpop.f32.mrf.mxu0  ;;  %v1301_v6 = vld [vmem:[#allocation2 + $0x39] sm:$0xff] }
  0xe6   : > { %747 = vst.msk [vmem:[#allocation2 + $0x48] sm:$0xff] %vm560_vm0, %v655_v5  ;;  %v1333_v10 = vpack.c.bf16 %v1301_v6, %v1300_v8  ;;  %v1371_v8 = vld [vmem:[%s12947_s28 + $0x71] sm:$0xff] }
  0xe8   : > { %v13146_v7 = vpop.f32.mrf.mxu1 }
  0xeb   : > { %11558 = vmatmul.msk.bf16.gmra.mxu1 %vm560_vm0, %v1333_v10  ;;  %v13151_v13 = vpop.f32.mrf.mxu3  ;;  %v1372_v10 = vld [vmem:[%s12947_s28 + $0x79] sm:$0xff] }
  0xed   : > { %v658_v17 = vpop.f32.mrf.mxu0  ;;  %v1302_v24 = vld [vmem:[#allocation2 + $0x41] sm:$0xff] }
  0xee   : > { %748 = vst.msk [vmem:[#allocation2 + $0x50] sm:$0xff] %vm560_vm0, %v658_v17 }
  0xf0   : > { %v13157_v18 = vpop.f32.mrf.mxu1  ;;  %11413 = vmatmul.msk.bf16.gmra.mxu0 %vm560_vm0, %v12661_v14  ;;  %11525 = vmatmul.msk.bf16.gmra.mxu3 %vm560_vm0, %v1397_v16  ;;  %v1400_v14 = vpack.c.bf16 %v1372_v10, %v1371_v8  ;;  %v12666_v10 = vld [vmem:[%s16881_s0 + $0x90] sm:$0xff] }
  0xf3   : > { %v13161_v19 = vpop.f32.mrf.mxu3 }
  0xf5   : > { %v660_v20 = vpop.f32.mrf.mxu0  ;;  %v1303_v22 = vld [vmem:[#allocation2 + $0x49] sm:$0xff] }
  0xf6   : > { %749 = vst.msk [vmem:[#allocation2 + $0x58] sm:$0xff] %vm560_vm0, %v660_v20  ;;  %v1334_v25 = vpack.c.bf16 %v1303_v22, %v1302_v24  ;;  %v12692_v20 = vld [vmem:[%s16884_s3 + $0x58] sm:$0xff] }
  0xf7   : > { %2267 = vmatpush.bf16.msrb.mxu3 %v12692_v20 }
  0xf8   : > { %v13164_v23 = vpop.f32.mrf.mxu1 }
  0xfb   : > { %11559 = vmatmul.msk.bf16.gmra.mxu1 %vm560_vm0, %v1334_v25  ;;  %v13169_v30 = vpop.f32.mrf.mxu3 }
  0xfd   : > { %v663_v34 = vpop.f32.mrf.mxu0  ;;  %v1304_v46 = vld [vmem:[#allocation2 + $0x51] sm:$0xff] }
  0xfe   : > { %750 = vst.msk [vmem:[#allocation2 + $0x60] sm:$0xff] %vm560_vm0, %v663_v34  ;;  %v1374_v34 = vld [vmem:[%s12947_s28 + $0x89] sm:$0xff] }
 0x100   : > { %v13175_v35 = vpop.f32.mrf.mxu1  ;;  %11414 = vmatmul.msk.bf16.gmra.mxu0 %vm560_vm0, %v12662_v31  ;;  %11526 = vmatmul.msk.bf16.gmra.mxu3 %vm560_vm0, %v1398_v33  ;;  %v1373_v33 = vld [vmem:[%s12947_s28 + $0x81] sm:$0xff] }
 0x101   : > { %v1401_v47 = vpack.c.bf16 %v1374_v34, %v1373_v33 }
 0x103   : > { %v13182_v38 = vpop.f32.mrf.mxu3 }
 0x105   : > { %v665_v40 = vpop.f32.mrf.mxu0  ;;  %v1305_v43 = vld [vmem:[#allocation2 + $0x59] sm:$0xff] }
 0x106   : > { %751 = vst.msk [vmem:[#allocation2 + $0x68] sm:$0xff] %vm560_vm0, %v665_v40  ;;  %v1335_v48 = vpack.c.bf16 %v1305_v43, %v1304_v46 }
 0x108   : > { %v13188_v44 = vpop.f32.mrf.mxu1 }
 0x109   : > { %16911 = vst [vmem:[#allocation5_spill] sm:$0xff] %v13188_v44 }
 0x10b   : > { %11560 = vmatmul.msk.bf16.gmra.mxu1 %vm560_vm0, %v1335_v48  ;;  %v13196_v52 = vpop.f32.mrf.mxu3 }
 0x10d   : > { %v668_v59 = vpop.f32.mrf.mxu0  ;;  %v1306_v5 = vld [vmem:[#allocation2 + $0x61] sm:$0xff] }
 0x10e   : > { %752 = vst.msk [vmem:[#allocation2 + $0x70] sm:$0xff] %vm560_vm0, %v668_v59 }
 0x110   : > { %v13205_v60 = vpop.f32.mrf.mxu1  ;;  %11415 = vmatmul.msk.bf16.gmra.mxu0 %vm560_vm0, %v12663_v56  ;;  %11527 = vmatmul.msk.bf16.gmra.mxu3 %vm560_vm0, %v1399_v57 }
 0x111   : > { %16912 = vst [vmem:[#allocation6_spill] sm:$0xff] %v13205_v60 }
 0x113   : > { %v13212_v62 = vpop.f32.mrf.mxu3 }
 0x115   : > { %v670_v0 = vpop.f32.mrf.mxu0  ;;  %v1307_v1 = vld [vmem:[#allocation2 + $0x69] sm:$0xff] }
 0x116   : > { %753 = vst.msk [vmem:[#allocation2 + $0x78] sm:$0xff] %vm560_vm0, %v670_v0  ;;  %v1336_v6 = vpack.c.bf16 %v1307_v1, %v1306_v5  ;;  %v12695_v1 = vld [vmem:[%s16885_s4 + $0x50] sm:$0xff] }
 0x117   : > { %v1375_v5 = vld [vmem:[%s12947_s28 + $0x91] sm:$0xff]  ;;  %2091 = vmatpush.bf16.msrb.mxu2 %v12695_v1 }
 0x118   : > { %v13215_v2 = vpop.f32.mrf.mxu1  ;;  %v794_v44 = vld [vmem:[#allocation2 + $0x70] sm:$0xff] }
 0x11b   : > { %11561 = vmatmul.msk.bf16.gmra.mxu1 %vm560_vm0, %v1336_v6  ;;  %v13220_v11 = vpop.f32.mrf.mxu3  ;;  %v1376_v6 = vld [vmem:[%s12947_s28 + $0x99] sm:$0xff] }
 0x11c   : > { %v1402_v20 = vpack.c.bf16 %v1376_v6, %v1375_v5 }
 0x11d   : > { %v673_v16 = vpop.f32.mrf.mxu0  ;;  %v1308_v27 = vld [vmem:[#allocation2 + $0x71] sm:$0xff] }
 0x11e   : > { %754 = vst.msk [vmem:[#allocation2 + $0x80] sm:$0xff] %vm560_vm0, %v673_v16 }
 0x120   : > { %v13226_v17 = vpop.f32.mrf.mxu1  ;;  %11416 = vmatmul.msk.bf16.gmra.mxu0 %vm560_vm0, %v12664_v12  ;;  %11528 = vmatmul.msk.bf16.gmra.mxu3 %vm560_vm0, %v1400_v14 }
 0x123   : > { %v13233_v22 = vpop.f32.mrf.mxu3 }
 0x125   : > { %v675_v24 = vpop.f32.mrf.mxu0  ;;  %v1309_v25 = vld [vmem:[#allocation2 + $0x79] sm:$0xff] }
 0x126   : > { %755 = vst.msk [vmem:[#allocation2 + $0x88] sm:$0xff] %vm560_vm0, %v675_v24  ;;  %v1337_v31 = vpack.c.bf16 %v1309_v25, %v1308_v27  ;;  %v796_v43 = vld [vmem:[#allocation2 + $0x80] sm:$0xff] }
 0x128   : > { %v13236_v26 = vpop.f32.mrf.mxu1 }
 0x12b   : > { %11562 = vmatmul.msk.bf16.gmra.mxu1 %vm560_vm0, %v1337_v31  ;;  %v13241_v36 = vpop.f32.mrf.mxu3 }
 0x12c   : > { %16913 = vst [vmem:[#allocation7_spill] sm:$0xff] %v13241_v36 }
 0x12d   : > { %v678_v40 = vpop.f32.mrf.mxu0  ;;  %v797_v46 = vld [vmem:[#allocation2 + $0x88] sm:$0xff] }
 0x12e   : > { %756 = vst.msk [vmem:[#allocation2 + $0x90] sm:$0xff] %vm560_vm0, %v678_v40  ;;  %v824_v48 = vpack.c.bf16 %v797_v46, %v796_v43  ;;  %v1310_v59 = vld [vmem:[#allocation2 + $0x81] sm:$0xff] }
 0x130   : > { %v13247_v49 = vpop.f32.mrf.mxu1  ;;  %11417 = vmatmul.msk.bf16.gmra.mxu0 %vm560_vm0, %v12665_v39  ;;  %11479 = vmatmul.msk.bf16.vlgmr.msra.gmra.mxu2 %vm560_vm0, %v824_v48  ;;  %v1378_v48 = vld [vmem:[%s12947_s28 + $0xa9] sm:$0xff] }
 0x131   : > { %11529 = vmatmul.msk.bf16.gmra.mxu3 %vm560_vm0, %v1401_v47  ;;  %v1377_v47 = vld [vmem:[%s12947_s28 + $0xa1] sm:$0xff] }
 0x133   : > { %v1507_v51 = vpop.f32.mrf.mxu3 }
 0x135   : > { %v680_v53 = vpop.f32.mrf.mxu0  ;;  %v1311_v56 = vld [vmem:[#allocation2 + $0x89] sm:$0xff] }
 0x136   : > { %757 = vst.msk [vmem:[#allocation2 + $0x98] sm:$0xff] %vm560_vm0, %v680_v53  ;;  %v1338_v0 = vpack.c.bf16 %v1311_v56, %v1310_v59  ;;  %v798_v14 = vld [vmem:[#allocation2 + $0x90] sm:$0xff]  ;;  %v12667_v53 = vld [vmem:[%s16881_s0 + $0x98] sm:$0xff] }
 0x138   : > { %v1684_v57 = vpop.f32.mrf.mxu1 }
 0x139   : > { %v13253_v61 = vadd.f32 %v1684_v57, %v1507_v51 }
 0x13b   : > { %11563 = vmatmul.msk.bf16.gmra.mxu1 %vm560_vm0, %v1338_v0  ;;  %v1509_v8 = vpop.f32.mrf.mxu3  ;;  %v1403_v0 = vpack.c.bf16 %v1378_v48, %v1377_v47 }
 0x13d   : > { %v683_v12 = vpop.f32.mrf.mxu0  ;;  %v799_v16 = vld [vmem:[#allocation2 + $0x98] sm:$0xff] }
 0x13e   : > { %758 = vst.msk [vmem:[#allocation2 + $0xa0] sm:$0xff] %vm560_vm0, %v683_v12  ;;  %v825_v24 = vpack.c.bf16 %v799_v16, %v798_v14  ;;  %v1312_v40 = vld [vmem:[#allocation2 + $0x91] sm:$0xff] }
 0x140   : > { %v1686_v25 = vpop.f32.mrf.mxu1  ;;  %11418 = vmatmul.msk.bf16.gmra.mxu0 %vm560_vm0, %v12666_v10  ;;  %11480 = vmatmul.msk.bf16.gmra.mxu2 %vm560_vm0, %v825_v24 }
 0x141   : > { %v13265_v27 = vadd.f32 %v1686_v25, %v1509_v8  ;;  %11530 = vmatmul.msk.bf16.gmra.mxu3 %vm560_vm0, %v1402_v20  ;;  %v1379_v25 = vld [vmem:[%s12947_s28 + $0xb1] sm:$0xff] }
 0x143   : > { %v1512_v31 = vpop.f32.mrf.mxu3 }
 0x145   : > { %v685_v33 = vpop.f32.mrf.mxu0  ;;  %v1313_v34 = vld [vmem:[#allocation2 + $0x99] sm:$0xff] }
 0x146   : > { %759 = vst.msk [vmem:[#allocation2 + $0xa8] sm:$0xff] %vm560_vm0, %v685_v33  ;;  %v1339_v46 = vpack.c.bf16 %v1313_v34, %v1312_v40  ;;  %v800_v57 = vld [vmem:[#allocation2 + $0xa0] sm:$0xff]  ;;  %v781_v34 = vld [vmem:[#allocation2 + $0x8] sm:$0xff] }
 0x147   : > { %v780_v40 = vld [vmem:[#allocation2] sm:$0xff] }
 0x148   : > { %v1689_v39 = vpop.f32.mrf.mxu1 }
 0x149   : > { %v13271_v43 = vadd.f32 %v1689_v39, %v1512_v31  ;;  %v1380_v31 = vld [vmem:[%s12947_s28 + $0xb9] sm:$0xff] }
 0x14a   : > { %v1404_v48 = vpack.c.bf16 %v1380_v31, %v1379_v25  ;;  %v1382_v25 = vld [vmem:[%s12947_s28 + $0xc9] sm:$0xff] }
 0x14b   : > { %11564 = vmatmul.msk.bf16.gmra.mxu1 %vm560_vm0, %v1339_v46  ;;  %v1514_v51 = vpop.f32.mrf.mxu3 }
 0x14d   : > { %v688_v56 = vpop.f32.mrf.mxu0  ;;  %v801_v59 = vld [vmem:[#allocation2 + $0xa8] sm:$0xff] }
 0x14e   : > { %760 = vst.msk [vmem:[#allocation2 + $0xb0] sm:$0xff] %vm560_vm0, %v688_v56  ;;  %v826_v1 = vpack.c.bf16 %v801_v59, %v800_v57  ;;  %v1314_v16 = vld [vmem:[#allocation2 + $0xa1] sm:$0xff] }
 0x14f   : > { %v12694_v59 = vld [vmem:[%s16885_s4 + $0x48] sm:$0xff] }
 0x150   : > { %v1691_v5 = vpop.f32.mrf.mxu1  ;;  %11419 = vmatmul.msk.bf16.gmra.mxu0 %vm560_vm0, %v12667_v53  ;;  %11481 = vmatmul.msk.bf16.gmra.mxu2 %vm560_vm0, %v826_v1 }
 0x151   : > { %v13280_v6 = vadd.f32 %v1691_v5, %v1514_v51  ;;  %11531 = vmatmul.msk.bf16.gmra.mxu3 %vm560_vm0, %v1403_v0  ;;  %v816_v51 = vpack.c.bf16 %v781_v34, %v780_v40  ;;  %2092 = vmatpush.bf16.msrb.mxu2 %v12694_v59 }
 0x153   : > { %v1517_v8 = vpop.f32.mrf.mxu3 }
 0x155   : > { %v690_v10 = vpop.f32.mrf.mxu0  ;;  %v1315_v12 = vld [vmem:[#allocation2 + $0xa9] sm:$0xff] }
 0x156   : > { %761 = vst.msk [vmem:[#allocation2 + $0xb8] sm:$0xff] %vm560_vm0, %v690_v10  ;;  %v1340_v24 = vpack.c.bf16 %v1315_v12, %v1314_v16  ;;  %v802_v46 = vld [vmem:[#allocation2 + $0xb0] sm:$0xff] }
 0x157   : > { %v12691_v16 = vld [vmem:[%s16884_s3 + $0x50] sm:$0xff] }
 0x158   : > { %v1694_v14 = vpop.f32.mrf.mxu1  ;;  %2268 = vmatpush.bf16.msrb.mxu3 %v12691_v16  ;;  %v1383_v16 = vld [vmem:[%s12947_s28 + $0xd1] sm:$0xff] }
 0x159   : > { %v13286_v20 = vadd.f32 %v1694_v14, %v1517_v8 }
 0x15b   : > { %11565 = vmatmul.msk.bf16.gmra.mxu1 %vm560_vm0, %v1340_v24  ;;  %v1519_v33 = vpop.f32.mrf.mxu3  ;;  %v1381_v24 = vld [vmem:[%s12947_s28 + $0xc1] sm:$0xff] }
 0x15d   : > { %v693_v39 = vpop.f32.mrf.mxu0  ;;  %v803_v47 = vld [vmem:[#allocation2 + $0xb8] sm:$0xff] }
 0x15e   : > { %762 = vst.msk [vmem:[#allocation2 + $0xc0] sm:$0xff] %vm560_vm0, %v693_v39  ;;  %v827_v53 = vpack.c.bf16 %v803_v47, %v802_v46  ;;  %v1316_v10 = vld [vmem:[#allocation2 + $0xb1] sm:$0xff]  ;;  %v1405_v47 = vpack.c.bf16 %v1382_v25, %v1381_v24  ;;  %v1384_v24 = vld [vmem:[%s12947_s28 + $0xd9] sm:$0xff] }
 0x15f   : > { %v782_v39 = vld [vmem:[#allocation2 + $0x10] sm:$0xff] }
 0x160   : > { %v1696_v56 = vpop.f32.mrf.mxu1  ;;  %11471 = vmatmul.msk.bf16.vlgmr.msrb.gmra.mxu0 %vm560_vm0, %v816_v51  ;;  %11482 = vmatmul.msk.bf16.gmra.mxu2 %vm560_vm0, %v827_v53 }
 0x161   : > { %v13292_v57 = vadd.f32 %v1696_v56, %v1519_v33  ;;  %11532 = vmatmul.msk.bf16.gmra.mxu3 %vm560_vm0, %v1404_v48  ;;  %v783_v33 = vld [vmem:[#allocation2 + $0x18] sm:$0xff] }
 0x162   : > { %v817_v48 = vpack.c.bf16 %v783_v33, %v782_v39 }
 0x163   : > { %v1522_v0 = vpop.f32.mrf.mxu3 }
 0x165   : > { %v695_v1 = vpop.f32.mrf.mxu0  ;;  %v1317_v5 = vld [vmem:[#allocation2 + $0xb9] sm:$0xff] }
 0x166   : > { %763 = vst.msk [vmem:[#allocation2 + $0xc8] sm:$0xff] %vm560_vm0, %v695_v1  ;;  %v1341_v14 = vpack.c.bf16 %v1317_v5, %v1316_v10  ;;  %v804_v40 = vld [vmem:[#allocation2 + $0xc0] sm:$0xff] }
 0x168   : > { %v1699_v8 = vpop.f32.mrf.mxu1 }
 0x169   : > { %v13301_v12 = vadd.f32 %v1699_v8, %v1522_v0 }
 0x16b   : > { %11566 = vmatmul.msk.bf16.gmra.mxu1 %vm560_vm0, %v1341_v14  ;;  %v1524_v31 = vpop.f32.mrf.mxu3 }
 0x16d   : > { %v698_v34 = vpop.f32.mrf.mxu0  ;;  %v805_v46 = vld [vmem:[#allocation2 + $0xc8] sm:$0xff] }
 0x16e   : > { %764 = vst.msk [vmem:[#allocation2 + $0xd0] sm:$0xff] %vm560_vm0, %v698_v34  ;;  %v828_v51 = vpack.c.bf16 %v805_v46, %v804_v40  ;;  %v1318_v8 = vld [vmem:[#allocation2 + $0xc1] sm:$0xff]  ;;  %v1406_v46 = vpack.c.bf16 %v1384_v24, %v1383_v16 }
 0x16f   : > { %v784_v34 = vld [vmem:[#allocation2 + $0x20] sm:$0xff] }
 0x170   : > { %v1701_v53 = vpop.f32.mrf.mxu1  ;;  %11472 = vmatmul.msk.bf16.gmra.mxu0 %vm560_vm0, %v817_v48  ;;  %11483 = vmatmul.msk.bf16.gmra.mxu2 %vm560_vm0, %v828_v51  ;;  %v12693_v24 = vld [vmem:[%s16885_s4 + $0x40] sm:$0xff] }
 0x171   : > { %v13310_v56 = vadd.f32 %v1701_v53, %v1524_v31  ;;  %11533 = vmatmul.msk.bf16.gmra.mxu3 %vm560_vm0, %v1405_v47  ;;  %v785_v31 = vld [vmem:[#allocation2 + $0x28] sm:$0xff]  ;;  %2093 = vmatpush.bf16.msrb.mxu2 %v12693_v24 }
 0x172   : > { %v818_v47 = vpack.c.bf16 %v785_v31, %v784_v34  ;;  %v1386_v31 = vld [vmem:[%s12947_s28 + $0xe9] sm:$0xff]  ;;  %v787_v34 = vld [vmem:[#allocation2 + $0x38] sm:$0xff] }
 0x173   : > { %v1527_v59 = vpop.f32.mrf.mxu3 }
 0x175   : > { %v700_v0 = vpop.f32.mrf.mxu0  ;;  %v1319_v1 = vld [vmem:[#allocation2 + $0xc9] sm:$0xff] }
 0x176   : > { %765 = vst.msk [vmem:[#allocation2 + $0xd8] sm:$0xff] %vm560_vm0, %v700_v0  ;;  %v1342_v14 = vpack.c.bf16 %v1319_v1, %v1318_v8  ;;  %v806_v39 = vld [vmem:[#allocation2 + $0xd0] sm:$0xff] }
 0x178   : > { %v1704_v5 = vpop.f32.mrf.mxu1 }
 0x179   : > { %v13316_v10 = vadd.f32 %v1704_v5, %v1527_v59 }
 0x17b   : > { %11567 = vmatmul.msk.bf16.gmra.mxu1 %vm560_vm0, %v1342_v14  ;;  %v1529_v25 = vpop.f32.mrf.mxu3 }
 0x17d   : > { %v703_v33 = vpop.f32.mrf.mxu0  ;;  %v807_v40 = vld [vmem:[#allocation2 + $0xd8] sm:$0xff] }
 0x17e   : > { %766 = vst.msk [vmem:[#allocation2 + $0xe0] sm:$0xff] %vm560_vm0, %v703_v33  ;;  %v829_v48 = vpack.c.bf16 %v807_v40, %v806_v39  ;;  %v1320_v8 = vld [vmem:[#allocation2 + $0xd1] sm:$0xff] }
 0x17f   : > { %v786_v40 = vld [vmem:[#allocation2 + $0x30] sm:$0xff] }
 0x180   : > { %v1706_v51 = vpop.f32.mrf.mxu1  ;;  %11473 = vmatmul.msk.bf16.gmra.mxu0 %vm560_vm0, %v818_v47  ;;  %11484 = vmatmul.msk.bf16.gmra.mxu2 %vm560_vm0, %v829_v48 }
 0x181   : > { %v13322_v53 = vadd.f32 %v1706_v51, %v1529_v25  ;;  %11534 = vmatmul.msk.bf16.gmra.mxu3 %vm560_vm0, %v1406_v46  ;;  %v1385_v25 = vld [vmem:[%s12947_s28 + $0xe1] sm:$0xff]  ;;  %v819_v51 = vpack.c.bf16 %v787_v34, %v786_v40 }
 0x182   : > { %v1407_v48 = vpack.c.bf16 %v1386_v31, %v1385_v25 }
 0x183   : > { %v1532_v59 = vpop.f32.mrf.mxu3 }
 0x185   : > { %v705_v0 = vpop.f32.mrf.mxu0  ;;  %v1321_v1 = vld [vmem:[#allocation2 + $0xd9] sm:$0xff] }
 0x186   : > { %767 = vst.msk [vmem:[#allocation2 + $0xe8] sm:$0xff] %vm560_vm0, %v705_v0  ;;  %v1343_v16 = vpack.c.bf16 %v1321_v1, %v1320_v8  ;;  %v808_v46 = vld [vmem:[#allocation2 + $0xe0] sm:$0xff] }
 0x188   : > { %v1709_v5 = vpop.f32.mrf.mxu1 }
 0x189   : > { %v13328_v14 = vadd.f32 %v1709_v5, %v1532_v59 }
 0x18b   : > { %11568 = vmatmul.msk.bf16.gmra.mxu1 %vm560_vm0, %v1343_v16  ;;  %v1534_v33 = vpop.f32.mrf.mxu3 }
 0x18d   : > { %v708_v39 = vpop.f32.mrf.mxu0  ;;  %v809_v47 = vld [vmem:[#allocation2 + $0xe8] sm:$0xff] }
 0x18e   : > { %768 = vst.msk [vmem:[#allocation2 + $0xf0] sm:$0xff] %vm560_vm0, %v708_v39  ;;  %v830_v59 = vpack.c.bf16 %v809_v47, %v808_v46  ;;  %v1322_v25 = vld [vmem:[#allocation2 + $0xe1] sm:$0xff]  ;;  %v1388_v39 = vld [vmem:[%s12947_s28 + $0xf9] sm:$0xff] }
 0x18f   : > { %v789_v46 = vld [vmem:[#allocation2 + $0x48] sm:$0xff] }
 0x190   : > { %v1711_v0 = vpop.f32.mrf.mxu1  ;;  %11474 = vmatmul.msk.bf16.gmra.mxu0 %vm560_vm0, %v819_v51  ;;  %11485 = vmatmul.msk.bf16.gmra.mxu2 %vm560_vm0, %v830_v59  ;;  %v788_v51 = vld [vmem:[#allocation2 + $0x40] sm:$0xff] }
 0x191   : > { %v13337_v1 = vadd.f32 %v1711_v0, %v1534_v33  ;;  %11535 = vmatmul.msk.bf16.gmra.mxu3 %vm560_vm0, %v1407_v48  ;;  %v1387_v33 = vld [vmem:[%s12947_s28 + $0xf1] sm:$0xff]  ;;  %v820_v60 = vpack.c.bf16 %v789_v46, %v788_v51 }
 0x192   : > { %v1408_v0 = vpack.c.bf16 %v1388_v39, %v1387_v33 }
 0x193   : > { %v1537_v5 = vpop.f32.mrf.mxu3 }
 0x195   : > { %v710_v8 = vpop.f32.mrf.mxu0  ;;  %v1323_v16 = vld [vmem:[#allocation2 + $0xe9] sm:$0xff] }
 0x196   : > { %769 = vst.msk [vmem:[#allocation2 + $0xf8] sm:$0xff] %vm560_vm0, %v710_v8  ;;  %v1344_v34 = vpack.c.bf16 %v1323_v16, %v1322_v25  ;;  %v810_v59 = vld [vmem:[#allocation2 + $0xf0] sm:$0xff] }
 0x198   : > { %v1714_v24 = vpop.f32.mrf.mxu1 }
 0x199   : > { %v13343_v31 = vadd.f32 %v1714_v24, %v1537_v5 }
 0x19b   : > { %11569 = vmatmul.msk.bf16.gmra.mxu1 %vm560_vm0, %v1344_v34  ;;  %v1539_v40 = vpop.f32.mrf.mxu3 }
 0x19d   : > { %v713_v47 = vpop.f32.mrf.mxu0  ;;  %v811_v48 = vld [vmem:[#allocation2 + $0xf8] sm:$0xff] }
 0x19e   : > { %770 = vst.msk [vmem:[#allocation2 + $0x100] sm:$0xff] %vm560_vm0, %v713_v47  ;;  %v831_v8 = vpack.c.bf16 %v811_v48, %v810_v59  ;;  %v1324_v33 = vld [vmem:[#allocation2 + $0xf1] sm:$0xff]  ;;  %v12689_v48 = vld [vmem:[%s16884_s3 + $0x40] sm:$0xff] }
 0x19f   : > { %v12700_v47 = vld [vmem:[%s16884_s3 + $0x78] sm:$0xff] }
 0x1a0   : > { %v1716_v36 = vpop.f32.mrf.mxu1  ;;  %11475 = vmatmul.msk.bf16.gmra.mxu0 %vm560_vm0, %v820_v60  ;;  %11486 = vmatmul.msk.bf16.gmra.mxu2 %vm560_vm0, %v831_v8  ;;  %v1389_v60 = vld [vmem:[%s12947_s28 + $0x101] sm:$0xff]  ;;  %v791_v59 = vld [vmem:[#allocation2 + $0x58] sm:$0xff]  ;;  %v790_v8 = vld [vmem:[#allocation2 + $0x50] sm:$0xff] }
 0x1a1   : > { %v13349_v5 = vadd.f32 %v1716_v36, %v1539_v40  ;;  %11536 = vmatmul.msk.bf16.gmra.mxu3 %vm560_vm0, %v1408_v0  ;;  %v12690_v36 = vld [vmem:[%s16884_s3 + $0x48] sm:$0xff]  ;;  %2855 = vmatpush.bf16.msra.mxu1 %v12700_v47 }
 0x1a2   : > { %v1390_v40 = vld [vmem:[%s12947_s28 + $0x109] sm:$0xff]  ;;  %2269 = vmatpush.bf16.msrb.mxu3 %v12690_v36 }
 0x1a3   : > { %16914 = vst [vmem:[#allocation8_spill] sm:$0xff] %v13349_v5  ;;  %v1542_v16 = vpop.f32.mrf.mxu3  ;;  %v1882_v5 = vld [vmem:[#allocation2 + $0x2] sm:$0xff] }
 0x1a5   : > { %v715_v24 = vpop.f32.mrf.mxu0  ;;  %v1325_v25 = vld [vmem:[#allocation2 + $0xf9] sm:$0xff] }
 0x1a6   : > { %771 = vst.msk [vmem:[#allocation2 + $0x108] sm:$0xff] %vm560_vm0, %v715_v24  ;;  %v1345_v46 = vpack.c.bf16 %v1325_v25, %v1324_v33  ;;  %v1409_v25 = vpack.c.bf16 %v1390_v40, %v1389_v60  ;;  %2270 = vmatpush.bf16.msrb.mxu3 %v12689_v48  ;;  %v12704_v60 = vld [vmem:[%s16885_s4 + $0x78] sm:$0xff] }
 0x1a7   : > { %v12712_v40 = vld [vmem:[%s16885_s4 + $0x98] sm:$0xff]  ;;  %2678 = vmatpush.bf16.msra.mxu0 %v12704_v60  ;;  %v12702_v60 = vld [vmem:[%s16885_s4 + $0x68] sm:$0xff] }
 0x1a8   : > { %v1719_v34 = vpop.f32.mrf.mxu1  ;;  %3266 = vmatpush.bf16.msra.mxu2 %v12712_v40 }
 0x1a9   : > { %v13355_v39 = vadd.f32 %v1719_v34, %v1542_v16  ;;  %v812_v16 = vld [vmem:[#allocation2 + $0x100] sm:$0xff]  ;;  %v821_v34 = vpack.c.bf16 %v791_v59, %v790_v8 }
 0x1ab   : > { %16915 = vst [vmem:[#allocation9_spill] sm:$0xff] %v13355_v39  ;;  %11570 = vmatmul.msk.bf16.gmra.mxu1 %vm560_vm0, %v1345_v46  ;;  %v1544_v51 = vpop.f32.mrf.mxu3  ;;  %v12699_v46 = vld [vmem:[%s16884_s3 + $0x70] sm:$0xff] }
 0x1ac   : > { %2856 = vmatpush.bf16.msra.mxu1 %v12699_v46 }
 0x1ad   : > { %v718_v0 = vpop.f32.mrf.mxu0  ;;  %v813_v24 = vld [vmem:[#allocation2 + $0x108] sm:$0xff] }
 0x1ae   : > { %772 = vst.msk [vmem:[#allocation2 + $0x110] sm:$0xff] %vm560_vm0, %v718_v0  ;;  %v832_v33 = vpack.c.bf16 %v813_v24, %v812_v16  ;;  %v12703_v0 = vld [vmem:[%s16885_s4 + $0x70] sm:$0xff]  ;;  %v12697_v24 = vld [vmem:[%s16884_s3 + $0x60] sm:$0xff] }
 0x1af   : > { %2679 = vmatpush.bf16.msra.mxu0 %v12703_v0  ;;  %v1392_v0 = vld [vmem:[%s12947_s28 + $0x119] sm:$0xff] }
 0x1b0   : > { %v1721_v36 = vpop.f32.mrf.mxu1  ;;  %11476 = vmatmul.msk.bf16.gmra.mxu0 %vm560_vm0, %v821_v34  ;;  %11487 = vmatmul.msk.bf16.gmra.mxu2 %vm560_vm0, %v832_v33  ;;  %v1326_v34 = vld [vmem:[#allocation2 + $0x101] sm:$0xff] }
 0x1b1   : > { %v13373_v47 = vadd.f32 %v1721_v36, %v1544_v51  ;;  %11537 = vmatmul.msk.bf16.gmra.mxu3 %vm560_vm0, %v1409_v25  ;;  %v12698_v51 = vld [vmem:[%s16884_s3 + $0x68] sm:$0xff] }
 0x1b2   : > { %2857 = vmatpush.bf16.msra.mxu1 %v12698_v51  ;;  %v1391_v51 = vld [vmem:[%s12947_s28 + $0x111] sm:$0xff] }
 0x1b3   : > { %16916 = vst [vmem:[#allocation10_spill] sm:$0xff] %v13373_v47  ;;  %v1208_v59 = vpop.f32.mrf.mxu2  ;;  %2680 = vmatpush.bf16.msra.mxu0 %v12702_v60  ;;  %v793_v47 = vld [vmem:[#allocation2 + $0x68] sm:$0xff] }
 0x1b4   : > { %v1547_v48 = vpop.f32.mrf.mxu3  ;;  %v1209_v33 = vadd.f32 %v1208_v59, %v13215_v2  ;;  %v12701_v2 = vld [vmem:[%s16885_s4 + $0x60] sm:$0xff] }
 0x1b5   : > { %v720_v8 = vpop.f32.mrf.mxu0  ;;  %v1327_v16 = vld [vmem:[#allocation2 + $0x109] sm:$0xff] }
 0x1b6   : > { %773 = vst.msk [vmem:[#allocation2 + $0x118] sm:$0xff] %vm560_vm0, %v720_v8  ;;  %v1346_v36 = vpack.c.bf16 %v1327_v16, %v1326_v34  ;;  %2858 = vmatpush.bf16.msra.mxu1 %v12697_v24  ;;  %v814_v16 = vld [vmem:[#allocation2 + $0x110] sm:$0xff]  ;;  %v1410_v34 = vpack.c.bf16 %v1392_v0, %v1391_v51 }
 0x1b7   : > { %2681 = vmatpush.bf16.msra.mxu0 %v12701_v2 }
 0x1b8   : > { %v1724_v25 = vpop.f32.mrf.mxu1 }
 0x1b9   : > { %v1725_v46 = vadd.f32 %v1724_v25, %v1547_v48  ;;  %v792_v48 = vld [vmem:[#allocation2 + $0x60] sm:$0xff] }
 0x1ba   : > { %v822_v24 = vpack.c.bf16 %v793_v47, %v792_v48 }
 0x1bb   : > { %v13398_v40 = vadd.f32 %v1725_v46, %v1209_v33  ;;  %11571 = vmatmul.msk.bf16.gmra.mxu1 %vm560_vm0, %v1346_v36  ;;  %v1210_v8 = vpop.f32.mrf.mxu2 }
 0x1bc   : > { %v1549_v39 = vpop.f32.mrf.mxu3  ;;  %v1211_v36 = vadd.f32 %v1210_v8, %v13226_v17 }
 0x1bd   : > { %16917 = vst [vmem:[#allocation11_spill] sm:$0xff] %v13398_v40  ;;  %v723_v59 = vpop.f32.mrf.mxu0  ;;  %v815_v25 = vld [vmem:[#allocation2 + $0x118] sm:$0xff] }
 0x1be   : > { %774 = vst.msk [vmem:[#allocation2 + $0x120] sm:$0xff] %vm560_vm0, %v723_v59  ;;  %v833_v33 = vpack.c.bf16 %v815_v25, %v814_v16  ;;  %v1328_v48 = vld [vmem:[#allocation2 + $0x111] sm:$0xff]  ;;  %v1945_v16 = vld [vmem:[%s12947_s28 + $0x2] sm:$0xff] }
 0x1bf   : > { %v1946_v25 = vld [vmem:[%s12947_s28 + $0xa] sm:$0xff] }
 0x1c0   : > { %v1726_v46 = vpop.f32.mrf.mxu1  ;;  %11477 = vmatmul.msk.bf16.gmra.mxu0 %vm560_vm0, %v822_v24  ;;  %11488 = vmatmul.msk.bf16.gmra.mxu2 %vm560_vm0, %v833_v33  ;;  %v795_v33 = vld [vmem:[#allocation2 + $0x78] sm:$0xff] }
 0x1c1   : > { %v1727_v60 = vadd.f32 %v1726_v46, %v1549_v39  ;;  %11538 = vmatmul.msk.bf16.gmra.mxu3 %vm560_vm0, %v1410_v34 }
 0x1c3   : > { %v13411_v40 = vadd.f32 %v1727_v60, %v1211_v36  ;;  %v1213_v51 = vpop.f32.mrf.mxu2  ;;  %v1981_v36 = vpack.c.bf16 %v1946_v25, %v1945_v16  ;;  %v1883_v60 = vld [vmem:[#allocation2 + $0xa] sm:$0xff]  ;;  %v1947_v25 = vld [vmem:[%s12947_s28 + $0x12] sm:$0xff] }
 0x1c4   : > { %v1552_v0 = vpop.f32.mrf.mxu3  ;;  %v1214_v17 = vadd.f32 %v1213_v51, %v13236_v26  ;;  %v1918_v51 = vpack.c.bf16 %v1883_v60, %v1882_v5 }
 0x1c5   : > { %16918 = vst [vmem:[#allocation12_spill] sm:$0xff] %v13411_v40  ;;  %v725_v59 = vpop.f32.mrf.mxu0  ;;  %v1329_v47 = vld [vmem:[#allocation2 + $0x119] sm:$0xff] }
 0x1c6   : > { %775 = vst.msk [vmem:[#allocation2 + $0x128] sm:$0xff] %vm560_vm0, %v725_v59  ;;  %v1347_v8 = vpack.c.bf16 %v1329_v47, %v1328_v48  ;;  %v823_v59 = vpack.c.bf16 %v795_v33, %v794_v44  ;;  %v2471_v44 = vld [vmem:[#allocation2 + $0x1a] sm:$0xff] }
 0x1c8   : > { %v1729_v2 = vpop.f32.mrf.mxu1 }
 0x1c9   : > { %v1730_v39 = vadd.f32 %v1729_v2, %v1552_v0 }
 0x1cb   : > { %v13417_v24 = vadd.f32 %v1730_v39, %v1214_v17  ;;  %11572 = vmatmul.msk.bf16.gmra.mxu1 %vm560_vm0, %v1347_v8  ;;  %v1215_v34 = vpop.f32.mrf.mxu2  ;;  %v2470_v39 = vld [vmem:[#allocation2 + $0x12] sm:$0xff] }
 0x1cc   : > { %v1554_v46 = vpop.f32.mrf.mxu3  ;;  %v1216_v0 = vadd.f32 %v1215_v34, %v13247_v49  ;;  %v2506_v16 = vpack.c.bf16 %v2471_v44, %v2470_v39  ;;  %v1948_v34 = vld [vmem:[%s12947_s28 + $0x1a] sm:$0xff]  ;;  %v2473_v44 = vld [vmem:[#allocation2 + $0x2a] sm:$0xff] }
 0x1cd   : > { %v728_v40 = vpop.f32.mrf.mxu0  ;;  %v1982_v60 = vpack.c.bf16 %v1948_v34, %v1947_v25  ;;  %v1949_v34 = vld [vmem:[%s12947_s28 + $0x22] sm:$0xff] }
 0x1ce   : > { %776 = vst.msk [vmem:[#allocation2 + $0x130] sm:$0xff] %vm560_vm0, %v728_v40 }
 0x1d0   : > { %v1731_v26 = vpop.f32.mrf.mxu1  ;;  %11478 = vmatmul.msk.bf16.gmra.mxu0 %vm560_vm0, %v823_v59  ;;  %11605 = vmatmul.msk.bf16.vlgmr.msrb.gmra.mxu2 %vm560_vm0, %v1981_v36 }
 0x1d1   : > { %v1732_v47 = vadd.f32 %v1731_v26, %v1554_v46  ;;  %11639 = vmatmul.msk.bf16.vlgmr.msrb.gmra.mxu3 %vm560_vm0, %v1918_v51 }
 0x1d3   : > { %v13425_v2 = vadd.f32 %v1732_v47, %v1216_v0  ;;  %v1218_v48 = vpop.f32.mrf.mxu2 }
 0x1d4   : > { %v1557_v17 = vpop.f32.mrf.mxu3  ;;  %v1219_v49 = vadd.f32 %v1218_v48, %v13089_v29 }
 0x1d5   : > { %v730_v40 = vpop.f32.mrf.mxu0 }
 0x1d6   : > { %777 = vst.msk [vmem:[#allocation2 + $0x138] sm:$0xff] %vm560_vm0, %v730_v40 }
 0x1d8   : > { %v1734_v5 = vpop.f32.mrf.mxu1 }
 0x1d9   : > { %v1735_v8 = vadd.f32 %v1734_v5, %v1557_v17 }
 0x1db   : > { %v13431_v33 = vadd.f32 %v1735_v8, %v1219_v49  ;;  %11723 = vmatmul.msk.bf16.vlgmr.msra.gmra.mxu1 %vm560_vm0, %v2506_v16  ;;  %v1220_v46 = vpop.f32.mrf.mxu2 }
 0x1dc   : > { %v1559_v36 = vpop.f32.mrf.mxu3  ;;  %v1221_v0 = vadd.f32 %v1220_v46, %v13097_v37  ;;  %v1950_v46 = vld [vmem:[%s12947_s28 + $0x2a] sm:$0xff] }
 0x1dd   : > { %v1168_v59 = vpop.f32.mrf.mxu0 }
 0x1de   : > { %v1169_v26 = vadd.f32 %v1168_v59, %v13059_v9  ;;  %v1983_v59 = vpack.c.bf16 %v1950_v46, %v1949_v34  ;;  %v1952_v34 = vld [vmem:[%s12947_s28 + $0x3a] sm:$0xff]  ;;  %v12711_v46 = vld [vmem:[%s16885_s4 + $0x90] sm:$0xff] }
 0x1df   : > { %3267 = vmatpush.bf16.msra.mxu2 %v12711_v46 }
 0x1e0   : > { %v1736_v51 = vpop.f32.mrf.mxu1  ;;  %v13437_v47 = vadd.f32 %v13253_v61, %v1169_v26  ;;  %11606 = vmatmul.msk.bf16.gmra.mxu2 %vm560_vm0, %v1982_v60  ;;  %11689 = vmatmul.msk.bf16.vlgmr.msra.gmra.mxu0 %vm560_vm0, %v1982_v60  ;;  %v2472_v61 = vld [vmem:[#allocation2 + $0x22] sm:$0xff] }
 0x1e1   : > { %v1737_v29 = vadd.f32 %v1736_v51, %v1559_v36  ;;  %11640 = vmatmul.msk.bf16.gmra.mxu3 %vm560_vm0, %v2506_v16  ;;  %v2507_v25 = vpack.c.bf16 %v2473_v44, %v2472_v61 }
 0x1e3   : > { %v13442_v48 = vadd.f32 %v1737_v29, %v1221_v0  ;;  %v1223_v17 = vpop.f32.mrf.mxu2 }
 0x1e4   : > { %v1562_v40 = vpop.f32.mrf.mxu3  ;;  %v1224_v39 = vadd.f32 %v1223_v17, %v13107_v42 }
 0x1e5   : > { %v1170_v9 = vpop.f32.mrf.mxu0 }
 0x1e6   : > { %v1171_v37 = vadd.f32 %v1170_v9, %v13068_v15  ;;  %v2475_v9 = vld [vmem:[#allocation2 + $0x3a] sm:$0xff] }
 0x1e8   : > { %v1739_v5 = vpop.f32.mrf.mxu1  ;;  %v13447_v49 = vadd.f32 %v13265_v27, %v1171_v37 }
 0x1e9   : > { %v1740_v8 = vadd.f32 %v1739_v5, %v1562_v40 }
 0x1eb   : > { %v13451_v16 = vadd.f32 %v1740_v8, %v1224_v39  ;;  %11724 = vmatmul.msk.bf16.gmra.mxu1 %vm560_vm0, %v2507_v25  ;;  %v1225_v36 = vpop.f32.mrf.mxu2  ;;  %v1951_v8 = vld [vmem:[%s12947_s28 + $0x32] sm:$0xff] }
 0x1ec   : > { %v1564_v60 = vpop.f32.mrf.mxu3  ;;  %v1226_v42 = vadd.f32 %v1225_v36, %v13115_v50 }
 0x1ed   : > { %v1173_v26 = vpop.f32.mrf.mxu0 }
 0x1ee   : > { %v1174_v15 = vadd.f32 %v1173_v26, %v13076_v21 }
 0x1f0   : > { %v1741_v51 = vpop.f32.mrf.mxu1  ;;  %v13457_v27 = vadd.f32 %v13271_v43, %v1174_v15  ;;  %11607 = vmatmul.msk.bf16.gmra.mxu2 %vm560_vm0, %v1983_v59  ;;  %11690 = vmatmul.msk.bf16.gmra.mxu0 %vm560_vm0, %v1983_v59  ;;  %v2474_v43 = vld [vmem:[#allocation2 + $0x32] sm:$0xff] }
 0x1f1   : > { %v1742_v0 = vadd.f32 %v1741_v51, %v1564_v60  ;;  %11641 = vmatmul.msk.bf16.gmra.mxu3 %vm560_vm0, %v2507_v25  ;;  %v2508_v39 = vpack.c.bf16 %v2475_v9, %v2474_v43  ;;  %v1984_v60 = vpack.c.bf16 %v1952_v34, %v1951_v8 }
 0x1f3   : > { %v13462_v29 = vadd.f32 %v1742_v0, %v1226_v42  ;;  %v1228_v17 = vpop.f32.mrf.mxu2 }
 0x1f4   : > { %v1567_v40 = vpop.f32.mrf.mxu3  ;;  %v1229_v37 = vadd.f32 %v1228_v17, %v13125_v55 }
 0x1f5   : > { %v1175_v21 = vpop.f32.mrf.mxu0 }
 0x1f6   : > { %v1176_v50 = vadd.f32 %v1175_v21, %v13085_v28 }
 0x1f8   : > { %v1744_v44 = vpop.f32.mrf.mxu1  ;;  %v13467_v5 = vadd.f32 %v13280_v6, %v1176_v50 }
 0x1f9   : > { %v1745_v61 = vadd.f32 %v1744_v44, %v1567_v40  ;;  %v2477_v40 = vld [vmem:[#allocation2 + $0x4a] sm:$0xff] }
 0x1fb   : > { %v13471_v25 = vadd.f32 %v1745_v61, %v1229_v37  ;;  %11725 = vmatmul.msk.bf16.gmra.mxu1 %vm560_vm0, %v2508_v39  ;;  %v1230_v28 = vpop.f32.mrf.mxu2  ;;  %v1953_v37 = vld [vmem:[%s12947_s28 + $0x42] sm:$0xff]  ;;  %v1954_v61 = vld [vmem:[%s12947_s28 + $0x4a] sm:$0xff] }
 0x1fc   : > { %v1569_v36 = vpop.f32.mrf.mxu3  ;;  %v1231_v26 = vadd.f32 %v1230_v28, %v13133_v63  ;;  %v1985_v46 = vpack.c.bf16 %v1954_v61, %v1953_v37 }
 0x1fd   : > { %v1178_v55 = vpop.f32.mrf.mxu0 }
 0x1fe   : > { %v1179_v6 = vadd.f32 %v1178_v55, %v13092_v32 }
 0x200   : > { %v1746_v59 = vpop.f32.mrf.mxu1  ;;  %v13480_v15 = vadd.f32 %v13286_v20, %v1179_v6  ;;  %11608 = vmatmul.msk.bf16.gmra.mxu2 %vm560_vm0, %v1984_v60  ;;  %11691 = vmatmul.msk.bf16.gmra.mxu0 %vm560_vm0, %v1984_v60  ;;  %v2476_v20 = vld [vmem:[#allocation2 + $0x42] sm:$0xff] }
 0x201   : > { %v1747_v51 = vadd.f32 %v1746_v59, %v1569_v36  ;;  %11642 = vmatmul.msk.bf16.gmra.mxu3 %vm560_vm0, %v2508_v39  ;;  %v2509_v43 = vpack.c.bf16 %v2477_v40, %v2476_v20 }
 0x203   : > { %v13485_v42 = vadd.f32 %v1747_v51, %v1231_v26  ;;  %v1233_v0 = vpop.f32.mrf.mxu2  ;;  %v2479_v26 = vld [vmem:[#allocation2 + $0x5a] sm:$0xff] }
 0x204   : > { %v1572_v17 = vpop.f32.mrf.mxu3  ;;  %v1234_v9 = vadd.f32 %v1233_v0, %v13143_v4 }
 0x205   : > { %v1180_v32 = vpop.f32.mrf.mxu0 }
 0x206   : > { %v1181_v63 = vadd.f32 %v1180_v32, %v13103_v41 }
 0x208   : > { %v1749_v21 = vpop.f32.mrf.mxu1  ;;  %v13490_v50 = vadd.f32 %v13292_v57, %v1181_v63  ;;  %v1955_v63 = vld [vmem:[%s12947_s28 + $0x52] sm:$0xff] }
 0x209   : > { %v1750_v44 = vadd.f32 %v1749_v21, %v1572_v17  ;;  %v1956_v21 = vld [vmem:[%s12947_s28 + $0x5a] sm:$0xff] }
 0x20b   : > { %v13494_v39 = vadd.f32 %v1750_v44, %v1234_v9  ;;  %11726 = vmatmul.msk.bf16.gmra.mxu1 %vm560_vm0, %v2509_v43  ;;  %v1235_v8 = vpop.f32.mrf.mxu2 }
 0x20c   : > { %v1574_v34 = vpop.f32.mrf.mxu3  ;;  %v1236_v4 = vadd.f32 %v1235_v8, %v13151_v13 }
 0x20d   : > { %v1183_v28 = vpop.f32.mrf.mxu0 }
 0x20e   : > { %v1184_v41 = vadd.f32 %v1183_v28, %v13110_v45 }
 0x210   : > { %v1751_v36 = vpop.f32.mrf.mxu1  ;;  %v13500_v57 = vadd.f32 %v13301_v12, %v1184_v41  ;;  %11609 = vmatmul.msk.bf16.gmra.mxu2 %vm560_vm0, %v1985_v46  ;;  %11692 = vmatmul.msk.bf16.gmra.mxu0 %vm560_vm0, %v1985_v46  ;;  %v2478_v12 = vld [vmem:[#allocation2 + $0x52] sm:$0xff]  ;;  %v2481_v41 = vld [vmem:[#allocation2 + $0x6a] sm:$0xff] }
 0x211   : > { %v1752_v60 = vadd.f32 %v1751_v36, %v1574_v34  ;;  %11643 = vmatmul.msk.bf16.gmra.mxu3 %vm560_vm0, %v2509_v43  ;;  %v2510_v40 = vpack.c.bf16 %v2479_v26, %v2478_v12  ;;  %v1986_v43 = vpack.c.bf16 %v1956_v21, %v1955_v63  ;;  %v1958_v26 = vld [vmem:[%s12947_s28 + $0x6a] sm:$0xff] }
 0x213   : > { %v13505_v55 = vadd.f32 %v1752_v60, %v1236_v4  ;;  %v1238_v6 = vpop.f32.mrf.mxu2 }
 0x214   : > { %v1577_v59 = vpop.f32.mrf.mxu3  ;;  %v1239_v0 = vadd.f32 %v1238_v6, %v13161_v19 }
 0x215   : > { %v1185_v45 = vpop.f32.mrf.mxu0 }
 0x216   : > { %v1186_v13 = vadd.f32 %v1185_v45, %v13121_v54  ;;  %v1957_v45 = vld [vmem:[%s12947_s28 + $0x62] sm:$0xff] }
 0x218   : > { %v1754_v51 = vpop.f32.mrf.mxu1  ;;  %v13510_v17 = vadd.f32 %v13310_v56, %v1186_v13 }
 0x219   : > { %v1755_v32 = vadd.f32 %v1754_v51, %v1577_v59 }
 0x21b   : > { %v13514_v20 = vadd.f32 %v1755_v32, %v1239_v0  ;;  %11727 = vmatmul.msk.bf16.gmra.mxu1 %vm560_vm0, %v2510_v40  ;;  %v1240_v9 = vpop.f32.mrf.mxu2  ;;  %v1987_v0 = vpack.c.bf16 %v1958_v26, %v1957_v45 }
 0x21c   : > { %v1579_v44 = vpop.f32.mrf.mxu3  ;;  %v1241_v19 = vadd.f32 %v1240_v9, %v13169_v30 }
 0x21d   : > { %v1188_v37 = vpop.f32.mrf.mxu0 }
 0x21e   : > { %v1189_v54 = vadd.f32 %v1188_v37, %v13128_v58 }
 0x220   : > { %v1756_v61 = vpop.f32.mrf.mxu1  ;;  %v13520_v56 = vadd.f32 %v13316_v10, %v1189_v54  ;;  %11610 = vmatmul.msk.bf16.gmra.mxu2 %vm560_vm0, %v1986_v43  ;;  %11693 = vmatmul.msk.bf16.gmra.mxu0 %vm560_vm0, %v1986_v43  ;;  %v2480_v10 = vld [vmem:[#allocation2 + $0x62] sm:$0xff]  ;;  %v2483_v43 = vld [vmem:[#allocation2 + $0x7a] sm:$0xff] }
 0x221   : > { %v1757_v8 = vadd.f32 %v1756_v61, %v1579_v44  ;;  %11644 = vmatmul.msk.bf16.gmra.mxu3 %vm560_vm0, %v2510_v40  ;;  %v2511_v59 = vpack.c.bf16 %v2481_v41, %v2480_v10 }
 0x223   : > { %v13525_v34 = vadd.f32 %v1757_v8, %v1241_v19  ;;  %v1243_v46 = vpop.f32.mrf.mxu2 }
 0x224   : > { %v1582_v28 = vpop.f32.mrf.mxu3  ;;  %v1244_v4 = vadd.f32 %v1243_v46, %v13182_v38  ;;  %v1959_v46 = vld [vmem:[%s12947_s28 + $0x72] sm:$0xff] }
 0x225   : > { %v1190_v58 = vpop.f32.mrf.mxu0 }
 0x226   : > { %v1191_v30 = vadd.f32 %v1190_v58, %v13139_v3 }
 0x228   : > { %v1759_v36 = vpop.f32.mrf.mxu1  ;;  %v13530_v60 = vadd.f32 %v13322_v53, %v1191_v30 }
 0x229   : > { %v1760_v6 = vadd.f32 %v1759_v36, %v1582_v28  ;;  %v1960_v28 = vld [vmem:[%s12947_s28 + $0x7a] sm:$0xff] }
 0x22a   : > { %v1988_v36 = vpack.c.bf16 %v1960_v28, %v1959_v46  ;;  %v16921_v46 = vld [vmem:[#allocation7_spill] sm:$0xff]  ;;  %v16922_v28 = vld [vmem:[#allocation9_spill] sm:$0xff] }
 0x22b   : > { %v13534_v13 = vadd.f32 %v1760_v6, %v1244_v4  ;;  %11728 = vmatmul.msk.bf16.gmra.mxu1 %vm560_vm0, %v2511_v59  ;;  %v1245_v51 = vpop.f32.mrf.mxu2 }
 0x22c   : > { %v1584_v12 = vpop.f32.mrf.mxu3  ;;  %v1246_v38 = vadd.f32 %v1245_v51, %v13196_v52  ;;  %v2485_v51 = vld [vmem:[#allocation2 + $0x8a] sm:$0xff] }
 0x22d   : > { %v1193_v32 = vpop.f32.mrf.mxu0 }
 0x22e   : > { %v1194_v3 = vadd.f32 %v1193_v32, %v13146_v7  ;;  %v2484_v32 = vld [vmem:[#allocation2 + $0x82] sm:$0xff] }
 0x230   : > { %v1761_v40 = vpop.f32.mrf.mxu1  ;;  %v13540_v53 = vadd.f32 %v13328_v14, %v1194_v3  ;;  %11611 = vmatmul.msk.bf16.gmra.mxu2 %vm560_vm0, %v1987_v0  ;;  %11694 = vmatmul.msk.bf16.gmra.mxu0 %vm560_vm0, %v1987_v0  ;;  %v2482_v14 = vld [vmem:[#allocation2 + $0x72] sm:$0xff] }
 0x231   : > { %v1762_v63 = vadd.f32 %v1761_v40, %v1584_v12  ;;  %11645 = vmatmul.msk.bf16.gmra.mxu3 %vm560_vm0, %v2511_v59  ;;  %v2512_v8 = vpack.c.bf16 %v2483_v43, %v2482_v14  ;;  %v12710_v59 = vld [vmem:[%s16885_s4 + $0x88] sm:$0xff]  ;;  %v16919_v40 = vld [vmem:[#allocation8_spill] sm:$0xff] }
 0x232   : > { %3268 = vmatpush.bf16.msra.mxu2 %v12710_v59  ;;  %v16923_v59 = vld [vmem:[#allocation6_spill] sm:$0xff] }
 0x233   : > { %v13545_v21 = vadd.f32 %v1762_v63, %v1246_v38  ;;  %v1248_v9 = vpop.f32.mrf.mxu2 }
 0x234   : > { %v1587_v44 = vpop.f32.mrf.mxu3  ;;  %v1249_v54 = vadd.f32 %v1248_v9, %v13212_v62  ;;  %v2513_v9 = vpack.c.bf16 %v2485_v51, %v2484_v32  ;;  %v16924_v51 = vld [vmem:[#allocation10_spill] sm:$0xff]  ;;  %v1963_v32 = vld [vmem:[%s12947_s28 + $0x92] sm:$0xff] }
 0x235   : > { %v1195_v7 = vpop.f32.mrf.mxu0 }
 0x236   : > { %v1196_v52 = vadd.f32 %v1195_v7, %v13157_v18  ;;  %v1962_v7 = vld [vmem:[%s12947_s28 + $0x8a] sm:$0xff] }
 0x238   : > { %v1764_v37 = vpop.f32.mrf.mxu1  ;;  %v13550_v61 = vadd.f32 %v13337_v1, %v1196_v52 }
 0x239   : > { %v1765_v19 = vadd.f32 %v1764_v37, %v1587_v44  ;;  %v1961_v44 = vld [vmem:[%s12947_s28 + $0x82] sm:$0xff] }
 0x23a   : > { %v1989_v14 = vpack.c.bf16 %v1962_v7, %v1961_v44 }
 0x23b   : > { %v13554_v58 = vadd.f32 %v1765_v19, %v1249_v54  ;;  %11729 = vmatmul.msk.bf16.gmra.mxu1 %vm560_vm0, %v2512_v8  ;;  %v1250_v41 = vpop.f32.mrf.mxu2 }
 0x23c   : > { %v1589_v30 = vpop.f32.mrf.mxu3  ;;  %v1251_v62 = vadd.f32 %v1250_v41, %v13220_v11 }
 0x23d   : > { %v1198_v10 = vpop.f32.mrf.mxu0 }
 0x23e   : > { %v1199_v18 = vadd.f32 %v1198_v10, %v13164_v23  ;;  %v12708_v23 = vld [vmem:[%s16884_s3 + $0x98] sm:$0xff] }
 0x23f   : > { %3443 = vmatpush.bf16.msra.mxu3 %v12708_v23 }
 0x240   : > { %v1766_v4 = vpop.f32.mrf.mxu1  ;;  %v13560_v1 = vadd.f32 %v13343_v31, %v1199_v18  ;;  %11612 = vmatmul.msk.bf16.gmra.mxu2 %vm560_vm0, %v1988_v36  ;;  %11695 = vmatmul.msk.bf16.gmra.mxu0 %vm560_vm0, %v1988_v36 }
 0x241   : > { %v1767_v6 = vadd.f32 %v1766_v4, %v1589_v30  ;;  %11646 = vmatmul.msk.bf16.gmra.mxu3 %vm560_vm0, %v2512_v8 }
 0x243   : > { %v13571_v11 = vadd.f32 %v1767_v6, %v1251_v62  ;;  %v1253_v31 = vpop.f32.mrf.mxu2  ;;  %v2487_v6 = vld [vmem:[#allocation2 + $0x9a] sm:$0xff] }
 0x244   : > { %v1592_v45 = vpop.f32.mrf.mxu3  ;;  %v1254_v3 = vadd.f32 %v1253_v31, %v13233_v22 }
 0x245   : > { %v1200_v26 = vpop.f32.mrf.mxu0 }
 0x246   : > { %v1201_v12 = vadd.f32 %v1200_v26, %v13175_v35  ;;  %v16920_v35 = vld [vmem:[#allocation5_spill] sm:$0xff]  ;;  %v2486_v26 = vld [vmem:[#allocation2 + $0x92] sm:$0xff] }
 0x248   : > { %v1769_v0 = vpop.f32.mrf.mxu1  ;;  %v13576_v38 = vadd.f32 %v16919_v40, %v1201_v12 }
 0x249   : > { %v1770_v63 = vadd.f32 %v1769_v0, %v1592_v45  ;;  %v2514_v0 = vpack.c.bf16 %v2487_v6, %v2486_v26 }
 0x24b   : > { %v13580_v43 = vadd.f32 %v1770_v63, %v1254_v3  ;;  %11730 = vmatmul.msk.bf16.gmra.mxu1 %vm560_vm0, %v2513_v9  ;;  %v1255_v52 = vpop.f32.mrf.mxu2  ;;  %v1964_v3 = vld [vmem:[%s12947_s28 + $0x9a] sm:$0xff] }
 0x24c   : > { %v1594_v37 = vpop.f32.mrf.mxu3  ;;  %v1256_v22 = vadd.f32 %v1255_v52, %v16921_v46  ;;  %v2489_v46 = vld [vmem:[#allocation2 + $0xaa] sm:$0xff] }
 0x24d   : > { %v1203_v54 = vpop.f32.mrf.mxu0 }
 0x24e   : > { %v1204_v19 = vadd.f32 %v1203_v54, %v16920_v35 }
 0x250   : > { %v1771_v8 = vpop.f32.mrf.mxu1  ;;  %v13586_v41 = vadd.f32 %v16922_v28, %v1204_v19  ;;  %11613 = vmatmul.msk.bf16.gmra.mxu2 %vm560_vm0, %v1989_v14  ;;  %11696 = vmatmul.msk.bf16.gmra.mxu0 %vm560_vm0, %v1989_v14 }
 0x251   : > { %v1772_v30 = vadd.f32 %v1771_v8, %v1594_v37  ;;  %11647 = vmatmul.msk.bf16.gmra.mxu3 %vm560_vm0, %v2513_v9  ;;  %v1990_v9 = vpack.c.bf16 %v1964_v3, %v1963_v32 }
 0x253   : > { %v13591_v36 = vadd.f32 %v1772_v30, %v1256_v22  ;;  %v2095_v10 = vpop.f32.mrf.mxu2  ;;  %v2488_v30 = vld [vmem:[#allocation2 + $0xa2] sm:$0xff] }
 0x254   : > { %v2272_v18 = vpop.f32.mrf.mxu3 }
 0x255   : > { %v2273_v4 = vadd.f32 %v2272_v18, %v2095_v10  ;;  %v1205_v62 = vpop.f32.mrf.mxu0  ;;  %v2515_v18 = vpack.c.bf16 %v2489_v46, %v2488_v30 }
 0x256   : > { %v1206_v23 = vadd.f32 %v1205_v62, %v16923_v59  ;;  %v1966_v62 = vld [vmem:[%s12947_s28 + $0xaa] sm:$0xff] }
 0x257   : > { %v2398_v31 = vadd.f32 %v2273_v4, %v13437_v47  ;;  %v1965_v4 = vld [vmem:[%s12947_s28 + $0xa2] sm:$0xff] }
 0x258   : > { %v2860_v45 = vpop.f32.mrf.mxu1  ;;  %v13596_v12 = vadd.f32 %v16924_v51, %v1206_v23  ;;  %v1991_v23 = vpack.c.bf16 %v1966_v62, %v1965_v4 }
 0x25b   : > { %11731 = vmatmul.msk.bf16.gmra.mxu1 %vm560_vm0, %v2514_v0  ;;  %v2097_v40 = vpop.f32.mrf.mxu2 }
 0x25c   : > { %v2274_v63 = vpop.f32.mrf.mxu3 }
 0x25d   : > { %v2275_v44 = vadd.f32 %v2274_v63, %v2097_v40  ;;  %v2683_v7 = vpop.f32.mrf.mxu0 }
 0x25e   : > { %v2861_v52 = vadd.f32 %v2860_v45, %v2683_v7 }
 0x25f   : > { %v2399_v37 = vadd.f32 %v2275_v44, %v13447_v49 }
 0x260   : > { %v2862_v14 = vpop.f32.mrf.mxu1  ;;  %v13602_v47 = vadd.f32 %v2861_v52, %v2398_v31  ;;  %11614 = vmatmul.msk.bf16.gmra.mxu2 %vm560_vm0, %v1990_v9  ;;  %11697 = vmatmul.msk.bf16.gmra.mxu0 %vm560_vm0, %v1990_v9  ;;  %v2491_v9 = vld [vmem:[#allocation2 + $0xba] sm:$0xff]  ;;  %v2490_v52 = vld [vmem:[#allocation2 + $0xb2] sm:$0xff] }
 0x261   : > { %11648 = vmatmul.msk.bf16.gmra.mxu3 %vm560_vm0, %v2514_v0 }
 0x263   : > { %v2100_v54 = vpop.f32.mrf.mxu2 }
 0x264   : > { %v2277_v35 = vpop.f32.mrf.mxu3 }
 0x265   : > { %v2278_v19 = vadd.f32 %v2277_v35, %v2100_v54  ;;  %v2685_v8 = vpop.f32.mrf.mxu0  ;;  %v1967_v54 = vld [vmem:[%s12947_s28 + $0xb2] sm:$0xff]  ;;  %v1968_v35 = vld [vmem:[%s12947_s28 + $0xba] sm:$0xff] }
 0x266   : > { %v2863_v22 = vadd.f32 %v2862_v14, %v2685_v8  ;;  %v2516_v14 = vpack.c.bf16 %v2491_v9, %v2490_v52  ;;  %v1992_v46 = vpack.c.bf16 %v1968_v35, %v1967_v54 }
 0x267   : > { %v2400_v28 = vadd.f32 %v2278_v19, %v13457_v27 }
 0x268   : > { %v2865_v49 = vpop.f32.mrf.mxu1  ;;  %v13608_v10 = vadd.f32 %v2863_v22, %v2399_v37 }
 0x26b   : > { %11732 = vmatmul.msk.bf16.gmra.mxu1 %vm560_vm0, %v2515_v18  ;;  %v2102_v6 = vpop.f32.mrf.mxu2 }
 0x26c   : > { %v2279_v59 = vpop.f32.mrf.mxu3 }
 0x26d   : > { %v2280_v31 = vadd.f32 %v2279_v59, %v2102_v6  ;;  %v2688_v45 = vpop.f32.mrf.mxu0 }
 0x26e   : > { %v2866_v26 = vadd.f32 %v2865_v49, %v2688_v45 }
 0x26f   : > { %v2401_v51 = vadd.f32 %v2280_v31, %v13467_v5 }
 0x270   : > { %v2867_v0 = vpop.f32.mrf.mxu1  ;;  %v13614_v27 = vadd.f32 %v2866_v26, %v2400_v28  ;;  %11615 = vmatmul.msk.bf16.gmra.mxu2 %vm560_vm0, %v1991_v23  ;;  %11698 = vmatmul.msk.bf16.gmra.mxu0 %vm560_vm0, %v1991_v23  ;;  %v2493_v23 = vld [vmem:[#allocation2 + $0xca] sm:$0xff]  ;;  %v2492_v26 = vld [vmem:[#allocation2 + $0xc2] sm:$0xff] }
 0x271   : > { %11649 = vmatmul.msk.bf16.gmra.mxu3 %vm560_vm0, %v2515_v18 }
 0x273   : > { %v2105_v32 = vpop.f32.mrf.mxu2 }
 0x274   : > { %v2282_v3 = vpop.f32.mrf.mxu3 }
 0x275   : > { %v2283_v40 = vadd.f32 %v2282_v3, %v2105_v32  ;;  %v2690_v63 = vpop.f32.mrf.mxu0  ;;  %v12709_v32 = vld [vmem:[%s16885_s4 + $0x80] sm:$0xff]  ;;  %v12707_v3 = vld [vmem:[%s16884_s3 + $0x90] sm:$0xff] }
 0x276   : > { %v2868_v44 = vadd.f32 %v2867_v0, %v2690_v63  ;;  %v2517_v0 = vpack.c.bf16 %v2493_v23, %v2492_v26  ;;  %v1970_v63 = vld [vmem:[%s12947_s28 + $0xca] sm:$0xff]  ;;  %3269 = vmatpush.bf16.msra.mxu2 %v12709_v32  ;;  %3444 = vmatpush.bf16.msra.mxu3 %v12707_v3 }
 0x277   : > { %v2402_v7 = vadd.f32 %v2283_v40, %v13480_v15  ;;  %v1969_v40 = vld [vmem:[%s12947_s28 + $0xc2] sm:$0xff] }
 0x278   : > { %v2870_v5 = vpop.f32.mrf.mxu1  ;;  %v13620_v37 = vadd.f32 %v2868_v44, %v2401_v51  ;;  %v1993_v44 = vpack.c.bf16 %v1970_v63, %v1969_v40 }
 0x27b   : > { %11733 = vmatmul.msk.bf16.gmra.mxu1 %vm560_vm0, %v2516_v14  ;;  %v2107_v19 = vpop.f32.mrf.mxu2 }
 0x27c   : > { %v2284_v8 = vpop.f32.mrf.mxu3 }
 0x27d   : > { %v2285_v22 = vadd.f32 %v2284_v8, %v2107_v19  ;;  %v2693_v28 = vpop.f32.mrf.mxu0 }
 0x27e   : > { %v2871_v49 = vadd.f32 %v2870_v5, %v2693_v28  ;;  %v2495_v28 = vld [vmem:[#allocation2 + $0xda] sm:$0xff] }
 0x27f   : > { %v2403_v30 = vadd.f32 %v2285_v22, %v13490_v50 }
 0x280   : > { %v2872_v18 = vpop.f32.mrf.mxu1  ;;  %v13626_v4 = vadd.f32 %v2871_v49, %v2402_v7  ;;  %11616 = vmatmul.msk.bf16.gmra.mxu2 %vm560_vm0, %v1992_v46  ;;  %11699 = vmatmul.msk.bf16.gmra.mxu0 %vm560_vm0, %v1992_v46 }
 0x281   : > { %11650 = vmatmul.msk.bf16.gmra.mxu3 %vm560_vm0, %v2516_v14 }
 0x283   : > { %v2110_v15 = vpop.f32.mrf.mxu2 }
 0x284   : > { %v2287_v62 = vpop.f32.mrf.mxu3 }
 0x285   : > { %v2288_v6 = vadd.f32 %v2287_v62, %v2110_v15  ;;  %v2695_v59 = vpop.f32.mrf.mxu0 }
 0x286   : > { %v2873_v31 = vadd.f32 %v2872_v18, %v2695_v59  ;;  %v2494_v18 = vld [vmem:[#allocation2 + $0xd2] sm:$0xff]  ;;  %v1972_v59 = vld [vmem:[%s12947_s28 + $0xda] sm:$0xff] }
 0x287   : > { %v2404_v45 = vadd.f32 %v2288_v6, %v13500_v57  ;;  %v2518_v62 = vpack.c.bf16 %v2495_v28, %v2494_v18  ;;  %v1971_v6 = vld [vmem:[%s12947_s28 + $0xd2] sm:$0xff] }
 0x288   : > { %v2875_v50 = vpop.f32.mrf.mxu1  ;;  %v13632_v51 = vadd.f32 %v2873_v31, %v2403_v30 }
 0x28b   : > { %11734 = vmatmul.msk.bf16.gmra.mxu1 %vm560_vm0, %v2517_v0  ;;  %v2112_v9 = vpop.f32.mrf.mxu2 }
 0x28c   : > { %v2289_v57 = vpop.f32.mrf.mxu3 }
 0x28d   : > { %v2290_v7 = vadd.f32 %v2289_v57, %v2112_v9  ;;  %v2698_v5 = vpop.f32.mrf.mxu0 }
 0x28e   : > { %v2876_v52 = vadd.f32 %v2875_v50, %v2698_v5 }
 0x28f   : > { %v2405_v14 = vadd.f32 %v2290_v7, %v13510_v17 }
 0x290   : > { %v2877_v54 = vpop.f32.mrf.mxu1  ;;  %v13644_v35 = vadd.f32 %v2876_v52, %v2404_v45  ;;  %11617 = vmatmul.msk.bf16.gmra.mxu2 %vm560_vm0, %v1993_v44  ;;  %11700 = vmatmul.msk.bf16.gmra.mxu0 %vm560_vm0, %v1993_v44  ;;  %v1994_v45 = vpack.c.bf16 %v1972_v59, %v1971_v6  ;;  %v2497_v44 = vld [vmem:[#allocation2 + $0xea] sm:$0xff]  ;;  %v2496_v52 = vld [vmem:[#allocation2 + $0xe2] sm:$0xff] }
 0x291   : > { %11651 = vmatmul.msk.bf16.gmra.mxu3 %vm560_vm0, %v2517_v0 }
 0x293   : > { %v2115_v19 = vpop.f32.mrf.mxu2 }
 0x294   : > { %v2292_v8 = vpop.f32.mrf.mxu3 }
 0x295   : > { %v2293_v46 = vadd.f32 %v2292_v8, %v2115_v19  ;;  %v2700_v22 = vpop.f32.mrf.mxu0  ;;  %v1973_v19 = vld [vmem:[%s12947_s28 + $0xe2] sm:$0xff]  ;;  %v1974_v8 = vld [vmem:[%s12947_s28 + $0xea] sm:$0xff] }
 0x296   : > { %v2878_v49 = vadd.f32 %v2877_v54, %v2700_v22  ;;  %v2519_v54 = vpack.c.bf16 %v2497_v44, %v2496_v52  ;;  %v1995_v28 = vpack.c.bf16 %v1974_v8, %v1973_v19 }
 0x297   : > { %v2406_v30 = vadd.f32 %v2293_v46, %v13520_v56 }
 0x298   : > { %v2880_v17 = vpop.f32.mrf.mxu1  ;;  %v13650_v15 = vadd.f32 %v2878_v49, %v2405_v14 }
 0x29b   : > { %11735 = vmatmul.msk.bf16.gmra.mxu1 %vm560_vm0, %v2518_v62  ;;  %v2117_v23 = vpop.f32.mrf.mxu2 }
 0x29c   : > { %v2294_v31 = vpop.f32.mrf.mxu3 }
 0x29d   : > { %v2295_v50 = vadd.f32 %v2294_v31, %v2117_v23  ;;  %v2703_v26 = vpop.f32.mrf.mxu0 }
 0x29e   : > { %v2881_v0 = vadd.f32 %v2880_v17, %v2703_v26 }
 0x29f   : > { %v2407_v32 = vadd.f32 %v2295_v50, %v13530_v60 }
 0x2a0   : > { %v2882_v3 = vpop.f32.mrf.mxu1  ;;  %v13656_v56 = vadd.f32 %v2881_v0, %v2406_v30  ;;  %11618 = vmatmul.msk.bf16.gmra.mxu2 %vm560_vm0, %v1994_v45  ;;  %11701 = vmatmul.msk.bf16.gmra.mxu0 %vm560_vm0, %v1994_v45  ;;  %v2499_v45 = vld [vmem:[#allocation2 + $0xfa] sm:$0xff]  ;;  %v2498_v0 = vld [vmem:[#allocation2 + $0xf2] sm:$0xff] }
 0x2a1   : > { %11652 = vmatmul.msk.bf16.gmra.mxu3 %vm560_vm0, %v2518_v62 }
 0x2a3   : > { %v2120_v40 = vpop.f32.mrf.mxu2 }
 0x2a4   : > { %v2297_v63 = vpop.f32.mrf.mxu3 }
 0x2a5   : > { %v2298_v9 = vadd.f32 %v2297_v63, %v2120_v40  ;;  %v2705_v57 = vpop.f32.mrf.mxu0  ;;  %v1975_v40 = vld [vmem:[%s12947_s28 + $0xf2] sm:$0xff]  ;;  %v1976_v63 = vld [vmem:[%s12947_s28 + $0xfa] sm:$0xff] }
 0x2a6   : > { %v2883_v7 = vadd.f32 %v2882_v3, %v2705_v57  ;;  %v2520_v3 = vpack.c.bf16 %v2499_v45, %v2498_v0  ;;  %v1996_v44 = vpack.c.bf16 %v1976_v63, %v1975_v40  ;;  %v12715_v40 = vld [vmem:[%s16884_s3 + $0xb0] sm:$0xff] }
 0x2a7   : > { %v2408_v5 = vadd.f32 %v2298_v9, %v13540_v53 }
 0x2a8   : > { %v2885_v60 = vpop.f32.mrf.mxu1  ;;  %v13662_v14 = vadd.f32 %v2883_v7, %v2407_v32 }
 0x2ab   : > { %11736 = vmatmul.msk.bf16.gmra.mxu1 %vm560_vm0, %v2519_v54  ;;  %v2122_v46 = vpop.f32.mrf.mxu2 }
 0x2ac   : > { %v2299_v22 = vpop.f32.mrf.mxu3 }
 0x2ad   : > { %v2300_v49 = vadd.f32 %v2299_v22, %v2122_v46  ;;  %v2708_v30 = vpop.f32.mrf.mxu0 }
 0x2ae   : > { %v2886_v17 = vadd.f32 %v2885_v60, %v2708_v30 }
 0x2af   : > { %v2409_v18 = vadd.f32 %v2300_v49, %v13550_v61 }
 0x2b0   : > { %v2887_v62 = vpop.f32.mrf.mxu1  ;;  %v13668_v53 = vadd.f32 %v2886_v17, %v2408_v5  ;;  %11619 = vmatmul.msk.bf16.gmra.mxu2 %vm560_vm0, %v1995_v28  ;;  %11702 = vmatmul.msk.bf16.gmra.mxu0 %vm560_vm0, %v1995_v28  ;;  %v2501_v28 = vld [vmem:[#allocation2 + $0x10a] sm:$0xff]  ;;  %v2500_v17 = vld [vmem:[#allocation2 + $0x102] sm:$0xff] }
 0x2b1   : > { %11653 = vmatmul.msk.bf16.gmra.mxu3 %vm560_vm0, %v2519_v54 }
 0x2b3   : > { %v2125_v6 = vpop.f32.mrf.mxu2 }
 0x2b4   : > { %v2302_v59 = vpop.f32.mrf.mxu3 }
 0x2b5   : > { %v2303_v23 = vadd.f32 %v2302_v59, %v2125_v6  ;;  %v2710_v31 = vpop.f32.mrf.mxu0  ;;  %v12706_v6 = vld [vmem:[%s16884_s3 + $0x88] sm:$0xff] }
 0x2b6   : > { %v2888_v50 = vadd.f32 %v2887_v62, %v2710_v31  ;;  %v2521_v62 = vpack.c.bf16 %v2501_v28, %v2500_v17  ;;  %v1977_v59 = vld [vmem:[%s12947_s28 + $0x102] sm:$0xff]  ;;  %3445 = vmatpush.bf16.msra.mxu3 %v12706_v6  ;;  %v12716_v31 = vld [vmem:[%s16884_s3 + $0xb8] sm:$0xff] }
 0x2b7   : > { %v2410_v26 = vadd.f32 %v2303_v23, %v13560_v1  ;;  %v1978_v23 = vld [vmem:[%s12947_s28 + $0x10a] sm:$0xff]  ;;  %4031 = vmatpush.bf16.msrb.mxu1 %v12716_v31 }
 0x2b8   : > { %v2890_v61 = vpop.f32.mrf.mxu1  ;;  %v13674_v32 = vadd.f32 %v2888_v50, %v2409_v18  ;;  %v1997_v50 = vpack.c.bf16 %v1978_v23, %v1977_v59  ;;  %v12718_v6 = vld [vmem:[%s16885_s4 + $0xa8] sm:$0xff]  ;;  %v1979_v59 = vld [vmem:[%s12947_s28 + $0x112] sm:$0xff]  ;;  %v1980_v23 = vld [vmem:[%s12947_s28 + $0x11a] sm:$0xff] }
 0x2bb   : > { %11737 = vmatmul.msk.bf16.gmra.mxu1 %vm560_vm0, %v2520_v3  ;;  %v2127_v9 = vpop.f32.mrf.mxu2 }
 0x2bc   : > { %v2304_v57 = vpop.f32.mrf.mxu3  ;;  %4032 = vmatpush.bf16.msrb.mxu1 %v12715_v40 }
 0x2bd   : > { %v2305_v7 = vadd.f32 %v2304_v57, %v2127_v9  ;;  %v2713_v5 = vpop.f32.mrf.mxu0 }
 0x2be   : > { %v2891_v60 = vadd.f32 %v2890_v61, %v2713_v5 }
 0x2bf   : > { %v2411_v52 = vadd.f32 %v2305_v7, %v13576_v38  ;;  %v12720_v7 = vld [vmem:[%s16885_s4 + $0xb8] sm:$0xff] }
 0x2c0   : > { %v2892_v54 = vpop.f32.mrf.mxu1  ;;  %v13680_v19 = vadd.f32 %v2891_v60, %v2410_v26  ;;  %11620 = vmatmul.msk.bf16.gmra.mxu2 %vm560_vm0, %v1996_v44  ;;  %11703 = vmatmul.msk.bf16.gmra.mxu0 %vm560_vm0, %v1996_v44  ;;  %v12705_v26 = vld [vmem:[%s16884_s3 + $0x80] sm:$0xff]  ;;  %v12728_v44 = vld [vmem:[%s16885_s4 + $0xd8] sm:$0xff] }
 0x2c1   : > { %11654 = vmatmul.msk.bf16.gmra.mxu3 %vm560_vm0, %v2520_v3  ;;  %4442 = vmatpush.bf16.msrb.mxu2 %v12728_v44 }
 0x2c2   : > { %3446 = vmatpush.bf16.msra.mxu3 %v12705_v26  ;;  %3854 = vmatpush.bf16.msrb.mxu0 %v12720_v7 }
 0x2c3   : > { %v2130_v1 = vpop.f32.mrf.mxu2 }
 0x2c4   : > { %v2307_v8 = vpop.f32.mrf.mxu3 }
 0x2c5   : > { %v2308_v46 = vadd.f32 %v2307_v8, %v2130_v1  ;;  %v2715_v22 = vpop.f32.mrf.mxu0  ;;  %v2503_v1 = vld [vmem:[#allocation2 + $0x11a] sm:$0xff]  ;;  %v12719_v8 = vld [vmem:[%s16885_s4 + $0xb0] sm:$0xff] }
 0x2c6   : > { %v2893_v49 = vadd.f32 %v2892_v54, %v2715_v22  ;;  %v16925_v22 = vld [vmem:[#allocation11_spill] sm:$0xff]  ;;  %3855 = vmatpush.bf16.msrb.mxu0 %v12719_v8 }
 0x2c7   : > { %v2412_v30 = vadd.f32 %v2308_v46, %v13586_v41 }
 0x2c8   : > { %v2895_v38 = vpop.f32.mrf.mxu1  ;;  %v13686_v18 = vadd.f32 %v2893_v49, %v2411_v52 }
 0x2ca   : > { %3856 = vmatpush.bf16.msrb.mxu0 %v12718_v6 }
 0x2cb   : > { %11738 = vmatmul.msk.bf16.gmra.mxu1 %vm560_vm0, %v2521_v62  ;;  %v2132_v45 = vpop.f32.mrf.mxu2 }
 0x2cc   : > { %v2309_v41 = vpop.f32.mrf.mxu3 }
 0x2cd   : > { %v2310_v61 = vadd.f32 %v2309_v41, %v2132_v45  ;;  %v2718_v0 = vpop.f32.mrf.mxu0  ;;  %v1998_v41 = vpack.c.bf16 %v1980_v23, %v1979_v59 }
 0x2ce   : > { %v2896_v3 = vadd.f32 %v2895_v38, %v2718_v0  ;;  %v12713_v38 = vld [vmem:[%s16884_s3 + $0xa0] sm:$0xff] }
 0x2cf   : > { %v2413_v63 = vadd.f32 %v2310_v61, %v13596_v12  ;;  %v12714_v12 = vld [vmem:[%s16884_s3 + $0xa8] sm:$0xff]  ;;  %v12717_v61 = vld [vmem:[%s16885_s4 + $0xa0] sm:$0xff] }
 0x2d0   : > { %v2897_v9 = vpop.f32.mrf.mxu1  ;;  %v13704_v57 = vadd.f32 %v2896_v3, %v2412_v30  ;;  %11621 = vmatmul.msk.bf16.gmra.mxu2 %vm560_vm0, %v1997_v50  ;;  %11704 = vmatmul.msk.bf16.gmra.mxu0 %vm560_vm0, %v1997_v50  ;;  %v2502_v30 = vld [vmem:[#allocation2 + $0x112] sm:$0xff] }
 0x2d1   : > { %11655 = vmatmul.msk.bf16.gmra.mxu3 %vm560_vm0, %v2521_v62  ;;  %4033 = vmatpush.bf16.msrb.mxu1 %v12714_v12  ;;  %v2522_v62 = vpack.c.bf16 %v2503_v1, %v2502_v30  ;;  %v16926_v3 = vld [vmem:[#allocation12_spill] sm:$0xff] }
 0x2d2   : > { %3857 = vmatpush.bf16.msrb.mxu0 %v12717_v61  ;;  %v3121_v30 = vld [vmem:[%s12947_s28 + $0x13] sm:$0xff] }
 0x2d3   : > { %v2135_v5 = vpop.f32.mrf.mxu2 }
 0x2d4   : > { %v2312_v60 = vpop.f32.mrf.mxu3 }
 0x2d5   : > { %v2313_v52 = vadd.f32 %v2312_v60, %v2135_v5  ;;  %v2720_v54 = vpop.f32.mrf.mxu0  ;;  %4034 = vmatpush.bf16.msrb.mxu1 %v12713_v38  ;;  %v2504_v60 = vld [vmem:[#allocation2 + $0x122] sm:$0xff] }
 0x2d6   : > { %v2898_v46 = vadd.f32 %v2897_v9, %v2720_v54  ;;  %v3122_v38 = vld [vmem:[%s12947_s28 + $0x1b] sm:$0xff] }
 0x2d7   : > { %v2414_v28 = vadd.f32 %v2313_v52, %v16925_v22  ;;  %v2505_v52 = vld [vmem:[#allocation2 + $0x12a] sm:$0xff]  ;;  %v3157_v23 = vpack.c.bf16 %v3122_v38, %v3121_v30 }
 0x2d8   : > { %v2900_v49 = vpop.f32.mrf.mxu1  ;;  %v13725_v17 = vadd.f32 %v2898_v46, %v2413_v63  ;;  %v2523_v22 = vpack.c.bf16 %v2505_v52, %v2504_v60  ;;  %v3646_v52 = vld [vmem:[#allocation2 + $0x14] sm:$0xff] }
 0x2db   : > { %11739 = vmatmul.msk.bf16.gmra.mxu1 %vm560_vm0, %v2522_v62  ;;  %v2137_v31 = vpop.f32.mrf.mxu2 }
 0x2dc   : > { %v2314_v45 = vpop.f32.mrf.mxu3 }
 0x2dd   : > { %v2315_v50 = vadd.f32 %v2314_v45, %v2137_v31  ;;  %v2723_v26 = vpop.f32.mrf.mxu0  ;;  %v3059_v31 = vld [vmem:[#allocation2 + $0x1b] sm:$0xff] }
 0x2de   : > { %v2901_v0 = vadd.f32 %v2900_v49, %v2723_v26  ;;  %v2568_v49 = vld [vmem:[%s12947_s28 + $0x12a] sm:$0xff]  ;;  %v3058_v26 = vld [vmem:[#allocation2 + $0x13] sm:$0xff] }
 0x2df   : > { %v2415_v40 = vadd.f32 %v2315_v50, %v16926_v3 }
 0x2e0   : > { %v2902_v63 = vpop.f32.mrf.mxu1  ;;  %v13737_v9 = vadd.f32 %v2901_v0, %v2414_v28  ;;  %11622 = vmatmul.msk.bf16.gmra.mxu2 %vm560_vm0, %v1998_v41  ;;  %11705 = vmatmul.msk.bf16.gmra.mxu0 %vm560_vm0, %v1998_v41  ;;  %v2567_v28 = vld [vmem:[%s12947_s28 + $0x122] sm:$0xff]  ;;  %v3094_v0 = vpack.c.bf16 %v3059_v31, %v3058_v26 }
 0x2e1   : > { %11656 = vmatmul.msk.bf16.gmra.mxu3 %vm560_vm0, %v2522_v62  ;;  %v2586_v59 = vpack.c.bf16 %v2568_v49, %v2567_v28  ;;  %v3709_v28 = vld [vmem:[%s12947_s28 + $0x14] sm:$0xff]  ;;  %v3710_v49 = vld [vmem:[%s12947_s28 + $0x1c] sm:$0xff] }
 0x2e3   : > { %v2140_v44 = vpop.f32.mrf.mxu2 }
 0x2e4   : > { %v2317_v7 = vpop.f32.mrf.mxu3 }
 0x2e5   : > { %v2318_v5 = vadd.f32 %v2317_v7, %v2140_v44  ;;  %v2725_v12 = vpop.f32.mrf.mxu0 }
 0x2e6   : > { %v2903_v54 = vadd.f32 %v2902_v63, %v2725_v12 }
 0x2e7   : > { %v2416_v1 = vadd.f32 %v2318_v5, %v13417_v24  ;;  %v3647_v5 = vld [vmem:[#allocation2 + $0x1c] sm:$0xff] }
 0x2e8   : > { %v2905_v8 = vpop.f32.mrf.mxu1  ;;  %v13743_v46 = vadd.f32 %v2903_v54, %v2415_v40 }
 0x2eb   : > { %11740 = vmatmul.msk.bf16.gmra.mxu1 %vm560_vm0, %v2523_v22  ;;  %v2142_v62 = vpop.f32.mrf.mxu2  ;;  %v3124_v22 = vld [vmem:[%s12947_s28 + $0x2b] sm:$0xff] }
 0x2ec   : > { %v2319_v6 = vpop.f32.mrf.mxu3 }
 0x2ed   : > { %v2320_v45 = vadd.f32 %v2319_v6, %v2142_v62  ;;  %v2728_v41 = vpop.f32.mrf.mxu0  ;;  %v3061_v6 = vld [vmem:[#allocation2 + $0x2b] sm:$0xff] }
 0x2ee   : > { %v2906_v50 = vadd.f32 %v2905_v8, %v2728_v41  ;;  %v3123_v8 = vld [vmem:[%s12947_s28 + $0x23] sm:$0xff] }
 0x2ef   : > { %v2417_v24 = vadd.f32 %v2320_v45, %v13425_v2  ;;  %v3158_v62 = vpack.c.bf16 %v3124_v22, %v3123_v8  ;;  %v3711_v8 = vld [vmem:[%s12947_s28 + $0x24] sm:$0xff]  ;;  %v3712_v22 = vld [vmem:[%s12947_s28 + $0x2c] sm:$0xff] }
 0x2f0   : > { %v2907_v61 = vpop.f32.mrf.mxu1  ;;  %v13751_v3 = vadd.f32 %v2906_v50, %v2416_v1  ;;  %11706 = vmatmul.msk.bf16.gmra.mxu0 %vm560_vm0, %v2586_v59  ;;  %11773 = vmatmul.msk.bf16.vlgmr.msra.gmra.mxu2 %vm560_vm0, %v3157_v23  ;;  %v3682_v1 = vpack.c.bf16 %v3647_v5, %v3646_v52  ;;  %v3745_v59 = vpack.c.bf16 %v3710_v49, %v3709_v28  ;;  %v3125_v52 = vld [vmem:[%s12947_s28 + $0x33] sm:$0xff] }
 0x2f1   : > { %11807 = vmatmul.msk.bf16.vlgmr.msra.gmra.mxu3 %vm560_vm0, %v3094_v0 }
 0x2f3   : > { %v2145_v40 = vpop.f32.mrf.mxu2 }
 0x2f4   : > { %v2322_v63 = vpop.f32.mrf.mxu3 }
 0x2f5   : > { %v2323_v44 = vadd.f32 %v2322_v63, %v2145_v40  ;;  %v2730_v7 = vpop.f32.mrf.mxu0 }
 0x2f6   : > { %v2908_v2 = vadd.f32 %v2907_v61, %v2730_v7 }
 0x2f7   : > { %v2418_v12 = vadd.f32 %v2323_v44, %v13431_v33  ;;  %v3060_v33 = vld [vmem:[#allocation2 + $0x23] sm:$0xff]  ;;  %v3649_v44 = vld [vmem:[#allocation2 + $0x2c] sm:$0xff] }
 0x2f8   : > { %v2910_v60 = vpop.f32.mrf.mxu1  ;;  %v13757_v54 = vadd.f32 %v2908_v2, %v2417_v24  ;;  %v3095_v26 = vpack.c.bf16 %v3061_v6, %v3060_v33  ;;  %v3648_v2 = vld [vmem:[#allocation2 + $0x24] sm:$0xff] }
 0x2fb   : > { %11891 = vmatmul.msk.bf16.vlgmr.msrb.gmra.mxu1 %vm560_vm0, %v3682_v1  ;;  %v2147_v30 = vpop.f32.mrf.mxu2  ;;  %v3126_v1 = vld [vmem:[%s12947_s28 + $0x3b] sm:$0xff] }
 0x2fc   : > { %v2324_v38 = vpop.f32.mrf.mxu3 }
 0x2fd   : > { %v2325_v23 = vadd.f32 %v2324_v38, %v2147_v30  ;;  %v2733_v31 = vpop.f32.mrf.mxu0  ;;  %v3159_v30 = vpack.c.bf16 %v3126_v1, %v3125_v52  ;;  %v3063_v38 = vld [vmem:[#allocation2 + $0x3b] sm:$0xff]  ;;  %v3128_v52 = vld [vmem:[%s12947_s28 + $0x4b] sm:$0xff] }
 0x2fe   : > { %v2911_v45 = vadd.f32 %v2910_v60, %v2733_v31  ;;  %v3683_v60 = vpack.c.bf16 %v3649_v44, %v3648_v2  ;;  %v3127_v2 = vld [vmem:[%s12947_s28 + $0x43] sm:$0xff]  ;;  %v3713_v1 = vld [vmem:[%s12947_s28 + $0x34] sm:$0xff] }
 0x2ff   : > { %v2419_v41 = vadd.f32 %v2325_v23, %v13442_v48 }
 0x300   : > { %v2912_v50 = vpop.f32.mrf.mxu1  ;;  %v13765_v24 = vadd.f32 %v2911_v45, %v2418_v12  ;;  %11774 = vmatmul.msk.bf16.gmra.mxu2 %vm560_vm0, %v3158_v62  ;;  %11857 = vmatmul.msk.bf16.vlgmr.msrb.gmra.mxu0 %vm560_vm0, %v3745_v59  ;;  %v3746_v62 = vpack.c.bf16 %v3712_v22, %v3711_v8  ;;  %v3714_v8 = vld [vmem:[%s12947_s28 + $0x3c] sm:$0xff] }
 0x301   : > { %11808 = vmatmul.msk.bf16.gmra.mxu3 %vm560_vm0, %v3095_v26 }
 0x303   : > { %v2150_v61 = vpop.f32.mrf.mxu2 }
 0x304   : > { %v2327_v0 = vpop.f32.mrf.mxu3 }
 0x305   : > { %v2328_v40 = vadd.f32 %v2327_v0, %v2150_v61  ;;  %v2735_v63 = vpop.f32.mrf.mxu0 }
 0x306   : > { %v2913_v48 = vadd.f32 %v2912_v50, %v2735_v63 }
 0x307   : > { %v2420_v7 = vadd.f32 %v2328_v40, %v13451_v16  ;;  %v3062_v16 = vld [vmem:[#allocation2 + $0x33] sm:$0xff]  ;;  %v3651_v40 = vld [vmem:[#allocation2 + $0x3c] sm:$0xff] }
 0x308   : > { %v2915_v5 = vpop.f32.mrf.mxu1  ;;  %v13771_v12 = vadd.f32 %v2913_v48, %v2419_v41  ;;  %v3096_v33 = vpack.c.bf16 %v3063_v38, %v3062_v16  ;;  %v3650_v48 = vld [vmem:[#allocation2 + $0x34] sm:$0xff] }
 0x30b   : > { %11892 = vmatmul.msk.bf16.gmra.mxu1 %vm560_vm0, %v3683_v60  ;;  %v2152_v28 = vpop.f32.mrf.mxu2  ;;  %v12727_v60 = vld [vmem:[%s16885_s4 + $0xd0] sm:$0xff] }
 0x30c   : > { %v2329_v49 = vpop.f32.mrf.mxu3  ;;  %4443 = vmatpush.bf16.msrb.mxu2 %v12727_v60  ;;  %v3715_v60 = vld [vmem:[%s12947_s28 + $0x44] sm:$0xff] }
 0x30d   : > { %v2330_v6 = vadd.f32 %v2329_v49, %v2152_v28  ;;  %v2738_v59 = vpop.f32.mrf.mxu0  ;;  %v3160_v49 = vpack.c.bf16 %v3128_v52, %v3127_v2  ;;  %v3130_v2 = vld [vmem:[%s12947_s28 + $0x5b] sm:$0xff]  ;;  %v3716_v52 = vld [vmem:[%s12947_s28 + $0x4c] sm:$0xff] }
 0x30e   : > { %v2916_v23 = vadd.f32 %v2915_v5, %v2738_v59  ;;  %v3684_v5 = vpack.c.bf16 %v3651_v40, %v3650_v48  ;;  %v3064_v59 = vld [vmem:[#allocation2 + $0x43] sm:$0xff] }
 0x30f   : > { %v2421_v31 = vadd.f32 %v2330_v6, %v13462_v29 }
 0x310   : > { %v2917_v45 = vpop.f32.mrf.mxu1  ;;  %v13779_v41 = vadd.f32 %v2916_v23, %v2420_v7  ;;  %11775 = vmatmul.msk.bf16.gmra.mxu2 %vm560_vm0, %v3159_v30  ;;  %11858 = vmatmul.msk.bf16.gmra.mxu0 %vm560_vm0, %v3746_v62  ;;  %v3747_v30 = vpack.c.bf16 %v3714_v8, %v3713_v1 }
 0x311   : > { %11809 = vmatmul.msk.bf16.gmra.mxu3 %vm560_vm0, %v3096_v33 }
 0x313   : > { %v2155_v50 = vpop.f32.mrf.mxu2 }
 0x314   : > { %v2332_v26 = vpop.f32.mrf.mxu3 }
 0x315   : > { %v2333_v61 = vadd.f32 %v2332_v26, %v2155_v50  ;;  %v2740_v0 = vpop.f32.mrf.mxu0 }
 0x316   : > { %v2918_v29 = vadd.f32 %v2917_v45, %v2740_v0  ;;  %v3653_v0 = vld [vmem:[#allocation2 + $0x4c] sm:$0xff] }
 0x317   : > { %v2422_v63 = vadd.f32 %v2333_v61, %v13471_v25  ;;  %v3065_v25 = vld [vmem:[#allocation2 + $0x4b] sm:$0xff] }
 0x318   : > { %v2920_v44 = vpop.f32.mrf.mxu1  ;;  %v13785_v7 = vadd.f32 %v2918_v29, %v2421_v31  ;;  %v3097_v31 = vpack.c.bf16 %v3065_v25, %v3064_v59 }
 0x31b   : > { %11893 = vmatmul.msk.bf16.gmra.mxu1 %vm560_vm0, %v3684_v5  ;;  %v2157_v22 = vpop.f32.mrf.mxu2  ;;  %v3129_v5 = vld [vmem:[%s12947_s28 + $0x53] sm:$0xff] }
 0x31c   : > { %v2334_v28 = vpop.f32.mrf.mxu3 }
 0x31d   : > { %v2335_v38 = vadd.f32 %v2334_v28, %v2157_v22  ;;  %v2743_v62 = vpop.f32.mrf.mxu0  ;;  %v3161_v22 = vpack.c.bf16 %v3130_v2, %v3129_v5  ;;  %v3067_v28 = vld [vmem:[#allocation2 + $0x5b] sm:$0xff] }
 0x31e   : > { %v2921_v6 = vadd.f32 %v2920_v44, %v2743_v62  ;;  %v3717_v5 = vld [vmem:[%s12947_s28 + $0x54] sm:$0xff]  ;;  %v3718_v2 = vld [vmem:[%s12947_s28 + $0x5c] sm:$0xff] }
 0x31f   : > { %v2423_v23 = vadd.f32 %v2335_v38, %v13485_v42 }
 0x320   : > { %v2922_v16 = vpop.f32.mrf.mxu1  ;;  %v13796_v45 = vadd.f32 %v2921_v6, %v2422_v63  ;;  %11776 = vmatmul.msk.bf16.gmra.mxu2 %vm560_vm0, %v3160_v49  ;;  %11859 = vmatmul.msk.bf16.gmra.mxu0 %vm560_vm0, %v3747_v30  ;;  %v3652_v63 = vld [vmem:[#allocation2 + $0x44] sm:$0xff]  ;;  %v3748_v49 = vpack.c.bf16 %v3716_v52, %v3715_v60 }
 0x321   : > { %11810 = vmatmul.msk.bf16.gmra.mxu3 %vm560_vm0, %v3097_v31  ;;  %v3685_v48 = vpack.c.bf16 %v3653_v0, %v3652_v63  ;;  %v3131_v63 = vld [vmem:[%s12947_s28 + $0x63] sm:$0xff] }
 0x323   : > { %v2160_v33 = vpop.f32.mrf.mxu2 }
 0x324   : > { %v2337_v50 = vpop.f32.mrf.mxu3 }
 0x325   : > { %v2338_v26 = vadd.f32 %v2337_v50, %v2160_v33  ;;  %v2745_v61 = vpop.f32.mrf.mxu0 }
 0x326   : > { %v2923_v42 = vadd.f32 %v2922_v16, %v2745_v61 }
 0x327   : > { %v2424_v40 = vadd.f32 %v2338_v26, %v13494_v39  ;;  %v3066_v39 = vld [vmem:[#allocation2 + $0x53] sm:$0xff]  ;;  %v3655_v26 = vld [vmem:[#allocation2 + $0x5c] sm:$0xff] }
 0x328   : > { %v2925_v29 = vpop.f32.mrf.mxu1  ;;  %v13802_v44 = vadd.f32 %v2923_v42, %v2423_v23  ;;  %v3098_v59 = vpack.c.bf16 %v3067_v28, %v3066_v39  ;;  %v3654_v42 = vld [vmem:[#allocation2 + $0x54] sm:$0xff] }
 0x32b   : > { %11894 = vmatmul.msk.bf16.gmra.mxu1 %vm560_vm0, %v3685_v48  ;;  %v2162_v1 = vpop.f32.mrf.mxu2  ;;  %v3132_v48 = vld [vmem:[%s12947_s28 + $0x6b] sm:$0xff] }
 0x32c   : > { %v2339_v8 = vpop.f32.mrf.mxu3 }
 0x32d   : > { %v2340_v25 = vadd.f32 %v2339_v8, %v2162_v1  ;;  %v2748_v30 = vpop.f32.mrf.mxu0  ;;  %v3162_v1 = vpack.c.bf16 %v3132_v48, %v3131_v63  ;;  %v3069_v8 = vld [vmem:[#allocation2 + $0x6b] sm:$0xff] }
 0x32e   : > { %v2926_v38 = vadd.f32 %v2925_v29, %v2748_v30  ;;  %v3686_v29 = vpack.c.bf16 %v3655_v26, %v3654_v42  ;;  %v3133_v42 = vld [vmem:[%s12947_s28 + $0x73] sm:$0xff]  ;;  %v3719_v63 = vld [vmem:[%s12947_s28 + $0x64] sm:$0xff] }
 0x32f   : > { %v2425_v62 = vadd.f32 %v2340_v25, %v13505_v55  ;;  %v3720_v48 = vld [vmem:[%s12947_s28 + $0x6c] sm:$0xff] }
 0x330   : > { %v2927_v6 = vpop.f32.mrf.mxu1  ;;  %v13810_v23 = vadd.f32 %v2926_v38, %v2424_v40  ;;  %11777 = vmatmul.msk.bf16.gmra.mxu2 %vm560_vm0, %v3161_v22  ;;  %11860 = vmatmul.msk.bf16.gmra.mxu0 %vm560_vm0, %v3748_v49  ;;  %v3749_v22 = vpack.c.bf16 %v3718_v2, %v3717_v5 }
 0x331   : > { %11811 = vmatmul.msk.bf16.gmra.mxu3 %vm560_vm0, %v3098_v59 }
 0x333   : > { %v2165_v16 = vpop.f32.mrf.mxu2 }
 0x334   : > { %v2342_v31 = vpop.f32.mrf.mxu3 }
 0x335   : > { %v2343_v33 = vadd.f32 %v2342_v31, %v2165_v16  ;;  %v2750_v50 = vpop.f32.mrf.mxu0 }
 0x336   : > { %v2928_v55 = vadd.f32 %v2927_v6, %v2750_v50 }
 0x337   : > { %v2426_v61 = vadd.f32 %v2343_v33, %v13514_v20  ;;  %v3068_v20 = vld [vmem:[#allocation2 + $0x63] sm:$0xff]  ;;  %v3657_v33 = vld [vmem:[#allocation2 + $0x6c] sm:$0xff] }
 0x338   : > { %v2930_v0 = vpop.f32.mrf.mxu1  ;;  %v13816_v40 = vadd.f32 %v2928_v55, %v2425_v62  ;;  %v3099_v39 = vpack.c.bf16 %v3069_v8, %v3068_v20  ;;  %v3656_v55 = vld [vmem:[#allocation2 + $0x64] sm:$0xff] }
 0x33b   : > { %11895 = vmatmul.msk.bf16.gmra.mxu1 %vm560_vm0, %v3686_v29  ;;  %v2167_v60 = vpop.f32.mrf.mxu2  ;;  %v3134_v29 = vld [vmem:[%s12947_s28 + $0x7b] sm:$0xff] }
 0x33c   : > { %v2344_v52 = vpop.f32.mrf.mxu3 }
 0x33d   : > { %v2345_v28 = vadd.f32 %v2344_v52, %v2167_v60  ;;  %v2753_v49 = vpop.f32.mrf.mxu0  ;;  %v3163_v60 = vpack.c.bf16 %v3134_v29, %v3133_v42  ;;  %v3071_v52 = vld [vmem:[#allocation2 + $0x7b] sm:$0xff] }
 0x33e   : > { %v2931_v25 = vadd.f32 %v2930_v0, %v2753_v49  ;;  %v3687_v0 = vpack.c.bf16 %v3657_v33, %v3656_v55  ;;  %v3135_v55 = vld [vmem:[%s12947_s28 + $0x83] sm:$0xff]  ;;  %v3721_v42 = vld [vmem:[%s12947_s28 + $0x74] sm:$0xff] }
 0x33f   : > { %v2427_v30 = vadd.f32 %v2345_v28, %v13525_v34  ;;  %v3722_v29 = vld [vmem:[%s12947_s28 + $0x7c] sm:$0xff] }
 0x340   : > { %v2932_v38 = vpop.f32.mrf.mxu1  ;;  %v13824_v62 = vadd.f32 %v2931_v25, %v2426_v61  ;;  %11778 = vmatmul.msk.bf16.gmra.mxu2 %vm560_vm0, %v3162_v1  ;;  %11861 = vmatmul.msk.bf16.gmra.mxu0 %vm560_vm0, %v3749_v22  ;;  %v3750_v1 = vpack.c.bf16 %v3720_v48, %v3719_v63 }
 0x341   : > { %11812 = vmatmul.msk.bf16.gmra.mxu3 %vm560_vm0, %v3099_v39 }
 0x343   : > { %v2170_v6 = vpop.f32.mrf.mxu2 }
 0x344   : > { %v2347_v59 = vpop.f32.mrf.mxu3 }
 0x345   : > { %v2348_v16 = vadd.f32 %v2347_v59, %v2170_v6  ;;  %v2755_v31 = vpop.f32.mrf.mxu0 }
 0x346   : > { %v2933_v34 = vadd.f32 %v2932_v38, %v2755_v31 }
 0x347   : > { %v2428_v50 = vadd.f32 %v2348_v16, %v13534_v13  ;;  %v3070_v13 = vld [vmem:[#allocation2 + $0x73] sm:$0xff]  ;;  %v3659_v16 = vld [vmem:[#allocation2 + $0x7c] sm:$0xff] }
 0x348   : > { %v2935_v26 = vpop.f32.mrf.mxu1  ;;  %v13830_v61 = vadd.f32 %v2933_v34, %v2427_v30  ;;  %v3100_v20 = vpack.c.bf16 %v3071_v52, %v3070_v13  ;;  %v3658_v34 = vld [vmem:[#allocation2 + $0x74] sm:$0xff] }
 0x34b   : > { %11896 = vmatmul.msk.bf16.gmra.mxu1 %vm560_vm0, %v3687_v0  ;;  %v2172_v5 = vpop.f32.mrf.mxu2  ;;  %v3136_v0 = vld [vmem:[%s12947_s28 + $0x8b] sm:$0xff] }
 0x34c   : > { %v2349_v2 = vpop.f32.mrf.mxu3 }
 0x34d   : > { %v2350_v8 = vadd.f32 %v2349_v2, %v2172_v5  ;;  %v2758_v22 = vpop.f32.mrf.mxu0  ;;  %v3164_v5 = vpack.c.bf16 %v3136_v0, %v3135_v55  ;;  %v3073_v2 = vld [vmem:[#allocation2 + $0x8b] sm:$0xff]  ;;  %v3137_v55 = vld [vmem:[%s12947_s28 + $0x93] sm:$0xff]  ;;  %v3138_v0 = vld [vmem:[%s12947_s28 + $0x9b] sm:$0xff] }
 0x34e   : > { %v2936_v28 = vadd.f32 %v2935_v26, %v2758_v22  ;;  %v3688_v26 = vpack.c.bf16 %v3659_v16, %v3658_v34 }
 0x34f   : > { %v2429_v49 = vadd.f32 %v2350_v8, %v13545_v21 }
 0x350   : > { %v2937_v25 = vpop.f32.mrf.mxu1  ;;  %v13838_v30 = vadd.f32 %v2936_v28, %v2428_v50  ;;  %11779 = vmatmul.msk.bf16.gmra.mxu2 %vm560_vm0, %v3163_v60  ;;  %11862 = vmatmul.msk.bf16.gmra.mxu0 %vm560_vm0, %v3750_v1  ;;  %v3751_v60 = vpack.c.bf16 %v3722_v29, %v3721_v42  ;;  %v3723_v42 = vld [vmem:[%s12947_s28 + $0x84] sm:$0xff]  ;;  %v3724_v29 = vld [vmem:[%s12947_s28 + $0x8c] sm:$0xff] }
 0x351   : > { %11813 = vmatmul.msk.bf16.gmra.mxu3 %vm560_vm0, %v3100_v20 }
 0x353   : > { %v2175_v38 = vpop.f32.mrf.mxu2 }
 0x354   : > { %v2352_v39 = vpop.f32.mrf.mxu3 }
 0x355   : > { %v2353_v6 = vadd.f32 %v2352_v39, %v2175_v38  ;;  %v2760_v59 = vpop.f32.mrf.mxu0 }
 0x356   : > { %v2938_v21 = vadd.f32 %v2937_v25, %v2760_v59  ;;  %v12726_v25 = vld [vmem:[%s16885_s4 + $0xc8] sm:$0xff] }
 0x357   : > { %v2430_v31 = vadd.f32 %v2353_v6, %v13554_v58  ;;  %v3072_v58 = vld [vmem:[#allocation2 + $0x83] sm:$0xff]  ;;  %4444 = vmatpush.bf16.msrb.mxu2 %v12726_v25  ;;  %v3661_v59 = vld [vmem:[#allocation2 + $0x8c] sm:$0xff] }
 0x358   : > { %v2940_v33 = vpop.f32.mrf.mxu1  ;;  %v13844_v50 = vadd.f32 %v2938_v21, %v2429_v49  ;;  %v3101_v13 = vpack.c.bf16 %v3073_v2, %v3072_v58  ;;  %v3075_v2 = vld [vmem:[#allocation2 + $0x9b] sm:$0xff] }
 0x35b   : > { %11897 = vmatmul.msk.bf16.gmra.mxu1 %vm560_vm0, %v3688_v26  ;;  %v2177_v63 = vpop.f32.mrf.mxu2 }
 0x35c   : > { %v2354_v48 = vpop.f32.mrf.mxu3 }
 0x35d   : > { %v2355_v52 = vadd.f32 %v2354_v48, %v2177_v63  ;;  %v2763_v1 = vpop.f32.mrf.mxu0 }
 0x35e   : > { %v2941_v8 = vadd.f32 %v2940_v33, %v2763_v1  ;;  %v3660_v33 = vld [vmem:[#allocation2 + $0x84] sm:$0xff] }
 0x35f   : > { %v2431_v22 = vadd.f32 %v2355_v52, %v13571_v11  ;;  %v12724_v11 = vld [vmem:[%s16884_s3 + $0xd8] sm:$0xff]  ;;  %v3689_v26 = vpack.c.bf16 %v3661_v59, %v3660_v33  ;;  %v3139_v33 = vld [vmem:[%s12947_s28 + $0xa3] sm:$0xff] }
 0x360   : > { %v2942_v28 = vpop.f32.mrf.mxu1  ;;  %v13852_v49 = vadd.f32 %v2941_v8, %v2430_v31  ;;  %11780 = vmatmul.msk.bf16.gmra.mxu2 %vm560_vm0, %v3164_v5  ;;  %11863 = vmatmul.msk.bf16.gmra.mxu0 %vm560_vm0, %v3751_v60  ;;  %v3165_v5 = vpack.c.bf16 %v3138_v0, %v3137_v55  ;;  %v3752_v60 = vpack.c.bf16 %v3724_v29, %v3723_v42  ;;  %v3725_v55 = vld [vmem:[%s12947_s28 + $0x94] sm:$0xff]  ;;  %v3726_v0 = vld [vmem:[%s12947_s28 + $0x9c] sm:$0xff] }
 0x361   : > { %11814 = vmatmul.msk.bf16.gmra.mxu3 %vm560_vm0, %v3101_v13 }
 0x362   : > { %4619 = vmatpush.bf16.msrb.mxu3 %v12724_v11 }
 0x363   : > { %v2180_v20 = vpop.f32.mrf.mxu2 }
 0x364   : > { %v2357_v38 = vpop.f32.mrf.mxu3 }
 0x365   : > { %v2358_v39 = vadd.f32 %v2357_v38, %v2180_v20  ;;  %v2765_v6 = vpop.f32.mrf.mxu0 }
 0x366   : > { %v2943_v16 = vadd.f32 %v2942_v28, %v2765_v6 }
 0x367   : > { %v2432_v21 = vadd.f32 %v2358_v39, %v13580_v43  ;;  %v3074_v43 = vld [vmem:[#allocation2 + $0x93] sm:$0xff]  ;;  %v3663_v39 = vld [vmem:[#allocation2 + $0x9c] sm:$0xff] }
 0x368   : > { %v2945_v31 = vpop.f32.mrf.mxu1  ;;  %v13864_v34 = vadd.f32 %v2943_v16, %v2431_v22  ;;  %v3102_v28 = vpack.c.bf16 %v3075_v2, %v3074_v43  ;;  %v3662_v16 = vld [vmem:[#allocation2 + $0x94] sm:$0xff] }
 0x36b   : > { %11898 = vmatmul.msk.bf16.gmra.mxu1 %vm560_vm0, %v3689_v26  ;;  %v2182_v63 = vpop.f32.mrf.mxu2  ;;  %v3140_v26 = vld [vmem:[%s12947_s28 + $0xab] sm:$0xff] }
 0x36c   : > { %v2359_v48 = vpop.f32.mrf.mxu3 }
 0x36d   : > { %v2360_v52 = vadd.f32 %v2359_v48, %v2182_v63  ;;  %v2768_v1 = vpop.f32.mrf.mxu0  ;;  %v3166_v63 = vpack.c.bf16 %v3140_v26, %v3139_v33  ;;  %v3077_v48 = vld [vmem:[#allocation2 + $0xab] sm:$0xff] }
 0x36e   : > { %v2946_v8 = vadd.f32 %v2945_v31, %v2768_v1  ;;  %v3690_v31 = vpack.c.bf16 %v3663_v39, %v3662_v16  ;;  %v3141_v16 = vld [vmem:[%s12947_s28 + $0xb3] sm:$0xff]  ;;  %v3727_v33 = vld [vmem:[%s12947_s28 + $0xa4] sm:$0xff] }
 0x36f   : > { %v2433_v58 = vadd.f32 %v2360_v52, %v13591_v36  ;;  %v3728_v26 = vld [vmem:[%s12947_s28 + $0xac] sm:$0xff] }
 0x370   : > { %v2947_v22 = vpop.f32.mrf.mxu1  ;;  %v13872_v13 = vadd.f32 %v2946_v8, %v2432_v21  ;;  %11781 = vmatmul.msk.bf16.gmra.mxu2 %vm560_vm0, %v3165_v5  ;;  %11864 = vmatmul.msk.bf16.gmra.mxu0 %vm560_vm0, %v3752_v60  ;;  %v3753_v5 = vpack.c.bf16 %v3726_v0, %v3725_v55 }
 0x371   : > { %11815 = vmatmul.msk.bf16.gmra.mxu3 %vm560_vm0, %v3102_v28 }
 0x373   : > { %v3271_v25 = vpop.f32.mrf.mxu2 }
 0x374   : > { %v3448_v11 = vpop.f32.mrf.mxu3 }
 0x375   : > { %v3449_v20 = vadd.f32 %v3448_v11, %v3271_v25  ;;  %v2770_v38 = vpop.f32.mrf.mxu0 }
 0x376   : > { %v2948_v36 = vadd.f32 %v2947_v22, %v2770_v38 }
 0x377   : > { %v3574_v6 = vadd.f32 %v3449_v20, %v13602_v47  ;;  %v3076_v47 = vld [vmem:[#allocation2 + $0xa3] sm:$0xff]  ;;  %v3665_v20 = vld [vmem:[#allocation2 + $0xac] sm:$0xff] }
 0x378   : > { %v4036_v59 = vpop.f32.mrf.mxu1  ;;  %v13878_v21 = vadd.f32 %v2948_v36, %v2433_v58  ;;  %v3103_v43 = vpack.c.bf16 %v3077_v48, %v3076_v47  ;;  %v3664_v36 = vld [vmem:[#allocation2 + $0xa4] sm:$0xff] }
 0x37b   : > { %11899 = vmatmul.msk.bf16.gmra.mxu1 %vm560_vm0, %v3690_v31  ;;  %v3273_v42 = vpop.f32.mrf.mxu2  ;;  %v3142_v31 = vld [vmem:[%s12947_s28 + $0xbb] sm:$0xff] }
 0x37c   : > { %v3450_v29 = vpop.f32.mrf.mxu3 }
 0x37d   : > { %v3451_v2 = vadd.f32 %v3450_v29, %v3273_v42  ;;  %v3859_v60 = vpop.f32.mrf.mxu0  ;;  %v3167_v42 = vpack.c.bf16 %v3142_v31, %v3141_v16  ;;  %v3079_v29 = vld [vmem:[#allocation2 + $0xbb] sm:$0xff] }
 0x37e   : > { %v4037_v52 = vadd.f32 %v4036_v59, %v3859_v60  ;;  %v3691_v59 = vpack.c.bf16 %v3665_v20, %v3664_v36  ;;  %v3143_v36 = vld [vmem:[%s12947_s28 + $0xc3] sm:$0xff]  ;;  %v3729_v16 = vld [vmem:[%s12947_s28 + $0xb4] sm:$0xff] }
 0x37f   : > { %v3575_v1 = vadd.f32 %v3451_v2, %v13608_v10  ;;  %v3730_v31 = vld [vmem:[%s12947_s28 + $0xbc] sm:$0xff] }
 0x380   : > { %v4038_v8 = vpop.f32.mrf.mxu1  ;;  %v13886_v58 = vadd.f32 %v4037_v52, %v3574_v6  ;;  %11782 = vmatmul.msk.bf16.gmra.mxu2 %vm560_vm0, %v3166_v63  ;;  %11865 = vmatmul.msk.bf16.gmra.mxu0 %vm560_vm0, %v3753_v5  ;;  %v3754_v63 = vpack.c.bf16 %v3728_v26, %v3727_v33 }
 0x381   : > { %11816 = vmatmul.msk.bf16.gmra.mxu3 %vm560_vm0, %v3103_v43 }
 0x383   : > { %v3276_v22 = vpop.f32.mrf.mxu2 }
 0x384   : > { %v3453_v28 = vpop.f32.mrf.mxu3 }
 0x385   : > { %v3454_v25 = vadd.f32 %v3453_v28, %v3276_v22  ;;  %v3861_v11 = vpop.f32.mrf.mxu0 }
 0x386   : > { %v4039_v10 = vadd.f32 %v4038_v8, %v3861_v11 }
 0x387   : > { %v3576_v38 = vadd.f32 %v3454_v25, %v13614_v27  ;;  %v3078_v27 = vld [vmem:[#allocation2 + $0xb3] sm:$0xff]  ;;  %v3667_v25 = vld [vmem:[#allocation2 + $0xbc] sm:$0xff] }
 0x388   : > { %v4041_v39 = vpop.f32.mrf.mxu1  ;;  %v13892_v6 = vadd.f32 %v4039_v10, %v3575_v1  ;;  %v3104_v47 = vpack.c.bf16 %v3079_v29, %v3078_v27  ;;  %v3666_v10 = vld [vmem:[#allocation2 + $0xb4] sm:$0xff] }
 0x38b   : > { %11900 = vmatmul.msk.bf16.gmra.mxu1 %vm560_vm0, %v3691_v59  ;;  %v3278_v55 = vpop.f32.mrf.mxu2  ;;  %v3144_v59 = vld [vmem:[%s12947_s28 + $0xcb] sm:$0xff] }
 0x38c   : > { %v3455_v0 = vpop.f32.mrf.mxu3 }
 0x38d   : > { %v3456_v48 = vadd.f32 %v3455_v0, %v3278_v55  ;;  %v3864_v5 = vpop.f32.mrf.mxu0  ;;  %v3168_v55 = vpack.c.bf16 %v3144_v59, %v3143_v36  ;;  %v3081_v0 = vld [vmem:[#allocation2 + $0xcb] sm:$0xff]  ;;  %v3146_v59 = vld [vmem:[%s12947_s28 + $0xdb] sm:$0xff] }
 0x38e   : > { %v4042_v2 = vadd.f32 %v4041_v39, %v3864_v5  ;;  %v3692_v39 = vpack.c.bf16 %v3667_v25, %v3666_v10  ;;  %v3145_v10 = vld [vmem:[%s12947_s28 + $0xd3] sm:$0xff] }
 0x38f   : > { %v3577_v60 = vadd.f32 %v3456_v48, %v13620_v37  ;;  %v12723_v36 = vld [vmem:[%s16884_s3 + $0xd0] sm:$0xff] }
 0x390   : > { %v4043_v52 = vpop.f32.mrf.mxu1  ;;  %v13900_v1 = vadd.f32 %v4042_v2, %v3576_v38  ;;  %11783 = vmatmul.msk.bf16.gmra.mxu2 %vm560_vm0, %v3167_v42  ;;  %11866 = vmatmul.msk.bf16.gmra.mxu0 %vm560_vm0, %v3754_v63  ;;  %v3755_v42 = vpack.c.bf16 %v3730_v31, %v3729_v16  ;;  %v3731_v16 = vld [vmem:[%s12947_s28 + $0xc4] sm:$0xff]  ;;  %v3732_v31 = vld [vmem:[%s12947_s28 + $0xcc] sm:$0xff] }
 0x391   : > { %11817 = vmatmul.msk.bf16.gmra.mxu3 %vm560_vm0, %v3104_v47 }
 0x392   : > { %4620 = vmatpush.bf16.msrb.mxu3 %v12723_v36  ;;  %v3733_v36 = vld [vmem:[%s12947_s28 + $0xd4] sm:$0xff] }
 0x393   : > { %v3281_v8 = vpop.f32.mrf.mxu2 }
 0x394   : > { %v3458_v43 = vpop.f32.mrf.mxu3 }
 0x395   : > { %v3459_v22 = vadd.f32 %v3458_v43, %v3281_v8  ;;  %v3866_v28 = vpop.f32.mrf.mxu0 }
 0x396   : > { %v4044_v37 = vadd.f32 %v4043_v52, %v3866_v28 }
 0x397   : > { %v3578_v11 = vadd.f32 %v3459_v22, %v13626_v4  ;;  %v3080_v4 = vld [vmem:[#allocation2 + $0xc3] sm:$0xff]  ;;  %v3669_v22 = vld [vmem:[#allocation2 + $0xcc] sm:$0xff] }
 0x398   : > { %v4046_v20 = vpop.f32.mrf.mxu1  ;;  %v13906_v38 = vadd.f32 %v4044_v37, %v3577_v60  ;;  %v3105_v27 = vpack.c.bf16 %v3081_v0, %v3080_v4  ;;  %v3668_v37 = vld [vmem:[#allocation2 + $0xc4] sm:$0xff]  ;;  %v3756_v0 = vpack.c.bf16 %v3732_v31, %v3731_v16 }
 0x39b   : > { %11901 = vmatmul.msk.bf16.gmra.mxu1 %vm560_vm0, %v3692_v39  ;;  %v3283_v33 = vpop.f32.mrf.mxu2  ;;  %v12725_v39 = vld [vmem:[%s16885_s4 + $0xc0] sm:$0xff] }
 0x39c   : > { %v3460_v26 = vpop.f32.mrf.mxu3  ;;  %4445 = vmatpush.bf16.msrb.mxu2 %v12725_v39  ;;  %v3148_v39 = vld [vmem:[%s12947_s28 + $0xeb] sm:$0xff] }
 0x39d   : > { %v3461_v29 = vadd.f32 %v3460_v26, %v3283_v33  ;;  %v3869_v63 = vpop.f32.mrf.mxu0  ;;  %v3169_v26 = vpack.c.bf16 %v3146_v59, %v3145_v10  ;;  %v3147_v10 = vld [vmem:[%s12947_s28 + $0xe3] sm:$0xff] }
 0x39e   : > { %v4047_v48 = vadd.f32 %v4046_v20, %v3869_v63  ;;  %v3693_v20 = vpack.c.bf16 %v3669_v22, %v3668_v37  ;;  %v3671_v22 = vld [vmem:[#allocation2 + $0xdc] sm:$0xff] }
 0x39f   : > { %v3579_v5 = vadd.f32 %v3461_v29, %v13632_v51  ;;  %v3734_v59 = vld [vmem:[%s12947_s28 + $0xdc] sm:$0xff] }
 0x3a0   : > { %v4048_v2 = vpop.f32.mrf.mxu1  ;;  %v13914_v60 = vadd.f32 %v4047_v48, %v3578_v11  ;;  %11784 = vmatmul.msk.bf16.gmra.mxu2 %vm560_vm0, %v3168_v55  ;;  %11867 = vmatmul.msk.bf16.gmra.mxu0 %vm560_vm0, %v3755_v42  ;;  %v3083_v55 = vld [vmem:[#allocation2 + $0xdb] sm:$0xff]  ;;  %v3082_v48 = vld [vmem:[#allocation2 + $0xd3] sm:$0xff] }
 0x3a1   : > { %11818 = vmatmul.msk.bf16.gmra.mxu3 %vm560_vm0, %v3105_v27 }
 0x3a3   : > { %v3286_v52 = vpop.f32.mrf.mxu2 }
 0x3a4   : > { %v3463_v47 = vpop.f32.mrf.mxu3 }
 0x3a5   : > { %v3464_v8 = vadd.f32 %v3463_v47, %v3286_v52  ;;  %v3871_v43 = vpop.f32.mrf.mxu0 }
 0x3a6   : > { %v4049_v51 = vadd.f32 %v4048_v2, %v3871_v43  ;;  %v3106_v2 = vpack.c.bf16 %v3083_v55, %v3082_v48 }
 0x3a7   : > { %v3580_v28 = vadd.f32 %v3464_v8, %v13644_v35 }
 0x3a8   : > { %v4051_v25 = vpop.f32.mrf.mxu1  ;;  %v13920_v11 = vadd.f32 %v4049_v51, %v3579_v5 }
 0x3ab   : > { %11902 = vmatmul.msk.bf16.gmra.mxu1 %vm560_vm0, %v3693_v20  ;;  %v3288_v35 = vpop.f32.mrf.mxu2 }
 0x3ac   : > { %v3465_v33 = vpop.f32.mrf.mxu3 }
 0x3ad   : > { %v3466_v42 = vadd.f32 %v3465_v33, %v3288_v35  ;;  %v3874_v29 = vpop.f32.mrf.mxu0  ;;  %v3170_v35 = vpack.c.bf16 %v3148_v39, %v3147_v10  ;;  %v3085_v33 = vld [vmem:[#allocation2 + $0xeb] sm:$0xff] }
 0x3ae   : > { %v4052_v63 = vadd.f32 %v4051_v25, %v3874_v29  ;;  %v3735_v10 = vld [vmem:[%s12947_s28 + $0xe4] sm:$0xff]  ;;  %v3736_v39 = vld [vmem:[%s12947_s28 + $0xec] sm:$0xff] }
 0x3af   : > { %v3581_v4 = vadd.f32 %v3466_v42, %v13650_v15 }
 0x3b0   : > { %v4053_v5 = vpop.f32.mrf.mxu1  ;;  %v13934_v27 = vadd.f32 %v4052_v63, %v3580_v28  ;;  %11785 = vmatmul.msk.bf16.gmra.mxu2 %vm560_vm0, %v3169_v26  ;;  %11868 = vmatmul.msk.bf16.gmra.mxu0 %vm560_vm0, %v3756_v0  ;;  %v3670_v28 = vld [vmem:[#allocation2 + $0xd4] sm:$0xff]  ;;  %v3757_v26 = vpack.c.bf16 %v3734_v59, %v3733_v36 }
 0x3b1   : > { %11819 = vmatmul.msk.bf16.gmra.mxu3 %vm560_vm0, %v3106_v2  ;;  %v3694_v20 = vpack.c.bf16 %v3671_v22, %v3670_v28  ;;  %v3149_v28 = vld [vmem:[%s12947_s28 + $0xf3] sm:$0xff] }
 0x3b3   : > { %v3291_v52 = vpop.f32.mrf.mxu2 }
 0x3b4   : > { %v3468_v47 = vpop.f32.mrf.mxu3 }
 0x3b5   : > { %v3469_v8 = vadd.f32 %v3468_v47, %v3291_v52  ;;  %v3876_v43 = vpop.f32.mrf.mxu0 }
 0x3b6   : > { %v4054_v15 = vadd.f32 %v4053_v5, %v3876_v43 }
 0x3b7   : > { %v3582_v51 = vadd.f32 %v3469_v8, %v13656_v56  ;;  %v3084_v56 = vld [vmem:[#allocation2 + $0xe3] sm:$0xff]  ;;  %v3673_v8 = vld [vmem:[#allocation2 + $0xec] sm:$0xff] }
 0x3b8   : > { %v4056_v25 = vpop.f32.mrf.mxu1  ;;  %v13940_v37 = vadd.f32 %v4054_v15, %v3581_v4  ;;  %v3107_v48 = vpack.c.bf16 %v3085_v33, %v3084_v56  ;;  %v3672_v15 = vld [vmem:[#allocation2 + $0xe4] sm:$0xff] }
 0x3bb   : > { %11903 = vmatmul.msk.bf16.gmra.mxu1 %vm560_vm0, %v3694_v20  ;;  %v3293_v16 = vpop.f32.mrf.mxu2  ;;  %v3150_v20 = vld [vmem:[%s12947_s28 + $0xfb] sm:$0xff] }
 0x3bc   : > { %v3470_v31 = vpop.f32.mrf.mxu3 }
 0x3bd   : > { %v3471_v55 = vadd.f32 %v3470_v31, %v3293_v16  ;;  %v3879_v0 = vpop.f32.mrf.mxu0  ;;  %v3171_v16 = vpack.c.bf16 %v3150_v20, %v3149_v28  ;;  %v3087_v31 = vld [vmem:[#allocation2 + $0xfb] sm:$0xff] }
 0x3be   : > { %v4057_v42 = vadd.f32 %v4056_v25, %v3879_v0  ;;  %v3695_v25 = vpack.c.bf16 %v3673_v8, %v3672_v15  ;;  %v3151_v15 = vld [vmem:[%s12947_s28 + $0x103] sm:$0xff]  ;;  %v3737_v28 = vld [vmem:[%s12947_s28 + $0xf4] sm:$0xff] }
 0x3bf   : > { %v3583_v29 = vadd.f32 %v3471_v55, %v13662_v14  ;;  %v3738_v20 = vld [vmem:[%s12947_s28 + $0xfc] sm:$0xff] }
 0x3c0   : > { %v4058_v63 = vpop.f32.mrf.mxu1  ;;  %v13948_v4 = vadd.f32 %v4057_v42, %v3582_v51  ;;  %11786 = vmatmul.msk.bf16.gmra.mxu2 %vm560_vm0, %v3170_v35  ;;  %11869 = vmatmul.msk.bf16.gmra.mxu0 %vm560_vm0, %v3757_v26  ;;  %v3758_v35 = vpack.c.bf16 %v3736_v39, %v3735_v10 }
 0x3c1   : > { %11820 = vmatmul.msk.bf16.gmra.mxu3 %vm560_vm0, %v3107_v48 }
 0x3c3   : > { %v3296_v5 = vpop.f32.mrf.mxu2 }
 0x3c4   : > { %v3473_v2 = vpop.f32.mrf.mxu3 }
 0x3c5   : > { %v3474_v52 = vadd.f32 %v3473_v2, %v3296_v5  ;;  %v3881_v47 = vpop.f32.mrf.mxu0 }
 0x3c6   : > { %v4059_v14 = vadd.f32 %v4058_v63, %v3881_v47 }
 0x3c7   : > { %v3584_v43 = vadd.f32 %v3474_v52, %v13668_v53  ;;  %v3086_v53 = vld [vmem:[#allocation2 + $0xf3] sm:$0xff]  ;;  %v3675_v52 = vld [vmem:[#allocation2 + $0xfc] sm:$0xff] }
 0x3c8   : > { %v4061_v22 = vpop.f32.mrf.mxu1  ;;  %v13954_v51 = vadd.f32 %v4059_v14, %v3583_v29  ;;  %v3108_v56 = vpack.c.bf16 %v3087_v31, %v3086_v53  ;;  %v3674_v14 = vld [vmem:[#allocation2 + $0xf4] sm:$0xff] }
 0x3cb   : > { %11904 = vmatmul.msk.bf16.gmra.mxu1 %vm560_vm0, %v3695_v25  ;;  %v3298_v36 = vpop.f32.mrf.mxu2  ;;  %v3152_v25 = vld [vmem:[%s12947_s28 + $0x10b] sm:$0xff] }
 0x3cc   : > { %v3475_v59 = vpop.f32.mrf.mxu3 }
 0x3cd   : > { %v3476_v33 = vadd.f32 %v3475_v59, %v3298_v36  ;;  %v3884_v26 = vpop.f32.mrf.mxu0  ;;  %v3172_v36 = vpack.c.bf16 %v3152_v25, %v3151_v15  ;;  %v3089_v59 = vld [vmem:[#allocation2 + $0x10b] sm:$0xff]  ;;  %v3154_v15 = vld [vmem:[%s12947_s28 + $0x11b] sm:$0xff] }
 0x3ce   : > { %v4062_v55 = vadd.f32 %v4061_v22, %v3884_v26  ;;  %v3696_v22 = vpack.c.bf16 %v3675_v52, %v3674_v14  ;;  %v3153_v14 = vld [vmem:[%s12947_s28 + $0x113] sm:$0xff]  ;;  %v3739_v25 = vld [vmem:[%s12947_s28 + $0x104] sm:$0xff] }
 0x3cf   : > { %v3585_v0 = vadd.f32 %v3476_v33, %v13674_v32 }
 0x3d0   : > { %v4063_v42 = vpop.f32.mrf.mxu1  ;;  %v13962_v29 = vadd.f32 %v4062_v55, %v3584_v43  ;;  %11787 = vmatmul.msk.bf16.gmra.mxu2 %vm560_vm0, %v3171_v16  ;;  %11870 = vmatmul.msk.bf16.gmra.mxu0 %vm560_vm0, %v3758_v35  ;;  %v3759_v16 = vpack.c.bf16 %v3738_v20, %v3737_v28  ;;  %v3740_v28 = vld [vmem:[%s12947_s28 + $0x10c] sm:$0xff] }
 0x3d1   : > { %11821 = vmatmul.msk.bf16.gmra.mxu3 %vm560_vm0, %v3108_v56 }
 0x3d3   : > { %v3301_v63 = vpop.f32.mrf.mxu2 }
 0x3d4   : > { %v3478_v48 = vpop.f32.mrf.mxu3 }
 0x3d5   : > { %v3479_v5 = vadd.f32 %v3478_v48, %v3301_v63  ;;  %v3886_v2 = vpop.f32.mrf.mxu0 }
 0x3d6   : > { %v4064_v32 = vadd.f32 %v4063_v42, %v3886_v2 }
 0x3d7   : > { %v3586_v47 = vadd.f32 %v3479_v5, %v13680_v19  ;;  %v3088_v19 = vld [vmem:[#allocation2 + $0x103] sm:$0xff]  ;;  %v3677_v5 = vld [vmem:[#allocation2 + $0x10c] sm:$0xff] }
 0x3d8   : > { %v4066_v8 = vpop.f32.mrf.mxu1  ;;  %v13968_v43 = vadd.f32 %v4064_v32, %v3585_v0  ;;  %v3109_v53 = vpack.c.bf16 %v3089_v59, %v3088_v19  ;;  %v3676_v32 = vld [vmem:[#allocation2 + $0x104] sm:$0xff]  ;;  %v3760_v59 = vpack.c.bf16 %v3740_v28, %v3739_v25  ;;  %v3090_v19 = vld [vmem:[#allocation2 + $0x113] sm:$0xff] }
 0x3d9   : > { %v3678_v25 = vld [vmem:[#allocation2 + $0x114] sm:$0xff]  ;;  %v12729_v28 = vld [vmem:[%s16884_s3 + $0xe0] sm:$0xff] }
 0x3db   : > { %11905 = vmatmul.msk.bf16.gmra.mxu1 %vm560_vm0, %v3696_v22  ;;  %v3303_v10 = vpop.f32.mrf.mxu2  ;;  %v12722_v22 = vld [vmem:[%s16884_s3 + $0xc8] sm:$0xff] }
 0x3dc   : > { %v3480_v39 = vpop.f32.mrf.mxu3  ;;  %4621 = vmatpush.bf16.msrb.mxu3 %v12722_v22 }
 0x3dd   : > { %v3481_v31 = vadd.f32 %v3480_v39, %v3303_v10  ;;  %v3889_v35 = vpop.f32.mrf.mxu0  ;;  %v3173_v39 = vpack.c.bf16 %v3154_v15, %v3153_v14 }
 0x3de   : > { %v4067_v33 = vadd.f32 %v4066_v8, %v3889_v35  ;;  %v3697_v8 = vpack.c.bf16 %v3677_v5, %v3676_v32  ;;  %v12721_v35 = vld [vmem:[%s16884_s3 + $0xc0] sm:$0xff]  ;;  %v12730_v5 = vld [vmem:[%s16884_s3 + $0xe8] sm:$0xff] }
 0x3df   : > { %v3587_v26 = vadd.f32 %v3481_v31, %v13686_v18  ;;  %v3679_v32 = vld [vmem:[#allocation2 + $0x11c] sm:$0xff] }
 0x3e0   : > { %v4068_v55 = vpop.f32.mrf.mxu1  ;;  %v13976_v0 = vadd.f32 %v4067_v33, %v3586_v47  ;;  %11788 = vmatmul.msk.bf16.gmra.mxu2 %vm560_vm0, %v3172_v36  ;;  %11871 = vmatmul.msk.bf16.gmra.mxu0 %vm560_vm0, %v3759_v16  ;;  %v3091_v36 = vld [vmem:[#allocation2 + $0x11b] sm:$0xff] }
 0x3e1   : > { %11822 = vmatmul.msk.bf16.gmra.mxu3 %vm560_vm0, %v3109_v53  ;;  %v3110_v53 = vpack.c.bf16 %v3091_v36, %v3090_v19  ;;  %v3156_v36 = vld [vmem:[%s12947_s28 + $0x12b] sm:$0xff] }
 0x3e2   : > { %4622 = vmatpush.bf16.msrb.mxu3 %v12721_v35  ;;  %v3093_v19 = vld [vmem:[#allocation2 + $0x12b] sm:$0xff] }
 0x3e3   : > { %v3306_v42 = vpop.f32.mrf.mxu2 }
 0x3e4   : > { %v3483_v56 = vpop.f32.mrf.mxu3 }
 0x3e5   : > { %v3484_v63 = vadd.f32 %v3483_v56, %v3306_v42  ;;  %v3891_v48 = vpop.f32.mrf.mxu0  ;;  %v12731_v42 = vld [vmem:[%s16884_s3 + $0xf0] sm:$0xff] }
 0x3e6   : > { %v4069_v18 = vadd.f32 %v4068_v55, %v3891_v48 }
 0x3e7   : > { %v3588_v2 = vadd.f32 %v3484_v63, %v13704_v57  ;;  %v12732_v57 = vld [vmem:[%s16884_s3 + $0xf8] sm:$0xff] }
 0x3e8   : > { %v4071_v52 = vpop.f32.mrf.mxu1  ;;  %v13982_v47 = vadd.f32 %v4069_v18, %v3587_v26  ;;  %5207 = vmatpush.bf16.msra.mxu1 %v12732_v57  ;;  %v12736_v63 = vld [vmem:[%s16885_s4 + $0xf8] sm:$0xff]  ;;  %v3698_v57 = vpack.c.bf16 %v3679_v32, %v3678_v25 }
 0x3e9   : > { %5030 = vmatpush.bf16.msra.mxu0 %v12736_v63 }
 0x3eb   : > { %11906 = vmatmul.msk.bf16.gmra.mxu1 %vm560_vm0, %v3697_v8  ;;  %v3308_v20 = vpop.f32.mrf.mxu2  ;;  %v12735_v8 = vld [vmem:[%s16885_s4 + $0xf0] sm:$0xff] }
 0x3ec   : > { %v3485_v10 = vpop.f32.mrf.mxu3  ;;  %5208 = vmatpush.bf16.msra.mxu1 %v12731_v42 }
 0x3ed   : > { %v3486_v16 = vadd.f32 %v3485_v10, %v3308_v20  ;;  %v3894_v31 = vpop.f32.mrf.mxu0  ;;  %5031 = vmatpush.bf16.msra.mxu0 %v12735_v8  ;;  %v3155_v10 = vld [vmem:[%s12947_s28 + $0x123] sm:$0xff] }
 0x3ee   : > { %v4072_v33 = vadd.f32 %v4071_v52, %v3894_v31  ;;  %v3174_v35 = vpack.c.bf16 %v3156_v36, %v3155_v10  ;;  %v3743_v10 = vld [vmem:[%s12947_s28 + $0x124] sm:$0xff] }
 0x3ef   : > { %v3589_v26 = vadd.f32 %v3486_v16, %v13725_v17  ;;  %v12744_v17 = vld [vmem:[%s16885_s4 + $0x118] sm:$0xff]  ;;  %v4297_v36 = vld [vmem:[%s12947_s28 + $0x24] sm:$0xff] }
 0x3f0   : > { %v4073_v55 = vpop.f32.mrf.mxu1  ;;  %v14002_v56 = vadd.f32 %v4072_v33, %v3588_v2  ;;  %11789 = vmatmul.msk.bf16.gmra.mxu2 %vm560_vm0, %v3173_v39  ;;  %11872 = vmatmul.msk.bf16.gmra.mxu0 %vm560_vm0, %v3760_v59  ;;  %v12734_v39 = vld [vmem:[%s16885_s4 + $0xe8] sm:$0xff]  ;;  %v3741_v59 = vld [vmem:[%s12947_s28 + $0x114] sm:$0xff]  ;;  %v3742_v16 = vld [vmem:[%s12947_s28 + $0x11c] sm:$0xff] }
 0x3f1   : > { %11823 = vmatmul.msk.bf16.gmra.mxu3 %vm560_vm0, %v3110_v53  ;;  %5618 = vmatpush.bf16.msra.mxu2 %v12744_v17  ;;  %v3092_v33 = vld [vmem:[#allocation2 + $0x123] sm:$0xff] }
 0x3f2   : > { %5209 = vmatpush.bf16.msra.mxu1 %v12730_v5  ;;  %5032 = vmatpush.bf16.msra.mxu0 %v12734_v39  ;;  %v12733_v17 = vld [vmem:[%s16885_s4 + $0xe0] sm:$0xff]  ;;  %v3111_v5 = vpack.c.bf16 %v3093_v19, %v3092_v33  ;;  %v3744_v39 = vld [vmem:[%s12947_s28 + $0x12c] sm:$0xff] }
 0x3f3   : > { %v3311_v48 = vpop.f32.mrf.mxu2  ;;  %v4235_v33 = vld [vmem:[#allocation2 + $0x2c] sm:$0xff] }
 0x3f4   : > { %v3488_v18 = vpop.f32.mrf.mxu3 }
 0x3f5   : > { %v3489_v2 = vadd.f32 %v3488_v18, %v3311_v48  ;;  %v3896_v52 = vpop.f32.mrf.mxu0 }
 0x3f6   : > { %v4074_v14 = vadd.f32 %v4073_v55, %v3896_v52  ;;  %5210 = vmatpush.bf16.msra.mxu1 %v12729_v28  ;;  %5033 = vmatpush.bf16.msra.mxu0 %v12733_v17 }
 0x3f7   : > { %v3590_v22 = vadd.f32 %v3489_v2, %v13737_v9 }
 0x3f8   : > { %v4076_v15 = vpop.f32.mrf.mxu1  ;;  %v14023_v20 = vadd.f32 %v4074_v14, %v3589_v26  ;;  %v3761_v26 = vpack.c.bf16 %v3742_v16, %v3741_v59  ;;  %v3681_v14 = vld [vmem:[#allocation2 + $0x12c] sm:$0xff] }
 0x3f9   : > { %v4298_v59 = vld [vmem:[%s12947_s28 + $0x2c] sm:$0xff] }
 0x3fb   : > { %11907 = vmatmul.msk.bf16.gmra.mxu1 %vm560_vm0, %v3698_v57  ;;  %v3313_v9 = vpop.f32.mrf.mxu2 }
 0x3fc   : > { %v3490_v31 = vpop.f32.mrf.mxu3 }
 0x3fd   : > { %v3491_v55 = vadd.f32 %v3490_v31, %v3313_v9  ;;  %v3899_v53 = vpop.f32.mrf.mxu0  ;;  %v3762_v31 = vpack.c.bf16 %v3744_v39, %v3743_v10  ;;  %v4885_v10 = vld [vmem:[%s12947_s28 + $0x25] sm:$0xff]  ;;  %v4886_v39 = vld [vmem:[%s12947_s28 + $0x2d] sm:$0xff] }
 0x3fe   : > { %v4077_v42 = vadd.f32 %v4076_v15, %v3899_v53  ;;  %v4234_v53 = vld [vmem:[#allocation2 + $0x24] sm:$0xff] }
 0x3ff   : > { %v3591_v63 = vadd.f32 %v3491_v55, %v13743_v46  ;;  %v3680_v46 = vld [vmem:[#allocation2 + $0x124] sm:$0xff]  ;;  %v4270_v17 = vpack.c.bf16 %v4235_v33, %v4234_v53 }
 0x400   : > { %v4078_v48 = vpop.f32.mrf.mxu1  ;;  %v14037_v18 = vadd.f32 %v4077_v42, %v3590_v22  ;;  %11790 = vmatmul.msk.bf16.gmra.mxu2 %vm560_vm0, %v3174_v35  ;;  %11873 = vmatmul.msk.bf16.gmra.mxu0 %vm560_vm0, %v3761_v26  ;;  %v3699_v57 = vpack.c.bf16 %v3681_v14, %v3680_v46  ;;  %v4333_v35 = vpack.c.bf16 %v4298_v59, %v4297_v36  ;;  %v4822_v14 = vld [vmem:[#allocation2 + $0x25] sm:$0xff] }
 0x401   : > { %11824 = vmatmul.msk.bf16.gmra.mxu3 %vm560_vm0, %v3111_v5 }
 0x403   : > { %v3316_v2 = vpop.f32.mrf.mxu2 }
 0x404   : > { %v3493_v52 = vpop.f32.mrf.mxu3 }
 0x405   : > { %v3494_v32 = vadd.f32 %v3493_v52, %v3316_v2  ;;  %v3901_v8 = vpop.f32.mrf.mxu0 }
 0x406   : > { %v4079_v15 = vadd.f32 %v4078_v48, %v3901_v8 }
 0x407   : > { %v3592_v22 = vadd.f32 %v3494_v32, %v13751_v3  ;;  %v4823_v32 = vld [vmem:[#allocation2 + $0x2d] sm:$0xff] }
 0x408   : > { %v4081_v25 = vpop.f32.mrf.mxu1  ;;  %v14043_v28 = vadd.f32 %v4079_v15, %v3591_v63 }
 0x40b   : > { %11908 = vmatmul.msk.bf16.gmra.mxu1 %vm560_vm0, %v3699_v57  ;;  %v3318_v16 = vpop.f32.mrf.mxu2  ;;  %v4300_v57 = vld [vmem:[%s12947_s28 + $0x3c] sm:$0xff] }
 0x40c   : > { %v3495_v9 = vpop.f32.mrf.mxu3 }
 0x40d   : > { %v3496_v19 = vadd.f32 %v3495_v9, %v3318_v16  ;;  %v3904_v26 = vpop.f32.mrf.mxu0  ;;  %v4237_v9 = vld [vmem:[#allocation2 + $0x3c] sm:$0xff] }
 0x40e   : > { %v4082_v55 = vadd.f32 %v4081_v25, %v3904_v26  ;;  %v4299_v25 = vld [vmem:[%s12947_s28 + $0x34] sm:$0xff] }
 0x40f   : > { %v3593_v3 = vadd.f32 %v3496_v19, %v13757_v54  ;;  %v4334_v16 = vpack.c.bf16 %v4300_v57, %v4299_v25  ;;  %v4887_v25 = vld [vmem:[%s12947_s28 + $0x35] sm:$0xff]  ;;  %v4888_v57 = vld [vmem:[%s12947_s28 + $0x3d] sm:$0xff] }
 0x410   : > { %v4083_v42 = vpop.f32.mrf.mxu1  ;;  %v14051_v63 = vadd.f32 %v4082_v55, %v3592_v22  ;;  %11874 = vmatmul.msk.bf16.gmra.mxu0 %vm560_vm0, %v3762_v31  ;;  %11941 = vmatmul.msk.bf16.vlgmr.msrb.gmra.mxu2 %vm560_vm0, %v4333_v35  ;;  %v4858_v22 = vpack.c.bf16 %v4823_v32, %v4822_v14  ;;  %v4921_v31 = vpack.c.bf16 %v4886_v39, %v4885_v10  ;;  %v4301_v14 = vld [vmem:[%s12947_s28 + $0x44] sm:$0xff] }
 0x411   : > { %11975 = vmatmul.msk.bf16.vlgmr.msrb.gmra.mxu3 %vm560_vm0, %v4270_v17 }
 0x413   : > { %v3321_v48 = vpop.f32.mrf.mxu2 }
 0x414   : > { %v3498_v5 = vpop.f32.mrf.mxu3 }
 0x415   : > { %v3499_v2 = vadd.f32 %v3498_v5, %v3321_v48  ;;  %v3906_v52 = vpop.f32.mrf.mxu0 }
 0x416   : > { %v4084_v54 = vadd.f32 %v4083_v42, %v3906_v52 }
 0x417   : > { %v3594_v8 = vadd.f32 %v3499_v2, %v13765_v24  ;;  %v4236_v24 = vld [vmem:[#allocation2 + $0x34] sm:$0xff]  ;;  %v4825_v2 = vld [vmem:[#allocation2 + $0x3d] sm:$0xff] }
 0x418   : > { %v4086_v46 = vpop.f32.mrf.mxu1  ;;  %v14057_v15 = vadd.f32 %v4084_v54, %v3593_v3  ;;  %v4271_v53 = vpack.c.bf16 %v4237_v9, %v4236_v24  ;;  %v4824_v54 = vld [vmem:[#allocation2 + $0x35] sm:$0xff] }
 0x41b   : > { %12059 = vmatmul.msk.bf16.vlgmr.msra.gmra.mxu1 %vm560_vm0, %v4858_v22  ;;  %v3323_v36 = vpop.f32.mrf.mxu2  ;;  %v4302_v22 = vld [vmem:[%s12947_s28 + $0x4c] sm:$0xff] }
 0x41c   : > { %v3500_v59 = vpop.f32.mrf.mxu3 }
 0x41d   : > { %v3501_v35 = vadd.f32 %v3500_v59, %v3323_v36  ;;  %v3909_v33 = vpop.f32.mrf.mxu0  ;;  %v4335_v36 = vpack.c.bf16 %v4302_v22, %v4301_v14  ;;  %v4239_v59 = vld [vmem:[#allocation2 + $0x4c] sm:$0xff]  ;;  %v4304_v14 = vld [vmem:[%s12947_s28 + $0x5c] sm:$0xff] }
 0x41e   : > { %v4087_v19 = vadd.f32 %v4086_v46, %v3909_v33  ;;  %v4859_v46 = vpack.c.bf16 %v4825_v2, %v4824_v54  ;;  %v4303_v54 = vld [vmem:[%s12947_s28 + $0x54] sm:$0xff]  ;;  %v4889_v22 = vld [vmem:[%s12947_s28 + $0x45] sm:$0xff] }
 0x41f   : > { %v3595_v26 = vadd.f32 %v3501_v35, %v13771_v12 }
 0x420   : > { %v4088_v55 = vpop.f32.mrf.mxu1  ;;  %v14065_v3 = vadd.f32 %v4087_v19, %v3594_v8  ;;  %11942 = vmatmul.msk.bf16.gmra.mxu2 %vm560_vm0, %v4334_v16  ;;  %12025 = vmatmul.msk.bf16.vlgmr.msra.gmra.mxu0 %vm560_vm0, %v4921_v31  ;;  %v4922_v16 = vpack.c.bf16 %v4888_v57, %v4887_v25  ;;  %v4890_v25 = vld [vmem:[%s12947_s28 + $0x4d] sm:$0xff] }
 0x421   : > { %11976 = vmatmul.msk.bf16.gmra.mxu3 %vm560_vm0, %v4271_v53 }
 0x423   : > { %v3326_v42 = vpop.f32.mrf.mxu2 }
 0x424   : > { %v3503_v17 = vpop.f32.mrf.mxu3 }
 0x425   : > { %v3504_v48 = vadd.f32 %v3503_v17, %v3326_v42  ;;  %v3911_v5 = vpop.f32.mrf.mxu0 }
 0x426   : > { %v4089_v12 = vadd.f32 %v4088_v55, %v3911_v5 }
 0x427   : > { %v3596_v52 = vadd.f32 %v3504_v48, %v13779_v41  ;;  %v4238_v41 = vld [vmem:[#allocation2 + $0x44] sm:$0xff]  ;;  %v4827_v48 = vld [vmem:[#allocation2 + $0x4d] sm:$0xff] }
 0x428   : > { %v4091_v32 = vpop.f32.mrf.mxu1  ;;  %v14071_v8 = vadd.f32 %v4089_v12, %v3595_v26  ;;  %v4272_v24 = vpack.c.bf16 %v4239_v59, %v4238_v41  ;;  %v4826_v12 = vld [vmem:[#allocation2 + $0x45] sm:$0xff] }
 0x42b   : > { %12060 = vmatmul.msk.bf16.gmra.mxu1 %vm560_vm0, %v4859_v46  ;;  %v3328_v10 = vpop.f32.mrf.mxu2  ;;  %v12743_v46 = vld [vmem:[%s16885_s4 + $0x110] sm:$0xff] }
 0x42c   : > { %v3505_v39 = vpop.f32.mrf.mxu3  ;;  %5619 = vmatpush.bf16.msra.mxu2 %v12743_v46  ;;  %v4891_v46 = vld [vmem:[%s12947_s28 + $0x55] sm:$0xff] }
 0x42d   : > { %v3506_v9 = vadd.f32 %v3505_v39, %v3328_v10  ;;  %v3914_v31 = vpop.f32.mrf.mxu0  ;;  %v4336_v39 = vpack.c.bf16 %v4304_v14, %v4303_v54  ;;  %v4306_v54 = vld [vmem:[%s12947_s28 + $0x6c] sm:$0xff]  ;;  %v4892_v14 = vld [vmem:[%s12947_s28 + $0x5d] sm:$0xff] }
 0x42e   : > { %v4092_v35 = vadd.f32 %v4091_v32, %v3914_v31  ;;  %v4860_v32 = vpack.c.bf16 %v4827_v48, %v4826_v12  ;;  %v4240_v31 = vld [vmem:[#allocation2 + $0x54] sm:$0xff] }
 0x42f   : > { %v3597_v33 = vadd.f32 %v3506_v9, %v13785_v7 }
 0x430   : > { %v4093_v19 = vpop.f32.mrf.mxu1  ;;  %v14079_v26 = vadd.f32 %v4092_v35, %v3596_v52  ;;  %11943 = vmatmul.msk.bf16.gmra.mxu2 %vm560_vm0, %v4335_v36  ;;  %12026 = vmatmul.msk.bf16.gmra.mxu0 %vm560_vm0, %v4922_v16  ;;  %v4923_v36 = vpack.c.bf16 %v4890_v25, %v4889_v22 }
 0x431   : > { %11977 = vmatmul.msk.bf16.gmra.mxu3 %vm560_vm0, %v4272_v24 }
 0x433   : > { %v3331_v55 = vpop.f32.mrf.mxu2 }
 0x434   : > { %v3508_v53 = vpop.f32.mrf.mxu3 }
 0x435   : > { %v3509_v42 = vadd.f32 %v3508_v53, %v3331_v55  ;;  %v3916_v17 = vpop.f32.mrf.mxu0 }
 0x436   : > { %v4094_v7 = vadd.f32 %v4093_v19, %v3916_v17  ;;  %v4829_v17 = vld [vmem:[#allocation2 + $0x5d] sm:$0xff] }
 0x437   : > { %v3598_v5 = vadd.f32 %v3509_v42, %v13796_v45  ;;  %v4241_v45 = vld [vmem:[#allocation2 + $0x5c] sm:$0xff] }
 0x438   : > { %v4096_v2 = vpop.f32.mrf.mxu1  ;;  %v14085_v52 = vadd.f32 %v4094_v7, %v3597_v33  ;;  %v4273_v33 = vpack.c.bf16 %v4241_v45, %v4240_v31 }
 0x43b   : > { %12061 = vmatmul.msk.bf16.gmra.mxu1 %vm560_vm0, %v4860_v32  ;;  %v3333_v57 = vpop.f32.mrf.mxu2  ;;  %v4305_v32 = vld [vmem:[%s12947_s28 + $0x64] sm:$0xff] }
 0x43c   : > { %v3510_v10 = vpop.f32.mrf.mxu3 }
 0x43d   : > { %v3511_v59 = vadd.f32 %v3510_v10, %v3333_v57  ;;  %v3919_v16 = vpop.f32.mrf.mxu0  ;;  %v4337_v57 = vpack.c.bf16 %v4306_v54, %v4305_v32  ;;  %v4243_v10 = vld [vmem:[#allocation2 + $0x6c] sm:$0xff] }
 0x43e   : > { %v4097_v9 = vadd.f32 %v4096_v2, %v3919_v16  ;;  %v4893_v32 = vld [vmem:[%s12947_s28 + $0x65] sm:$0xff]  ;;  %v4894_v54 = vld [vmem:[%s12947_s28 + $0x6d] sm:$0xff] }
 0x43f   : > { %v3599_v35 = vadd.f32 %v3511_v59, %v13802_v44 }
 0x440   : > { %v4098_v41 = vpop.f32.mrf.mxu1  ;;  %v14096_v19 = vadd.f32 %v4097_v9, %v3598_v5  ;;  %11944 = vmatmul.msk.bf16.gmra.mxu2 %vm560_vm0, %v4336_v39  ;;  %12027 = vmatmul.msk.bf16.gmra.mxu0 %vm560_vm0, %v4923_v36  ;;  %v4828_v5 = vld [vmem:[#allocation2 + $0x55] sm:$0xff]  ;;  %v4924_v39 = vpack.c.bf16 %v4892_v14, %v4891_v46 }
 0x441   : > { %11978 = vmatmul.msk.bf16.gmra.mxu3 %vm560_vm0, %v4273_v33  ;;  %v4861_v12 = vpack.c.bf16 %v4829_v17, %v4828_v5  ;;  %v4307_v5 = vld [vmem:[%s12947_s28 + $0x74] sm:$0xff] }
 0x443   : > { %v3336_v24 = vpop.f32.mrf.mxu2 }
 0x444   : > { %v3513_v55 = vpop.f32.mrf.mxu3 }
 0x445   : > { %v3514_v53 = vadd.f32 %v3513_v55, %v3336_v24  ;;  %v3921_v42 = vpop.f32.mrf.mxu0 }
 0x446   : > { %v4099_v44 = vadd.f32 %v4098_v41, %v3921_v42 }
 0x447   : > { %v3600_v48 = vadd.f32 %v3514_v53, %v13810_v23  ;;  %v4242_v23 = vld [vmem:[#allocation2 + $0x64] sm:$0xff]  ;;  %v4831_v53 = vld [vmem:[#allocation2 + $0x6d] sm:$0xff] }
 0x448   : > { %v4101_v7 = vpop.f32.mrf.mxu1  ;;  %v14102_v2 = vadd.f32 %v4099_v44, %v3599_v35  ;;  %v4274_v31 = vpack.c.bf16 %v4243_v10, %v4242_v23  ;;  %v4830_v44 = vld [vmem:[#allocation2 + $0x65] sm:$0xff] }
 0x44b   : > { %12062 = vmatmul.msk.bf16.gmra.mxu1 %vm560_vm0, %v4861_v12  ;;  %v3338_v22 = vpop.f32.mrf.mxu2  ;;  %v4308_v12 = vld [vmem:[%s12947_s28 + $0x7c] sm:$0xff] }
 0x44c   : > { %v3515_v25 = vpop.f32.mrf.mxu3 }
 0x44d   : > { %v3516_v45 = vadd.f32 %v3515_v25, %v3338_v22  ;;  %v3924_v36 = vpop.f32.mrf.mxu0  ;;  %v4338_v22 = vpack.c.bf16 %v4308_v12, %v4307_v5  ;;  %v4245_v25 = vld [vmem:[#allocation2 + $0x7c] sm:$0xff] }
 0x44e   : > { %v4102_v59 = vadd.f32 %v4101_v7, %v3924_v36  ;;  %v4862_v7 = vpack.c.bf16 %v4831_v53, %v4830_v44  ;;  %v4309_v44 = vld [vmem:[%s12947_s28 + $0x84] sm:$0xff]  ;;  %v4895_v5 = vld [vmem:[%s12947_s28 + $0x75] sm:$0xff] }
 0x44f   : > { %v3601_v16 = vadd.f32 %v3516_v45, %v13816_v40  ;;  %v4896_v12 = vld [vmem:[%s12947_s28 + $0x7d] sm:$0xff] }
 0x450   : > { %v4103_v9 = vpop.f32.mrf.mxu1  ;;  %v14110_v35 = vadd.f32 %v4102_v59, %v3600_v48  ;;  %11945 = vmatmul.msk.bf16.gmra.mxu2 %vm560_vm0, %v4337_v57  ;;  %12028 = vmatmul.msk.bf16.gmra.mxu0 %vm560_vm0, %v4924_v39  ;;  %v4925_v57 = vpack.c.bf16 %v4894_v54, %v4893_v32 }
 0x451   : > { %11979 = vmatmul.msk.bf16.gmra.mxu3 %vm560_vm0, %v4274_v31 }
 0x453   : > { %v3341_v41 = vpop.f32.mrf.mxu2 }
 0x454   : > { %v3518_v33 = vpop.f32.mrf.mxu3 }
 0x455   : > { %v3519_v24 = vadd.f32 %v3518_v33, %v3341_v41  ;;  %v3926_v55 = vpop.f32.mrf.mxu0 }
 0x456   : > { %v4104_v40 = vadd.f32 %v4103_v9, %v3926_v55 }
 0x457   : > { %v3602_v42 = vadd.f32 %v3519_v24, %v13824_v62  ;;  %v4244_v62 = vld [vmem:[#allocation2 + $0x74] sm:$0xff]  ;;  %v4833_v24 = vld [vmem:[#allocation2 + $0x7d] sm:$0xff] }
 0x458   : > { %v4106_v17 = vpop.f32.mrf.mxu1  ;;  %v14116_v48 = vadd.f32 %v4104_v40, %v3601_v16  ;;  %v4275_v23 = vpack.c.bf16 %v4245_v25, %v4244_v62  ;;  %v4832_v40 = vld [vmem:[#allocation2 + $0x75] sm:$0xff] }
 0x45b   : > { %12063 = vmatmul.msk.bf16.gmra.mxu1 %vm560_vm0, %v4862_v7  ;;  %v3343_v46 = vpop.f32.mrf.mxu2  ;;  %v4310_v7 = vld [vmem:[%s12947_s28 + $0x8c] sm:$0xff] }
 0x45c   : > { %v3520_v14 = vpop.f32.mrf.mxu3 }
 0x45d   : > { %v3521_v10 = vadd.f32 %v3520_v14, %v3343_v46  ;;  %v3929_v39 = vpop.f32.mrf.mxu0  ;;  %v4339_v46 = vpack.c.bf16 %v4310_v7, %v4309_v44  ;;  %v4247_v14 = vld [vmem:[#allocation2 + $0x8c] sm:$0xff] }
 0x45e   : > { %v4107_v45 = vadd.f32 %v4106_v17, %v3929_v39  ;;  %v4863_v17 = vpack.c.bf16 %v4833_v24, %v4832_v40  ;;  %v4311_v40 = vld [vmem:[%s12947_s28 + $0x94] sm:$0xff]  ;;  %v4897_v44 = vld [vmem:[%s12947_s28 + $0x85] sm:$0xff] }
 0x45f   : > { %v3603_v36 = vadd.f32 %v3521_v10, %v13830_v61  ;;  %v4898_v7 = vld [vmem:[%s12947_s28 + $0x8d] sm:$0xff] }
 0x460   : > { %v4108_v59 = vpop.f32.mrf.mxu1  ;;  %v14124_v16 = vadd.f32 %v4107_v45, %v3602_v42  ;;  %11946 = vmatmul.msk.bf16.gmra.mxu2 %vm560_vm0, %v4338_v22  ;;  %12029 = vmatmul.msk.bf16.gmra.mxu0 %vm560_vm0, %v4925_v57  ;;  %v4926_v22 = vpack.c.bf16 %v4896_v12, %v4895_v5 }
 0x461   : > { %11980 = vmatmul.msk.bf16.gmra.mxu3 %vm560_vm0, %v4275_v23 }
 0x463   : > { %v3346_v9 = vpop.f32.mrf.mxu2 }
 0x464   : > { %v3523_v31 = vpop.f32.mrf.mxu3 }
 0x465   : > { %v3524_v41 = vadd.f32 %v3523_v31, %v3346_v9  ;;  %v3931_v33 = vpop.f32.mrf.mxu0 }
 0x466   : > { %v4109_v61 = vadd.f32 %v4108_v59, %v3931_v33 }
 0x467   : > { %v3604_v55 = vadd.f32 %v3524_v41, %v13838_v30  ;;  %v4246_v30 = vld [vmem:[#allocation2 + $0x84] sm:$0xff]  ;;  %v4835_v41 = vld [vmem:[#allocation2 + $0x8d] sm:$0xff] }
 0x468   : > { %v4111_v53 = vpop.f32.mrf.mxu1  ;;  %v14130_v42 = vadd.f32 %v4109_v61, %v3603_v36  ;;  %v4276_v62 = vpack.c.bf16 %v4247_v14, %v4246_v30  ;;  %v4834_v61 = vld [vmem:[#allocation2 + $0x85] sm:$0xff] }
 0x46b   : > { %12064 = vmatmul.msk.bf16.gmra.mxu1 %vm560_vm0, %v4863_v17  ;;  %v3348_v32 = vpop.f32.mrf.mxu2  ;;  %v4312_v17 = vld [vmem:[%s12947_s28 + $0x9c] sm:$0xff] }
 0x46c   : > { %v3525_v54 = vpop.f32.mrf.mxu3 }
 0x46d   : > { %v3526_v25 = vadd.f32 %v3525_v54, %v3348_v32  ;;  %v3934_v57 = vpop.f32.mrf.mxu0  ;;  %v4340_v32 = vpack.c.bf16 %v4312_v17, %v4311_v40  ;;  %v4249_v54 = vld [vmem:[#allocation2 + $0x9c] sm:$0xff]  ;;  %v4313_v40 = vld [vmem:[%s12947_s28 + $0xa4] sm:$0xff]  ;;  %v4314_v17 = vld [vmem:[%s12947_s28 + $0xac] sm:$0xff] }
 0x46e   : > { %v4112_v10 = vadd.f32 %v4111_v53, %v3934_v57  ;;  %v4864_v53 = vpack.c.bf16 %v4835_v41, %v4834_v61 }
 0x46f   : > { %v3605_v39 = vadd.f32 %v3526_v25, %v13844_v50 }
 0x470   : > { %v4113_v45 = vpop.f32.mrf.mxu1  ;;  %v14138_v36 = vadd.f32 %v4112_v10, %v3604_v55  ;;  %11947 = vmatmul.msk.bf16.gmra.mxu2 %vm560_vm0, %v4339_v46  ;;  %12030 = vmatmul.msk.bf16.gmra.mxu0 %vm560_vm0, %v4926_v22  ;;  %v4927_v46 = vpack.c.bf16 %v4898_v7, %v4897_v44  ;;  %v4899_v44 = vld [vmem:[%s12947_s28 + $0x95] sm:$0xff]  ;;  %v4900_v7 = vld [vmem:[%s12947_s28 + $0x9d] sm:$0xff] }
 0x471   : > { %11981 = vmatmul.msk.bf16.gmra.mxu3 %vm560_vm0, %v4276_v62 }
 0x473   : > { %v3351_v59 = vpop.f32.mrf.mxu2 }
 0x474   : > { %v3528_v23 = vpop.f32.mrf.mxu3 }
 0x475   : > { %v3529_v9 = vadd.f32 %v3528_v23, %v3351_v59  ;;  %v3936_v31 = vpop.f32.mrf.mxu0 }
 0x476   : > { %v4114_v50 = vadd.f32 %v4113_v45, %v3936_v31  ;;  %v12742_v45 = vld [vmem:[%s16885_s4 + $0x108] sm:$0xff]  ;;  %v4837_v31 = vld [vmem:[#allocation2 + $0x9d] sm:$0xff] }
 0x477   : > { %v3606_v33 = vadd.f32 %v3529_v9, %v13852_v49  ;;  %v4248_v49 = vld [vmem:[#allocation2 + $0x94] sm:$0xff]  ;;  %5620 = vmatpush.bf16.msra.mxu2 %v12742_v45 }
 0x478   : > { %v4116_v24 = vpop.f32.mrf.mxu1  ;;  %v14144_v55 = vadd.f32 %v4114_v50, %v3605_v39  ;;  %v4277_v30 = vpack.c.bf16 %v4249_v54, %v4248_v49  ;;  %v4251_v54 = vld [vmem:[#allocation2 + $0xac] sm:$0xff] }
 0x47b   : > { %12065 = vmatmul.msk.bf16.gmra.mxu1 %vm560_vm0, %v4864_v53  ;;  %v3353_v5 = vpop.f32.mrf.mxu2 }
 0x47c   : > { %v3530_v12 = vpop.f32.mrf.mxu3 }
 0x47d   : > { %v3531_v14 = vadd.f32 %v3530_v12, %v3353_v5  ;;  %v3939_v22 = vpop.f32.mrf.mxu0 }
 0x47e   : > { %v4117_v25 = vadd.f32 %v4116_v24, %v3939_v22  ;;  %v4836_v24 = vld [vmem:[#allocation2 + $0x95] sm:$0xff] }
 0x47f   : > { %v3607_v57 = vadd.f32 %v3531_v14, %v13864_v34  ;;  %v12740_v34 = vld [vmem:[%s16884_s3 + $0x118] sm:$0xff]  ;;  %v4865_v53 = vpack.c.bf16 %v4837_v31, %v4836_v24 }
 0x480   : > { %v4118_v10 = vpop.f32.mrf.mxu1  ;;  %v14152_v39 = vadd.f32 %v4117_v25, %v3606_v33  ;;  %11948 = vmatmul.msk.bf16.gmra.mxu2 %vm560_vm0, %v4340_v32  ;;  %12031 = vmatmul.msk.bf16.gmra.mxu0 %vm560_vm0, %v4927_v46  ;;  %v4341_v32 = vpack.c.bf16 %v4314_v17, %v4313_v40  ;;  %v4928_v46 = vpack.c.bf16 %v4900_v7, %v4899_v44  ;;  %v4315_v24 = vld [vmem:[%s12947_s28 + $0xb4] sm:$0xff]  ;;  %v4901_v40 = vld [vmem:[%s12947_s28 + $0xa5] sm:$0xff] }
 0x481   : > { %11982 = vmatmul.msk.bf16.gmra.mxu3 %vm560_vm0, %v4277_v30  ;;  %v4902_v17 = vld [vmem:[%s12947_s28 + $0xad] sm:$0xff] }
 0x482   : > { %5795 = vmatpush.bf16.msra.mxu3 %v12740_v34 }
 0x483   : > { %v3356_v62 = vpop.f32.mrf.mxu2 }
 0x484   : > { %v3533_v59 = vpop.f32.mrf.mxu3 }
 0x485   : > { %v3534_v23 = vadd.f32 %v3533_v59, %v3356_v62  ;;  %v3941_v9 = vpop.f32.mrf.mxu0 }
 0x486   : > { %v4119_v41 = vadd.f32 %v4118_v10, %v3941_v9 }
 0x487   : > { %v3608_v50 = vadd.f32 %v3534_v23, %v13872_v13  ;;  %v4250_v13 = vld [vmem:[#allocation2 + $0xa4] sm:$0xff]  ;;  %v4839_v23 = vld [vmem:[#allocation2 + $0xad] sm:$0xff] }
 0x488   : > { %v4121_v33 = vpop.f32.mrf.mxu1  ;;  %v14164_v61 = vadd.f32 %v4119_v41, %v3607_v57  ;;  %v4278_v10 = vpack.c.bf16 %v4251_v54, %v4250_v13  ;;  %v4838_v41 = vld [vmem:[#allocation2 + $0xa5] sm:$0xff] }
 0x48b   : > { %12066 = vmatmul.msk.bf16.gmra.mxu1 %vm560_vm0, %v4865_v53  ;;  %v3358_v5 = vpop.f32.mrf.mxu2  ;;  %v4316_v53 = vld [vmem:[%s12947_s28 + $0xbc] sm:$0xff] }
 0x48c   : > { %v3535_v12 = vpop.f32.mrf.mxu3 }
 0x48d   : > { %v3536_v14 = vadd.f32 %v3535_v12, %v3358_v5  ;;  %v3944_v22 = vpop.f32.mrf.mxu0  ;;  %v4342_v5 = vpack.c.bf16 %v4316_v53, %v4315_v24  ;;  %v4253_v12 = vld [vmem:[#allocation2 + $0xbc] sm:$0xff] }
 0x48e   : > { %v4122_v25 = vadd.f32 %v4121_v33, %v3944_v22  ;;  %v4866_v33 = vpack.c.bf16 %v4839_v23, %v4838_v41  ;;  %v4317_v41 = vld [vmem:[%s12947_s28 + $0xc4] sm:$0xff]  ;;  %v4903_v24 = vld [vmem:[%s12947_s28 + $0xb5] sm:$0xff] }
 0x48f   : > { %v3609_v49 = vadd.f32 %v3536_v14, %v13878_v21  ;;  %v4904_v53 = vld [vmem:[%s12947_s28 + $0xbd] sm:$0xff] }
 0x490   : > { %v4123_v57 = vpop.f32.mrf.mxu1  ;;  %v14172_v30 = vadd.f32 %v4122_v25, %v3608_v50  ;;  %11949 = vmatmul.msk.bf16.gmra.mxu2 %vm560_vm0, %v4341_v32  ;;  %12032 = vmatmul.msk.bf16.gmra.mxu0 %vm560_vm0, %v4928_v46  ;;  %v4929_v32 = vpack.c.bf16 %v4902_v17, %v4901_v40 }
 0x491   : > { %11983 = vmatmul.msk.bf16.gmra.mxu3 %vm560_vm0, %v4278_v10 }
 0x493   : > { %v4447_v45 = vpop.f32.mrf.mxu2 }
 0x494   : > { %v4624_v34 = vpop.f32.mrf.mxu3 }
 0x495   : > { %v4625_v62 = vadd.f32 %v4624_v34, %v4447_v45  ;;  %v3946_v59 = vpop.f32.mrf.mxu0 }
 0x496   : > { %v4124_v21 = vadd.f32 %v4123_v57, %v3946_v59 }
 0x497   : > { %v4750_v9 = vadd.f32 %v4625_v62, %v13886_v58  ;;  %v4252_v58 = vld [vmem:[#allocation2 + $0xb4] sm:$0xff]  ;;  %v4841_v62 = vld [vmem:[#allocation2 + $0xbd] sm:$0xff] }
 0x498   : > { %v5212_v31 = vpop.f32.mrf.mxu1  ;;  %v14178_v50 = vadd.f32 %v4124_v21, %v3609_v49  ;;  %v4279_v13 = vpack.c.bf16 %v4253_v12, %v4252_v58  ;;  %v4840_v21 = vld [vmem:[#allocation2 + $0xb5] sm:$0xff] }
 0x49b   : > { %12067 = vmatmul.msk.bf16.gmra.mxu1 %vm560_vm0, %v4866_v33  ;;  %v4449_v44 = vpop.f32.mrf.mxu2  ;;  %v4318_v33 = vld [vmem:[%s12947_s28 + $0xcc] sm:$0xff] }
 0x49c   : > { %v4626_v7 = vpop.f32.mrf.mxu3 }
 0x49d   : > { %v4627_v54 = vadd.f32 %v4626_v7, %v4449_v44  ;;  %v5035_v46 = vpop.f32.mrf.mxu0  ;;  %v4343_v44 = vpack.c.bf16 %v4318_v33, %v4317_v41  ;;  %v4255_v7 = vld [vmem:[#allocation2 + $0xcc] sm:$0xff] }
 0x49e   : > { %v5213_v14 = vadd.f32 %v5212_v31, %v5035_v46  ;;  %v4867_v31 = vpack.c.bf16 %v4841_v62, %v4840_v21  ;;  %v4319_v21 = vld [vmem:[%s12947_s28 + $0xd4] sm:$0xff]  ;;  %v4905_v41 = vld [vmem:[%s12947_s28 + $0xc5] sm:$0xff] }
 0x49f   : > { %v4751_v22 = vadd.f32 %v4627_v54, %v13892_v6  ;;  %v4906_v33 = vld [vmem:[%s12947_s28 + $0xcd] sm:$0xff] }
 0x4a0   : > { %v5214_v25 = vpop.f32.mrf.mxu1  ;;  %v14186_v49 = vadd.f32 %v5213_v14, %v4750_v9  ;;  %11950 = vmatmul.msk.bf16.gmra.mxu2 %vm560_vm0, %v4342_v5  ;;  %12033 = vmatmul.msk.bf16.gmra.mxu0 %vm560_vm0, %v4929_v32  ;;  %v4930_v5 = vpack.c.bf16 %v4904_v53, %v4903_v24 }
 0x4a1   : > { %11984 = vmatmul.msk.bf16.gmra.mxu3 %vm560_vm0, %v4279_v13 }
 0x4a3   : > { %v4452_v57 = vpop.f32.mrf.mxu2 }
 0x4a4   : > { %v4629_v10 = vpop.f32.mrf.mxu3 }
 0x4a5   : > { %v4630_v45 = vadd.f32 %v4629_v10, %v4452_v57  ;;  %v5037_v34 = vpop.f32.mrf.mxu0 }
 0x4a6   : > { %v5215_v6 = vadd.f32 %v5214_v25, %v5037_v34 }
 0x4a7   : > { %v4752_v59 = vadd.f32 %v4630_v45, %v13900_v1  ;;  %v4254_v1 = vld [vmem:[#allocation2 + $0xc4] sm:$0xff]  ;;  %v4843_v45 = vld [vmem:[#allocation2 + $0xcd] sm:$0xff] }
 0x4a8   : > { %v5217_v23 = vpop.f32.mrf.mxu1  ;;  %v14192_v9 = vadd.f32 %v5215_v6, %v4751_v22  ;;  %v4280_v58 = vpack.c.bf16 %v4255_v7, %v4254_v1  ;;  %v4842_v6 = vld [vmem:[#allocation2 + $0xc5] sm:$0xff] }
 0x4ab   : > { %12068 = vmatmul.msk.bf16.gmra.mxu1 %vm560_vm0, %v4867_v31  ;;  %v4454_v40 = vpop.f32.mrf.mxu2  ;;  %v4320_v31 = vld [vmem:[%s12947_s28 + $0xdc] sm:$0xff] }
 0x4ac   : > { %v4631_v17 = vpop.f32.mrf.mxu3 }
 0x4ad   : > { %v4632_v12 = vadd.f32 %v4631_v17, %v4454_v40  ;;  %v5040_v32 = vpop.f32.mrf.mxu0  ;;  %v4344_v40 = vpack.c.bf16 %v4320_v31, %v4319_v21  ;;  %v4257_v17 = vld [vmem:[#allocation2 + $0xdc] sm:$0xff]  ;;  %v12739_v21 = vld [vmem:[%s16884_s3 + $0x110] sm:$0xff] }
 0x4ae   : > { %v5218_v54 = vadd.f32 %v5217_v23, %v5040_v32  ;;  %v4868_v23 = vpack.c.bf16 %v4843_v45, %v4842_v6  ;;  %v4321_v6 = vld [vmem:[%s12947_s28 + $0xe4] sm:$0xff]  ;;  %v4322_v31 = vld [vmem:[%s12947_s28 + $0xec] sm:$0xff]  ;;  %5796 = vmatpush.bf16.msra.mxu3 %v12739_v21 }
 0x4af   : > { %v4753_v46 = vadd.f32 %v4632_v12, %v13906_v38  ;;  %v4909_v21 = vld [vmem:[%s12947_s28 + $0xe5] sm:$0xff] }
 0x4b0   : > { %v5219_v14 = vpop.f32.mrf.mxu1  ;;  %v14200_v22 = vadd.f32 %v5218_v54, %v4752_v59  ;;  %11951 = vmatmul.msk.bf16.gmra.mxu2 %vm560_vm0, %v4343_v44  ;;  %12034 = vmatmul.msk.bf16.gmra.mxu0 %vm560_vm0, %v4930_v5  ;;  %v4931_v44 = vpack.c.bf16 %v4906_v33, %v4905_v41  ;;  %v4907_v41 = vld [vmem:[%s12947_s28 + $0xd5] sm:$0xff]  ;;  %v4908_v33 = vld [vmem:[%s12947_s28 + $0xdd] sm:$0xff] }
 0x4b1   : > { %11985 = vmatmul.msk.bf16.gmra.mxu3 %vm560_vm0, %v4280_v58 }
 0x4b3   : > { %v4457_v25 = vpop.f32.mrf.mxu2 }
 0x4b4   : > { %v4634_v13 = vpop.f32.mrf.mxu3 }
 0x4b5   : > { %v4635_v57 = vadd.f32 %v4634_v13, %v4457_v25  ;;  %v5042_v10 = vpop.f32.mrf.mxu0 }
 0x4b6   : > { %v5220_v38 = vadd.f32 %v5219_v14, %v5042_v10 }
 0x4b7   : > { %v4754_v34 = vadd.f32 %v4635_v57, %v13914_v60  ;;  %v4256_v60 = vld [vmem:[#allocation2 + $0xd4] sm:$0xff]  ;;  %v4845_v57 = vld [vmem:[#allocation2 + $0xdd] sm:$0xff] }
 0x4b8   : > { %v5222_v62 = vpop.f32.mrf.mxu1  ;;  %v14206_v59 = vadd.f32 %v5220_v38, %v4753_v46  ;;  %v4281_v1 = vpack.c.bf16 %v4257_v17, %v4256_v60  ;;  %v4844_v38 = vld [vmem:[#allocation2 + $0xd5] sm:$0xff]  ;;  %v4932_v17 = vpack.c.bf16 %v4908_v33, %v4907_v41 }
 0x4bb   : > { %12069 = vmatmul.msk.bf16.gmra.mxu1 %vm560_vm0, %v4868_v23  ;;  %v4459_v24 = vpop.f32.mrf.mxu2  ;;  %v12741_v23 = vld [vmem:[%s16885_s4 + $0x100] sm:$0xff] }
 0x4bc   : > { %v4636_v53 = vpop.f32.mrf.mxu3  ;;  %5621 = vmatpush.bf16.msra.mxu2 %v12741_v23  ;;  %v4324_v23 = vld [vmem:[%s12947_s28 + $0xfc] sm:$0xff] }
 0x4bd   : > { %v4637_v7 = vadd.f32 %v4636_v53, %v4459_v24  ;;  %v5045_v5 = vpop.f32.mrf.mxu0  ;;  %v4345_v53 = vpack.c.bf16 %v4322_v31, %v4321_v6  ;;  %v4323_v6 = vld [vmem:[%s12947_s28 + $0xf4] sm:$0xff] }
 0x4be   : > { %v5223_v12 = vadd.f32 %v5222_v62, %v5045_v5  ;;  %v4869_v62 = vpack.c.bf16 %v4845_v57, %v4844_v38  ;;  %v4847_v57 = vld [vmem:[#allocation2 + $0xed] sm:$0xff] }
 0x4bf   : > { %v4755_v32 = vadd.f32 %v4637_v7, %v13920_v11  ;;  %v4910_v31 = vld [vmem:[%s12947_s28 + $0xed] sm:$0xff] }
 0x4c0   : > { %v5224_v54 = vpop.f32.mrf.mxu1  ;;  %v14214_v46 = vadd.f32 %v5223_v12, %v4754_v34  ;;  %11952 = vmatmul.msk.bf16.gmra.mxu2 %vm560_vm0, %v4344_v40  ;;  %12035 = vmatmul.msk.bf16.gmra.mxu0 %vm560_vm0, %v4931_v44  ;;  %v4259_v40 = vld [vmem:[#allocation2 + $0xec] sm:$0xff]  ;;  %v4258_v12 = vld [vmem:[#allocation2 + $0xe4] sm:$0xff] }
 0x4c1   : > { %11986 = vmatmul.msk.bf16.gmra.mxu3 %vm560_vm0, %v4281_v1 }
 0x4c3   : > { %v4462_v14 = vpop.f32.mrf.mxu2 }
 0x4c4   : > { %v4639_v58 = vpop.f32.mrf.mxu3 }
 0x4c5   : > { %v4640_v25 = vadd.f32 %v4639_v58, %v4462_v14  ;;  %v5047_v13 = vpop.f32.mrf.mxu0 }
 0x4c6   : > { %v5225_v11 = vadd.f32 %v5224_v54, %v5047_v13  ;;  %v4282_v54 = vpack.c.bf16 %v4259_v40, %v4258_v12 }
 0x4c7   : > { %v4756_v10 = vadd.f32 %v4640_v25, %v13934_v27 }
 0x4c8   : > { %v5227_v45 = vpop.f32.mrf.mxu1  ;;  %v14220_v34 = vadd.f32 %v5225_v11, %v4755_v32 }
 0x4cb   : > { %12070 = vmatmul.msk.bf16.gmra.mxu1 %vm560_vm0, %v4869_v62  ;;  %v4464_v27 = vpop.f32.mrf.mxu2 }
 0x4cc   : > { %v4641_v24 = vpop.f32.mrf.mxu3 }
 0x4cd   : > { %v4642_v44 = vadd.f32 %v4641_v24, %v4464_v27  ;;  %v5050_v7 = vpop.f32.mrf.mxu0  ;;  %v4346_v27 = vpack.c.bf16 %v4324_v23, %v4323_v6  ;;  %v4261_v24 = vld [vmem:[#allocation2 + $0xfc] sm:$0xff] }
 0x4ce   : > { %v5228_v5 = vadd.f32 %v5227_v45, %v5050_v7  ;;  %v4911_v6 = vld [vmem:[%s12947_s28 + $0xf5] sm:$0xff]  ;;  %v4912_v23 = vld [vmem:[%s12947_s28 + $0xfd] sm:$0xff] }
 0x4cf   : > { %v4757_v60 = vadd.f32 %v4642_v44, %v13940_v37 }
 0x4d0   : > { %v5229_v32 = vpop.f32.mrf.mxu1  ;;  %v14234_v1 = vadd.f32 %v5228_v5, %v4756_v10  ;;  %11953 = vmatmul.msk.bf16.gmra.mxu2 %vm560_vm0, %v4345_v53  ;;  %12036 = vmatmul.msk.bf16.gmra.mxu0 %vm560_vm0, %v4932_v17  ;;  %v4846_v10 = vld [vmem:[#allocation2 + $0xe5] sm:$0xff]  ;;  %v4933_v53 = vpack.c.bf16 %v4910_v31, %v4909_v21 }
 0x4d1   : > { %11987 = vmatmul.msk.bf16.gmra.mxu3 %vm560_vm0, %v4282_v54  ;;  %v4870_v62 = vpack.c.bf16 %v4847_v57, %v4846_v10  ;;  %v4325_v10 = vld [vmem:[%s12947_s28 + $0x104] sm:$0xff] }
 0x4d2   : > { %16927 = vst [vmem:[#allocation8_spill] sm:$0xff] %v14234_v1  ;;  %v14585_v1 = vld [vmem:[#allocation2 + $0xf6] sm:$0xff] }
 0x4d3   : > { %v4467_v14 = vpop.f32.mrf.mxu2  ;;  %16959 = vst [vmem:[#allocation36_spill] sm:$0xff] %v14585_v1  ;;  %v14666_v1 = vld [vmem:[%s12947_s28 + $0xae] sm:$0xff] }
 0x4d4   : > { %v4644_v58 = vpop.f32.mrf.mxu3 }
 0x4d5   : > { %v4645_v25 = vadd.f32 %v4644_v58, %v4467_v14  ;;  %v5052_v13 = vpop.f32.mrf.mxu0 }
 0x4d6   : > { %v5230_v37 = vadd.f32 %v5229_v32, %v5052_v13 }
 0x4d7   : > { %v4758_v11 = vadd.f32 %v4645_v25, %v13948_v4  ;;  %v4260_v4 = vld [vmem:[#allocation2 + $0xf4] sm:$0xff]  ;;  %v4849_v25 = vld [vmem:[#allocation2 + $0xfd] sm:$0xff] }
 0x4d8   : > { %v5232_v45 = vpop.f32.mrf.mxu1  ;;  %v14240_v38 = vadd.f32 %v5230_v37, %v4757_v60  ;;  %v4283_v12 = vpack.c.bf16 %v4261_v24, %v4260_v4  ;;  %v4848_v37 = vld [vmem:[#allocation2 + $0xf5] sm:$0xff] }
 0x4da   : > { %16928 = vst [vmem:[#allocation5_spill] sm:$0xff] %v14240_v38 }
 0x4db   : > { %12071 = vmatmul.msk.bf16.gmra.mxu1 %vm560_vm0, %v4870_v62  ;;  %v4469_v41 = vpop.f32.mrf.mxu2  ;;  %v4326_v62 = vld [vmem:[%s12947_s28 + $0x10c] sm:$0xff] }
 0x4dc   : > { %v4646_v33 = vpop.f32.mrf.mxu3 }
 0x4dd   : > { %v4647_v40 = vadd.f32 %v4646_v33, %v4469_v41  ;;  %v5055_v17 = vpop.f32.mrf.mxu0  ;;  %v4347_v41 = vpack.c.bf16 %v4326_v62, %v4325_v10  ;;  %v4263_v33 = vld [vmem:[#allocation2 + $0x10c] sm:$0xff] }
 0x4de   : > { %v5233_v44 = vadd.f32 %v5232_v45, %v5055_v17  ;;  %v4871_v45 = vpack.c.bf16 %v4849_v25, %v4848_v37  ;;  %v4327_v37 = vld [vmem:[%s12947_s28 + $0x114] sm:$0xff]  ;;  %v4913_v10 = vld [vmem:[%s12947_s28 + $0x105] sm:$0xff] }
 0x4df   : > { %v4759_v7 = vadd.f32 %v4647_v40, %v13954_v51  ;;  %v4914_v62 = vld [vmem:[%s12947_s28 + $0x10d] sm:$0xff] }
 0x4e0   : > { %v5234_v5 = vpop.f32.mrf.mxu1  ;;  %v14248_v60 = vadd.f32 %v5233_v44, %v4758_v11  ;;  %11954 = vmatmul.msk.bf16.gmra.mxu2 %vm560_vm0, %v4346_v27  ;;  %12037 = vmatmul.msk.bf16.gmra.mxu0 %vm560_vm0, %v4933_v53  ;;  %v4934_v27 = vpack.c.bf16 %v4912_v23, %v4911_v6 }
 0x4e1   : > { %11988 = vmatmul.msk.bf16.gmra.mxu3 %vm560_vm0, %v4283_v12 }
 0x4e2   : > { %16929 = vst [vmem:[#allocation7_spill] sm:$0xff] %v14248_v60 }
 0x4e3   : > { %v4472_v32 = vpop.f32.mrf.mxu2 }
 0x4e4   : > { %v4649_v54 = vpop.f32.mrf.mxu3 }
 0x4e5   : > { %v4650_v14 = vadd.f32 %v4649_v54, %v4472_v32  ;;  %v5057_v58 = vpop.f32.mrf.mxu0 }
 0x4e6   : > { %v5235_v51 = vadd.f32 %v5234_v5, %v5057_v58 }
 0x4e7   : > { %v4760_v13 = vadd.f32 %v4650_v14, %v13962_v29  ;;  %v4262_v29 = vld [vmem:[#allocation2 + $0x104] sm:$0xff]  ;;  %v4851_v14 = vld [vmem:[#allocation2 + $0x10d] sm:$0xff] }
 0x4e8   : > { %v5237_v57 = vpop.f32.mrf.mxu1  ;;  %v14254_v11 = vadd.f32 %v5235_v51, %v4759_v7  ;;  %v4284_v4 = vpack.c.bf16 %v4263_v33, %v4262_v29  ;;  %v4850_v51 = vld [vmem:[#allocation2 + $0x105] sm:$0xff] }
 0x4ea   : > { %16930 = vst [vmem:[#allocation9_spill] sm:$0xff] %v14254_v11 }
 0x4eb   : > { %12072 = vmatmul.msk.bf16.gmra.mxu1 %vm560_vm0, %v4871_v45  ;;  %v4474_v21 = vpop.f32.mrf.mxu2  ;;  %v4328_v45 = vld [vmem:[%s12947_s28 + $0x11c] sm:$0xff] }
 0x4ec   : > { %v4651_v31 = vpop.f32.mrf.mxu3 }
 0x4ed   : > { %v4652_v24 = vadd.f32 %v4651_v31, %v4474_v21  ;;  %v5060_v53 = vpop.f32.mrf.mxu0  ;;  %v4348_v21 = vpack.c.bf16 %v4328_v45, %v4327_v37  ;;  %v4265_v31 = vld [vmem:[#allocation2 + $0x11c] sm:$0xff]  ;;  %v4330_v37 = vld [vmem:[%s12947_s28 + $0x12c] sm:$0xff] }
 0x4ee   : > { %v5238_v40 = vadd.f32 %v5237_v57, %v5060_v53  ;;  %v4872_v57 = vpack.c.bf16 %v4851_v14, %v4850_v51  ;;  %v4329_v51 = vld [vmem:[%s12947_s28 + $0x124] sm:$0xff]  ;;  %v4915_v45 = vld [vmem:[%s12947_s28 + $0x115] sm:$0xff] }
 0x4ef   : > { %v4761_v17 = vadd.f32 %v4652_v24, %v13968_v43 }
 0x4f0   : > { %v5239_v44 = vpop.f32.mrf.mxu1  ;;  %v14262_v7 = vadd.f32 %v5238_v40, %v4760_v13  ;;  %11955 = vmatmul.msk.bf16.gmra.mxu2 %vm560_vm0, %v4347_v41  ;;  %12038 = vmatmul.msk.bf16.gmra.mxu0 %vm560_vm0, %v4934_v27  ;;  %v4935_v41 = vpack.c.bf16 %v4914_v62, %v4913_v10  ;;  %v4916_v10 = vld [vmem:[%s12947_s28 + $0x11d] sm:$0xff] }
 0x4f1   : > { %11989 = vmatmul.msk.bf16.gmra.mxu3 %vm560_vm0, %v4284_v4 }
 0x4f2   : > { %16931 = vst [vmem:[#allocation6_spill] sm:$0xff] %v14262_v7  ;;  %v14568_v7 = vld [vmem:[#allocation2 + $0xe6] sm:$0xff] }
 0x4f3   : > { %v4477_v5 = vpop.f32.mrf.mxu2 }
 0x4f4   : > { %v4654_v12 = vpop.f32.mrf.mxu3 }
 0x4f5   : > { %v4655_v32 = vadd.f32 %v4654_v12, %v4477_v5  ;;  %v5062_v54 = vpop.f32.mrf.mxu0 }
 0x4f6   : > { %v5240_v43 = vadd.f32 %v5239_v44, %v5062_v54 }
 0x4f7   : > { %v4762_v58 = vadd.f32 %v4655_v32, %v13976_v0  ;;  %v4264_v0 = vld [vmem:[#allocation2 + $0x114] sm:$0xff]  ;;  %v4853_v32 = vld [vmem:[#allocation2 + $0x11d] sm:$0xff] }
 0x4f8   : > { %v5242_v25 = vpop.f32.mrf.mxu1  ;;  %v14268_v13 = vadd.f32 %v5240_v43, %v4761_v17  ;;  %v4285_v29 = vpack.c.bf16 %v4265_v31, %v4264_v0  ;;  %v4852_v43 = vld [vmem:[#allocation2 + $0x115] sm:$0xff]  ;;  %v4936_v31 = vpack.c.bf16 %v4916_v10, %v4915_v45  ;;  %v12737_v0 = vld [vmem:[%s16884_s3 + $0x100] sm:$0xff] }
 0x4fa   : > { %16932 = vst [vmem:[#allocation10_spill] sm:$0xff] %v14268_v13  ;;  %v14583_v13 = vld [vmem:[#allocation2 + $0xfb] sm:$0xff] }
 0x4fb   : > { %12073 = vmatmul.msk.bf16.gmra.mxu1 %vm560_vm0, %v4872_v57  ;;  %v4479_v6 = vpop.f32.mrf.mxu2  ;;  %v12738_v57 = vld [vmem:[%s16884_s3 + $0x108] sm:$0xff]  ;;  %16958 = vst [vmem:[#allocation35_spill] sm:$0xff] %v14583_v13 }
 0x4fc   : > { %v4656_v23 = vpop.f32.mrf.mxu3  ;;  %5797 = vmatpush.bf16.msra.mxu3 %v12738_v57  ;;  %v12747_v57 = vld [vmem:[%s16888_s7 + $0x10] sm:$0xff] }
 0x4fd   : > { %v4657_v33 = vadd.f32 %v4656_v23, %v4479_v6  ;;  %v5065_v27 = vpop.f32.mrf.mxu0  ;;  %v4349_v23 = vpack.c.bf16 %v4330_v37, %v4329_v51 }
 0x4fe   : > { %v5243_v24 = vadd.f32 %v5242_v25, %v5065_v27  ;;  %v4873_v25 = vpack.c.bf16 %v4853_v32, %v4852_v43  ;;  %v4854_v43 = vld [vmem:[#allocation2 + $0x125] sm:$0xff] }
 0x4ff   : > { %v4763_v53 = vadd.f32 %v4657_v33, %v13982_v47 }
 0x500   : > { %v5244_v40 = vpop.f32.mrf.mxu1  ;;  %v14276_v17 = vadd.f32 %v5243_v24, %v4762_v58  ;;  %11956 = vmatmul.msk.bf16.gmra.mxu2 %vm560_vm0, %v4348_v21  ;;  %12039 = vmatmul.msk.bf16.gmra.mxu0 %vm560_vm0, %v4935_v41  ;;  %v4267_v21 = vld [vmem:[#allocation2 + $0x12c] sm:$0xff]  ;;  %v12752_v41 = vld [vmem:[%s16889_s8 + $0x18] sm:$0xff] }
 0x501   : > { %11990 = vmatmul.msk.bf16.gmra.mxu3 %vm560_vm0, %v4285_v29  ;;  %7976 = vmatpush.bf16.msrb.mxu1 %v12752_v41  ;;  %v4918_v41 = vld [vmem:[%s12947_s28 + $0x12d] sm:$0xff] }
 0x502   : > { %16933 = vst [vmem:[#allocation11_spill] sm:$0xff] %v14276_v17  ;;  %5798 = vmatpush.bf16.msra.mxu3 %v12737_v0  ;;  %v4269_v0 = vld [vmem:[#allocation2 + $0x13c] sm:$0xff] }
 0x503   : > { %v4482_v44 = vpop.f32.mrf.mxu2 }
 0x504   : > { %v4659_v4 = vpop.f32.mrf.mxu3 }
 0x505   : > { %v4660_v5 = vadd.f32 %v4659_v4, %v4482_v44  ;;  %v5067_v12 = vpop.f32.mrf.mxu0  ;;  %v12751_v4 = vld [vmem:[%s16889_s8 + $0x10] sm:$0xff] }
 0x506   : > { %v5245_v47 = vadd.f32 %v5244_v40, %v5067_v12  ;;  %7977 = vmatpush.bf16.msrb.mxu1 %v12751_v4 }
 0x507   : > { %v4764_v54 = vadd.f32 %v4660_v5, %v14002_v56  ;;  %v4266_v56 = vld [vmem:[#allocation2 + $0x124] sm:$0xff]  ;;  %v12760_v5 = vld [vmem:[%s16887_s6 + $0x38] sm:$0xff] }
 0x508   : > { %v5247_v14 = vpop.f32.mrf.mxu1  ;;  %v14282_v58 = vadd.f32 %v5245_v47, %v4763_v53  ;;  %v4286_v29 = vpack.c.bf16 %v4267_v21, %v4266_v56  ;;  %8297 = vmatpush.bf16.msrb.mxu2 %v12760_v5  ;;  %v12750_v47 = vld [vmem:[%s16889_s8 + $0x8] sm:$0xff]  ;;  %v4332_v21 = vld [vmem:[%s12947_s28 + $0x13c] sm:$0xff] }
 0x509   : > { %v12746_v56 = vld [vmem:[%s16888_s7 + $0x8] sm:$0xff]  ;;  %v12745_v5 = vld [vmem:[%s16888_s7] sm:$0xff] }
 0x50a   : > { %16934 = vst [vmem:[#allocation12_spill] sm:$0xff] %v14282_v58  ;;  %7978 = vmatpush.bf16.msrb.mxu1 %v12750_v47 }
 0x50b   : > { %12074 = vmatmul.msk.bf16.gmra.mxu1 %vm560_vm0, %v4873_v25  ;;  %v4484_v62 = vpop.f32.mrf.mxu2  ;;  %v4855_v25 = vld [vmem:[#allocation2 + $0x12d] sm:$0xff] }
 0x50c   : > { %v4661_v6 = vpop.f32.mrf.mxu3 }
 0x50d   : > { %v4662_v33 = vadd.f32 %v4661_v6, %v4484_v62  ;;  %v5070_v27 = vpop.f32.mrf.mxu0  ;;  %v4874_v62 = vpack.c.bf16 %v4855_v25, %v4854_v43  ;;  %v4331_v6 = vld [vmem:[%s12947_s28 + $0x134] sm:$0xff] }
 0x50e   : > { %v5248_v24 = vadd.f32 %v5247_v14, %v5070_v27  ;;  %v4350_v27 = vpack.c.bf16 %v4332_v21, %v4331_v6  ;;  %v5473_v21 = vld [vmem:[%s12947_s28 + $0x26] sm:$0xff] }
 0x50f   : > { %v4765_v53 = vadd.f32 %v4662_v33, %v14023_v20  ;;  %v12748_v20 = vld [vmem:[%s16888_s7 + $0x18] sm:$0xff] }
 0x510   : > { %v5249_v40 = vpop.f32.mrf.mxu1  ;;  %v14299_v44 = vadd.f32 %v5248_v24, %v4764_v54  ;;  %11957 = vmatmul.msk.bf16.gmra.mxu2 %vm560_vm0, %v4349_v23  ;;  %12040 = vmatmul.msk.bf16.gmra.mxu0 %vm560_vm0, %v4936_v31  ;;  %v12749_v23 = vld [vmem:[%s16889_s8] sm:$0xff]  ;;  %v4268_v24 = vld [vmem:[#allocation2 + $0x134] sm:$0xff] }
 0x511   : > { %11991 = vmatmul.msk.bf16.gmra.mxu3 %vm560_vm0, %v4286_v29  ;;  %7665 = vmatpush.bf16.msrb.mxu0 %v12748_v20  ;;  %v4917_v31 = vld [vmem:[%s12947_s28 + $0x125] sm:$0xff] }
 0x512   : > { %16935 = vst [vmem:[#allocation13_spill] sm:$0xff] %v14299_v44  ;;  %7979 = vmatpush.bf16.msrb.mxu1 %v12749_v23  ;;  %v4919_v23 = vld [vmem:[%s12947_s28 + $0x135] sm:$0xff] }
 0x513   : > { %v4487_v12 = vpop.f32.mrf.mxu2 }
 0x514   : > { %v4664_v32 = vpop.f32.mrf.mxu3 }
 0x515   : > { %v4665_v54 = vadd.f32 %v4664_v32, %v4487_v12  ;;  %v5072_v14 = vpop.f32.mrf.mxu0  ;;  %7666 = vmatpush.bf16.msrb.mxu0 %v12747_v57  ;;  %v4287_v32 = vpack.c.bf16 %v4269_v0, %v4268_v24  ;;  %v5411_v24 = vld [vmem:[#allocation2 + $0x2e] sm:$0xff] }
 0x516   : > { %v5250_v51 = vadd.f32 %v5249_v40, %v5072_v14 }
 0x517   : > { %v4766_v37 = vadd.f32 %v4665_v54, %v14037_v18 }
 0x518   : > { %v5252_v45 = vpop.f32.mrf.mxu1  ;;  %v14320_v10 = vadd.f32 %v5250_v51, %v4765_v53  ;;  %v4937_v53 = vpack.c.bf16 %v4918_v41, %v4917_v31  ;;  %v4857_v51 = vld [vmem:[#allocation2 + $0x13d] sm:$0xff]  ;;  %v5474_v31 = vld [vmem:[%s12947_s28 + $0x2e] sm:$0xff] }
 0x519   : > { %7667 = vmatpush.bf16.msrb.mxu0 %v12746_v56  ;;  %v4920_v56 = vld [vmem:[%s12947_s28 + $0x13d] sm:$0xff] }
 0x51a   : > { %16936 = vst [vmem:[#allocation14_spill] sm:$0xff] %v14320_v10 }
 0x51b   : > { %12075 = vmatmul.msk.bf16.gmra.mxu1 %vm560_vm0, %v4874_v62  ;;  %v4489_v18 = vpop.f32.mrf.mxu2 }
 0x51c   : > { %v4666_v33 = vpop.f32.mrf.mxu3 }
 0x51d   : > { %v4667_v40 = vadd.f32 %v4666_v33, %v4489_v18  ;;  %v5075_v29 = vpop.f32.mrf.mxu0  ;;  %7668 = vmatpush.bf16.msrb.mxu0 %v12745_v5  ;;  %v4938_v33 = vpack.c.bf16 %v4920_v56, %v4919_v23  ;;  %v5476_v23 = vld [vmem:[%s12947_s28 + $0x3e] sm:$0xff] }
 0x51e   : > { %v5253_v4 = vadd.f32 %v5252_v45, %v5075_v29 }
 0x51f   : > { %v4767_v20 = vadd.f32 %v4667_v40, %v14043_v28  ;;  %v4856_v28 = vld [vmem:[#allocation2 + $0x135] sm:$0xff]  ;;  %v5410_v40 = vld [vmem:[#allocation2 + $0x26] sm:$0xff] }
 0x520   : > { %v5254_v12 = vpop.f32.mrf.mxu1  ;;  %v14337_v47 = vadd.f32 %v5253_v4, %v4766_v37  ;;  %11958 = vmatmul.msk.bf16.gmra.mxu2 %vm560_vm0, %v4350_v27  ;;  %12041 = vmatmul.msk.bf16.gmra.mxu0 %vm560_vm0, %v4937_v53  ;;  %v4875_v6 = vpack.c.bf16 %v4857_v51, %v4856_v28  ;;  %v5509_v27 = vpack.c.bf16 %v5474_v31, %v5473_v21  ;;  %v7522_v21 = vld [vmem:[#allocation2 + $0x1b] sm:$0xff] }
 0x521   : > { %11992 = vmatmul.msk.bf16.gmra.mxu3 %vm560_vm0, %v4287_v32  ;;  %v5446_v5 = vpack.c.bf16 %v5411_v24, %v5410_v40  ;;  %v7832_v32 = vld [vmem:[%s12947_s28 + $0x13] sm:$0xff] }
 0x522   : > { %16937 = vst [vmem:[#allocation15_spill] sm:$0xff] %v14337_v47 }
 0x523   : > { %v4492_v54 = vpop.f32.mrf.mxu2 }
 0x524   : > { %v4669_v14 = vpop.f32.mrf.mxu3 }
 0x525   : > { %v4670_v43 = vadd.f32 %v4669_v14, %v4492_v54  ;;  %v5077_v25 = vpop.f32.mrf.mxu0  ;;  %v7833_v54 = vld [vmem:[%s12947_s28 + $0x1b] sm:$0xff] }
 0x526   : > { %v5255_v57 = vadd.f32 %v5254_v12, %v5077_v25 }
 0x527   : > { %v4768_v37 = vadd.f32 %v4670_v43, %v14051_v63 }
 0x528   : > { %v5257_v45 = vpop.f32.mrf.mxu1  ;;  %v14343_v62 = vadd.f32 %v5255_v57, %v4767_v20 }
 0x52a   : > { %16938 = vst [vmem:[#allocation16_spill] sm:$0xff] %v14343_v62 }
 0x52b   : > { %12076 = vmatmul.msk.bf16.gmra.mxu1 %vm560_vm0, %v4875_v6  ;;  %v4494_v41 = vpop.f32.mrf.mxu2  ;;  %v5475_v6 = vld [vmem:[%s12947_s28 + $0x36] sm:$0xff] }
 0x52c   : > { %v4671_v18 = vpop.f32.mrf.mxu3 }
 0x52d   : > { %v4672_v0 = vadd.f32 %v4671_v18, %v4494_v41  ;;  %v5080_v53 = vpop.f32.mrf.mxu0  ;;  %v5510_v41 = vpack.c.bf16 %v5476_v23, %v5475_v6  ;;  %v5413_v18 = vld [vmem:[#allocation2 + $0x3e] sm:$0xff]  ;;  %v7524_v23 = vld [vmem:[#allocation2 + $0x2b] sm:$0xff] }
 0x52e   : > { %v5258_v63 = vadd.f32 %v5257_v45, %v5080_v53 }
 0x52f   : > { %v4769_v29 = vadd.f32 %v4672_v0, %v14057_v15  ;;  %v7868_v15 = vpack.c.bf16 %v7833_v54, %v7832_v32  ;;  %v5412_v0 = vld [vmem:[#allocation2 + $0x36] sm:$0xff]  ;;  %v7835_v32 = vld [vmem:[%s12947_s28 + $0x2b] sm:$0xff] }
 0x530   : > { %v5259_v4 = vpop.f32.mrf.mxu1  ;;  %v14351_v20 = vadd.f32 %v5258_v63, %v4768_v37  ;;  %12042 = vmatmul.msk.bf16.gmra.mxu0 %vm560_vm0, %v4938_v33  ;;  %12109 = vmatmul.msk.bf16.vlgmr.msra.gmra.mxu2 %vm560_vm0, %v5509_v27  ;;  %v12759_v37 = vld [vmem:[%s16887_s6 + $0x30] sm:$0xff] }
 0x531   : > { %12143 = vmatmul.msk.bf16.vlgmr.msra.gmra.mxu3 %vm560_vm0, %v5446_v5  ;;  %8298 = vmatpush.bf16.msrb.mxu2 %v12759_v37  ;;  %v7521_v27 = vld [vmem:[#allocation2 + $0x13] sm:$0xff] }
 0x532   : > { %16939 = vst [vmem:[#allocation17_spill] sm:$0xff] %v14351_v20  ;;  %v7557_v53 = vpack.c.bf16 %v7522_v21, %v7521_v27  ;;  %v5478_v37 = vld [vmem:[%s12947_s28 + $0x4e] sm:$0xff]  ;;  %v5414_v27 = vld [vmem:[#allocation2 + $0x46] sm:$0xff] }
 0x533   : > { %v4497_v12 = vpop.f32.mrf.mxu2  ;;  %v14563_v20 = vld [vmem:[#allocation2 + $0xd3] sm:$0xff] }
 0x534   : > { %v4674_v14 = vpop.f32.mrf.mxu3 }
 0x535   : > { %v4675_v43 = vadd.f32 %v4674_v14, %v4497_v12  ;;  %v5082_v25 = vpop.f32.mrf.mxu0  ;;  %v7834_v12 = vld [vmem:[%s12947_s28 + $0x23] sm:$0xff] }
 0x536   : > { %v5260_v28 = vadd.f32 %v5259_v4, %v5082_v25 }
 0x537   : > { %v4770_v51 = vadd.f32 %v4675_v43, %v14065_v3 }
 0x538   : > { %v5262_v57 = vpop.f32.mrf.mxu1  ;;  %v14362_v45 = vadd.f32 %v5260_v28, %v4769_v29  ;;  %v5447_v29 = vpack.c.bf16 %v5413_v18, %v5412_v0 }
 0x53a   : > { %16940 = vst [vmem:[#allocation18_spill] sm:$0xff] %v14362_v45  ;;  %v14511_v45 = vld [vmem:[#allocation2 + $0xbe] sm:$0xff] }
 0x53b   : > { %12211 = vmatmul.msk.bf16.vlgmr.msrb.gmra.mxu1 %vm560_vm0, %v7868_v15  ;;  %v4499_v56 = vpop.f32.mrf.mxu2 }
 0x53c   : > { %v4676_v31 = vpop.f32.mrf.mxu3 }
 0x53d   : > { %v4677_v3 = vadd.f32 %v4676_v31, %v4499_v56  ;;  %v5085_v33 = vpop.f32.mrf.mxu0  ;;  %v5415_v31 = vld [vmem:[#allocation2 + $0x4e] sm:$0xff] }
 0x53e   : > { %v5263_v24 = vadd.f32 %v5262_v57, %v5085_v33  ;;  %v5477_v57 = vld [vmem:[%s12947_s28 + $0x46] sm:$0xff] }
 0x53f   : > { %v4771_v63 = vadd.f32 %v4677_v3, %v14071_v8  ;;  %v7869_v8 = vpack.c.bf16 %v7835_v32, %v7834_v12  ;;  %v5511_v21 = vpack.c.bf16 %v5478_v37, %v5477_v57  ;;  %v7523_v3 = vld [vmem:[#allocation2 + $0x23] sm:$0xff] }
 0x540   : > { %v5264_v40 = vpop.f32.mrf.mxu1  ;;  %v14368_v4 = vadd.f32 %v5263_v24, %v4770_v51  ;;  %12110 = vmatmul.msk.bf16.gmra.mxu2 %vm560_vm0, %v5510_v41  ;;  %12177 = vmatmul.msk.bf16.vlgmr.msrb.gmra.mxu0 %vm560_vm0, %v7557_v53  ;;  %v5448_v53 = vpack.c.bf16 %v5415_v31, %v5414_v27  ;;  %v5480_v57 = vld [vmem:[%s12947_s28 + $0x5e] sm:$0xff] }
 0x541   : > { %12144 = vmatmul.msk.bf16.gmra.mxu3 %vm560_vm0, %v5447_v29  ;;  %v7836_v29 = vld [vmem:[%s12947_s28 + $0x33] sm:$0xff] }
 0x542   : > { %16941 = vst [vmem:[#allocation19_spill] sm:$0xff] %v14368_v4  ;;  %v14509_v4 = vld [vmem:[#allocation2 + $0xb6] sm:$0xff] }
 0x543   : > { %v4502_v5 = vpop.f32.mrf.mxu2 }
 0x544   : > { %v4679_v54 = vpop.f32.mrf.mxu3 }
 0x545   : > { %v4680_v14 = vadd.f32 %v4679_v54, %v4502_v5  ;;  %v5087_v43 = vpop.f32.mrf.mxu0  ;;  %v7837_v5 = vld [vmem:[%s12947_s28 + $0x3b] sm:$0xff] }
 0x546   : > { %v5265_v25 = vadd.f32 %v5264_v40, %v5087_v43 }
 0x547   : > { %v4772_v28 = vadd.f32 %v4680_v14, %v14079_v26  ;;  %v7558_v26 = vpack.c.bf16 %v7524_v23, %v7523_v3  ;;  %v5416_v3 = vld [vmem:[#allocation2 + $0x56] sm:$0xff] }
 0x548   : > { %v5267_v15 = vpop.f32.mrf.mxu1  ;;  %v14376_v51 = vadd.f32 %v5265_v25, %v4771_v63 }
 0x54a   : > { %16942 = vst [vmem:[#allocation20_spill] sm:$0xff] %v14376_v51 }
 0x54b   : > { %12212 = vmatmul.msk.bf16.gmra.mxu1 %vm560_vm0, %v7869_v8  ;;  %v4504_v6 = vpop.f32.mrf.mxu2 }
 0x54c   : > { %v4681_v56 = vpop.f32.mrf.mxu3 }
 0x54d   : > { %v4682_v41 = vadd.f32 %v4681_v56, %v4504_v6  ;;  %v5090_v18 = vpop.f32.mrf.mxu0  ;;  %v7526_v6 = vld [vmem:[#allocation2 + $0x3b] sm:$0xff] }
 0x54e   : > { %v5268_v33 = vadd.f32 %v5267_v15, %v5090_v18  ;;  %v5479_v15 = vld [vmem:[%s12947_s28 + $0x56] sm:$0xff] }
 0x54f   : > { %v4773_v24 = vadd.f32 %v4682_v41, %v14085_v52  ;;  %v7870_v52 = vpack.c.bf16 %v7837_v5, %v7836_v29  ;;  %v5512_v56 = vpack.c.bf16 %v5480_v57, %v5479_v15  ;;  %v7525_v41 = vld [vmem:[#allocation2 + $0x33] sm:$0xff]  ;;  %v7839_v29 = vld [vmem:[%s12947_s28 + $0x4b] sm:$0xff] }
 0x550   : > { %v5269_v0 = vpop.f32.mrf.mxu1  ;;  %v14382_v63 = vadd.f32 %v5268_v33, %v4772_v28  ;;  %12111 = vmatmul.msk.bf16.gmra.mxu2 %vm560_vm0, %v5511_v21  ;;  %12178 = vmatmul.msk.bf16.gmra.mxu0 %vm560_vm0, %v7558_v26  ;;  %v12758_v28 = vld [vmem:[%s16887_s6 + $0x28] sm:$0xff]  ;;  %v5417_v21 = vld [vmem:[#allocation2 + $0x5e] sm:$0xff]  ;;  %v7559_v33 = vpack.c.bf16 %v7526_v6, %v7525_v41 }
 0x551   : > { %12145 = vmatmul.msk.bf16.gmra.mxu3 %vm560_vm0, %v5448_v53  ;;  %8299 = vmatpush.bf16.msrb.mxu2 %v12758_v28  ;;  %v5482_v28 = vld [vmem:[%s12947_s28 + $0x6e] sm:$0xff]  ;;  %v5418_v41 = vld [vmem:[#allocation2 + $0x66] sm:$0xff] }
 0x552   : > { %16943 = vst [vmem:[#allocation21_spill] sm:$0xff] %v14382_v63  ;;  %v7528_v57 = vld [vmem:[#allocation2 + $0x4b] sm:$0xff] }
 0x553   : > { %v4507_v40 = vpop.f32.mrf.mxu2 }
 0x554   : > { %v4684_v12 = vpop.f32.mrf.mxu3 }
 0x555   : > { %v4685_v32 = vadd.f32 %v4684_v12, %v4507_v40  ;;  %v5092_v54 = vpop.f32.mrf.mxu0  ;;  %v7838_v40 = vld [vmem:[%s12947_s28 + $0x43] sm:$0xff] }
 0x556   : > { %v5270_v14 = vadd.f32 %v5269_v0, %v5092_v54 }
 0x557   : > { %v4774_v43 = vadd.f32 %v4685_v32, %v14096_v19 }
 0x558   : > { %v5272_v25 = vpop.f32.mrf.mxu1  ;;  %v14390_v8 = vadd.f32 %v5270_v14, %v4773_v24  ;;  %v5449_v24 = vpack.c.bf16 %v5417_v21, %v5416_v3 }
 0x55a   : > { %16944 = vst [vmem:[#allocation22_spill] sm:$0xff] %v14390_v8 }
 0x55b   : > { %12213 = vmatmul.msk.bf16.gmra.mxu1 %vm560_vm0, %v7870_v52  ;;  %v4509_v37 = vpop.f32.mrf.mxu2 }
 0x55c   : > { %v4686_v23 = vpop.f32.mrf.mxu3 }
 0x55d   : > { %v4687_v19 = vadd.f32 %v4686_v23, %v4509_v37  ;;  %v5095_v31 = vpop.f32.mrf.mxu0  ;;  %v5419_v23 = vld [vmem:[#allocation2 + $0x6e] sm:$0xff] }
 0x55e   : > { %v5273_v18 = vadd.f32 %v5272_v25, %v5095_v31  ;;  %v5481_v25 = vld [vmem:[%s12947_s28 + $0x66] sm:$0xff] }
 0x55f   : > { %v4775_v27 = vadd.f32 %v4687_v19, %v14102_v2  ;;  %v7871_v2 = vpack.c.bf16 %v7839_v29, %v7838_v40  ;;  %v5513_v6 = vpack.c.bf16 %v5482_v28, %v5481_v25  ;;  %v7527_v19 = vld [vmem:[#allocation2 + $0x43] sm:$0xff]  ;;  %v7530_v28 = vld [vmem:[#allocation2 + $0x5b] sm:$0xff] }
 0x560   : > { %v5274_v26 = vpop.f32.mrf.mxu1  ;;  %v14399_v0 = vadd.f32 %v5273_v18, %v4774_v43  ;;  %12112 = vmatmul.msk.bf16.gmra.mxu2 %vm560_vm0, %v5512_v56  ;;  %12179 = vmatmul.msk.bf16.gmra.mxu0 %vm560_vm0, %v7559_v33  ;;  %v5450_v33 = vpack.c.bf16 %v5419_v23, %v5418_v41 }
 0x561   : > { %12146 = vmatmul.msk.bf16.gmra.mxu3 %vm560_vm0, %v5449_v24  ;;  %v7840_v24 = vld [vmem:[%s12947_s28 + $0x53] sm:$0xff] }
 0x562   : > { %16945 = vst [vmem:[#allocation23_spill] sm:$0xff] %v14399_v0 }
 0x563   : > { %v4512_v53 = vpop.f32.mrf.mxu2 }
 0x564   : > { %v4689_v5 = vpop.f32.mrf.mxu3 }
 0x565   : > { %v4690_v12 = vadd.f32 %v4689_v5, %v4512_v53  ;;  %v5097_v32 = vpop.f32.mrf.mxu0  ;;  %v7841_v53 = vld [vmem:[%s12947_s28 + $0x5b] sm:$0xff] }
 0x566   : > { %v5275_v54 = vadd.f32 %v5274_v26, %v5097_v32 }
 0x567   : > { %v4776_v14 = vadd.f32 %v4690_v12, %v14110_v35  ;;  %v7560_v35 = vpack.c.bf16 %v7528_v57, %v7527_v19  ;;  %v5420_v19 = vld [vmem:[#allocation2 + $0x76] sm:$0xff] }
 0x568   : > { %v5277_v52 = vpop.f32.mrf.mxu1  ;;  %v14407_v43 = vadd.f32 %v5275_v54, %v4775_v27 }
 0x56a   : > { %16946 = vst [vmem:[#allocation24_spill] sm:$0xff] %v14407_v43 }
 0x56b   : > { %12214 = vmatmul.msk.bf16.gmra.mxu1 %vm560_vm0, %v7871_v2  ;;  %v4514_v15 = vpop.f32.mrf.mxu2 }
 0x56c   : > { %v4691_v37 = vpop.f32.mrf.mxu3 }
 0x56d   : > { %v4692_v56 = vadd.f32 %v4691_v37, %v4514_v15  ;;  %v5100_v21 = vpop.f32.mrf.mxu0  ;;  %v5421_v37 = vld [vmem:[#allocation2 + $0x7e] sm:$0xff] }
 0x56e   : > { %v5278_v31 = vadd.f32 %v5277_v52, %v5100_v21  ;;  %v5484_v52 = vld [vmem:[%s12947_s28 + $0x7e] sm:$0xff] }
 0x56f   : > { %v4777_v18 = vadd.f32 %v4692_v56, %v14116_v48  ;;  %v7872_v48 = vpack.c.bf16 %v7841_v53, %v7840_v24  ;;  %v7529_v56 = vld [vmem:[#allocation2 + $0x53] sm:$0xff]  ;;  %v7843_v24 = vld [vmem:[%s12947_s28 + $0x6b] sm:$0xff] }
 0x570   : > { %v5279_v3 = vpop.f32.mrf.mxu1  ;;  %v14413_v27 = vadd.f32 %v5278_v31, %v4776_v14  ;;  %12113 = vmatmul.msk.bf16.gmra.mxu2 %vm560_vm0, %v5513_v6  ;;  %12180 = vmatmul.msk.bf16.gmra.mxu0 %vm560_vm0, %v7560_v35  ;;  %v5483_v14 = vld [vmem:[%s12947_s28 + $0x76] sm:$0xff]  ;;  %v5451_v35 = vpack.c.bf16 %v5421_v37, %v5420_v19  ;;  %v7532_v19 = vld [vmem:[#allocation2 + $0x6b] sm:$0xff] }
 0x571   : > { %12147 = vmatmul.msk.bf16.gmra.mxu3 %vm560_vm0, %v5450_v33  ;;  %v5514_v57 = vpack.c.bf16 %v5484_v52, %v5483_v14  ;;  %v6110_v33 = vlaneseq }
 0x572   : > { %16947 = vst [vmem:[#allocation25_spill] sm:$0xff] %v14413_v27 }
 0x573   : > { %v4517_v26 = vpop.f32.mrf.mxu2 }
 0x574   : > { %v4694_v40 = vpop.f32.mrf.mxu3 }
 0x575   : > { %v4695_v29 = vadd.f32 %v4694_v40, %v4517_v26  ;;  %v5102_v5 = vpop.f32.mrf.mxu0  ;;  %v14437_v40 = vshrl.u32 %v6110_v33, 7  ;;  %v7531_v33 = vld [vmem:[#allocation2 + $0x63] sm:$0xff] }
 0x576   : > { %v5280_v12 = vadd.f32 %v5279_v3, %v5102_v5 }
 0x577   : > { %v4778_v32 = vadd.f32 %v4695_v29, %v14124_v16  ;;  %v7561_v16 = vpack.c.bf16 %v7530_v28, %v7529_v56  ;;  %v5486_v28 = vld [vmem:[%s12947_s28 + $0x8e] sm:$0xff] }
 0x578   : > { %v5282_v54 = vpop.f32.mrf.mxu1  ;;  %v14421_v2 = vadd.f32 %v5280_v12, %v4777_v18  ;;  %v12757_v18 = vld [vmem:[%s16887_s6 + $0x20] sm:$0xff] }
 0x579   : > { %8300 = vmatpush.bf16.msrb.mxu2 %v12757_v18 }
 0x57a   : > { %16948 = vst [vmem:[#allocation26_spill] sm:$0xff] %v14421_v2 }
 0x57b   : > { %12215 = vmatmul.msk.bf16.gmra.mxu1 %vm560_vm0, %v7872_v48  ;;  %v4519_v25 = vpop.f32.mrf.mxu2 }
 0x57c   : > { %v4696_v15 = vpop.f32.mrf.mxu3 }
 0x57d   : > { %v4697_v6 = vadd.f32 %v4696_v15, %v4519_v25  ;;  %v5105_v23 = vpop.f32.mrf.mxu0  ;;  %v5485_v25 = vld [vmem:[%s12947_s28 + $0x86] sm:$0xff]  ;;  %v6151_v15 = vshrl.u32 %v14437_v40, 16 }
 0x57e   : > { %v5283_v21 = vadd.f32 %v5282_v54, %v5105_v23 }
 0x57f   : > { %v4779_v31 = vadd.f32 %v4697_v6, %v14130_v42  ;;  %v7842_v42 = vld [vmem:[%s12947_s28 + $0x63] sm:$0xff]  ;;  %v14447_v6 = vmul.u32 14564, %v6151_v15 }
 0x580   : > { %v5284_v41 = vpop.f32.mrf.mxu1  ;;  %v14430_v3 = vadd.f32 %v5283_v21, %v4778_v32  ;;  %12114 = vmatmul.msk.bf16.gmra.mxu2 %vm560_vm0, %v5514_v57  ;;  %12181 = vmatmul.msk.bf16.gmra.mxu0 %vm560_vm0, %v7561_v16  ;;  %v7873_v48 = vpack.c.bf16 %v7843_v24, %v7842_v42  ;;  %v6150_v32 = vand.u32 65535, %v14437_v40  ;;  %v5515_v21 = vpack.c.bf16 %v5486_v28, %v5485_v25 }
 0x581   : > { %12148 = vmatmul.msk.bf16.gmra.mxu3 %vm560_vm0, %v5451_v35 }
 0x582   : > { %16949 = vst [vmem:[#allocation27_spill] sm:$0xff] %v14430_v3  ;;  %v6154_v57 = vmul.u32 58254, %v6150_v32  ;;  %v6153_v37 = vmul.u32 14564, %v6150_v32 }
 0x583   : > { %v4522_v26 = vpop.f32.mrf.mxu2 }
 0x584   : > { %v4699_v53 = vpop.f32.mrf.mxu3  ;;  %v6157_v23 = vshll.u32 %v6154_v57, 16 }
 0x585   : > { %v4700_v29 = vadd.f32 %v4699_v53, %v4522_v26  ;;  %v5107_v5 = vpop.f32.mrf.mxu0  ;;  %v16892_v26 = vmov 0   ;;  %v14452_v53 = vadd.s32 8, %v14437_v40 }
 0x586   : > { %v5285_v12 = vadd.f32 %v5284_v41, %v5107_v5  ;;  %v5423_v41 = vld [vmem:[#allocation2 + $0x8e] sm:$0xff]  ;;  %vm6161_vm1 = vc.u32 %v6153_v37, %v6157_v23  ;;  %v6163_v24 = vadd.s32 %v6157_v23, %v6153_v37  ;;  %v5422_v5 = vld [vmem:[#allocation2 + $0x86] sm:$0xff]  ;;  %v6158_v23 = vshrl.u32 %v6154_v57, 16 }
 0x587   : > { %v4780_v54 = vadd.f32 %v4700_v29, %v14138_v36  ;;  %v6156_v36 = vmul.u32 58254, %v6151_v15  ;;  %v6162_v42 = vsel %vm6161_vm1, 1, %v16892_v26  ;;  %v5452_v15 = vpack.c.bf16 %v5423_v41, %v5422_v5  ;;  %v14466_v37 = vld [vmem:[#allocation2 + $0x73] sm:$0xff]  ;;  %v14481_v57 = vld [vmem:[#allocation2 + $0xab] sm:$0xff] }
 0x588   : > { %v5287_v14 = vpop.f32.mrf.mxu1  ;;  %v14441_v52 = vadd.f32 %v5285_v12, %v4779_v31  ;;  %v6159_v31 = vshll.u32 %v14447_v6, 16  ;;  %v7562_v12 = vpack.c.bf16 %v7532_v19, %v7531_v33  ;;  %v16952_v19 = vmov 0   ;;  %v14483_v33 = vld [vmem:[#allocation2 + $0x96] sm:$0xff] }
 0x589   : > { %v6164_v32 = vadd.s32 %v6162_v42, %v6156_v36  ;;  %v6180_v41 = vshrl.u32 %v14452_v53, 16  ;;  %v14470_v36 = vld [vmem:[#allocation2 + $0x9b] sm:$0xff]  ;;  %v14485_v42 = vld [vmem:[#allocation2 + $0xa6] sm:$0xff] }
 0x58a   : > { %16950 = vst [vmem:[#allocation28_spill] sm:$0xff] %v14441_v52  ;;  %vm6165_vm2 = vc.u32 %v6163_v24, %v6159_v31  ;;  %v14477_v31 = vld [vmem:[#allocation2 + $0x83] sm:$0xff] }
 0x58b   : > { %12216 = vmatmul.msk.bf16.gmra.mxu1 %vm560_vm0, %v7873_v48  ;;  %v4524_v56 = vpop.f32.mrf.mxu2  ;;  %v14454_v48 = vld [vmem:[#allocation2 + $0x7b] sm:$0xff]  ;;  %v14501_v24 = vld [vmem:[#allocation2 + $0xa3] sm:$0xff]  ;;  %v6185_v27 = vmul.u32 58254, %v6180_v41 }
 0x58c   : > { %v4701_v16 = vpop.f32.mrf.mxu3 }
 0x58d   : > { %v4702_v35 = vadd.f32 %v4701_v16, %v4524_v56  ;;  %v5110_v18 = vpop.f32.mrf.mxu0  ;;  %v14457_v56 = vld [vmem:[#allocation2 + $0x8b] sm:$0xff]  ;;  %v6179_v16 = vand.u32 65535, %v14452_v53 }
 0x58e   : > { %v5288_v29 = vadd.f32 %v5287_v14, %v5110_v18  ;;  %v14464_v14 = vld [vmem:[#allocation2 + $0x9e] sm:$0xff] }
 0x58f   : > { %v4781_v25 = vadd.f32 %v4702_v35, %v14144_v55  ;;  %v6166_v55 = vsel %vm6165_vm2, 1, %v16952_v19  ;;  %v14479_v18 = vmul.u32 58254, %v6179_v16  ;;  %v6182_v5 = vmul.u32 14564, %v6179_v16 }
 0x590   : > { %v5289_v28 = vpop.f32.mrf.mxu1  ;;  %v14460_v26 = vadd.f32 %v5288_v29, %v4780_v54  ;;  %12115 = vmatmul.msk.bf16.gmra.mxu2 %vm560_vm0, %v5515_v21  ;;  %12182 = vmatmul.msk.bf16.gmra.mxu0 %vm560_vm0, %v7562_v12  ;;  %v14475_v21 = vld [vmem:[#allocation2 + $0xae] sm:$0xff]  ;;  %v6168_v35 = vadd.s32 %v6166_v55, %v6164_v32  ;;  %v6160_v29 = vshrl.u32 %v14447_v6, 16  ;;  %v14490_v12 = vmul.u32 14564, %v6180_v41  ;;  %v7845_v55 = vld [vmem:[%s12947_s28 + $0x7b] sm:$0xff] }
 0x591   : > { %12149 = vmatmul.msk.bf16.gmra.mxu3 %vm560_vm0, %v5452_v15  ;;  %v14492_v15 = vld [vmem:[#allocation2 + $0x93] sm:$0xff]  ;;  %v6186_v3 = vshll.u32 %v14479_v18, 16  ;;  %v14514_v41 = vadd.s32 16, %v14437_v40 }
 0x592   : > { %16951 = vst [vmem:[#allocation29_spill] sm:$0xff] %v14460_v26  ;;  %v7844_v32 = vld [vmem:[%s12947_s28 + $0x73] sm:$0xff]  ;;  %v6169_v52 = vadd.s32 %v6168_v35, %v6158_v23  ;;  %v6188_v43 = vshll.u32 %v14490_v12, 16  ;;  %v6189_v0 = vshrl.u32 %v14490_v12, 16 }
 0x593   : > { %v4527_v54 = vpop.f32.mrf.mxu2  ;;  %vm6190_vm3 = vc.u32 %v6182_v5, %v6186_v3  ;;  %v6192_v35 = vadd.s32 %v6186_v3, %v6182_v5  ;;  %v7874_v51 = vpack.c.bf16 %v7845_v55, %v7844_v32  ;;  %v14519_v3 = vld [vmem:[#allocation2 + $0xce] sm:$0xff]  ;;  %v6187_v32 = vshrl.u32 %v14479_v18, 16  ;;  %v14541_v18 = vld [vmem:[#allocation2 + $0xdb] sm:$0xff] }
 0x594   : > { %v4704_v6 = vpop.f32.mrf.mxu3  ;;  %v6170_v23 = vadd.s32 %v6169_v52, %v6160_v29  ;;  %v6191_v2 = vsel %vm6190_vm3, 1, %v16952_v19  ;;  %v14559_v12 = vld [vmem:[#allocation2 + $0xd6] sm:$0xff] }
 0x595   : > { %v4705_v8 = vadd.f32 %v4704_v6, %v4527_v54  ;;  %v5112_v26 = vpop.f32.mrf.mxu0  ;;  %v6193_v29 = vadd.s32 %v6191_v2, %v6185_v27  ;;  %vm6194_vm4 = vc.u32 %v6192_v35, %v6188_v43  ;;  %v14532_v6 = vld [vmem:[#allocation2 + $0xde] sm:$0xff]  ;;  %v14534_v27 = vld [vmem:[#allocation2 + $0xcb] sm:$0xff]  ;;  %v5487_v43 = vld [vmem:[%s12947_s28 + $0x96] sm:$0xff] }
 0x596   : > { %v5290_v63 = vadd.f32 %v5289_v28, %v5112_v26  ;;  %v6171_v52 = vshrl.u32 %v6170_v23, 4  ;;  %v14521_v26 = vld [vmem:[#allocation2 + $0xb3] sm:$0xff]  ;;  %v14523_v28 = vld [vmem:[#allocation2 + $0xbb] sm:$0xff]  ;;  %v6195_v55 = vsel %vm6194_vm4, 1, %v16952_v19  ;;  %16954 = vst [vmem:[#allocation31_spill] sm:$0xff] %v14534_v27 }
 0x597   : > { %v14517_v16 = vadd.f32 %v4705_v8, %v14152_v39  ;;  %v6208_v39 = vand.u32 65535, %v14514_v41  ;;  %v14530_v8 = vld [vmem:[#allocation2 + $0xc6] sm:$0xff]  ;;  %v5488_v2 = vld [vmem:[%s12947_s28 + $0x9e] sm:$0xff]  ;;  %v6197_v35 = vadd.s32 %v6195_v55, %v6193_v29  ;;  %v14551_v29 = vld [vmem:[#allocation2 + $0xee] sm:$0xff] }
 0x598   : > { %v5292_v54 = vpop.f32.mrf.mxu1  ;;  %v14525_v5 = vadd.f32 %v5290_v63, %v4781_v25  ;;  %v6172_v23 = vmul.u32 18, %v6171_v52  ;;  %v6209_v25 = vshrl.u32 %v14514_v41, 16  ;;  %v14553_v55 = vld [vmem:[#allocation2 + $0xc3] sm:$0xff]  ;;  %v14555_v63 = vld [vmem:[#allocation2 + $0xeb] sm:$0xff]  ;;  %v5516_v52 = vpack.c.bf16 %v5488_v2, %v5487_v43 }
 0x599   : > { %16955 = vst [vmem:[#allocation32_spill] sm:$0xff] %v14553_v55  ;;  %v6198_v47 = vadd.s32 %v6197_v35, %v6187_v32  ;;  %v6211_v10 = vmul.u32 14564, %v6208_v39  ;;  %v14570_v32 = vld [vmem:[#allocation2 + $0xfe] sm:$0xff]  ;;  %v14612_v2 = vld [vmem:[#allocation2 + $0x106] sm:$0xff] }
 0x59a   : > { %16953 = vst [vmem:[#allocation30_spill] sm:$0xff] %v14525_v5  ;;  %v14545_v5 = vmul.u32 58254, %v6208_v39  ;;  %v14574_v35 = vld [vmem:[#allocation2 + $0xe3] sm:$0xff]  ;;  %v14577_v60 = vsub.s32 %v14437_v40, %v6172_v23  ;;  %v6214_v38 = vmul.u32 58254, %v6209_v25  ;;  %v14587_v39 = vld [vmem:[#allocation2 + $0x10e] sm:$0xff]  ;;  %v12864_v23 = vmov 0.0  }
 0x59b   : > { %12217 = vmatmul.msk.bf16.gmra.mxu1 %vm560_vm0, %v7874_v51  ;;  %16956 = vst [vmem:[#allocation33_spill] sm:$0xff] %v14555_v63  ;;  %v4529_v62 = vpop.f32.mrf.mxu2  ;;  %v14557_v51 = vmul.u32 14564, %v6209_v25  ;;  %v6199_v27 = vadd.s32 %v6198_v47, %v6189_v0  ;;  %v14598_v47 = vld [vmem:[#allocation2 + $0xf3] sm:$0xff]  ;;  %v14600_v0 = vld [vmem:[#allocation2 + $0x10b] sm:$0xff] }
 0x59c   : > { %v4706_v58 = vpop.f32.mrf.mxu3  ;;  %v6215_v17 = vshll.u32 %v14545_v5, 16  ;;  %16957 = vst [vmem:[#allocation34_spill] sm:$0xff] %v14574_v35  ;;  %v14630_v35 = vld [vmem:[#allocation2 + $0x11b] sm:$0xff]  ;;  %vm7191_vm6 = vcmp.ne.s32.totalorder %v14577_v60, 0  ;;  %vm7227_vm7 = vcmp.lt.s32.totalorder %v14577_v60, 0  ;;  %v14663_v63 = vld [vmem:[%s12947_s28 + $0xa6] sm:$0xff] }
 0x59d   : > { %v4707_v11 = vadd.f32 %v4706_v58, %v4529_v62  ;;  %v5115_v44 = vpop.f32.mrf.mxu0  ;;  %16960 = vst [vmem:[#allocation37_spill] sm:$0xff] %v14587_v39  ;;  %v6217_v43 = vshll.u32 %v14557_v51, 16  ;;  %vm14672_vm9 = vmand %vm7227_vm7, %vm7191_vm6 }
 0x59e   : > { %v5293_v55 = vadd.f32 %v5292_v54, %v5115_v44  ;;  %7445 = vst [vmem:[#allocation3 + $0x10] sm:$0xff] %v12864_v23  ;;  %vm6219_vm5 = vc.u32 %v6211_v10, %v6215_v17  ;;  %v14596_v44 = vld [vmem:[#allocation2 + $0x11e] sm:$0xff] }
 0x59f   : > { %v14590_v58 = vadd.f32 %v4707_v11, %v14164_v61  ;;  %16961 = vst [vmem:[#allocation38_spill] sm:$0xff] %v14596_v44  ;;  %v16965_v61 = vpack.c.bf16 %v14454_v48, %v14466_v37  ;;  %v6200_v11 = vshrl.u32 %v6199_v27, 4  ;;  %v6220_v25 = vsel %vm6219_vm5, 1, %v16952_v19 }
 0x5a0   : > { %v5294_v62 = vpop.f32.mrf.mxu1  ;;  %16962 = vst [vmem:[#allocation39_spill] sm:$0xff] %v14598_v47  ;;  %v14603_v54 = vadd.f32 %v5293_v55, %v14517_v16  ;;  %12116 = vmatmul.msk.bf16.gmra.mxu2 %vm560_vm0, %v5516_v52  ;;  %v16967_v16 = vpack.c.bf16 %v14464_v14, %v14483_v33  ;;  %v6221_v48 = vadd.s32 %v6215_v17, %v6211_v10  ;;  %v14622_v27 = vadd.s32 24, %v14437_v40  ;;  %v14626_v55 = vld [vmem:[#allocation2 + $0x116] sm:$0xff]  ;;  %v14641_v14 = vld [vmem:[#allocation2 + $0x13e] sm:$0xff]  ;;  %v7847_v52 = vld [vmem:[%s12947_s28 + $0x8b] sm:$0xff] }
 0x5a1   : > { %16963 = vst [vmem:[#allocation40_spill] sm:$0xff] %v14600_v0  ;;  %12183 = vmatmul.msk.bf16.gmra.mxu0 %vm560_vm0, %v16965_v61  ;;  %v6222_v37 = vadd.s32 %v6220_v25, %v6214_v38  ;;  %v14628_v61 = vld [vmem:[#allocation2 + $0x103] sm:$0xff]  ;;  %v14639_v10 = vld [vmem:[#allocation2 + $0x136] sm:$0xff]  ;;  %v6216_v47 = vshrl.u32 %v14545_v5, 16 }
 0x5a2   : > { %16964 = vst [vmem:[#allocation41_spill] sm:$0xff] %v14603_v54  ;;  %12150 = vmatmul.msk.bf16.gmra.mxu3 %vm560_vm0, %v16967_v16  ;;  %v14643_v33 = vld [vmem:[#allocation2 + $0x113] sm:$0xff]  ;;  %v7846_v16 = vld [vmem:[%s12947_s28 + $0x83] sm:$0xff]  ;;  %v6201_v54 = vmul.u32 18, %v6200_v11  ;;  %vm6223_vm8 = vc.u32 %v6221_v48, %v6217_v43  ;;  %v6237_v38 = vand.u32 65535, %v14622_v27  ;;  %v6218_v43 = vshrl.u32 %v14557_v51, 16 }
 0x5a3   : > { %7446 = vst [vmem:[#allocation3 + $0x18] sm:$0xff] %v12864_v23  ;;  %v4532_v25 = vpop.f32.mrf.mxu2  ;;  %v6224_v0 = vsel %vm6223_vm8, 1, %v16952_v19  ;;  %v7875_v39 = vpack.c.bf16 %v7847_v52, %v7846_v16 }
 0x5a4   : > { %16966 = vst [vmem:[#allocation42_spill] sm:$0xff] %v14612_v2  ;;  %v4709_v17 = vpop.f32.mrf.mxu3  ;;  %v6226_v48 = vadd.s32 %v6224_v0, %v6222_v37  ;;  %v14660_v13 = vmul.u32 58254, %v6237_v38  ;;  %v6240_v51 = vmul.u32 14564, %v6237_v38  ;;  %v14682_v52 = vsub.s32 %v14452_v53, %v6201_v54 }
 0x5a5   : > { %7443 = vst [vmem:[#allocation3] sm:$0xff] %v12864_v23  ;;  %v4710_v44 = vadd.f32 %v4709_v17, %v4532_v25  ;;  %v5117_v5 = vpop.f32.mrf.mxu0  ;;  %v14692_v0 = vadd.s32 32, %v14437_v40 }
 0x5a6   : > { %16968 = vst [vmem:[#allocation43_spill] sm:$0xff] %v14626_v55  ;;  %v6238_v55 = vshrl.u32 %v14622_v27, 16  ;;  %v5295_v2 = vadd.f32 %v5294_v62, %v5117_v5  ;;  %v6227_v25 = vadd.s32 %v6226_v48, %v6216_v47  ;;  %v6244_v11 = vshll.u32 %v14660_v13, 16  ;;  %v14717_v48 = vld [vmem:[#allocation2 + $0x126] sm:$0xff] }
 0x5a7   : > { %16969 = vst [vmem:[#allocation44_spill] sm:$0xff] %v14628_v61  ;;  %v14651_v61 = vadd.s32 18, %v14577_v60  ;;  %v4784_v62 = vadd.f32 %v4710_v44, %v14172_v30  ;;  %v5517_v30 = vpack.c.bf16 %v14666_v1, %v14663_v63  ;;  %v12756_v44 = vld [vmem:[%s16887_s6 + $0x18] sm:$0xff]  ;;  %v6266_v63 = vand.u32 65535, %v14692_v0 }
 0x5a8   : > { %16970 = vst [vmem:[#allocation45_spill] sm:$0xff] %v14630_v35  ;;  %v5297_v37 = vpop.f32.mrf.mxu1  ;;  %v14684_v16 = vmul.u32 14564, %v6238_v55  ;;  %v14687_v5 = vadd.f32 %v5295_v2, %v14590_v58  ;;  %v6243_v38 = vmul.u32 58254, %v6238_v55  ;;  %v6228_v2 = vadd.s32 %v6227_v25, %v6218_v43  ;;  %8301 = vmatpush.bf16.msrb.mxu2 %v12756_v44 }
 0x5a9   : > { %7444 = vst [vmem:[#allocation3 + $0x8] sm:$0xff] %v12864_v23  ;;  %v7335_v53 = vsel %vm14672_vm9, %v14651_v61, %v14577_v60  ;;  %vm6248_vm10 = vc.u32 %v6240_v51, %v6244_v11  ;;  %v6250_v1 = vadd.s32 %v6244_v11, %v6240_v51  ;;  %v6267_v47 = vshrl.u32 %v14692_v0, 16 }
 0x5aa   : > { %16971 = vst [vmem:[#allocation46_spill] sm:$0xff] %v14639_v10  ;;  %v6246_v58 = vshll.u32 %v14684_v16, 16  ;;  %vm7192_vm11 = vcmp.ne.s32.totalorder %v14682_v52, 0  ;;  %vm7228_vm12 = vcmp.lt.s32.totalorder %v14682_v52, 0  ;;  %v6249_v54 = vsel %vm6248_vm10, 1, %v16952_v19 }
 0x5ab   : > { %16972 = vst [vmem:[#allocation47_spill] sm:$0xff] %v14641_v14  ;;  %12218 = vmatmul.msk.bf16.gmra.mxu1 %vm560_vm0, %v7875_v39  ;;  %v4534_v60 = vpop.f32.mrf.mxu2  ;;  %v6229_v39 = vshrl.u32 %v6228_v2, 4  ;;  %v6245_v61 = vshrl.u32 %v14660_v13, 16  ;;  %v6251_v11 = vadd.s32 %v6249_v54, %v6243_v38  ;;  %v14715_v43 = vmul.u32 58254, %v6266_v63  ;;  %v14727_v13 = vld [vmem:[#allocation2 + $0x123] sm:$0xff]  ;;  %vm14758_vm14 = vmand %vm7228_vm12, %vm7192_vm11 }
 0x5ac   : > { %16973 = vst [vmem:[#allocation48_spill] sm:$0xff] %v14643_v33  ;;  %v4711_v55 = vpop.f32.mrf.mxu3  ;;  %vm6252_vm13 = vc.u32 %v6250_v1, %v6246_v58  ;;  %v14721_v25 = vadd.s32 18, %v14682_v52  ;;  %v6247_v2 = vshrl.u32 %v14684_v16, 16  ;;  %v14731_v58 = vld [vmem:[%s12947_s28 + $0x93] sm:$0xff]  ;;  %v14734_v1 = vld [vmem:[%s12947_s28 + $0x9b] sm:$0xff]  ;;  %v6269_v54 = vmul.u32 14564, %v6266_v63 }
 0x5ad   : > { %7447 = vst [vmem:[#allocation3 + $0x20] sm:$0xff] %v12864_v23  ;;  %v4712_v17 = vadd.f32 %v4711_v55, %v4534_v60  ;;  %v5120_v51 = vpop.f32.mrf.mxu0  ;;  %v6253_v44 = vsel %vm6252_vm13, 1, %v16952_v19  ;;  %v14736_v55 = vmul.u32 14564, %v6267_v47  ;;  %v14738_v16 = vld [vmem:[#allocation2 + $0x12b] sm:$0xff]  ;;  %v14744_v33 = vadd.s32 40, %v14437_v40 }
 0x5ae   : > { %7448 = vst [vmem:[#allocation3 + $0x28] sm:$0xff] %v12864_v23  ;;  %v5298_v38 = vadd.f32 %v5297_v37, %v5120_v51  ;;  %v6255_v60 = vadd.s32 %v6253_v44, %v6251_v11  ;;  %v6230_v37 = vmul.u32 18, %v6229_v39  ;;  %v6273_v51 = vshll.u32 %v14715_v43, 16  ;;  %v14763_v39 = vld [vmem:[%s12947_s28 + $0xb6] sm:$0xff] }
 0x5af   : > { %7449 = vst [vmem:[#allocation3 + $0x30] sm:$0xff] %v12864_v23  ;;  %v4785_v10 = vadd.f32 %v4712_v17, %v14178_v50  ;;  %v16977_v63 = vpack.c.bf16 %v14457_v56, %v14477_v31  ;;  %v6272_v11 = vmul.u32 58254, %v6267_v47  ;;  %v6275_v56 = vshll.u32 %v14736_v55, 16  ;;  %v14860_v47 = vld [vmem:[%s12947_s28 + $0xa3] sm:$0xff] }
 0x5b0   : > { %7450 = vst [vmem:[#allocation3 + $0x38] sm:$0xff] %v12864_v23  ;;  %v5299_v14 = vpop.f32.mrf.mxu1  ;;  %v14746_v35 = vadd.f32 %v5298_v38, %v4784_v62  ;;  %12117 = vmatmul.msk.bf16.gmra.mxu2 %vm560_vm0, %v5517_v30  ;;  %v14766_v62 = vld [vmem:[%s12947_s28 + $0xbe] sm:$0xff]  ;;  %v6256_v30 = vadd.s32 %v6255_v60, %v6245_v61  ;;  %v16980_v31 = vpack.c.bf16 %v14475_v21, %v14485_v42  ;;  %vm14780_vm15 = vcmp.lt.s32.totalorder %v7335_v53, 16 }
 0x5b1   : > { %7451 = vst [vmem:[#allocation3 + $0x40] sm:$0xff] %v12864_v23  ;;  %12184 = vmatmul.msk.bf16.gmra.mxu0 %vm560_vm0, %v16977_v63  ;;  %v7876_v17 = vpack.c.bf16 %v14734_v1, %v14731_v58  ;;  %vm6277_vm1 = vc.u32 %v6269_v54, %v6273_v51  ;;  %v6279_v42 = vadd.s32 %v6273_v51, %v6269_v54  ;;  %v6295_v61 = vand.u32 65535, %v14744_v33  ;;  %v14802_v38 = vld [vmem:[%s16886_s5] ss:$0 sm:$0xff] }
 0x5b2   : > { %16976 = vst [vmem:[#allocation49_spill] sm:$0xff] %v14687_v5  ;;  %v14725_v5 = vld [vmem:[#allocation2 + $0x12e] sm:$0xff]  ;;  %12151 = vmatmul.msk.bf16.gmra.mxu3 %vm560_vm0, %v16980_v31  ;;  %v6257_v21 = vadd.s32 %v6256_v30, %v6247_v2  ;;  %v14794_v1 = vsub.s32 %v14514_v41, %v6230_v37  ;;  %v6278_v2 = vsel %vm6277_vm1, 1, %v16952_v19  ;;  %v6274_v51 = vshrl.u32 %v14715_v43, 16 }
 0x5b3   : > { %7452 = vst [vmem:[#allocation3 + $0x48] sm:$0xff] %v12864_v23  ;;  %v5623_v60 = vpop.f32.mrf.mxu2  ;;  %v6280_v30 = vadd.s32 %v6278_v2, %v6272_v11  ;;  %vm6281_vm2 = vc.u32 %v6279_v42, %v6275_v56  ;;  %v6276_v37 = vshrl.u32 %v14736_v55, 16  ;;  %v6296_v58 = vshrl.u32 %v14744_v33, 16 }
 0x5b4   : > { %7453 = vst [vmem:[#allocation3 + $0x50] sm:$0xff] %v12864_v23  ;;  %v5800_v63 = vpop.f32.mrf.mxu3  ;;  %v6258_v54 = vshrl.u32 %v6257_v21, 4  ;;  %v6282_v44 = vsel %vm6281_vm2, 1, %v16952_v19  ;;  %v14809_v21 = vmul.u32 58254, %v6295_v61  ;;  %v6298_v2 = vmul.u32 14564, %v6295_v61 }
 0x5b5   : > { %7454 = vst [vmem:[#allocation3 + $0x58] sm:$0xff] %v12864_v23  ;;  %v5801_v31 = vadd.f32 %v5800_v63, %v5623_v60  ;;  %v5122_v41 = vpop.f32.mrf.mxu0  ;;  %v6284_v56 = vadd.s32 %v6282_v44, %v6280_v30  ;;  %v14813_v63 = vmul.u32 14564, %v6296_v58  ;;  %v14816_v55 = vadd.s32 48, %v14437_v40 }
 0x5b6   : > { %7455 = vst [vmem:[#allocation3 + $0x60] sm:$0xff] %v12864_v23  ;;  %v5300_v43 = vadd.f32 %v5299_v14, %v5122_v41  ;;  %v6259_v11 = vmul.u32 18, %v6258_v54  ;;  %v6302_v54 = vshll.u32 %v14809_v21, 16  ;;  %vm7193_vm3 = vcmp.ne.s32.totalorder %v14794_v1, 0 }
 0x5b7   : > { %7456 = vst [vmem:[#allocation3 + $0x68] sm:$0xff] %v12864_v23  ;;  %v5926_v42 = vadd.f32 %v5801_v31, %v14186_v49  ;;  %v6285_v44 = vadd.s32 %v6284_v56, %v6274_v51  ;;  %vm7229_vm4 = vcmp.lt.s32.totalorder %v14794_v1, 0  ;;  %v14830_v61 = vadd.s32 18, %v14794_v1 }
 0x5b8   : > { %7457 = vst [vmem:[#allocation3 + $0x70] sm:$0xff] %v12864_v23  ;;  %v7981_v60 = vpop.f32.mrf.mxu1  ;;  %v14819_v53 = vadd.f32 %v5300_v43, %v4785_v10  ;;  %v14822_v14 = vsub.s32 %v14622_v27, %v6259_v11  ;;  %v6301_v10 = vmul.u32 58254, %v6296_v58  ;;  %v6304_v51 = vshll.u32 %v14813_v63, 16  ;;  %vm14855_vm8 = vmand %vm7229_vm4, %vm7193_vm3 }
 0x5b9   : > { %7458 = vst [vmem:[#allocation3 + $0x78] sm:$0xff] %v12864_v23  ;;  %v6038_v49 = vadd.f32 %v14802_v38, %v5926_v42  ;;  %v6286_v27 = vadd.s32 %v6285_v44, %v6276_v37  ;;  %v6324_v30 = vand.u32 65535, %v14816_v55  ;;  %vm6306_vm6 = vc.u32 %v6298_v2, %v6302_v54 }
 0x5ba   : > { %7459 = vst [vmem:[#allocation3 + $0x80] sm:$0xff] %v12864_v23  ;;  %vm7194_vm5 = vcmp.ne.s32.totalorder %v14822_v14, 0  ;;  %v6308_v43 = vadd.s32 %v6302_v54, %v6298_v2  ;;  %vm7230_vm7 = vcmp.lt.s32.totalorder %v14822_v14, 0  ;;  %v6307_v58 = vsel %vm6306_vm6, 1, %v16952_v19 }
 0x5bb   : > { %7460 = vst [vmem:[#allocation3 + $0x88] sm:$0xff] %v12864_v23  ;;  %12219 = vmatmul.msk.bf16.gmra.mxu1 %vm560_vm0, %v7876_v17  ;;  %v6074_v31 = vmax.f32 %v6038_v49, 0.0  ;;  %v5625_v41 = vpop.f32.mrf.mxu2  ;;  %v6287_v17 = vshrl.u32 %v6286_v27, 4  ;;  %v6325_v37 = vshrl.u32 %v14816_v55, 16  ;;  %v14846_v2 = vadd.s32 18, %v14822_v14  ;;  %vm14871_vm10 = vmand %vm7230_vm7, %vm7194_vm5 }
 0x5bc   : > { %7461 = vst [vmem:[#allocation3 + $0x90] sm:$0xff] %v12864_v23  ;;  %v5802_v11 = vpop.f32.mrf.mxu3  ;;  %v6303_v54 = vshrl.u32 %v14809_v21, 16  ;;  %vm6310_vm9 = vc.u32 %v6308_v43, %v6304_v51  ;;  %v6327_v43 = vmul.u32 14564, %v6324_v30 }
 0x5bd   : > { %7462 = vst [vmem:[#allocation3 + $0x98] sm:$0xff] %v12864_v23  ;;  %v7407_v56 = vsel %vm14780_vm15, %v6074_v31, 0.0  ;;  %v5803_v42 = vadd.f32 %v5802_v11, %v5625_v41  ;;  %v7670_v44 = vpop.f32.mrf.mxu0  ;;  %v14863_v31 = vld [vmem:[%s12947_s28 + $0xab] sm:$0xff]  ;;  %v6288_v41 = vmul.u32 18, %v6287_v17  ;;  %v6309_v11 = vadd.s32 %v6307_v58, %v6301_v10 }
 0x5be   : > { %7463 = vst [vmem:[#allocation3 + $0xa0] sm:$0xff] %v12864_v23  ;;  %v14849_v49 = vadd.f32 %v7981_v60, %v7670_v44  ;;  %v6305_v44 = vshrl.u32 %v14813_v63, 16  ;;  %v14877_v17 = vmul.u32 58254, %v6324_v30  ;;  %v16989_v10 = vpack.c.bf16 %v14470_v36, %v14492_v15 }
 0x5bf   : > { %7464 = vst [vmem:[#allocation3 + $0xa8] sm:$0xff] %v12864_v23  ;;  %v5927_v21 = vadd.f32 %v5803_v42, %v14192_v9  ;;  %v16988_v9 = vpack.c.bf16 %v14766_v62, %v14763_v39  ;;  %v14889_v51 = vsub.s32 %v14692_v0, %v6288_v41  ;;  %v14891_v58 = vmul.u32 14564, %v6325_v37 }
 0x5c0   : > { %7465 = vst [vmem:[#allocation3 + $0xb0] sm:$0xff] %v12864_v23  ;;  %v7983_v60 = vpop.f32.mrf.mxu1  ;;  %v16990_v39 = vsel %vm14758_vm14, %v14721_v25, %v14682_v52  ;;  %v16993_v15 = vpack.c.bf16 %v14511_v45, %v14509_v4  ;;  %v7877_v0 = vpack.c.bf16 %v14863_v31, %v14860_v47  ;;  %v6331_v62 = vshll.u32 %v14877_v17, 16 }
 0x5c1   : > { %7466 = vst [vmem:[#allocation3 + $0xb8] sm:$0xff] %v12864_v23  ;;  %12118 = vmatmul.msk.bf16.gmra.mxu2 %vm560_vm0, %v16988_v9  ;;  %12185 = vmatmul.msk.bf16.gmra.mxu0 %vm560_vm0, %v16989_v10  ;;  %v6039_v42 = vadd.f32 %v14802_v38, %v5927_v21  ;;  %vm14900_vm11 = vcmp.lt.s32.totalorder %v16990_v39, 16  ;;  %v7337_v52 = vsel %vm14855_vm8, %v14830_v61, %v14794_v1  ;;  %v6330_v4 = vmul.u32 58254, %v6325_v37  ;;  %v5494_v9 = vld [vmem:[%s12947_s28 + $0xce] sm:$0xff] }
 0x5c2   : > { %7467 = vst [vmem:[#allocation3 + $0xc0] sm:$0xff] %v12864_v23  ;;  %12152 = vmatmul.msk.bf16.gmra.mxu3 %vm560_vm0, %v16993_v15  ;;  %v7338_v25 = vsel %vm14871_vm10, %v14846_v2, %v14822_v14  ;;  %v6333_v47 = vshll.u32 %v14891_v58, 16  ;;  %v14924_v31 = vadd.s32 56, %v14437_v40  ;;  %vm7195_vm12 = vcmp.ne.s32.totalorder %v14889_v51, 0 }
 0x5c3   : > { %7468 = vst [vmem:[#allocation3 + $0xc8] sm:$0xff] %v12864_v23  ;;  %v6075_v50 = vmax.f32 %v6039_v42, 0.0  ;;  %v5628_v30 = vpop.f32.mrf.mxu2  ;;  %vm6335_vm13 = vc.u32 %v6327_v43, %v6331_v62  ;;  %v6337_v14 = vadd.s32 %v6331_v62, %v6327_v43  ;;  %vm7231_vm14 = vcmp.lt.s32.totalorder %v14889_v51, 0  ;;  %v14958_v62 = vld [vmem:[%s12947_s28 + $0xb3] sm:$0xff] }
 0x5c4   : > { %7469 = vst [vmem:[#allocation3 + $0xd0] sm:$0xff] %v12864_v23  ;;  %v5805_v1 = vpop.f32.mrf.mxu3  ;;  %v6336_v27 = vsel %vm6335_vm13, 1, %v16952_v19  ;;  %v6354_v43 = vshrl.u32 %v14924_v31, 16  ;;  %v6334_v39 = vshrl.u32 %v14891_v58, 16  ;;  %vm14953_vm1 = vmand %vm7231_vm14, %vm7195_vm12  ;;  %v14968_v58 = vadd.s32 64, %v14437_v40 }
 0x5c5   : > { %7470 = vst [vmem:[#allocation3 + $0xd8] sm:$0xff] %v12864_v23  ;;  %v7408_v37 = vsel %vm14900_vm11, %v6075_v50, 0.0  ;;  %v5806_v2 = vadd.f32 %v5805_v1, %v5628_v30  ;;  %v6338_v21 = vadd.s32 %v6336_v27, %v6330_v4  ;;  %vm6339_vm15 = vc.u32 %v6337_v14, %v6333_v47 }
 0x5c6   : > { %7471 = vst [vmem:[#allocation3 + $0xe0] sm:$0xff] %v12864_v23  ;;  %v6340_v10 = vsel %vm6339_vm15, 1, %v16952_v19  ;;  %v14965_v4 = vmul.u32 14564, %v6354_v43  ;;  %vm7373_vm2 = vcmp.lt.s32.totalorder %v7337_v52, 16  ;;  %vm14971_vm3 = vcmp.lt.s32.totalorder %v7338_v25, 16 }
 0x5c7   : > { %7472 = vst [vmem:[#allocation3 + $0xe8] sm:$0xff] %v12864_v23  ;;  %v6342_v36 = vadd.s32 %v6340_v10, %v6338_v21  ;;  %v16999_v15 = vpack.c.bf16 %v14519_v3, %v14530_v8 }
 0x5c8   : > { %7473 = vst [vmem:[#allocation3 + $0xf0] sm:$0xff] %v12864_v23 }
 0x5c9   : > { %7485 = vst [vmem:[#allocation3 + $0x13] sm:$0xff] %v7407_v56  ;;  %v5928_v56 = vadd.f32 %v5806_v2, %v14200_v22 }
 0x5ca   : > { %16983 = vst [vmem:[#allocation50_spill] sm:$0xff] %v14849_v49  ;;  %v6311_v49 = vsel %vm6310_vm9, 1, %v16952_v19 }
 0x5cb   : > { %7474 = vst [vmem:[#allocation3 + $0xf8] sm:$0xff] %v12864_v23  ;;  %v6313_v63 = vadd.s32 %v6311_v49, %v6309_v11  ;;  %v6332_v49 = vshrl.u32 %v14877_v17, 16  ;;  %v5493_v17 = vld [vmem:[%s12947_s28 + $0xc6] sm:$0xff]  ;;  %v6040_v22 = vadd.f32 %v14802_v38, %v5928_v56  ;;  %12220 = vmatmul.msk.bf16.gmra.mxu1 %vm560_vm0, %v7877_v0  ;;  %v6362_v56 = vshll.u32 %v14965_v4, 16 }
 0x5cc   : > { %7475 = vst [vmem:[#allocation3 + $0x100] sm:$0xff] %v12864_v23  ;;  %v5519_v50 = vpack.c.bf16 %v5494_v9, %v5493_v17  ;;  %v5807_v27 = vpop.f32.mrf.mxu3 }
 0x5cd   : > { %7476 = vst [vmem:[#allocation3 + $0x108] sm:$0xff] %v12864_v23  ;;  %v6314_v45 = vadd.s32 %v6313_v63, %v6303_v54  ;;  %v7672_v54 = vpop.f32.mrf.mxu0  ;;  %v6353_v63 = vand.u32 65535, %v14924_v31  ;;  %v6343_v30 = vadd.s32 %v6342_v36, %v6332_v49  ;;  %v6076_v1 = vmax.f32 %v6040_v22, 0.0 }
 0x5ce   : > { %7477 = vst [vmem:[#allocation3 + $0x110] sm:$0xff] %v12864_v23  ;;  %v14934_v41 = vadd.f32 %v7983_v60, %v7672_v54  ;;  %v14945_v60 = vadd.s32 18, %v14889_v51 }
 0x5cf   : > { %7478 = vst [vmem:[#allocation3 + $0x118] sm:$0xff] %v12864_v23  ;;  %v6315_v61 = vadd.s32 %v6314_v45, %v6305_v44  ;;  %v7986_v44 = vpop.f32.mrf.mxu1  ;;  %v14963_v45 = vmul.u32 58254, %v6353_v63  ;;  %v6356_v47 = vmul.u32 14564, %v6353_v63  ;;  %v6344_v49 = vadd.s32 %v6343_v30, %v6334_v39  ;;  %v15018_v30 = vld [vmem:[%s12947_s28 + $0xc3] sm:$0xff] }
 0x5d0   : > { %7479 = vst [vmem:[#allocation3 + $0x120] sm:$0xff] %v12864_v23  ;;  %v7339_v0 = vsel %vm14953_vm1, %v14945_v60, %v14889_v51  ;;  %v7409_v25 = vsel %vm7373_vm2, %v6076_v1, 0.0  ;;  %v12755_v51 = vld [vmem:[%s16887_s6 + $0x10] sm:$0xff]  ;;  %v6363_v1 = vshrl.u32 %v14965_v4, 16 }
 0x5d1   : > { %7480 = vst [vmem:[#allocation3 + $0x128] sm:$0xff] %v12864_v23  ;;  %v6316_v11 = vshrl.u32 %v6315_v61, 4  ;;  %v5630_v61 = vpop.f32.mrf.mxu2  ;;  %v6360_v54 = vshll.u32 %v14963_v45, 16  ;;  %v6345_v9 = vshrl.u32 %v6344_v49, 4  ;;  %v6361_v10 = vshrl.u32 %v14963_v45, 16  ;;  %12119 = vmatmul.msk.bf16.gmra.mxu2 %vm560_vm0, %v5519_v50  ;;  %v15010_v50 = vld [vmem:[%s12947_s28 + $0xd6] sm:$0xff] }
 0x5d2   : > { %7481 = vst [vmem:[#allocation3 + $0x130] sm:$0xff] %v12864_v23  ;;  %12153 = vmatmul.msk.bf16.gmra.mxu3 %vm560_vm0, %v16999_v15  ;;  %8302 = vmatpush.bf16.msrb.mxu2 %v12755_v51  ;;  %vm15039_vm9 = vcmp.lt.s32.totalorder %v7339_v0, 16 }
 0x5d3   : > { %7482 = vst [vmem:[#allocation3 + $0x138] sm:$0xff] %v12864_v23  ;;  %v6317_v42 = vmul.u32 18, %v6316_v11  ;;  %v5808_v11 = vadd.f32 %v5807_v27, %v5630_v61  ;;  %vm6364_vm4 = vc.u32 %v6356_v47, %v6360_v54  ;;  %v6346_v39 = vmul.u32 18, %v6345_v9 }
 0x5d4   : > { %7483 = vst [vmem:[#allocation3 + $0x140] sm:$0xff] %v12864_v23  ;;  %v14961_v23 = vld [vmem:[%s12947_s28 + $0xbb] sm:$0xff]  ;;  %v6365_v60 = vsel %vm6364_vm4, 1, %v16952_v19  ;;  %v15046_v9 = vadd.s32 72, %v14437_v40 }
 0x5d5   : > { %7486 = vst [vmem:[#allocation3 + $0x1b] sm:$0xff] %v7408_v37  ;;  %v14976_v2 = vsub.s32 %v14744_v33, %v6317_v42  ;;  %v7878_v52 = vpack.c.bf16 %v14961_v23, %v14958_v62  ;;  %v6359_v37 = vmul.u32 58254, %v6354_v43  ;;  %v7675_v21 = vpop.f32.mrf.mxu0  ;;  %v6382_v33 = vand.u32 65535, %v14968_v58 }
 0x5d6   : > { %7487 = vst [vmem:[#allocation3 + $0x23] sm:$0xff] %v7409_v25  ;;  %v14987_v17 = vadd.f32 %v7986_v44, %v7675_v21  ;;  %v5929_v63 = vadd.f32 %v5808_v11, %v14206_v59  ;;  %v6366_v44 = vadd.s32 %v6360_v54, %v6356_v47  ;;  %v16998_v42 = vpack.c.bf16 %v14481_v57, %v14501_v24  ;;  %v15013_v57 = vld [vmem:[%s12947_s28 + $0xde] sm:$0xff]  ;;  %v15021_v47 = vld [vmem:[%s12947_s28 + $0xcb] sm:$0xff]  ;;  %v5810_v11 = vpop.f32.mrf.mxu3 }
 0x5d7   : > { %v7988_v43 = vpop.f32.mrf.mxu1  ;;  %vm7196_vm5 = vcmp.ne.s32.totalorder %v14976_v2, 0  ;;  %vm7232_vm6 = vcmp.lt.s32.totalorder %v14976_v2, 0  ;;  %v6367_v36 = vadd.s32 %v6365_v60, %v6359_v37  ;;  %v6383_v59 = vshrl.u32 %v14968_v58, 16 }
 0x5d8   : > { %12186 = vmatmul.msk.bf16.gmra.mxu0 %vm560_vm0, %v16998_v42  ;;  %v6041_v22 = vadd.f32 %v14802_v38, %v5929_v63  ;;  %v7304_v45 = vadd.s32 18, %v14976_v2  ;;  %vm6368_vm7 = vc.u32 %v6366_v44, %v6362_v56  ;;  %v15015_v24 = vmul.u32 58254, %v6382_v33  ;;  %vm15031_vm8 = vmand %vm7232_vm6, %vm7196_vm5 }
 0x5d9   : > { %v6369_v3 = vsel %vm6368_vm7, 1, %v16952_v19  ;;  %v6385_v8 = vmul.u32 14564, %v6382_v33  ;;  %v15025_v61 = vmul.u32 14564, %v6383_v59  ;;  %v5633_v27 = vpop.f32.mrf.mxu2  ;;  %v15036_v37 = vsub.s32 %v14816_v55, %v6346_v39 }
 0x5da   : > { %v6077_v54 = vmax.f32 %v6041_v22, 0.0  ;;  %v6371_v25 = vadd.s32 %v6369_v3, %v6367_v36  ;;  %v6389_v4 = vshll.u32 %v15015_v24, 16  ;;  %v5520_v56 = vpack.c.bf16 %v15013_v57, %v15010_v50 }
 0x5db   : > { %v6388_v33 = vmul.u32 58254, %v6383_v59  ;;  %v5811_v55 = vadd.f32 %v5810_v11, %v5633_v27  ;;  %v7879_v60 = vpack.c.bf16 %v15021_v47, %v15018_v30  ;;  %v7340_v42 = vsel %vm15031_vm8, %v7304_v45, %v14976_v2  ;;  %12221 = vmatmul.msk.bf16.gmra.mxu1 %vm560_vm0, %v7878_v52  ;;  %v15089_v52 = vld [vmem:[%s12947_s28 + $0xe6] sm:$0xff] }
 0x5dc   : > { %v7410_v51 = vsel %vm14971_vm3, %v6077_v54, 0.0  ;;  %v6372_v44 = vadd.s32 %v6371_v25, %v6361_v10  ;;  %v6391_v39 = vshll.u32 %v15025_v61, 16  ;;  %vm6393_vm10 = vc.u32 %v6385_v8, %v6389_v4 }
 0x5dd   : > { %v7677_v63 = vpop.f32.mrf.mxu0  ;;  %7488 = vst [vmem:[#allocation3 + $0x2b] sm:$0xff] %v7410_v51  ;;  %v5930_v36 = vadd.f32 %v5811_v55, %v14214_v46  ;;  %vm7197_vm11 = vcmp.ne.s32.totalorder %v15036_v37, 0  ;;  %v6394_v22 = vsel %vm6393_vm10, 1, %v16952_v19  ;;  %v6395_v15 = vadd.s32 %v6389_v4, %v6385_v8  ;;  %v15092_v4 = vld [vmem:[%s12947_s28 + $0xee] sm:$0xff] }
 0x5de   : > { %v15052_v0 = vadd.f32 %v7988_v43, %v7677_v63  ;;  %v6373_v59 = vadd.s32 %v6372_v44, %v6363_v1  ;;  %v6396_v10 = vadd.s32 %v6394_v22, %v6388_v33  ;;  %v6411_v43 = vand.u32 65535, %v15046_v9  ;;  %v5812_v62 = vpop.f32.mrf.mxu3 }
 0x5df   : > { %v7991_v14 = vpop.f32.mrf.mxu1  ;;  %v6412_v50 = vshrl.u32 %v15046_v9, 16  ;;  %v6042_v57 = vadd.f32 %v14802_v38, %v5930_v36  ;;  %vm7233_vm12 = vcmp.lt.s32.totalorder %v15036_v37, 0  ;;  %v6390_v46 = vshrl.u32 %v15015_v24, 16 }
 0x5e0   : > { %v6374_v2 = vshrl.u32 %v6373_v59, 4  ;;  %vm15070_vm13 = vcmp.lt.s32.totalorder %v7340_v42, 16  ;;  %vm6397_vm14 = vc.u32 %v6395_v15, %v6391_v39  ;;  %v6414_v1 = vmul.u32 14564, %v6411_v43  ;;  %vm15084_vm15 = vmand %vm7233_vm12, %vm7197_vm11 }
 0x5e1   : > { %v15074_v3 = vmul.u32 58254, %v6411_v43  ;;  %v15076_v8 = vmul.u32 14564, %v6412_v50  ;;  %v6078_v54 = vmax.f32 %v6042_v57, 0.0  ;;  %v5635_v27 = vpop.f32.mrf.mxu2  ;;  %v7305_v49 = vadd.s32 18, %v15036_v37  ;;  %12120 = vmatmul.msk.bf16.gmra.mxu2 %vm560_vm0, %v5520_v56 }
 0x5e2   : > { %v6375_v24 = vmul.u32 18, %v6374_v2  ;;  %v6398_v25 = vsel %vm6397_vm14, 1, %v16952_v19  ;;  %v6392_v11 = vshrl.u32 %v15025_v61, 16  ;;  %v15097_v55 = vadd.s32 80, %v14437_v40 }
 0x5e3   : > { %v6400_v33 = vadd.s32 %v6398_v25, %v6396_v10  ;;  %v6418_v51 = vshll.u32 %v15074_v3, 16  ;;  %v7411_v63 = vsel %vm15039_vm9, %v6078_v54, 0.0  ;;  %v5813_v44 = vadd.f32 %v5812_v62, %v5635_v27 }
 0x5e4   : > { %v6417_v39 = vmul.u32 58254, %v6412_v50  ;;  %v6420_v36 = vshll.u32 %v15076_v8, 16  ;;  %7489 = vst [vmem:[#allocation3 + $0x33] sm:$0xff] %v7411_v63  ;;  %v15105_v22 = vsub.s32 %v14924_v31, %v6375_v24  ;;  %v7341_v21 = vsel %vm15084_vm15, %v7305_v49, %v15036_v37 }
 0x5e5   : > { %v7680_v42 = vpop.f32.mrf.mxu0  ;;  %v6401_v61 = vadd.s32 %v6400_v33, %v6390_v46  ;;  %vm6422_vm1 = vc.u32 %v6414_v1, %v6418_v51  ;;  %v5931_v15 = vadd.f32 %v5813_v44, %v14220_v34  ;;  %v5521_v43 = vpack.c.bf16 %v15092_v4, %v15089_v52  ;;  %v15199_v44 = vld [vmem:[%s12947_s28 + $0xf6] sm:$0xff] }
 0x5e6   : > { %v15102_v59 = vadd.f32 %v7991_v14, %v7680_v42  ;;  %v6419_v50 = vshrl.u32 %v15074_v3, 16  ;;  %v17008_v31 = vpack.c.bf16 %v14523_v28, %v14521_v26  ;;  %v6423_v34 = vsel %vm6422_vm1, 1, %v16952_v19 }
 0x5e7   : > { %v7993_v10 = vpop.f32.mrf.mxu1  ;;  %v6402_v14 = vadd.s32 %v6401_v61, %v6392_v11  ;;  %v6424_v57 = vadd.s32 %v6418_v51, %v6414_v1  ;;  %v6440_v2 = vand.u32 65535, %v15097_v55  ;;  %v6043_v37 = vadd.f32 %v14802_v38, %v5931_v15  ;;  %v9157_v11 = vld [vmem:[#allocation3 + $0x1a] sm:$0xff] }
 0x5e8   : > { %12187 = vmatmul.msk.bf16.gmra.mxu0 %vm560_vm0, %v17008_v31  ;;  %v17009_v46 = vpack.c.bf16 %v14532_v6, %v14559_v12  ;;  %v6421_v56 = vshrl.u32 %v15076_v8, 16  ;;  %v6425_v3 = vadd.s32 %v6423_v34, %v6417_v39  ;;  %v6441_v26 = vshrl.u32 %v15097_v55, 16  ;;  %v5815_v8 = vpop.f32.mrf.mxu3  ;;  %v17014_v31 = vld [vmem:[#allocation8_spill] sm:$0xff] }
 0x5e9   : > { %vm15128_vm2 = vcmp.lt.s32.totalorder %v7341_v21, 16  ;;  %vm7198_vm3 = vcmp.ne.s32.totalorder %v15105_v22, 0  ;;  %vm7234_vm4 = vcmp.lt.s32.totalorder %v15105_v22, 0  ;;  %v6403_v1 = vshrl.u32 %v6402_v14, 4  ;;  %v5638_v27 = vpop.f32.mrf.mxu2  ;;  %v9156_v21 = vld [vmem:[#allocation3 + $0x12] sm:$0xff] }
 0x5ea   : > { %12154 = vmatmul.msk.bf16.gmra.mxu3 %vm560_vm0, %v17009_v46  ;;  %vm6426_vm5 = vc.u32 %v6424_v57, %v6420_v36  ;;  %v6079_v54 = vmax.f32 %v6043_v37, 0.0  ;;  %v6443_v12 = vmul.u32 14564, %v6440_v2  ;;  %v6444_v49 = vmul.u32 58254, %v6440_v2  ;;  %vm15144_vm6 = vmand %vm7234_vm4, %vm7198_vm3  ;;  %v15164_v37 = vld [vmem:[%s12947_s28 + $0xd3] sm:$0xff]  ;;  %v15167_v46 = vld [vmem:[%s12947_s28 + $0xdb] sm:$0xff] }
 0x5eb   : > { %v6427_v6 = vsel %vm6426_vm5, 1, %v16952_v19  ;;  %v7306_v24 = vadd.s32 18, %v15105_v22  ;;  %v6404_v25 = vmul.u32 18, %v6403_v1  ;;  %v15136_v23 = vmul.u32 14564, %v6441_v26  ;;  %12222 = vmatmul.msk.bf16.gmra.mxu1 %vm560_vm0, %v7879_v60 }
 0x5ec   : > { %v6429_v62 = vadd.s32 %v6427_v6, %v6425_v3  ;;  %v7412_v33 = vsel %vm15070_vm13, %v6079_v54, 0.0  ;;  %v5816_v51 = vadd.f32 %v5815_v8, %v5638_v27  ;;  %v6446_v42 = vmul.u32 58254, %v6441_v26 }
 0x5ed   : > { %v7682_v63 = vpop.f32.mrf.mxu0  ;;  %v6447_v39 = vshll.u32 %v6444_v49, 16  ;;  %7490 = vst [vmem:[#allocation3 + $0x3b] sm:$0xff] %v7412_v33  ;;  %v15151_v45 = vsub.s32 %v14968_v58, %v6404_v25  ;;  %v6449_v15 = vshll.u32 %v15136_v23, 16  ;;  %v15155_v2 = vpack.c.bf16 %v9157_v11, %v9156_v21  ;;  %v12754_v21 = vld [vmem:[%s16887_s6 + $0x8] sm:$0xff] }
 0x5ee   : > { %v15148_v36 = vadd.f32 %v7993_v10, %v7682_v63  ;;  %v6430_v61 = vadd.s32 %v6429_v62, %v6419_v50  ;;  %v5932_v14 = vadd.f32 %v5816_v51, %v17014_v31  ;;  %v7342_v10 = vsel %vm15144_vm6, %v7306_v24, %v15105_v22  ;;  %8303 = vmatpush.bf16.msrb.mxu2 %v12754_v21 }
 0x5ef   : > { %v7996_v34 = vpop.f32.mrf.mxu1  ;;  %vm6451_vm7 = vc.u32 %v6443_v12, %v6447_v39  ;;  %v6453_v57 = vadd.s32 %v6447_v39, %v6443_v12  ;;  %vm7199_vm8 = vcmp.ne.s32.totalorder %v15151_v45, 0  ;;  %vm7235_vm9 = vcmp.lt.s32.totalorder %v15151_v45, 0 }
 0x5f0   : > { %v6431_v58 = vadd.s32 %v6430_v61, %v6421_v56  ;;  %v6044_v50 = vadd.f32 %v14802_v38, %v5932_v14  ;;  %v6452_v3 = vsel %vm6451_vm7, 1, %v16952_v19  ;;  %v15171_v26 = vadd.s32 88, %v14437_v40  ;;  %v5817_v25 = vpop.f32.mrf.mxu3  ;;  %vm15185_vm11 = vmand %vm7235_vm9, %vm7199_vm8  ;;  %v15207_v61 = vld [vmem:[#allocation3 + $0x18] sm:$0xff]  ;;  %v17019_v14 = vld [vmem:[#allocation5_spill] sm:$0xff] }
 0x5f1   : > { %vm6455_vm10 = vc.u32 %v6453_v57, %v6449_v15  ;;  %v6448_v1 = vshrl.u32 %v6444_v49, 16  ;;  %v6454_v56 = vadd.s32 %v6452_v3, %v6446_v42  ;;  %v5640_v6 = vpop.f32.mrf.mxu2  ;;  %v7307_v12 = vadd.s32 18, %v15151_v45  ;;  %v15202_v42 = vld [vmem:[%s12947_s28 + $0xfe] sm:$0xff]  ;;  %12121 = vmatmul.msk.bf16.gmra.mxu2 %vm560_vm0, %v5521_v43 }
 0x5f2   : > { %v6432_v22 = vshrl.u32 %v6431_v58, 4  ;;  %v6456_v54 = vsel %vm6455_vm10, 1, %v16952_v19  ;;  %v6080_v27 = vmax.f32 %v6044_v50, 0.0  ;;  %v6469_v8 = vand.u32 65535, %v15171_v26 }
 0x5f3   : > { %v6470_v24 = vshrl.u32 %v15171_v26, 16  ;;  %v7880_v47 = vpack.c.bf16 %v15167_v46, %v15164_v37  ;;  %v6450_v49 = vshrl.u32 %v15136_v23, 16  ;;  %v6458_v62 = vadd.s32 %v6456_v54, %v6454_v56 }
 0x5f4   : > { %v6433_v60 = vmul.u32 18, %v6432_v22  ;;  %v7413_v11 = vsel %vm15128_vm2, %v6080_v27, 0.0  ;;  %v5818_v33 = vadd.f32 %v5817_v25, %v5640_v6  ;;  %vm15194_vm12 = vcmp.lt.s32.totalorder %v7342_v10, 16  ;;  %v17021_v22 = vld [vmem:[#allocation32_spill] sm:$0xff]  ;;  %v15470_v27 = vld [vmem:[%s12947_s28 + $0x12e] sm:$0xff] }
 0x5f5   : > { %v7685_v63 = vpop.f32.mrf.mxu0  ;;  %v15205_v39 = vadd.s32 96, %v14437_v40  ;;  %7491 = vst [vmem:[#allocation3 + $0x43] sm:$0xff] %v7413_v11  ;;  %v6459_v15 = vadd.s32 %v6458_v62, %v6448_v1  ;;  %v6473_v31 = vmul.u32 58254, %v6469_v8  ;;  %v7343_v58 = vsel %vm15185_vm11, %v7307_v12, %v15151_v45 }
 0x5f6   : > { %v15209_v23 = vadd.f32 %v7996_v34, %v7685_v63  ;;  %v15212_v28 = vsub.s32 %v15046_v9, %v6433_v60  ;;  %v5933_v57 = vadd.f32 %v5818_v33, %v17019_v14  ;;  %v6472_v50 = vmul.u32 14564, %v6469_v8  ;;  %v15223_v34 = vld [vmem:[#allocation3 + $0x10] sm:$0xff]  ;;  %v17020_v9 = vld [vmem:[#allocation31_spill] sm:$0xff] }
 0x5f7   : > { %v7998_v10 = vpop.f32.mrf.mxu1  ;;  %v15221_v3 = vmul.u32 14564, %v6470_v24  ;;  %v17022_v1 = vpack.c.bf16 %v17020_v9, %v17021_v22  ;;  %v5522_v56 = vpack.c.bf16 %v15202_v42, %v15199_v44  ;;  %v6460_v54 = vadd.s32 %v6459_v15, %v6450_v49  ;;  %v17031_v8 = vld [vmem:[#allocation9_spill] sm:$0xff] }
 0x5f8   : > { %v6475_v45 = vmul.u32 58254, %v6470_v24  ;;  %v6045_v6 = vadd.f32 %v14802_v38, %v5933_v57  ;;  %v17023_v52 = vpack.c.bf16 %v14551_v29, %v14568_v7  ;;  %v6476_v4 = vshll.u32 %v6473_v31, 16  ;;  %v5820_v49 = vpop.f32.mrf.mxu3  ;;  %v15258_v57 = vld [vmem:[%s12947_s28 + $0xe3] sm:$0xff] }
 0x5f9   : > { %12188 = vmatmul.msk.bf16.gmra.mxu0 %vm560_vm0, %v17022_v1  ;;  %v6478_v43 = vshll.u32 %v15221_v3, 16  ;;  %v6498_v12 = vand.u32 65535, %v15205_v39  ;;  %vm15244_vm13 = vcmp.lt.s32.totalorder %v7343_v58, 16  ;;  %vm7200_vm14 = vcmp.ne.s32.totalorder %v15212_v28, 0  ;;  %v5643_v25 = vpop.f32.mrf.mxu2  ;;  %v15261_v58 = vld [vmem:[%s12947_s28 + $0xeb] sm:$0xff] }
 0x5fa   : > { %12155 = vmatmul.msk.bf16.gmra.mxu3 %vm560_vm0, %v17023_v52  ;;  %vm7236_vm15 = vcmp.lt.s32.totalorder %v15212_v28, 0  ;;  %v15251_v24 = vadd.s32 18, %v15212_v28  ;;  %v6461_v7 = vshrl.u32 %v6460_v54, 4  ;;  %v6081_v29 = vmax.f32 %v6045_v6, 0.0  ;;  %v17026_v54 = vld [vmem:[#allocation7_spill] sm:$0xff] }
 0x5fb   : > { %vm6480_vm1 = vc.u32 %v6472_v50, %v6476_v4  ;;  %v6482_v30 = vadd.s32 %v6476_v4, %v6472_v50  ;;  %v6499_v60 = vshrl.u32 %v15205_v39, 16  ;;  %v6477_v11 = vshrl.u32 %v6473_v31, 16  ;;  %vm15272_vm3 = vmand %vm7236_vm15, %vm7200_vm14  ;;  %12223 = vmatmul.msk.bf16.gmra.mxu1 %vm560_vm0, %v7880_v47 }
 0x5fc   : > { %v6462_v62 = vmul.u32 18, %v6461_v7  ;;  %v6481_v33 = vsel %vm6480_vm1, 1, %v16952_v19  ;;  %v6501_v63 = vmul.u32 14564, %v6498_v12  ;;  %v7414_v15 = vsel %vm15194_vm12, %v6081_v29, 0.0 }
 0x5fd   : > { %v5821_v21 = vadd.f32 %v5820_v49, %v5643_v25  ;;  %v7687_v14 = vpop.f32.mrf.mxu0  ;;  %v6483_v9 = vadd.s32 %v6481_v33, %v6475_v45  ;;  %vm6484_vm2 = vc.u32 %v6482_v30, %v6478_v43  ;;  %7492 = vst [vmem:[#allocation3 + $0x4b] sm:$0xff] %v7414_v15  ;;  %v6502_v1 = vmul.u32 58254, %v6498_v12 }
 0x5fe   : > { %v15263_v50 = vadd.f32 %v7998_v10, %v7687_v14  ;;  %v6463_v22 = vsub.s32 %v15097_v55, %v6462_v62  ;;  %v6485_v31 = vsel %vm6484_vm2, 1, %v16952_v19  ;;  %v6479_v45 = vshrl.u32 %v15221_v3, 16 }
 0x5ff   : > { %v5934_v6 = vadd.f32 %v5821_v21, %v17026_v54  ;;  %v8001_v51 = vpop.f32.mrf.mxu1  ;;  %v6487_v10 = vadd.s32 %v6485_v31, %v6483_v9  ;;  %v6503_v4 = vmul.u32 14564, %v6499_v60  ;;  %v7881_v55 = vpack.c.bf16 %v15261_v58, %v15258_v57  ;;  %v15303_v54 = vld [vmem:[%s12947_s28 + $0x106] sm:$0xff] }
 0x600   : > { %vm7201_vm4 = vcmp.ne.s32.totalorder %v6463_v22, 0  ;;  %v6504_v43 = vmul.u32 58254, %v6499_v60  ;;  %v6505_v12 = vshll.u32 %v6502_v1, 16  ;;  %vm7237_vm5 = vcmp.lt.s32.totalorder %v6463_v22, 0  ;;  %v5822_v21 = vpop.f32.mrf.mxu3  ;;  %v12753_v58 = vld [vmem:[%s16887_s6] sm:$0xff] }
 0x601   : > { %v6046_v7 = vadd.f32 %v14802_v38, %v5934_v6  ;;  %v6488_v29 = vadd.s32 %v6487_v10, %v6477_v11  ;;  %v6507_v25 = vshll.u32 %v6503_v4, 16  ;;  %v7344_v3 = vsel %vm15272_vm3, %v15251_v24, %v15212_v28  ;;  %v5645_v62 = vpop.f32.mrf.mxu2  ;;  %vm15290_vm7 = vmand %vm7237_vm5, %vm7201_vm4  ;;  %v15306_v6 = vld [vmem:[%s12947_s28 + $0x10e] sm:$0xff]  ;;  %12122 = vmatmul.msk.bf16.gmra.mxu2 %vm560_vm0, %v5522_v56 }
 0x602   : > { %v7309_v30 = vadd.s32 18, %v6463_v22  ;;  %vm6509_vm6 = vc.u32 %v6501_v63, %v6505_v12  ;;  %v6511_v49 = vadd.s32 %v6505_v12, %v6501_v63  ;;  %v6506_v15 = vshrl.u32 %v6502_v1, 16  ;;  %8304 = vmatpush.bf16.msrb.mxu2 %v12753_v58 }
 0x603   : > { %v6082_v60 = vmax.f32 %v6046_v7, 0.0  ;;  %v6489_v33 = vadd.s32 %v6488_v29, %v6479_v45  ;;  %v6510_v11 = vsel %vm6509_vm6, 1, %v16952_v19  ;;  %v6508_v46 = vshrl.u32 %v6503_v4, 16 }
 0x604   : > { %v6512_v47 = vadd.s32 %v6510_v11, %v6504_v43  ;;  %vm6513_vm8 = vc.u32 %v6511_v49, %v6507_v25  ;;  %v15295_v28 = vadd.s32 104, %v14437_v40  ;;  %v5823_v63 = vadd.f32 %v5822_v21, %v5645_v62 }
 0x605   : > { %v7415_v24 = vsel %vm15244_vm13, %v6082_v60, 0.0  ;;  %v7690_v14 = vpop.f32.mrf.mxu0  ;;  %v6490_v9 = vshrl.u32 %v6489_v33, 4  ;;  %v6514_v31 = vsel %vm6513_vm8, 1, %v16952_v19  ;;  %v15310_v10 = vadd.s32 112, %v14437_v40 }
 0x606   : > { %7493 = vst [vmem:[#allocation3 + $0x53] sm:$0xff] %v7415_v24  ;;  %v15300_v1 = vadd.f32 %v8001_v51, %v7690_v14  ;;  %v6516_v52 = vadd.s32 %v6514_v31, %v6512_v47  ;;  %v6527_v45 = vand.u32 65535, %v15295_v28  ;;  %v5935_v4 = vadd.f32 %v5823_v63, %v17031_v8  ;;  %v15394_v31 = vld [vmem:[%s12947_s28 + $0x11e] sm:$0xff] }
 0x607   : > { %v8003_v43 = vpop.f32.mrf.mxu1  ;;  %v7345_v12 = vsel %vm15290_vm7, %v7309_v30, %v6463_v22  ;;  %v6491_v7 = vmul.u32 18, %v6490_v9  ;;  %v6528_v51 = vshrl.u32 %v15295_v28, 16  ;;  %vm15316_vm9 = vcmp.lt.s32.totalorder %v7344_v3, 16  ;;  %v17035_v3 = vld [vmem:[#allocation36_spill] sm:$0xff] }
 0x608   : > { %v17034_v25 = vpack.c.bf16 %v14541_v18, %v14563_v20  ;;  %v6517_v49 = vadd.s32 %v6516_v52, %v6506_v15  ;;  %v6530_v60 = vmul.u32 14564, %v6527_v45  ;;  %v6531_v22 = vmul.u32 58254, %v6527_v45  ;;  %v5825_v37 = vpop.f32.mrf.mxu3  ;;  %v15405_v20 = vld [vmem:[%s12947_s28 + $0x10b] sm:$0xff] }
 0x609   : > { %v6047_v30 = vadd.f32 %v14802_v38, %v5935_v4  ;;  %v17036_v62 = vpack.c.bf16 %v14570_v32, %v17035_v3  ;;  %v6492_v33 = vsub.s32 %v15171_v26, %v6491_v7  ;;  %v5523_v44 = vpack.c.bf16 %v15306_v6, %v15303_v54  ;;  %v5648_v21 = vpop.f32.mrf.mxu2  ;;  %v17050_v6 = vld [vmem:[#allocation37_spill] sm:$0xff] }
 0x60a   : > { %12189 = vmatmul.msk.bf16.gmra.mxu0 %vm560_vm0, %v17034_v25  ;;  %v15336_v42 = vmul.u32 14564, %v6528_v51  ;;  %vm15338_vm10 = vcmp.lt.s32.totalorder %v7345_v12, 16  ;;  %v6518_v18 = vadd.s32 %v6517_v49, %v6508_v46  ;;  %v6534_v56 = vshll.u32 %v6531_v22, 16 }
 0x60b   : > { %12156 = vmatmul.msk.bf16.gmra.mxu3 %vm560_vm0, %v17036_v62  ;;  %v6556_v15 = vand.u32 65535, %v15310_v10  ;;  %v6557_v11 = vshrl.u32 %v15310_v10, 16  ;;  %v6083_v32 = vmax.f32 %v6047_v30, 0.0  ;;  %vm7202_vm11 = vcmp.ne.s32.totalorder %v6492_v33, 0  ;;  %12224 = vmatmul.msk.bf16.gmra.mxu1 %vm560_vm0, %v7881_v55 }
 0x60c   : > { %vm7238_vm12 = vcmp.lt.s32.totalorder %v6492_v33, 0  ;;  %v6533_v26 = vmul.u32 58254, %v6528_v51  ;;  %v7310_v47 = vadd.s32 18, %v6492_v33  ;;  %v6519_v24 = vshrl.u32 %v6518_v18, 4  ;;  %v17041_v51 = vld [vmem:[#allocation6_spill] sm:$0xff]  ;;  %v15362_v18 = vld [vmem:[%s12947_s28 + $0xf3] sm:$0xff] }
 0x60d   : > { %v6536_v63 = vshll.u32 %v15336_v42, 16  ;;  %vm6538_vm13 = vc.u32 %v6530_v60, %v6534_v56  ;;  %v7416_v14 = vsel %vm15316_vm9, %v6083_v32, 0.0  ;;  %v5826_v46 = vadd.f32 %v5825_v37, %v5648_v21  ;;  %v7692_v9 = vpop.f32.mrf.mxu0  ;;  %vm15347_vm14 = vmand %vm7238_vm12, %vm7202_vm11 }
 0x60e   : > { %v6535_v52 = vshrl.u32 %v6531_v22, 16  ;;  %v6539_v45 = vsel %vm6538_vm13, 1, %v16952_v19  ;;  %7494 = vst [vmem:[#allocation3 + $0x5b] sm:$0xff] %v7416_v14  ;;  %v15352_v8 = vadd.f32 %v8003_v43, %v7692_v9  ;;  %v6520_v4 = vmul.u32 18, %v6519_v24  ;;  %v15365_v43 = vld [vmem:[%s12947_s28 + $0xfb] sm:$0xff] }
 0x60f   : > { %v6540_v12 = vadd.s32 %v6534_v56, %v6530_v60  ;;  %v6559_v7 = vmul.u32 14564, %v6556_v15  ;;  %v5936_v29 = vadd.f32 %v5826_v46, %v17041_v51  ;;  %v8006_v25 = vpop.f32.mrf.mxu1  ;;  %v6537_v49 = vshrl.u32 %v15336_v42, 16  ;;  %v15391_v9 = vld [vmem:[%s12947_s28 + $0x116] sm:$0xff] }
 0x610   : > { %v6541_v30 = vadd.s32 %v6539_v45, %v6533_v26  ;;  %v15356_v3 = vmul.u32 58254, %v6556_v15  ;;  %v7346_v62 = vsel %vm15347_vm14, %v7310_v47, %v6492_v33  ;;  %v6521_v22 = vsub.s32 %v15205_v39, %v6520_v4  ;;  %v5827_v57 = vpop.f32.mrf.mxu3 }
 0x611   : > { %vm6542_vm15 = vc.u32 %v6540_v12, %v6536_v63  ;;  %v15367_v60 = vmul.u32 14564, %v6557_v11  ;;  %v6048_v56 = vadd.f32 %v14802_v38, %v5936_v29  ;;  %v6562_v42 = vmul.u32 58254, %v6557_v11  ;;  %v5650_v26 = vpop.f32.mrf.mxu2  ;;  %v17046_v29 = vld [vmem:[#allocation10_spill] sm:$0xff]  ;;  %12123 = vmatmul.msk.bf16.gmra.mxu2 %vm560_vm0, %v5523_v44 }
 0x612   : > { %v6543_v32 = vsel %vm6542_vm15, 1, %v16952_v19  ;;  %v6563_v15 = vshll.u32 %v15356_v3, 16  ;;  %vm7203_vm1 = vcmp.ne.s32.totalorder %v6521_v22, 0  ;;  %vm7239_vm2 = vcmp.lt.s32.totalorder %v6521_v22, 0  ;;  %v17051_v44 = vld [vmem:[#allocation42_spill] sm:$0xff] }
 0x613   : > { %v7311_v39 = vadd.s32 18, %v6521_v22  ;;  %v6545_v33 = vadd.s32 %v6543_v32, %v6541_v30  ;;  %v6084_v21 = vmax.f32 %v6048_v56, 0.0  ;;  %vm15376_vm3 = vmand %vm7239_vm2, %vm7203_vm1  ;;  %v7882_v11 = vpack.c.bf16 %v15365_v43, %v15362_v18  ;;  %v15415_v32 = vld [vmem:[#allocation3 + $0x19] sm:$0xff] }
 0x614   : > { %v6565_v37 = vshll.u32 %v15367_v60, 16  ;;  %vm6567_vm4 = vc.u32 %v6559_v7, %v6563_v15  ;;  %vm15383_vm5 = vcmp.lt.s32.totalorder %v7346_v62, 16  ;;  %v6569_v24 = vadd.s32 %v6563_v15, %v6559_v7  ;;  %v15402_v7 = vld [vmem:[%s12947_s28 + $0x103] sm:$0xff] }
 0x615   : > { %v6546_v55 = vadd.s32 %v6545_v33, %v6535_v52  ;;  %v6568_v47 = vsel %vm6567_vm4, 1, %v16952_v19  ;;  %v7417_v63 = vsel %vm15338_vm10, %v6084_v21, 0.0  ;;  %v5828_v14 = vadd.f32 %v5827_v57, %v5650_v26  ;;  %v7695_v46 = vpop.f32.mrf.mxu0  ;;  %v15431_v26 = vld [vmem:[%s16886_s5] ss:$0 sm:$0xff]  ;;  %v12782_v18 = vld [vmem:[%s16887_s6 + $0xe8] sm:$0xff] }
 0x616   : > { %v6564_v45 = vshrl.u32 %v15356_v3, 16  ;;  %v6570_v4 = vadd.s32 %v6568_v47, %v6562_v42  ;;  %7495 = vst [vmem:[#allocation3 + $0x63] sm:$0xff] %v7417_v63  ;;  %v15397_v12 = vadd.f32 %v8006_v25, %v7695_v46  ;;  %v7347_v52 = vsel %vm15376_vm3, %v7311_v39, %v6521_v22  ;;  %v17048_v22 = vld [vmem:[#allocation34_spill] sm:$0xff]  ;;  %v12784_v47 = vld [vmem:[%s16887_s6 + $0xf8] sm:$0xff] }
 0x617   : > { %v6547_v51 = vadd.s32 %v6546_v55, %v6537_v49  ;;  %vm6571_vm6 = vc.u32 %v6569_v24, %v6565_v37  ;;  %v5937_v30 = vadd.f32 %v5828_v14, %v17046_v29  ;;  %v8008_v62 = vpop.f32.mrf.mxu1  ;;  %v15410_v3 = vadd.s32 120, %v14437_v40  ;;  %v17047_v49 = vld [vmem:[#allocation33_spill] sm:$0xff]  ;;  %9275 = vmatpush.bf16.msra.mxu1 %v12784_v47 }
 0x618   : > { %v6572_v56 = vsel %vm6571_vm6, 1, %v16952_v19  ;;  %v15413_v25 = vadd.s32 128, %v14437_v40  ;;  %v17049_v42 = vpack.c.bf16 %v17047_v49, %v17048_v22  ;;  %v5524_v39 = vpack.c.bf16 %v15394_v31, %v15391_v9  ;;  %v15442_v55 = vld [vmem:[#allocation3 + $0x11] sm:$0xff] }
 0x619   : > { %v6548_v15 = vshrl.u32 %v6547_v51, 4  ;;  %v6566_v33 = vshrl.u32 %v15367_v60, 16  ;;  %v6574_v21 = vadd.s32 %v6572_v56, %v6570_v4  ;;  %v6049_v54 = vadd.f32 %v15431_v26, %v5937_v30  ;;  %v5653_v51 = vpop.f32.mrf.mxu2  ;;  %v5830_v56 = vpop.f32.mrf.mxu3  ;;  %v15467_v46 = vld [vmem:[%s12947_s28 + $0x126] sm:$0xff] }
 0x61a   : > { %12190 = vmatmul.msk.bf16.gmra.mxu0 %vm560_vm0, %v17049_v42  ;;  %v17052_v38 = vpack.c.bf16 %v17050_v6, %v17051_v44  ;;  %v6585_v57 = vand.u32 65535, %v15410_v3  ;;  %v6586_v60 = vshrl.u32 %v15410_v3, 16  ;;  %vm15444_vm7 = vcmp.lt.s32.totalorder %v7347_v52, 16  ;;  %v12768_v42 = vld [vmem:[%s16887_s6 + $0x78] sm:$0xff]  ;;  %v12765_v9 = vld [vmem:[%s16887_s6 + $0x60] sm:$0xff] }
 0x61b   : > { %v6549_v24 = vmul.u32 18, %v6548_v15  ;;  %v6575_v63 = vadd.s32 %v6574_v21, %v6564_v45  ;;  %v15449_v14 = vadd.s32 136, %v14437_v40  ;;  %v6085_v4 = vmax.f32 %v6049_v54, 0.0  ;;  %8623 = vmatpush.bf16.msrb.mxu3 %v12768_v42  ;;  %12225 = vmatmul.msk.bf16.gmra.mxu1 %vm560_vm0, %v7882_v11 }
 0x61c   : > { %12157 = vmatmul.msk.bf16.gmra.mxu3 %vm560_vm0, %v17052_v38  ;;  %v15453_v29 = vmul.u32 58254, %v6585_v57  ;;  %v15455_v30 = vmul.u32 14564, %v6586_v60  ;;  %v6614_v52 = vand.u32 65535, %v15413_v25  ;;  %v6588_v22 = vmul.u32 14564, %v6585_v57  ;;  %v17055_v57 = vld [vmem:[#allocation11_spill] sm:$0xff] }
 0x61d   : > { %v6550_v49 = vsub.s32 %v15295_v28, %v6549_v24  ;;  %v6576_v45 = vadd.s32 %v6575_v63, %v6566_v33  ;;  %v6615_v15 = vshrl.u32 %v15413_v25, 16  ;;  %v7418_v21 = vsel %vm15383_vm5, %v6085_v4, 0.0  ;;  %v7697_v6 = vpop.f32.mrf.mxu0 }
 0x61e   : > { %v5831_v54 = vadd.f32 %v5830_v56, %v5653_v51  ;;  %v6591_v44 = vmul.u32 58254, %v6586_v60  ;;  %v6592_v38 = vshll.u32 %v15453_v29, 16  ;;  %7496 = vst [vmem:[#allocation3 + $0x6b] sm:$0xff] %v7418_v21  ;;  %v15472_v28 = vadd.f32 %v8008_v62, %v7697_v6 }
 0x61f   : > { %vm7204_vm8 = vcmp.ne.s32.totalorder %v6550_v49, 0  ;;  %vm7240_vm9 = vcmp.lt.s32.totalorder %v6550_v49, 0  ;;  %v7312_v33 = vadd.s32 18, %v6550_v49  ;;  %v8011_v60 = vpop.f32.mrf.mxu1  ;;  %v6577_v4 = vshrl.u32 %v6576_v45, 4 }
 0x620   : > { %v5938_v24 = vadd.f32 %v5831_v54, %v17055_v57  ;;  %vm15478_vm10 = vmand %vm7240_vm9, %vm7204_vm8  ;;  %v6594_v51 = vshll.u32 %v15455_v30, 16  ;;  %v6643_v62 = vand.u32 65535, %v15449_v14  ;;  %v6593_v56 = vshrl.u32 %v15453_v29, 16  ;;  %v12767_v54 = vld [vmem:[%s16887_s6 + $0x70] sm:$0xff] }
 0x621   : > { %vm6596_vm11 = vc.u32 %v6588_v22, %v6592_v38  ;;  %v6598_v21 = vadd.s32 %v6592_v38, %v6588_v22  ;;  %v5525_v42 = vpack.c.bf16 %v15470_v27, %v15467_v46  ;;  %v7348_v45 = vsel %vm15478_vm10, %v7312_v33, %v6550_v49  ;;  %8624 = vmatpush.bf16.msrb.mxu3 %v12767_v54  ;;  %v12773_v27 = vld [vmem:[%s16887_s6 + $0xa0] sm:$0xff] }
 0x622   : > { %v6050_v6 = vadd.f32 %v15431_v26, %v5938_v24  ;;  %v6578_v57 = vmul.u32 18, %v6577_v4  ;;  %v6597_v37 = vsel %vm6596_vm11, 1, %v16952_v19  ;;  %v15498_v22 = vmul.u32 58254, %v6614_v52  ;;  %v5655_v24 = vpop.f32.mrf.mxu2  ;;  %v5832_v4 = vpop.f32.mrf.mxu3  ;;  %12124 = vmatmul.msk.bf16.gmra.mxu2 %vm560_vm0, %v5524_v39  ;;  %v17064_v39 = vld [vmem:[#allocation38_spill] sm:$0xff] }
 0x623   : > { %v6599_v29 = vadd.s32 %v6597_v37, %v6591_v44  ;;  %vm6600_vm12 = vc.u32 %v6598_v21, %v6594_v51  ;;  %v15500_v38 = vmul.u32 14564, %v6615_v15  ;;  %v6617_v33 = vmul.u32 14564, %v6614_v52  ;;  %v12766_v44 = vld [vmem:[%s16887_s6 + $0x68] sm:$0xff] }
 0x624   : > { %v6086_v58 = vmax.f32 %v6050_v6, 0.0  ;;  %v15503_v63 = vsub.s32 %v15310_v10, %v6578_v57  ;;  %v6601_v49 = vsel %vm6600_vm12, 1, %v16952_v19  ;;  %vm15506_vm13 = vcmp.lt.s32.totalorder %v7348_v45, 16  ;;  %v17060_v45 = vld [vmem:[#allocation12_spill] sm:$0xff] }
 0x625   : > { %v6595_v43 = vshrl.u32 %v15455_v30, 16  ;;  %v6603_v11 = vadd.s32 %v6601_v49, %v6599_v29  ;;  %v6621_v37 = vshll.u32 %v15498_v22, 16  ;;  %v5833_v51 = vadd.f32 %v5832_v4, %v5655_v24  ;;  %v7700_v21 = vpop.f32.mrf.mxu0  ;;  %8625 = vmatpush.bf16.msrb.mxu3 %v12766_v44  ;;  %v17062_v24 = vld [vmem:[#allocation39_spill] sm:$0xff] }
 0x626   : > { %v7419_v10 = vsel %vm15444_vm7, %v6086_v58, 0.0  ;;  %v6620_v52 = vmul.u32 58254, %v6615_v15  ;;  %v6623_v54 = vshll.u32 %v15500_v38, 16  ;;  %v15518_v6 = vadd.f32 %v8011_v60, %v7700_v21  ;;  %v17061_v58 = vld [vmem:[#allocation35_spill] sm:$0xff] }
 0x627   : > { %7497 = vst [vmem:[#allocation3 + $0x73] sm:$0xff] %v7419_v10  ;;  %vm7205_vm14 = vcmp.ne.s32.totalorder %v15503_v63, 0  ;;  %vm7241_vm15 = vcmp.lt.s32.totalorder %v15503_v63, 0  ;;  %v6604_v30 = vadd.s32 %v6603_v11, %v6593_v56  ;;  %v5939_v57 = vadd.f32 %v5833_v51, %v17060_v45  ;;  %v8013_v15 = vpop.f32.mrf.mxu1  ;;  %v15540_v44 = vld [vmem:[%s12947_s28 + $0x113] sm:$0xff] }
 0x628   : > { %v6622_v29 = vshrl.u32 %v15498_v22, 16  ;;  %vm6625_vm1 = vc.u32 %v6617_v33, %v6621_v37  ;;  %v6627_v60 = vadd.s32 %v6621_v37, %v6617_v33  ;;  %v17063_v56 = vpack.c.bf16 %v17061_v58, %v17062_v24  ;;  %v15543_v22 = vld [vmem:[%s12947_s28 + $0x11b] sm:$0xff]  ;;  %v17065_v37 = vld [vmem:[#allocation43_spill] sm:$0xff]  ;;  %vm15558_vm2 = vmand %vm7241_vm15, %vm7205_vm14 }
 0x629   : > { %v15536_v49 = vadd.s32 18, %v15503_v63  ;;  %v6605_v4 = vadd.s32 %v6604_v30, %v6595_v43  ;;  %v6626_v11 = vsel %vm6625_vm1, 1, %v16952_v19  ;;  %v6644_v33 = vshrl.u32 %v15449_v14, 16  ;;  %8626 = vmatpush.bf16.msrb.mxu3 %v12765_v9  ;;  %v12783_v24 = vld [vmem:[%s16887_s6 + $0xf0] sm:$0xff] }
 0x62a   : > { %12191 = vmatmul.msk.bf16.gmra.mxu0 %vm560_vm0, %v17063_v56  ;;  %v6051_v31 = vadd.f32 %v15431_v26, %v5939_v57  ;;  %v17066_v10 = vpack.c.bf16 %v17064_v39, %v17065_v37  ;;  %v6624_v51 = vshrl.u32 %v15500_v38, 16  ;;  %v6628_v21 = vadd.s32 %v6626_v11, %v6620_v52  ;;  %v5658_v38 = vpop.f32.mrf.mxu2  ;;  %v12776_v39 = vld [vmem:[%s16887_s6 + $0xb8] sm:$0xff]  ;;  %9276 = vmatpush.bf16.msra.mxu1 %v12783_v24 }
 0x62b   : > { %vm6629_vm3 = vc.u32 %v6627_v60, %v6623_v54  ;;  %v6606_v30 = vshrl.u32 %v6605_v4, 4  ;;  %v6646_v57 = vmul.u32 14564, %v6643_v62  ;;  %v15568_v58 = vmul.u32 58254, %v6643_v62  ;;  %v5835_v60 = vpop.f32.mrf.mxu3  ;;  %8949 = vmatpush.bf16.msra.mxu0 %v12776_v39 }
 0x62c   : > { %12158 = vmatmul.msk.bf16.gmra.mxu3 %vm560_vm0, %v17066_v10  ;;  %v6630_v45 = vsel %vm6629_vm3, 1, %v16952_v19  ;;  %v6087_v56 = vmax.f32 %v6051_v31, 0.0  ;;  %v7884_v54 = vpack.c.bf16 %v15543_v22, %v15540_v44  ;;  %v15575_v47 = vmul.u32 14564, %v6644_v33  ;;  %v12764_v31 = vld [vmem:[%s16887_s6 + $0x58] sm:$0xff] }
 0x62d   : > { %v6632_v52 = vadd.s32 %v6630_v45, %v6628_v21  ;;  %v7349_v62 = vsel %vm15558_vm2, %v15536_v49, %v15503_v63  ;;  %v6607_v4 = vmul.u32 18, %v6606_v30  ;;  %v6649_v11 = vmul.u32 58254, %v6644_v33  ;;  %v7702_v21 = vpop.f32.mrf.mxu0  ;;  %8627 = vmatpush.bf16.msrb.mxu3 %v12764_v31  ;;  %v17069_v45 = vld [vmem:[#allocation13_spill] sm:$0xff] }
 0x62e   : > { %v6650_v9 = vshll.u32 %v15568_v58, 16  ;;  %v7420_v37 = vsel %vm15506_vm13, %v6087_v56, 0.0  ;;  %v5836_v10 = vadd.f32 %v5835_v60, %v5658_v38  ;;  %v6652_v63 = vshll.u32 %v15575_v47, 16  ;;  %v15606_v60 = vld [vmem:[%s12947_s28 + $0x13e] sm:$0xff]  ;;  %9277 = vmatpush.bf16.msra.mxu1 %v12782_v18 }
 0x62f   : > { %v6633_v43 = vadd.s32 %v6632_v52, %v6622_v29  ;;  %7498 = vst [vmem:[#allocation3 + $0x7b] sm:$0xff] %v7420_v37  ;;  %v15591_v49 = vadd.f32 %v8013_v15, %v7702_v21  ;;  %v15594_v33 = vsub.s32 %v15410_v3, %v6607_v4  ;;  %v6651_v30 = vshrl.u32 %v15568_v58, 16  ;;  %v8016_v56 = vpop.f32.mrf.mxu1  ;;  %v15603_v15 = vld [vmem:[%s12947_s28 + $0x136] sm:$0xff] }
 0x630   : > { %vm6654_vm4 = vc.u32 %v6646_v57, %v6650_v9  ;;  %v5940_v29 = vadd.f32 %v5836_v10, %v17069_v45  ;;  %v6656_v52 = vadd.s32 %v6650_v9, %v6646_v57  ;;  %v12763_v4 = vld [vmem:[%s16887_s6 + $0x50] sm:$0xff]  ;;  %v15623_v39 = vadd.s32 144, %v14437_v40 }
 0x631   : > { %v6634_v38 = vadd.s32 %v6633_v43, %v6624_v51  ;;  %v6655_v24 = vsel %vm6654_vm4, 1, %v16952_v19  ;;  %vm7206_vm5 = vcmp.ne.s32.totalorder %v15594_v33, 0  ;;  %vm7242_vm6 = vcmp.lt.s32.totalorder %v15594_v33, 0  ;;  %v12775_v51 = vld [vmem:[%s16887_s6 + $0xb0] sm:$0xff]  ;;  %8628 = vmatpush.bf16.msrb.mxu3 %v12763_v4 }
 0x632   : > { %v7314_v3 = vadd.s32 18, %v15594_v33  ;;  %v6657_v58 = vadd.s32 %v6655_v24, %v6649_v11  ;;  %v6052_v57 = vadd.f32 %v15431_v26, %v5940_v29  ;;  %vm15618_vm7 = vmand %vm7242_vm6, %vm7206_vm5  ;;  %vm6658_vm8 = vc.u32 %v6656_v52, %v6652_v63  ;;  %v5660_v18 = vpop.f32.mrf.mxu2  ;;  %8950 = vmatpush.bf16.msra.mxu0 %v12775_v51  ;;  %v12762_v24 = vld [vmem:[%s16887_s6 + $0x48] sm:$0xff]  ;;  %v12780_v11 = vld [vmem:[%s16887_s6 + $0xd8] sm:$0xff]  ;;  %12125 = vmatmul.msk.bf16.gmra.mxu2 %vm560_vm0, %v5525_v42 }
 0x633   : > { %v6635_v31 = vshrl.u32 %v6634_v38, 4  ;;  %vm15625_vm9 = vcmp.lt.s32.totalorder %v7349_v62, 16  ;;  %v17074_v37 = vpack.c.bf16 %v15405_v20, %v15402_v7  ;;  %v6653_v10 = vshrl.u32 %v15575_v47, 16  ;;  %v12781_v62 = vld [vmem:[%s16887_s6 + $0xe0] sm:$0xff]  ;;  %v5837_v47 = vpop.f32.mrf.mxu3  ;;  %v12774_v52 = vld [vmem:[%s16887_s6 + $0xa8] sm:$0xff] }
 0x634   : > { %v6659_v21 = vsel %vm6658_vm8, 1, %v16952_v19  ;;  %v6088_v63 = vmax.f32 %v6052_v57, 0.0  ;;  %v7350_v7 = vsel %vm15618_vm7, %v7314_v3, %v15594_v33  ;;  %v6672_v29 = vand.u32 65535, %v15623_v39  ;;  %9278 = vmatpush.bf16.msra.mxu1 %v12781_v62  ;;  %v17080_v62 = vld [vmem:[#allocation44_spill] sm:$0xff] }
 0x635   : > { %12226 = vmatmul.msk.bf16.gmra.mxu1 %vm560_vm0, %v17074_v37  ;;  %v6636_v20 = vmul.u32 18, %v6635_v31  ;;  %v6661_v45 = vadd.s32 %v6659_v21, %v6657_v58  ;;  %v6673_v38 = vshrl.u32 %v15623_v39, 16  ;;  %v15652_v4 = vadd.s32 152, %v14437_v40  ;;  %v7705_v51 = vpop.f32.mrf.mxu0  ;;  %8629 = vmatpush.bf16.msrb.mxu3 %v12762_v24 }
 0x636   : > { %v15655_v33 = vadd.s32 160, %v14437_v40  ;;  %v7421_v3 = vsel %vm15625_vm9, %v6088_v63, 0.0  ;;  %v5838_v58 = vadd.f32 %v5837_v47, %v5660_v18  ;;  %v15662_v31 = vadd.f32 %v8016_v56, %v7705_v51  ;;  %v17076_v63 = vld [vmem:[#allocation14_spill] sm:$0xff]  ;;  %8951 = vmatpush.bf16.msra.mxu0 %v12774_v52  ;;  %v17079_v56 = vld [vmem:[#allocation40_spill] sm:$0xff]  ;;  %v12761_v52 = vld [vmem:[%s16887_s6 + $0x40] sm:$0xff] }
 0x637   : > { %v15660_v57 = vsub.s32 %v15413_v25, %v6636_v20  ;;  %v6662_v9 = vadd.s32 %v6661_v45, %v6651_v30  ;;  %7499 = vst [vmem:[#allocation3 + $0x83] sm:$0xff] %v7421_v3  ;;  %v6675_v37 = vmul.u32 14564, %v6672_v29  ;;  %v15664_v21 = vmul.u32 58254, %v6672_v29  ;;  %v8018_v47 = vpop.f32.mrf.mxu1  ;;  %v12792_v30 = vld [vmem:[%s16887_s6 + $0x138] sm:$0xff] }
 0x638   : > { %17075 = vst [vmem:[#allocation8_spill] sm:$0xff] %v15662_v31  ;;  %v15666_v43 = vmul.u32 14564, %v6673_v38  ;;  %v5941_v18 = vadd.f32 %v5838_v58, %v17076_v63  ;;  %vm15677_vm12 = vcmp.lt.s32.totalorder %v7350_v7, 16  ;;  %v17081_v20 = vpack.c.bf16 %v17079_v56, %v17080_v62  ;;  %9279 = vmatpush.bf16.msra.mxu1 %v12780_v11  ;;  %9601 = vmatpush.bf16.msra.mxu2 %v12792_v30 }
 0x639   : > { %vm7207_vm10 = vcmp.ne.s32.totalorder %v15660_v57, 0  ;;  %vm7243_vm11 = vcmp.lt.s32.totalorder %v15660_v57, 0  ;;  %v15675_v25 = vadd.s32 18, %v15660_v57  ;;  %v6663_v29 = vadd.s32 %v6662_v9, %v6653_v10  ;;  %8630 = vmatpush.bf16.msrb.mxu3 %v12761_v52 }
 0x63a   : > { %12192 = vmatmul.msk.bf16.gmra.mxu0 %vm560_vm0, %v17081_v20  ;;  %vm15689_vm13 = vmand %vm7243_vm11, %vm7207_vm10  ;;  %v6678_v24 = vmul.u32 58254, %v6673_v38  ;;  %v6679_v7 = vshll.u32 %v15664_v21, 16  ;;  %v6053_v46 = vadd.f32 %v15431_v26, %v5941_v18  ;;  %v17084_v42 = vpack.c.bf16 %v14725_v5, %v14717_v48  ;;  %v12779_v5 = vld [vmem:[%s16887_s6 + $0xd0] sm:$0xff]  ;;  %v9159_v20 = vld [vmem:[#allocation3 + $0x2a] sm:$0xff] }
 0x63b   : > { %v6680_v10 = vshrl.u32 %v15664_v21, 16  ;;  %v6681_v38 = vshll.u32 %v15666_v43, 16  ;;  %v6701_v3 = vand.u32 65535, %v15652_v4  ;;  %v7351_v58 = vsel %vm15689_vm13, %v15675_v25, %v15660_v57  ;;  %v5663_v21 = vpop.f32.mrf.mxu2  ;;  %8952 = vmatpush.bf16.msra.mxu0 %v12773_v27  ;;  %v5840_v56 = vpop.f32.mrf.mxu3 }
 0x63c   : > { %12159 = vmatmul.msk.bf16.gmra.mxu3 %vm560_vm0, %v17084_v42  ;;  %v6664_v51 = vshrl.u32 %v6663_v29, 4  ;;  %vm6683_vm14 = vc.u32 %v6675_v37, %v6679_v7  ;;  %v6685_v9 = vadd.s32 %v6679_v7, %v6675_v37  ;;  %v6089_v48 = vmax.f32 %v6053_v46, 0.0  ;;  %v12772_v37 = vld [vmem:[%s16887_s6 + $0x98] sm:$0xff]  ;;  %9280 = vmatpush.bf16.msra.mxu1 %v12779_v5 }
 0x63d   : > { %v6682_v63 = vshrl.u32 %v15666_v43, 16  ;;  %v6684_v18 = vsel %vm6683_vm14, 1, %v16952_v19  ;;  %v6702_v11 = vshrl.u32 %v15652_v4, 16  ;;  %v6704_v25 = vmul.u32 14564, %v6701_v3  ;;  %v7707_v29 = vpop.f32.mrf.mxu0 }
 0x63e   : > { %v6665_v62 = vmul.u32 18, %v6664_v51  ;;  %v6686_v57 = vadd.s32 %v6684_v18, %v6678_v24  ;;  %vm6687_vm15 = vc.u32 %v6685_v9, %v6681_v38  ;;  %v7422_v45 = vsel %vm15677_vm12, %v6089_v48, 0.0  ;;  %v12778_v38 = vld [vmem:[%s16887_s6 + $0xc8] sm:$0xff]  ;;  %v9158_v51 = vld [vmem:[#allocation3 + $0x22] sm:$0xff] }
 0x63f   : > { %v5841_v43 = vadd.f32 %v5840_v56, %v5663_v21  ;;  %v6688_v7 = vsel %vm6687_vm15, 1, %v16952_v19  ;;  %v15724_v52 = vmul.u32 58254, %v6701_v3  ;;  %7500 = vst [vmem:[#allocation3 + $0x8b] sm:$0xff] %v7422_v45  ;;  %v15726_v24 = vadd.f32 %v8018_v47, %v7707_v29  ;;  %v17086_v3 = vld [vmem:[#allocation15_spill] sm:$0xff]  ;;  %v8021_v5 = vpop.f32.mrf.mxu1  ;;  %v15739_v48 = vld [vmem:[%s12947_s28 + $0x123] sm:$0xff]  ;;  %8953 = vmatpush.bf16.msra.mxu0 %v12772_v37 }
 0x640   : > { %v6666_v27 = vsub.s32 %v15449_v14, %v6665_v62  ;;  %v6690_v46 = vadd.s32 %v6688_v7, %v6686_v57  ;;  %v15729_v42 = vmul.u32 14564, %v6702_v11  ;;  %v15742_v47 = vld [vmem:[%s12947_s28 + $0x12b] sm:$0xff]  ;;  %v6707_v14 = vmul.u32 58254, %v6702_v11  ;;  %9281 = vmatpush.bf16.msra.mxu1 %v12778_v38  ;;  %v12777_v7 = vld [vmem:[%s16887_s6 + $0xc0] sm:$0xff]  ;;  %s12838_s28 = smul.u32 288, %s17213_s14 }
 0x641   : > { %17085 = vst [vmem:[#allocation5_spill] sm:$0xff] %v15726_v24  ;;  %v5942_v9 = vadd.f32 %v5841_v43, %v17086_v3  ;;  %v6708_v21 = vshll.u32 %v15724_v52, 16  ;;  %v15745_v18 = vpack.c.bf16 %v9159_v20, %v9158_v51  ;;  %v12771_v57 = vld [vmem:[%s16887_s6 + $0x90] sm:$0xff]  ;;  %vm15751_vm3 = vcmp.lt.s32.totalorder %v7351_v58, 16  ;;  %v12770_v3 = vld [vmem:[%s16887_s6 + $0x88] sm:$0xff] }
 0x642   : > { %vm7208_vm1 = vcmp.ne.s32.totalorder %v6666_v27, 0  ;;  %vm7244_vm2 = vcmp.lt.s32.totalorder %v6666_v27, 0  ;;  %v7316_v56 = vadd.s32 18, %v6666_v27  ;;  %v6691_v62 = vadd.s32 %v6690_v46, %v6680_v10  ;;  %s16729_s18 = scalar_lea.vmem %s16891_s10, %s12838_s28 }
 0x643   : > { %v6054_v45 = vadd.f32 %v15431_v26, %v5942_v9  ;;  %vm15755_vm4 = vmand %vm7244_vm2, %vm7208_vm1  ;;  %v6710_v37 = vshll.u32 %v15729_v42, 16  ;;  %vm6712_vm5 = vc.u32 %v6704_v25, %v6708_v21  ;;  %v7885_v58 = vpack.c.bf16 %v15742_v47, %v15739_v48  ;;  %v5665_v30 = vpop.f32.mrf.mxu2  ;;  %8954 = vmatpush.bf16.msra.mxu0 %v12771_v57 }
 0x644   : > { %v6692_v10 = vadd.s32 %v6691_v62, %v6682_v63  ;;  %v6713_v20 = vsel %vm6712_vm5, 1, %v16952_v19  ;;  %v6714_v29 = vadd.s32 %v6708_v21, %v6704_v25  ;;  %v7352_v38 = vsel %vm15755_vm4, %v7316_v56, %v6666_v27  ;;  %9282 = vmatpush.bf16.msra.mxu1 %v12777_v7  ;;  %v17096_v7 = vld [vmem:[#allocation45_spill] sm:$0xff] }
 0x645   : > { %12227 = vmatmul.msk.bf16.gmra.mxu1 %vm560_vm0, %v7884_v54  ;;  %v6090_v46 = vmax.f32 %v6054_v45, 0.0  ;;  %v6709_v44 = vshrl.u32 %v15724_v52, 16  ;;  %v6715_v22 = vadd.s32 %v6713_v20, %v6707_v14  ;;  %v5842_v54 = vpop.f32.mrf.mxu3  ;;  %v6711_v51 = vshrl.u32 %v15729_v42, 16  ;;  %v7710_v27 = vpop.f32.mrf.mxu0  ;;  %v17094_v45 = vld [vmem:[#allocation16_spill] sm:$0xff] }
 0x646   : > { %v6693_v63 = vshrl.u32 %v6692_v10, 4  ;;  %vm6716_vm6 = vc.u32 %v6714_v29, %v6710_v37  ;;  %v6730_v25 = vand.u32 65535, %v15655_v33  ;;  %v5843_v21 = vadd.f32 %v5842_v54, %v5665_v30 }
 0x647   : > { %v7423_v9 = vsel %vm15751_vm3, %v6090_v46, 0.0  ;;  %v6717_v52 = vsel %vm6716_vm6, 1, %v16952_v19  ;;  %v6731_v14 = vshrl.u32 %v15655_v33, 16  ;;  %vm15782_vm7 = vcmp.lt.s32.totalorder %v7352_v38, 16  ;;  %v8023_v43 = vpop.f32.mrf.mxu1  ;;  %8955 = vmatpush.bf16.msra.mxu0 %v12770_v3  ;;  %v17097_v46 = vld [vmem:[#allocation48_spill] sm:$0xff]  ;;  %v17099_v3 = vld [vmem:[#allocation47_spill] sm:$0xff] }
 0x648   : > { %7501 = vst [vmem:[#allocation3 + $0x93] sm:$0xff] %v7423_v9  ;;  %v15786_v56 = vadd.f32 %v8021_v5, %v7710_v27  ;;  %v6694_v62 = vmul.u32 18, %v6693_v63  ;;  %v6719_v57 = vadd.s32 %v6717_v52, %v6715_v22  ;;  %v5943_v11 = vadd.f32 %v5843_v21, %v17094_v45  ;;  %v15802_v22 = vld [vmem:[#allocation3] sm:$0xff]  ;;  %v17100_v9 = vld [vmem:[#allocation46_spill] sm:$0xff] }
 0x649   : > { %v6733_v37 = vmul.u32 14564, %v6730_v25  ;;  %v15789_v10 = vmul.u32 58254, %v6730_v25  ;;  %v15791_v20 = vmul.u32 14564, %v6731_v14  ;;  %v17095_v29 = vpack.c.bf16 %v15606_v60, %v15603_v15  ;;  %v15806_v63 = vld [vmem:[#allocation3 + $0x1] sm:$0xff]  ;;  %v15808_v25 = vld [vmem:[#allocation3 + $0x9] sm:$0xff] }
 0x64a   : > { %17093 = vst [vmem:[#allocation31_spill] sm:$0xff] %v15786_v56  ;;  %v17098_v5 = vpack.c.bf16 %v17096_v7, %v17097_v46  ;;  %v6695_v30 = vsub.s32 %v15623_v39, %v6694_v62  ;;  %v6720_v38 = vadd.s32 %v6719_v57, %v6709_v44  ;;  %v15811_v15 = vadd.s32 168, %v14437_v40  ;;  %v15963_v56 = vld [vmem:[#allocation3 + $0x48] sm:$0xff] }
 0x64b   : > { %12126 = vmatmul.msk.bf16.gmra.mxu2 %vm560_vm0, %v17095_v29  ;;  %v6055_v60 = vadd.f32 %v15431_v26, %v5943_v11  ;;  %v17101_v21 = vpack.c.bf16 %v17099_v3, %v17100_v9  ;;  %v6736_v39 = vmul.u32 58254, %v6731_v14  ;;  %v6737_v44 = vshll.u32 %v15789_v10, 16  ;;  %v5668_v45 = vpop.f32.mrf.mxu2 }
 0x64c   : > { %12193 = vmatmul.msk.bf16.gmra.mxu0 %vm560_vm0, %v17098_v5  ;;  %v6739_v27 = vshll.u32 %v15791_v20, 16  ;;  %vm7209_vm8 = vcmp.ne.s32.totalorder %v6695_v30, 0  ;;  %vm7245_vm9 = vcmp.lt.s32.totalorder %v6695_v30, 0  ;;  %v7317_v52 = vadd.s32 18, %v6695_v30 }
 0x64d   : > { %12160 = vmatmul.msk.bf16.gmra.mxu3 %vm560_vm0, %v17101_v21  ;;  %v6721_v62 = vadd.s32 %v6720_v38, %v6711_v51  ;;  %v6091_v57 = vmax.f32 %v6055_v60, 0.0  ;;  %vm15820_vm10 = vmand %vm7245_vm9, %vm7209_vm8  ;;  %vm6741_vm11 = vc.u32 %v6733_v37, %v6737_v44  ;;  %v6743_v7 = vadd.s32 %v6737_v44, %v6733_v37  ;;  %v5845_v14 = vpop.f32.mrf.mxu3  ;;  %v7712_v21 = vpop.f32.mrf.mxu0  ;;  %v12769_v44 = vld [vmem:[%s16887_s6 + $0x80] sm:$0xff] }
 0x64e   : > { %v6738_v5 = vshrl.u32 %v15789_v10, 16  ;;  %v6742_v3 = vsel %vm6741_vm11, 1, %v16952_v19  ;;  %v6759_v9 = vand.u32 65535, %v15811_v15  ;;  %v5846_v38 = vadd.f32 %v5845_v14, %v5668_v45  ;;  %8956 = vmatpush.bf16.msra.mxu0 %v12769_v44  ;;  %v15870_v44 = vld [vmem:[#allocation3 + $0x2] sm:$0xff] }
 0x64f   : > { %v6722_v46 = vshrl.u32 %v6721_v62, 4  ;;  %v7424_v51 = vsel %vm15782_vm7, %v6091_v57, 0.0  ;;  %v7353_v60 = vsel %vm15820_vm10, %v7317_v52, %v6695_v30  ;;  %v6744_v54 = vadd.s32 %v6742_v3, %v6736_v39  ;;  %v17105_v62 = vld [vmem:[#allocation17_spill] sm:$0xff]  ;;  %v8026_v57 = vpop.f32.mrf.mxu1 }
 0x650   : > { %7502 = vst [vmem:[#allocation3 + $0x9b] sm:$0xff] %v7424_v51  ;;  %v15833_v11 = vadd.f32 %v8023_v43, %v7712_v21  ;;  %vm6745_vm12 = vc.u32 %v6743_v7, %v6739_v27  ;;  %v6760_v10 = vshrl.u32 %v15811_v15, 16  ;;  %v5944_v42 = vadd.f32 %v5846_v38, %v17105_v62  ;;  %v15847_v7 = vld [vmem:[#allocation3 + $0x28] sm:$0xff] }
 0x651   : > { %v6723_v37 = vmul.u32 18, %v6722_v46  ;;  %v6746_v45 = vsel %vm6745_vm12, 1, %v16952_v19  ;;  %v6762_v29 = vmul.u32 14564, %v6759_v9  ;;  %v15841_v30 = vmul.u32 58254, %v6759_v9  ;;  %v15872_v62 = vld [vmem:[#allocation3 + $0xa] sm:$0xff] }
 0x652   : > { %17104 = vst [vmem:[#allocation32_spill] sm:$0xff] %v15833_v11  ;;  %v6740_v43 = vshrl.u32 %v15791_v20, 16  ;;  %v6748_v52 = vadd.s32 %v6746_v45, %v6744_v54  ;;  %v15845_v27 = vmul.u32 14564, %v6760_v10  ;;  %v6056_v14 = vadd.f32 %v15431_v26, %v5944_v42  ;;  %v15859_v54 = vld [vmem:[#allocation3 + $0x20] sm:$0xff]  ;;  %v17111_v11 = vld [vmem:[#allocation18_spill] sm:$0xff] }
 0x653   : > { %v6724_v39 = vsub.s32 %v15652_v4, %v6723_v37  ;;  %vm15850_vm13 = vcmp.lt.s32.totalorder %v7353_v60, 16  ;;  %v6765_v3 = vmul.u32 58254, %v6760_v10  ;;  %v6766_v9 = vshll.u32 %v15841_v30, 16  ;;  %v5670_v38 = vpop.f32.mrf.mxu2 }
 0x654   : > { %v6749_v20 = vadd.s32 %v6748_v52, %v6738_v5  ;;  %v6092_v51 = vmax.f32 %v6056_v14, 0.0  ;;  %v6768_v21 = vshll.u32 %v15845_v27, 16  ;;  %v6767_v37 = vshrl.u32 %v15841_v30, 16 }
 0x655   : > { %12228 = vmatmul.msk.bf16.gmra.mxu1 %vm560_vm0, %v7885_v58  ;;  %vm7210_vm14 = vcmp.ne.s32.totalorder %v6724_v39, 0  ;;  %vm7246_vm15 = vcmp.lt.s32.totalorder %v6724_v39, 0  ;;  %v7318_v4 = vadd.s32 18, %v6724_v39  ;;  %vm6770_vm2 = vc.u32 %v6762_v29, %v6766_v9  ;;  %v5847_v47 = vpop.f32.mrf.mxu3  ;;  %v7715_v14 = vpop.f32.mrf.mxu0 }
 0x656   : > { %vm15861_vm1 = vmand %vm7246_vm15, %vm7210_vm14  ;;  %v6750_v58 = vadd.s32 %v6749_v20, %v6740_v43  ;;  %v6771_v5 = vsel %vm6770_vm2, 1, %v16952_v19  ;;  %v6772_v10 = vadd.s32 %v6766_v9, %v6762_v29  ;;  %v7425_v42 = vsel %vm15850_vm13, %v6092_v51, 0.0  ;;  %v15883_v9 = vld [vmem:[#allocation3 + $0x29] sm:$0xff]  ;;  %v9161_v20 = vld [vmem:[#allocation3 + $0x3a] sm:$0xff] }
 0x657   : > { %v5848_v45 = vadd.f32 %v5847_v47, %v5670_v38  ;;  %v7354_v52 = vsel %vm15861_vm1, %v7318_v4, %v6724_v39  ;;  %v6773_v48 = vadd.s32 %v6771_v5, %v6765_v3  ;;  %7503 = vst [vmem:[#allocation3 + $0xa3] sm:$0xff] %v7425_v42  ;;  %v15878_v43 = vadd.f32 %v8026_v57, %v7715_v14  ;;  %v8028_v51 = vpop.f32.mrf.mxu1  ;;  %v15890_v57 = vld [vmem:[#allocation3 + $0x38] sm:$0xff] }
 0x658   : > { %v6751_v30 = vshrl.u32 %v6750_v58, 4  ;;  %vm6774_vm3 = vc.u32 %v6772_v10, %v6768_v21  ;;  %v15881_v29 = vadd.s32 176, %v14437_v40  ;;  %v6769_v38 = vshrl.u32 %v15845_v27, 16  ;;  %v15901_v58 = vld [vmem:[#allocation3 + $0x21] sm:$0xff]  ;;  %v9160_v5 = vld [vmem:[#allocation3 + $0x32] sm:$0xff] }
 0x659   : > { %17110 = vst [vmem:[#allocation7_spill] sm:$0xff] %v15878_v43  ;;  %v5945_v46 = vadd.f32 %v5848_v45, %v17111_v11  ;;  %v6775_v39 = vsel %vm6774_vm3, 1, %v16952_v19  ;;  %v17112_v4 = vpack.c.bf16 %v14738_v16, %v14727_v13  ;;  %v17113_v60 = vpack.c.bf16 %v15802_v22, %v15802_v22  ;;  %v15941_v42 = vld [vmem:[#allocation3 + $0x31] sm:$0xff] }
 0x65a   : > { %v6752_v11 = vmul.u32 18, %v6751_v30  ;;  %v6777_v21 = vadd.s32 %v6775_v39, %v6773_v48  ;;  %v6788_v27 = vand.u32 65535, %v15881_v29  ;;  %v6789_v47 = vshrl.u32 %v15881_v29, 16  ;;  %v15915_v48 = vld [vmem:[#allocation3 + $0x30] sm:$0xff] }
 0x65b   : > { %8305 = vmatmul.bf16.vlgmr.msrb.gmra.mxu2 %v17113_v60  ;;  %v6057_v10 = vadd.f32 %v15431_v26, %v5945_v46  ;;  %vm15904_vm4 = vcmp.lt.s32.totalorder %v7354_v52, 16  ;;  %v17116_v13 = vpack.c.bf16 %v15808_v25, %v15806_v63  ;;  %v15913_v22 = vpack.c.bf16 %v9161_v20, %v9160_v5  ;;  %v5673_v39 = vpop.f32.mrf.mxu2  ;;  %v9163_v43 = vld [vmem:[#allocation3 + $0x4a] sm:$0xff] }
 0x65c   : > { %12194 = vmatmul.msk.bf16.gmra.mxu0 %vm560_vm0, %v17112_v4  ;;  %v6753_v45 = vsub.s32 %v15655_v33, %v6752_v11  ;;  %v6778_v14 = vadd.s32 %v6777_v21, %v6767_v37  ;;  %v15918_v30 = vmul.u32 58254, %v6788_v27  ;;  %v6791_v4 = vmul.u32 14564, %v6788_v27  ;;  %v15927_v33 = vld [vmem:[#allocation3 + $0x39] sm:$0xff] }
 0x65d   : > { %8631 = vmatmul.bf16.vlgmr.msrb.gmra.mxu3 %v17116_v13  ;;  %v6093_v46 = vmax.f32 %v6057_v10, 0.0  ;;  %v15922_v63 = vmul.u32 14564, %v6789_v47  ;;  %v15925_v25 = vadd.s32 184, %v14437_v40  ;;  %v5850_v20 = vpop.f32.mrf.mxu3  ;;  %v7717_v27 = vpop.f32.mrf.mxu0  ;;  %v6794_v10 = vmul.u32 58254, %v6789_v47 }
 0x65e   : > { %vm7211_vm0 = vcmp.ne.s32.totalorder %v6753_v45, 0  ;;  %vm7247_vm5 = vcmp.lt.s32.totalorder %v6753_v45, 0  ;;  %v7319_v60 = vadd.s32 18, %v6753_v45  ;;  %v6779_v5 = vadd.s32 %v6778_v14, %v6769_v38 }
 0x65f   : > { %v7426_v37 = vsel %vm15904_vm4, %v6093_v46, 0.0  ;;  %v5851_v11 = vadd.f32 %v5850_v20, %v5673_v39  ;;  %vm15931_vm6 = vmand %vm7247_vm5, %vm7211_vm0  ;;  %v6795_v13 = vshll.u32 %v15918_v30, 16  ;;  %v15938_v16 = vadd.f32 %v8028_v51, %v7717_v27  ;;  %v17120_v46 = vld [vmem:[#allocation19_spill] sm:$0xff]  ;;  %v8031_v20 = vpop.f32.mrf.mxu1 }
 0x660   : > { %7504 = vst [vmem:[#allocation3 + $0xab] sm:$0xff] %v7426_v37  ;;  %v7355_v52 = vsel %vm15931_vm6, %v7319_v60, %v6753_v45  ;;  %v6780_v38 = vshrl.u32 %v6779_v5, 4  ;;  %v6797_v14 = vshll.u32 %v15922_v63, 16  ;;  %v6796_v3 = vshrl.u32 %v15918_v30, 16  ;;  %v9162_v5 = vld [vmem:[#allocation3 + $0x42] sm:$0xff] }
 0x661   : > { %17119 = vst [vmem:[#allocation9_spill] sm:$0xff] %v15938_v16  ;;  %v5946_v39 = vadd.f32 %v5851_v11, %v17120_v46  ;;  %vm6799_vm7 = vc.u32 %v6791_v4, %v6795_v13  ;;  %v6801_v45 = vadd.s32 %v6795_v13, %v6791_v4  ;;  %v6817_v51 = vand.u32 65535, %v15925_v25 }
 0x662   : > { %v6781_v37 = vmul.u32 18, %v6780_v38  ;;  %v6800_v21 = vsel %vm6799_vm7, 1, %v16952_v19  ;;  %vm15950_vm8 = vcmp.lt.s32.totalorder %v7355_v52, 16  ;;  %v6818_v27 = vshrl.u32 %v15925_v25, 16 }
 0x663   : > { %v6058_v60 = vadd.f32 %v15431_v26, %v5946_v39  ;;  %v6802_v11 = vadd.s32 %v6800_v21, %v6794_v10  ;;  %v6798_v38 = vshrl.u32 %v15922_v63, 16  ;;  %vm6803_vm9 = vc.u32 %v6801_v45, %v6797_v14  ;;  %v5675_v13 = vpop.f32.mrf.mxu2 }
 0x664   : > { %v6782_v30 = vsub.s32 %v15811_v15, %v6781_v37  ;;  %v15958_v46 = vmul.u32 58254, %v6817_v51  ;;  %v6804_v39 = vsel %vm6803_vm9, 1, %v16952_v19  ;;  %v6820_v52 = vmul.u32 14564, %v6817_v51 }
 0x665   : > { %9283 = vmatmul.bf16.vlgmr.msra.gmra.mxu1 %v15155_v2  ;;  %v6094_v4 = vmax.f32 %v6058_v60, 0.0  ;;  %v15961_v47 = vmul.u32 14564, %v6818_v27  ;;  %v5852_v16 = vpop.f32.mrf.mxu3  ;;  %v6806_v21 = vadd.s32 %v6804_v39, %v6802_v11  ;;  %v7720_v37 = vpop.f32.mrf.mxu0  ;;  %v6823_v45 = vmul.u32 58254, %v6818_v27 }
 0x666   : > { %vm7212_vm10 = vcmp.ne.s32.totalorder %v6782_v30, 0  ;;  %vm7248_vm11 = vcmp.lt.s32.totalorder %v6782_v30, 0  ;;  %v7320_v10 = vadd.s32 18, %v6782_v30  ;;  %v5853_v63 = vadd.f32 %v5852_v16, %v5675_v13  ;;  %v12791_v16 = vld [vmem:[%s16887_s6 + $0x130] sm:$0xff]  ;;  %v17125_v13 = vld [vmem:[#allocation20_spill] sm:$0xff] }
 0x667   : > { %v7427_v15 = vsel %vm15950_vm8, %v6094_v4, 0.0  ;;  %vm15967_vm12 = vmand %vm7248_vm11, %vm7212_vm10  ;;  %v6824_v51 = vshll.u32 %v15958_v46, 16  ;;  %v15974_v11 = vadd.f32 %v8031_v20, %v7720_v37  ;;  %v6807_v39 = vadd.s32 %v6806_v21, %v6796_v3  ;;  %v15980_v4 = vld [vmem:[#allocation3 + $0x40] sm:$0xff]  ;;  %v8033_v31 = vpop.f32.mrf.mxu1  ;;  %9602 = vmatpush.bf16.msra.mxu2 %v12791_v16 }
 0x668   : > { %7505 = vst [vmem:[#allocation3 + $0xb3] sm:$0xff] %v7427_v15  ;;  %v7356_v60 = vsel %vm15967_vm12, %v7320_v10, %v6782_v30  ;;  %v6826_v24 = vshll.u32 %v15961_v47, 16  ;;  %v5947_v27 = vadd.f32 %v5853_v63, %v17125_v13  ;;  %v15983_v15 = vpack.c.bf16 %v9163_v43, %v9162_v5  ;;  %v16038_v20 = vld [vmem:[#allocation3 + $0x41] sm:$0xff] }
 0x669   : > { %vm6828_vm13 = vc.u32 %v6820_v52, %v6824_v51  ;;  %v17126_v3 = vpack.c.bf16 %v15207_v61, %v15223_v34  ;;  %v17127_v30 = vpack.c.bf16 %v15872_v62, %v15870_v44  ;;  %v6808_v10 = vadd.s32 %v6807_v39, %v6798_v38 }
 0x66a   : > { %v6829_v21 = vsel %vm6828_vm13, 1, %v16952_v19  ;;  %v6830_v14 = vadd.s32 %v6824_v51, %v6820_v52  ;;  %v15995_v63 = vadd.s32 192, %v14437_v40  ;;  %v6059_v43 = vadd.f32 %v15431_v26, %v5947_v27 }
 0x66b   : > { %8310 = vmatmul.bf16.gmra.mxu2 %v17126_v3  ;;  %vm15998_vm14 = vcmp.lt.s32.totalorder %v7356_v60, 16  ;;  %v17130_v61 = vpack.c.bf16 %v15415_v32, %v15442_v55  ;;  %v6825_v34 = vshrl.u32 %v15958_v46, 16  ;;  %v6831_v44 = vadd.s32 %v6829_v21, %v6823_v45  ;;  %v5678_v26 = vpop.f32.mrf.mxu2 }
 0x66c   : > { %8957 = vmatmul.bf16.vlgmr.msra.gmra.mxu0 %v17127_v30  ;;  %v6809_v62 = vshrl.u32 %v6808_v10, 4  ;;  %vm6832_vm15 = vc.u32 %v6830_v14, %v6826_v24  ;;  %v6846_v38 = vand.u32 65535, %v15995_v63  ;;  %v6847_v52 = vshrl.u32 %v15995_v63, 16 }
 0x66d   : > { %8636 = vmatmul.bf16.gmra.mxu3 %v17130_v61  ;;  %v6095_v51 = vmax.f32 %v6059_v43, 0.0  ;;  %v6827_v60 = vshrl.u32 %v15961_v47, 16  ;;  %v6833_v39 = vsel %vm6832_vm15, 1, %v16952_v19  ;;  %v16011_v5 = vadd.s32 200, %v14437_v40  ;;  %v5855_v32 = vpop.f32.mrf.mxu3  ;;  %v7722_v27 = vpop.f32.mrf.mxu0  ;;  %v17131_v43 = vld [vmem:[#allocation21_spill] sm:$0xff] }
 0x66e   : > { %v6810_v55 = vmul.u32 18, %v6809_v62  ;;  %v6835_v46 = vadd.s32 %v6833_v39, %v6831_v44  ;;  %v6849_v45 = vmul.u32 14564, %v6846_v38  ;;  %v6850_v16 = vmul.u32 58254, %v6846_v38 }
 0x66f   : > { %v7428_v24 = vsel %vm15998_vm14, %v6095_v51, 0.0  ;;  %v5856_v13 = vadd.f32 %v5855_v32, %v5678_v26  ;;  %v16015_v3 = vmul.u32 14564, %v6847_v52  ;;  %v6852_v30 = vmul.u32 58254, %v6847_v52  ;;  %v8036_v44 = vpop.f32.mrf.mxu1 }
 0x670   : > { %7506 = vst [vmem:[#allocation3 + $0xbb] sm:$0xff] %v7428_v24  ;;  %v6811_v47 = vsub.s32 %v15881_v29, %v6810_v55  ;;  %v16018_v10 = vadd.f32 %v8033_v31, %v7722_v27  ;;  %v6836_v21 = vadd.s32 %v6835_v46, %v6825_v34  ;;  %v6853_v14 = vshll.u32 %v6850_v16, 16  ;;  %v16026_v29 = vld [vmem:[%s16886_s5] ss:$0 sm:$0xff] }
 0x671   : > { %v5948_v61 = vadd.f32 %v5856_v13, %v17131_v43  ;;  %v6854_v62 = vshrl.u32 %v6850_v16, 16  ;;  %v6855_v38 = vshll.u32 %v16015_v3, 16  ;;  %v6856_v37 = vshrl.u32 %v16015_v3, 16  ;;  %v16033_v13 = vld [vmem:[#allocation3 + $0x49] sm:$0xff] }
 0x672   : > { %vm7213_vm1 = vcmp.ne.s32.totalorder %v6811_v47, 0  ;;  %vm7249_vm2 = vcmp.lt.s32.totalorder %v6811_v47, 0  ;;  %v7321_v51 = vadd.s32 18, %v6811_v47  ;;  %v6837_v26 = vadd.s32 %v6836_v21, %v6827_v60 }
 0x673   : > { %v6060_v31 = vadd.f32 %v16026_v29, %v5948_v61  ;;  %vm7285_vm3 = vmand %vm7249_vm2, %vm7213_vm1  ;;  %vm6857_vm4 = vc.u32 %v6849_v45, %v6853_v14  ;;  %v6859_v34 = vadd.s32 %v6853_v14, %v6849_v45  ;;  %v6875_v52 = vand.u32 65535, %v16011_v5  ;;  %v5680_v16 = vpop.f32.mrf.mxu2 }
 0x674   : > { %v7357_v39 = vsel %vm7285_vm3, %v7321_v51, %v6811_v47  ;;  %v6838_v32 = vshrl.u32 %v6837_v26, 4  ;;  %v6858_v55 = vsel %vm6857_vm4, 1, %v16952_v19  ;;  %v6876_v60 = vshrl.u32 %v16011_v5, 16 }
 0x675   : > { %9288 = vmatmul.bf16.gmra.mxu1 %v15745_v18  ;;  %v6096_v46 = vmax.f32 %v6060_v31, 0.0  ;;  %vm7393_vm0 = vcmp.lt.s32.totalorder %v7357_v39, 16  ;;  %v6860_v24 = vadd.s32 %v6858_v55, %v6852_v30  ;;  %vm6861_vm5 = vc.u32 %v6859_v34, %v6855_v38  ;;  %v5857_v27 = vpop.f32.mrf.mxu3  ;;  %v17132_v39 = vld [vmem:[#allocation22_spill] sm:$0xff] }
 0x676   : > { %v6839_v3 = vmul.u32 18, %v6838_v32  ;;  %v6862_v45 = vsel %vm6861_vm5, 1, %v16952_v19  ;;  %v6878_v21 = vmul.u32 14564, %v6875_v52  ;;  %v6879_v47 = vmul.u32 58254, %v6875_v52  ;;  %v7725_v61 = vpop.f32.mrf.mxu0 }
 0x677   : > { %v7429_v14 = vsel %vm7393_vm0, %v6096_v46, 0.0  ;;  %v5858_v43 = vadd.f32 %v5857_v27, %v5680_v16  ;;  %v6864_v51 = vadd.s32 %v6862_v45, %v6860_v24  ;;  %v16036_v26 = vmul.u32 14564, %v6876_v60  ;;  %v8038_v52 = vpop.f32.mrf.mxu1 }
 0x678   : > { %7507 = vst [vmem:[#allocation3 + $0xc3] sm:$0xff] %v7429_v14  ;;  %v6840_v30 = vsub.s32 %v15925_v25, %v6839_v3  ;;  %v16041_v38 = vadd.f32 %v8036_v44, %v7725_v61  ;;  %v6882_v31 = vshll.u32 %v6879_v47, 16  ;;  %v6881_v46 = vmul.u32 58254, %v6876_v60 }
 0x679   : > { %v5949_v32 = vadd.f32 %v5858_v43, %v17132_v39  ;;  %v6865_v55 = vadd.s32 %v6864_v51, %v6854_v62  ;;  %v6883_v16 = vshrl.u32 %v6879_v47, 16  ;;  %v17133_v27 = vpack.c.bf16 %v15847_v7, %v15859_v54 }
 0x67a   : > { %vm7214_vm6 = vcmp.ne.s32.totalorder %v6840_v30, 0  ;;  %vm7250_vm7 = vcmp.lt.s32.totalorder %v6840_v30, 0  ;;  %v7322_v24 = vadd.s32 18, %v6840_v30  ;;  %v6884_v25 = vshll.u32 %v16036_v26, 16 }
 0x67b   : > { %8315 = vmatmul.bf16.gmra.mxu2 %v17133_v27  ;;  %v6061_v44 = vadd.f32 %v16026_v29, %v5949_v32  ;;  %vm7286_vm8 = vmand %vm7250_vm7, %vm7214_vm6  ;;  %v17134_v3 = vpack.c.bf16 %v15883_v9, %v15901_v58  ;;  %v6866_v62 = vadd.s32 %v6865_v55, %v6856_v37  ;;  %vm6886_vm9 = vc.u32 %v6878_v21, %v6882_v31  ;;  %v5683_v14 = vpop.f32.mrf.mxu2 }
 0x67c   : > { %8962 = vmatmul.bf16.gmra.mxu0 %v15155_v2  ;;  %v6888_v60 = vadd.s32 %v6882_v31, %v6878_v21  ;;  %v7358_v45 = vsel %vm7286_vm8, %v7322_v24, %v6840_v30  ;;  %v6885_v47 = vshrl.u32 %v16036_v26, 16  ;;  %v6887_v7 = vsel %vm6886_vm9, 1, %v16952_v19  ;;  %v9165_v21 = vld [vmem:[#allocation3 + $0x5a] sm:$0xff] }
 0x67d   : > { %8641 = vmatmul.bf16.gmra.mxu3 %v17134_v3  ;;  %v16058_v54 = vadd.s32 208, %v14437_v40  ;;  %v6097_v2 = vmax.f32 %v6061_v44, 0.0  ;;  %vm7394_vm10 = vcmp.lt.s32.totalorder %v7358_v45, 16  ;;  %v6867_v43 = vshrl.u32 %v6866_v62, 4  ;;  %v5860_v51 = vpop.f32.mrf.mxu3  ;;  %v17135_v44 = vld [vmem:[#allocation23_spill] sm:$0xff] }
 0x67e   : > { %v6889_v61 = vadd.s32 %v6887_v7, %v6881_v46  ;;  %vm6890_vm11 = vc.u32 %v6888_v60, %v6884_v25  ;;  %v16063_v37 = vadd.s32 216, %v14437_v40  ;;  %v5861_v30 = vadd.f32 %v5860_v51, %v5683_v14  ;;  %v7727_v39 = vpop.f32.mrf.mxu0  ;;  %v9164_v25 = vld [vmem:[#allocation3 + $0x52] sm:$0xff] }
 0x67f   : > { %v6904_v9 = vand.u32 65535, %v16058_v54  ;;  %v6905_v58 = vshrl.u32 %v16058_v54, 16  ;;  %v7430_v26 = vsel %vm7394_vm10, %v6097_v2, 0.0  ;;  %v6868_v31 = vmul.u32 18, %v6867_v43  ;;  %v8041_v60 = vpop.f32.mrf.mxu1 }
 0x680   : > { %v6891_v32 = vsel %vm6890_vm11, 1, %v16952_v19  ;;  %7508 = vst [vmem:[#allocation3 + $0xcb] sm:$0xff] %v7430_v26  ;;  %v16066_v55 = vadd.f32 %v8038_v52, %v7727_v39  ;;  %v5950_v3 = vadd.f32 %v5861_v30, %v17135_v44  ;;  %v16070_v7 = vpack.c.bf16 %v9165_v21, %v9164_v25 }
 0x681   : > { %v6893_v46 = vadd.s32 %v6891_v32, %v6889_v61  ;;  %v6907_v24 = vmul.u32 14564, %v6904_v9  ;;  %v6908_v27 = vmul.u32 58254, %v6904_v9  ;;  %v6869_v62 = vsub.s32 %v15995_v63, %v6868_v31 }
 0x682   : > { %v6909_v45 = vmul.u32 14564, %v6905_v58  ;;  %v6910_v14 = vmul.u32 58254, %v6905_v58  ;;  %v6062_v26 = vadd.f32 %v16026_v29, %v5950_v3  ;;  %v6933_v63 = vand.u32 65535, %v16063_v37 }
 0x683   : > { %v6894_v2 = vadd.s32 %v6893_v46, %v6883_v16  ;;  %v6911_v43 = vshll.u32 %v6908_v27, 16  ;;  %v6912_v51 = vshrl.u32 %v6908_v27, 16  ;;  %vm7215_vm12 = vcmp.ne.s32.totalorder %v6869_v62, 0  ;;  %v5685_v31 = vpop.f32.mrf.mxu2 }
 0x684   : > { %vm7251_vm13 = vcmp.lt.s32.totalorder %v6869_v62, 0  ;;  %v7323_v52 = vadd.s32 18, %v6869_v62  ;;  %v6913_v9 = vshll.u32 %v6909_v45, 16  ;;  %v6098_v30 = vmax.f32 %v6062_v26, 0.0 }
 0x685   : > { %vm7287_vm14 = vmand %vm7251_vm13, %vm7215_vm12  ;;  %9293 = vmatmul.bf16.gmra.mxu1 %v15913_v22  ;;  %v6895_v61 = vadd.s32 %v6894_v2, %v6885_v47  ;;  %vm6915_vm15 = vc.u32 %v6907_v24, %v6911_v43  ;;  %v6917_v58 = vadd.s32 %v6911_v43, %v6907_v24  ;;  %v5862_v39 = vpop.f32.mrf.mxu3  ;;  %v6934_v27 = vshrl.u32 %v16063_v37, 16 }
 0x686   : > { %v7359_v21 = vsel %vm7287_vm14, %v7323_v52, %v6869_v62  ;;  %v6916_v16 = vsel %vm6915_vm15, 1, %v16952_v19  ;;  %v5863_v44 = vadd.f32 %v5862_v39, %v5685_v31  ;;  %v6936_v47 = vmul.u32 14564, %v6933_v63  ;;  %v17136_v52 = vld [vmem:[#allocation24_spill] sm:$0xff] }
 0x687   : > { %vm7395_vm1 = vcmp.lt.s32.totalorder %v7359_v21, 16  ;;  %v6896_v32 = vshrl.u32 %v6895_v61, 4  ;;  %v6918_v46 = vadd.s32 %v6916_v16, %v6910_v14  ;;  %v7730_v3 = vpop.f32.mrf.mxu0  ;;  %vm6919_vm2 = vc.u32 %v6917_v58, %v6913_v9  ;;  %v8043_v43 = vpop.f32.mrf.mxu1 }
 0x688   : > { %v7431_v25 = vsel %vm7395_vm1, %v6098_v30, 0.0  ;;  %v16077_v34 = vadd.f32 %v8041_v60, %v7730_v3  ;;  %v6920_v62 = vsel %vm6919_vm2, 1, %v16952_v19  ;;  %v6937_v26 = vmul.u32 58254, %v6933_v63 }
 0x689   : > { %7509 = vst [vmem:[#allocation3 + $0xd3] sm:$0xff] %v7431_v25  ;;  %v6897_v2 = vmul.u32 18, %v6896_v32  ;;  %v5951_v24 = vadd.f32 %v5863_v44, %v17136_v52  ;;  %v6914_v21 = vshrl.u32 %v6909_v45, 16  ;;  %v6922_v61 = vadd.s32 %v6920_v62, %v6918_v46 }
 0x68a   : > { %v16081_v14 = vmul.u32 14564, %v6934_v27  ;;  %v17137_v9 = vpack.c.bf16 %v15890_v57, %v15915_v48  ;;  %v6939_v60 = vmul.u32 58254, %v6934_v27  ;;  %v6940_v31 = vshll.u32 %v6937_v26, 16 }
 0x68b   : > { %v6898_v30 = vsub.s32 %v16011_v5, %v6897_v2  ;;  %v16089_v16 = vadd.s32 224, %v14437_v40  ;;  %v6063_v63 = vadd.f32 %v16026_v29, %v5951_v24  ;;  %v17138_v45 = vpack.c.bf16 %v15927_v33, %v15941_v42  ;;  %v5688_v32 = vpop.f32.mrf.mxu2 }
 0x68c   : > { %8320 = vmatmul.bf16.gmra.mxu2 %v17137_v9  ;;  %8967 = vmatmul.bf16.gmra.mxu0 %v15745_v18  ;;  %v6923_v58 = vadd.s32 %v6922_v61, %v6912_v51  ;;  %v6941_v39 = vshrl.u32 %v6937_v26, 16  ;;  %v6942_v5 = vshll.u32 %v16081_v14, 16  ;;  %vm6944_vm0 = vc.u32 %v6936_v47, %v6940_v31  ;;  %v12790_v18 = vld [vmem:[%s16887_s6 + $0x128] sm:$0xff]  ;;  %v17139_v61 = vld [vmem:[#allocation25_spill] sm:$0xff] }
 0x68d   : > { %8646 = vmatmul.bf16.gmra.mxu3 %v17138_v45  ;;  %vm7216_vm3 = vcmp.ne.s32.totalorder %v6898_v30, 0  ;;  %vm7252_vm4 = vcmp.lt.s32.totalorder %v6898_v30, 0  ;;  %v7324_v57 = vadd.s32 18, %v6898_v30  ;;  %v6099_v48 = vmax.f32 %v6063_v63, 0.0  ;;  %9603 = vmatpush.bf16.msra.mxu2 %v12790_v18 }
 0x68e   : > { %vm7288_vm5 = vmand %vm7252_vm4, %vm7216_vm3  ;;  %v6924_v46 = vadd.s32 %v6923_v58, %v6914_v21  ;;  %v6945_v27 = vsel %vm6944_vm0, 1, %v16952_v19  ;;  %v6946_v33 = vadd.s32 %v6940_v31, %v6936_v47  ;;  %v5865_v51 = vpop.f32.mrf.mxu3  ;;  %v6962_v44 = vand.u32 65535, %v16089_v16 }
 0x68f   : > { %v7360_v42 = vsel %vm7288_vm5, %v7324_v57, %v6898_v30  ;;  %v6947_v25 = vadd.s32 %v6945_v27, %v6939_v60  ;;  %v6963_v3 = vshrl.u32 %v16089_v16, 16  ;;  %v5866_v2 = vadd.f32 %v5865_v51, %v5688_v32  ;;  %v7732_v26 = vpop.f32.mrf.mxu0  ;;  %v8046_v60 = vpop.f32.mrf.mxu1 }
 0x690   : > { %vm7396_vm6 = vcmp.lt.s32.totalorder %v7360_v42, 16  ;;  %v6925_v62 = vshrl.u32 %v6924_v46, 4  ;;  %vm6948_vm7 = vc.u32 %v6946_v33, %v6942_v5  ;;  %v16102_v24 = vadd.f32 %v8043_v43, %v7732_v26 }
 0x691   : > { %v7432_v52 = vsel %vm7396_vm6, %v6099_v48, 0.0  ;;  %v6943_v21 = vshrl.u32 %v16081_v14, 16  ;;  %v6949_v47 = vsel %vm6948_vm7, 1, %v16952_v19  ;;  %v5952_v30 = vadd.f32 %v5866_v2, %v17139_v61 }
 0x692   : > { %7510 = vst [vmem:[#allocation3 + $0xdb] sm:$0xff] %v7432_v52  ;;  %v6926_v9 = vmul.u32 18, %v6925_v62  ;;  %v6951_v31 = vadd.s32 %v6949_v47, %v6947_v25  ;;  %v6966_v63 = vmul.u32 58254, %v6962_v44  ;;  %v6965_v45 = vmul.u32 14564, %v6962_v44 }
 0x693   : > { %v16107_v58 = vmul.u32 14564, %v6963_v3  ;;  %v6968_v57 = vmul.u32 58254, %v6963_v3  ;;  %v16110_v5 = vadd.s32 232, %v14437_v40  ;;  %v6064_v43 = vadd.f32 %v16026_v29, %v5952_v30  ;;  %v5690_v25 = vpop.f32.mrf.mxu2 }
 0x694   : > { %v6927_v14 = vsub.s32 %v16058_v54, %v6926_v9  ;;  %v6952_v18 = vadd.s32 %v6951_v31, %v6941_v39  ;;  %v6969_v48 = vshll.u32 %v6966_v63, 16  ;;  %v6970_v32 = vshrl.u32 %v6966_v63, 16  ;;  %v17140_v63 = vld [vmem:[#allocation26_spill] sm:$0xff] }
 0x695   : > { %9298 = vmatmul.bf16.gmra.mxu1 %v15983_v15  ;;  %v6971_v46 = vshll.u32 %v16107_v58, 16  ;;  %v6972_v27 = vshrl.u32 %v16107_v58, 16  ;;  %v6991_v33 = vand.u32 65535, %v16110_v5  ;;  %v6100_v42 = vmax.f32 %v6064_v43, 0.0 }
 0x696   : > { %vm7217_vm8 = vcmp.ne.s32.totalorder %v6927_v14, 0  ;;  %vm7253_vm9 = vcmp.lt.s32.totalorder %v6927_v14, 0  ;;  %v7325_v51 = vadd.s32 18, %v6927_v14  ;;  %v5867_v44 = vpop.f32.mrf.mxu3  ;;  %v6953_v3 = vadd.s32 %v6952_v18, %v6943_v21 }
 0x697   : > { %vm7289_vm10 = vmand %vm7253_vm9, %vm7217_vm8  ;;  %vm6973_vm11 = vc.u32 %v6965_v45, %v6969_v48  ;;  %v6975_v54 = vadd.s32 %v6969_v48, %v6965_v45  ;;  %v6992_v39 = vshrl.u32 %v16110_v5, 16  ;;  %v5868_v62 = vadd.f32 %v5867_v44, %v5690_v25  ;;  %v7735_v26 = vpop.f32.mrf.mxu0  ;;  %v8048_v43 = vpop.f32.mrf.mxu1 }
 0x698   : > { %v7361_v2 = vsel %vm7289_vm10, %v7325_v51, %v6927_v14  ;;  %v6974_v52 = vsel %vm6973_vm11, 1, %v16952_v19  ;;  %v6994_v47 = vmul.u32 14564, %v6991_v33  ;;  %v6954_v61 = vshrl.u32 %v6953_v3, 4 }
 0x699   : > { %vm7397_vm12 = vcmp.lt.s32.totalorder %v7361_v2, 16  ;;  %v16120_v30 = vadd.f32 %v8046_v60, %v7735_v26  ;;  %v6976_v9 = vadd.s32 %v6974_v52, %v6968_v57  ;;  %v5953_v58 = vadd.f32 %v5868_v62, %v17140_v63  ;;  %v17143_v63 = vld [vmem:[#allocation27_spill] sm:$0xff] }
 0x69a   : > { %v7433_v31 = vsel %vm7397_vm12, %v6100_v42, 0.0  ;;  %vm6977_vm13 = vc.u32 %v6975_v54, %v6971_v46  ;;  %v6995_v21 = vmul.u32 58254, %v6991_v33  ;;  %v6955_v45 = vmul.u32 18, %v6954_v61 }
 0x69b   : > { %7511 = vst [vmem:[#allocation3 + $0xe3] sm:$0xff] %v7433_v31  ;;  %v17141_v14 = vpack.c.bf16 %v15963_v56, %v15980_v4  ;;  %v6978_v18 = vsel %vm6977_vm13, 1, %v16952_v19  ;;  %v6996_v48 = vmul.u32 14564, %v6992_v39  ;;  %v6997_v60 = vmul.u32 58254, %v6992_v39  ;;  %v5693_v3 = vpop.f32.mrf.mxu2 }
 0x69c   : > { %8972 = vmatmul.bf16.gmra.mxu0 %v15913_v22  ;;  %v6065_v57 = vadd.f32 %v16026_v29, %v5953_v58  ;;  %v17142_v42 = vpack.c.bf16 %v16033_v13, %v16038_v20  ;;  %v6980_v46 = vadd.s32 %v6978_v18, %v6976_v9  ;;  %v6998_v33 = vshll.u32 %v6995_v21, 16  ;;  %v8515_v18 = vld [vmem:[#allocation3 + $0x59] sm:$0xff] }
 0x69d   : > { %8325 = vmatmul.bf16.gmra.mxu2 %v17141_v14  ;;  %v6999_v51 = vshrl.u32 %v6995_v21, 16  ;;  %v6956_v25 = vsub.s32 %v16063_v37, %v6955_v45  ;;  %v7000_v44 = vshll.u32 %v6996_v48, 16  ;;  %v7001_v56 = vshrl.u32 %v6996_v48, 16 }
 0x69e   : > { %8651 = vmatmul.bf16.gmra.mxu3 %v17142_v42  ;;  %v16134_v4 = vadd.s32 240, %v14437_v40  ;;  %v6101_v22 = vmax.f32 %v6065_v57, 0.0  ;;  %v6981_v54 = vadd.s32 %v6980_v46, %v6970_v32  ;;  %vm7002_vm14 = vc.u32 %v6994_v47, %v6998_v33  ;;  %v8190_v32 = vld [vmem:[#allocation3 + $0x58] sm:$0xff] }
 0x69f   : > { %v7004_v39 = vadd.s32 %v6998_v33, %v6994_v47  ;;  %vm7218_vm15 = vcmp.ne.s32.totalorder %v6956_v25, 0  ;;  %vm7254_vm1 = vcmp.lt.s32.totalorder %v6956_v25, 0  ;;  %v7326_v2 = vadd.s32 18, %v6956_v25  ;;  %v5870_v20 = vpop.f32.mrf.mxu3  ;;  %v7737_v37 = vpop.f32.mrf.mxu0 }
 0x6a0   : > { %v7003_v13 = vsel %vm7002_vm14, 1, %v16952_v19  ;;  %vm7290_vm2 = vmand %vm7254_vm1, %vm7218_vm15  ;;  %v5871_v62 = vadd.f32 %v5870_v20, %v5693_v3  ;;  %v6982_v26 = vadd.s32 %v6981_v54, %v6972_v27  ;;  %v16137_v9 = vadd.f32 %v8048_v43, %v7737_v37  ;;  %v8051_v45 = vpop.f32.mrf.mxu1  ;;  %v8189_v27 = vld [vmem:[#allocation3 + $0x50] sm:$0xff] }
 0x6a1   : > { %v7005_v52 = vadd.s32 %v7003_v13, %v6997_v60  ;;  %vm7006_vm3 = vc.u32 %v7004_v39, %v7000_v44  ;;  %v7362_v61 = vsel %vm7290_vm2, %v7326_v2, %v6956_v25  ;;  %v7020_v47 = vand.u32 65535, %v16134_v4  ;;  %v8514_v44 = vld [vmem:[#allocation3 + $0x51] sm:$0xff] }
 0x6a2   : > { %v7007_v31 = vsel %vm7006_vm3, 1, %v16952_v19  ;;  %vm7398_vm4 = vcmp.lt.s32.totalorder %v7362_v61, 16  ;;  %v5954_v58 = vadd.f32 %v5871_v62, %v17143_v63  ;;  %v6983_v21 = vshrl.u32 %v6982_v26, 4 }
 0x6a3   : > { %v7009_v14 = vadd.s32 %v7007_v31, %v7005_v52  ;;  %v7434_v48 = vsel %vm7398_vm4, %v6101_v22, 0.0  ;;  %v7021_v60 = vshrl.u32 %v16134_v4, 16  ;;  %v7023_v57 = vmul.u32 14564, %v7020_v47  ;;  %v5695_v13 = vpop.f32.mrf.mxu2 }
 0x6a4   : > { %v7024_v42 = vmul.u32 58254, %v7020_v47  ;;  %7512 = vst [vmem:[#allocation3 + $0xeb] sm:$0xff] %v7434_v48  ;;  %v6066_v43 = vadd.f32 %v16026_v29, %v5954_v58  ;;  %v6984_v46 = vmul.u32 18, %v6983_v21  ;;  %v8220_v25 = vpack.c.bf16 %v8190_v32, %v8189_v27  ;;  %v17144_v21 = vld [vmem:[#allocation28_spill] sm:$0xff] }
 0x6a5   : > { %v7010_v33 = vadd.s32 %v7009_v14, %v6999_v51  ;;  %9303 = vmatmul.bf16.gmra.mxu1 %v16070_v7  ;;  %v8545_v3 = vpack.c.bf16 %v8515_v18, %v8514_v44  ;;  %v7025_v54 = vmul.u32 14564, %v7021_v60  ;;  %v7026_v39 = vmul.u32 58254, %v7021_v60 }
 0x6a6   : > { %v7027_v2 = vshll.u32 %v7024_v42, 16  ;;  %v6102_v20 = vmax.f32 %v6066_v43, 0.0  ;;  %v6985_v22 = vsub.s32 %v16089_v16, %v6984_v46  ;;  %v7028_v26 = vshrl.u32 %v7024_v42, 16 }
 0x6a7   : > { %v7011_v62 = vadd.s32 %v7010_v33, %v7001_v56  ;;  %v5872_v37 = vpop.f32.mrf.mxu3  ;;  %v7029_v52 = vshll.u32 %v7025_v54, 16  ;;  %v16147_v51 = vadd.s32 248, %v14437_v40  ;;  %v7740_v47 = vpop.f32.mrf.mxu0  ;;  %v7030_v46 = vshrl.u32 %v7025_v54, 16 }
 0x6a8   : > { %vm7031_vm0 = vc.u32 %v7023_v57, %v7027_v2  ;;  %v7033_v61 = vadd.s32 %v7027_v2, %v7023_v57  ;;  %vm7219_vm5 = vcmp.ne.s32.totalorder %v6985_v22, 0  ;;  %vm7255_vm6 = vcmp.lt.s32.totalorder %v6985_v22, 0  ;;  %v8053_v18 = vpop.f32.mrf.mxu1 }
 0x6a9   : > { %v7327_v31 = vadd.s32 18, %v6985_v22  ;;  %v5873_v32 = vadd.f32 %v5872_v37, %v5695_v13  ;;  %vm7291_vm7 = vmand %vm7255_vm6, %vm7219_vm5  ;;  %v7012_v63 = vshrl.u32 %v7011_v62, 4  ;;  %v16149_v58 = vadd.f32 %v8051_v45, %v7740_v47 }
 0x6aa   : > { %v7032_v16 = vsel %vm7031_vm0, 1, %v16952_v19  ;;  %vm7035_vm8 = vc.u32 %v7033_v61, %v7029_v52  ;;  %v7049_v57 = vand.u32 65535, %v16147_v51  ;;  %v7050_v45 = vshrl.u32 %v16147_v51, 16  ;;  %v9166_v52 = vld [vmem:[#allocation3 + $0x62] sm:$0xff] }
 0x6ab   : > { %v7363_v56 = vsel %vm7291_vm7, %v7327_v31, %v6985_v22  ;;  %v5955_v14 = vadd.f32 %v5873_v32, %v17144_v21  ;;  %v7034_v48 = vadd.s32 %v7032_v16, %v7026_v39  ;;  %v7036_v27 = vsel %vm7035_vm8, 1, %v16952_v19  ;;  %v9167_v39 = vld [vmem:[#allocation3 + $0x6a] sm:$0xff]  ;;  %v5698_v62 = vpop.f32.mrf.mxu2 }
 0x6ac   : > { %vm7399_vm9 = vcmp.lt.s32.totalorder %v7363_v56, 16  ;;  %v7013_v60 = vmul.u32 18, %v7012_v63  ;;  %8977 = vmatmul.bf16.gmra.mxu0 %v15983_v15  ;;  %v7052_v2 = vmul.u32 14564, %v7049_v57  ;;  %v16159_v22 = vmul.u32 58254, %v7049_v57  ;;  %v16163_v15 = vld [vmem:[#allocation3 + $0x68] sm:$0xff] }
 0x6ad   : > { %8330 = vmatmul.bf16.gmra.mxu2 %v8220_v25  ;;  %v7435_v42 = vsel %vm7399_vm9, %v6102_v20, 0.0  ;;  %v6067_v43 = vadd.f32 %v16026_v29, %v5955_v14  ;;  %v7038_v33 = vadd.s32 %v7036_v27, %v7034_v48  ;;  %v16161_v25 = vmul.u32 14564, %v7050_v45  ;;  %v8517_v14 = vld [vmem:[#allocation3 + $0x69] sm:$0xff] }
 0x6ae   : > { %8656 = vmatmul.bf16.gmra.mxu3 %v8545_v3  ;;  %7513 = vst [vmem:[#allocation3 + $0xf3] sm:$0xff] %v7435_v42  ;;  %v7014_v44 = vsub.s32 %v16110_v5, %v7013_v60  ;;  %v7055_v20 = vmul.u32 58254, %v7050_v45  ;;  %v7056_v61 = vshll.u32 %v16159_v22, 16  ;;  %v8191_v5 = vld [vmem:[#allocation3 + $0x60] sm:$0xff]  ;;  %v16166_v63 = vpack.c.bf16 %v9167_v39, %v9166_v52  ;;  %v17145_v48 = vld [vmem:[#allocation29_spill] sm:$0xff] }
 0x6af   : > { %v6103_v13 = vmax.f32 %v6067_v43, 0.0  ;;  %v7039_v37 = vadd.s32 %v7038_v33, %v7028_v26  ;;  %v5875_v54 = vpop.f32.mrf.mxu3  ;;  %v7742_v47 = vpop.f32.mrf.mxu0  ;;  %v8221_v16 = vpack.c.bf16 %v16163_v15, %v8191_v5  ;;  %v7058_v26 = vshll.u32 %v16161_v25, 16  ;;  %v8516_v33 = vld [vmem:[#allocation3 + $0x61] sm:$0xff] }
 0x6b0   : > { %vm7220_vm10 = vcmp.ne.s32.totalorder %v7014_v44, 0  ;;  %vm7256_vm11 = vcmp.lt.s32.totalorder %v7014_v44, 0  ;;  %v7328_v3 = vadd.s32 18, %v7014_v44  ;;  %v5876_v31 = vadd.f32 %v5875_v54, %v5698_v62 }
 0x6b1   : > { %vm7292_vm12 = vmand %vm7256_vm11, %vm7220_vm10  ;;  %v7040_v32 = vadd.s32 %v7039_v37, %v7030_v46  ;;  %v16169_v21 = vadd.f32 %v8053_v18, %v7742_v47  ;;  %vm7060_vm13 = vc.u32 %v7052_v2, %v7056_v61  ;;  %v7062_v43 = vadd.s32 %v7056_v61, %v7052_v2 }
 0x6b2   : > { %v7364_v56 = vsel %vm7292_vm12, %v7328_v3, %v7014_v44  ;;  %v5956_v27 = vadd.f32 %v5876_v31, %v17145_v48  ;;  %v8056_v57 = vpop.f32.mrf.mxu1  ;;  %v7061_v45 = vsel %vm7060_vm13, 1, %v16952_v19  ;;  %v16175_v39 = vadd.s32 256, %v14437_v40 }
 0x6b3   : > { %vm7400_vm14 = vcmp.lt.s32.totalorder %v7364_v56, 16  ;;  %v7041_v60 = vshrl.u32 %v7040_v32, 4  ;;  %v7063_v46 = vadd.s32 %v7061_v45, %v7055_v20  ;;  %v7057_v15 = vshrl.u32 %v16159_v22, 16  ;;  %v5700_v54 = vpop.f32.mrf.mxu2  ;;  %v9169_v45 = vld [vmem:[#allocation3 + $0x7a] sm:$0xff] }
 0x6b4   : > { %v7436_v42 = vsel %vm7400_vm14, %v6103_v13, 0.0  ;;  %v6068_v18 = vadd.f32 %v16026_v29, %v5956_v27  ;;  %v8546_v62 = vpack.c.bf16 %v8517_v14, %v8516_v33  ;;  %v7059_v37 = vshrl.u32 %v16161_v25, 16 }
 0x6b5   : > { %7514 = vst [vmem:[#allocation3 + $0xfb] sm:$0xff] %v7436_v42  ;;  %v7042_v44 = vmul.u32 18, %v7041_v60  ;;  %9308 = vmatmul.bf16.gmra.mxu1 %v16166_v63  ;;  %vm7064_vm15 = vc.u32 %v7062_v43, %v7058_v26  ;;  %v7078_v13 = vand.u32 65535, %v16175_v39  ;;  %v7079_v2 = vshrl.u32 %v16175_v39, 16  ;;  %v17146_v43 = vld [vmem:[#allocation30_spill] sm:$0xff] }
 0x6b6   : > { %v6104_v20 = vmax.f32 %v6068_v18, 0.0  ;;  %v7065_v52 = vsel %vm7064_vm15, 1, %v16952_v19  ;;  %v16186_v61 = vadd.s32 264, %v14437_v40 }
 0x6b7   : > { %v7043_v3 = vsub.s32 %v16134_v4, %v7042_v44  ;;  %v5877_v22 = vpop.f32.mrf.mxu3  ;;  %v7067_v5 = vadd.s32 %v7065_v52, %v7063_v46  ;;  %v7081_v31 = vmul.u32 14564, %v7078_v13  ;;  %v7082_v32 = vmul.u32 58254, %v7078_v13  ;;  %v7745_v26 = vpop.f32.mrf.mxu0  ;;  %v12789_v4 = vld [vmem:[%s16887_s6 + $0x120] sm:$0xff] }
 0x6b8   : > { %v16188_v47 = vmul.u32 14564, %v7079_v2  ;;  %v5878_v56 = vadd.f32 %v5877_v22, %v5700_v54  ;;  %v16193_v48 = vadd.f32 %v8056_v57, %v7745_v26  ;;  %v7084_v27 = vmul.u32 58254, %v7079_v2  ;;  %9604 = vmatpush.bf16.msra.mxu2 %v12789_v4  ;;  %v9168_v57 = vld [vmem:[#allocation3 + $0x72] sm:$0xff] }
 0x6b9   : > { %vm7221_vm1 = vcmp.ne.s32.totalorder %v7043_v3, 0  ;;  %vm7257_vm2 = vcmp.lt.s32.totalorder %v7043_v3, 0  ;;  %v7329_v25 = vadd.s32 18, %v7043_v3  ;;  %v7068_v14 = vadd.s32 %v7067_v5, %v7057_v15 }
 0x6ba   : > { %vm7293_vm3 = vmand %vm7257_vm2, %vm7221_vm1  ;;  %v7085_v60 = vshll.u32 %v7082_v32, 16  ;;  %v5957_v46 = vadd.f32 %v5878_v56, %v17146_v43  ;;  %v8058_v33 = vpop.f32.mrf.mxu1  ;;  %v7087_v18 = vshll.u32 %v16188_v47, 16  ;;  %v7107_v44 = vand.u32 65535, %v16186_v61 }
 0x6bb   : > { %v7365_v42 = vsel %vm7293_vm3, %v7329_v25, %v7043_v3  ;;  %v7069_v13 = vadd.s32 %v7068_v14, %v7059_v37  ;;  %v16200_v54 = vpack.c.bf16 %v9169_v45, %v9168_v57  ;;  %v7108_v25 = vshrl.u32 %v16186_v61, 16  ;;  %v5703_v37 = vpop.f32.mrf.mxu2 }
 0x6bc   : > { %vm7401_vm4 = vcmp.lt.s32.totalorder %v7365_v42, 16  ;;  %8982 = vmatmul.bf16.gmra.mxu0 %v16070_v7  ;;  %vm7089_vm0 = vc.u32 %v7081_v31, %v7085_v60  ;;  %v7091_v3 = vadd.s32 %v7085_v60, %v7081_v31  ;;  %v6069_v52 = vadd.f32 %v16026_v29, %v5957_v46 }
 0x6bd   : > { %8335 = vmatmul.bf16.gmra.mxu2 %v8221_v16  ;;  %v7437_v15 = vsel %vm7401_vm4, %v6104_v20, 0.0  ;;  %v7090_v2 = vsel %vm7089_vm0, 1, %v16952_v19  ;;  %v7070_v22 = vshrl.u32 %v7069_v13, 4  ;;  %v7086_v16 = vshrl.u32 %v7082_v32, 16 }
 0x6be   : > { %8661 = vmatmul.bf16.gmra.mxu3 %v8546_v62  ;;  %7515 = vst [vmem:[#allocation3 + $0x103] sm:$0xff] %v7437_v15  ;;  %v7092_v5 = vadd.s32 %v7090_v2, %v7084_v27  ;;  %vm7093_vm5 = vc.u32 %v7091_v3, %v7087_v18  ;;  %v7110_v7 = vmul.u32 14564, %v7107_v44  ;;  %v7111_v56 = vmul.u32 58254, %v7107_v44  ;;  %v17147_v18 = vld [vmem:[#allocation41_spill] sm:$0xff]  ;;  %v8194_v2 = vld [vmem:[#allocation3 + $0x78] sm:$0xff] }
 0x6bf   : > { %v7071_v26 = vmul.u32 18, %v7070_v22  ;;  %v5880_v20 = vpop.f32.mrf.mxu3  ;;  %v7088_v62 = vshrl.u32 %v16188_v47, 16  ;;  %v7094_v31 = vsel %vm7093_vm5, 1, %v16952_v19  ;;  %v7112_v4 = vmul.u32 14564, %v7108_v25  ;;  %v7747_v45 = vpop.f32.mrf.mxu0 }
 0x6c0   : > { %v5881_v14 = vadd.f32 %v5880_v20, %v5703_v37  ;;  %v7096_v60 = vadd.s32 %v7094_v31, %v7092_v5  ;;  %v7113_v42 = vmul.u32 58254, %v7108_v25  ;;  %v7114_v43 = vshll.u32 %v7111_v56, 16 }
 0x6c1   : > { %v6105_v27 = vmax.f32 %v6069_v52, 0.0  ;;  %v7072_v46 = vsub.s32 %v16147_v51, %v7071_v26  ;;  %v16207_v13 = vadd.f32 %v8058_v33, %v7747_v45  ;;  %v7116_v32 = vshll.u32 %v7112_v4, 16  ;;  %v8193_v51 = vld [vmem:[#allocation3 + $0x70] sm:$0xff]  ;;  %v8519_v45 = vld [vmem:[#allocation3 + $0x79] sm:$0xff] }
 0x6c2   : > { %v5958_v44 = vadd.f32 %v5881_v14, %v17147_v18  ;;  %v7097_v57 = vadd.s32 %v7096_v60, %v7086_v16  ;;  %v8061_v15 = vpop.f32.mrf.mxu1  ;;  %vm7118_vm6 = vc.u32 %v7110_v7, %v7114_v43  ;;  %v7120_v47 = vadd.s32 %v7114_v43, %v7110_v7 }
 0x6c3   : > { %vm7222_vm7 = vcmp.ne.s32.totalorder %v7072_v46, 0  ;;  %vm7258_vm8 = vcmp.lt.s32.totalorder %v7072_v46, 0  ;;  %v7330_v3 = vadd.s32 18, %v7072_v46  ;;  %v7119_v22 = vsel %vm7118_vm6, 1, %v16952_v19  ;;  %v5705_v20 = vpop.f32.mrf.mxu2 }
 0x6c4   : > { %vm7294_vm9 = vmand %vm7258_vm8, %vm7222_vm7  ;;  %v7098_v5 = vadd.s32 %v7097_v57, %v7088_v62  ;;  %v7115_v52 = vshrl.u32 %v7111_v56, 16  ;;  %v7121_v25 = vadd.s32 %v7119_v22, %v7113_v42  ;;  %vm7122_vm10 = vc.u32 %v7120_v47, %v7116_v32 }
 0x6c5   : > { %v7366_v33 = vsel %vm7294_vm9, %v7330_v3, %v7072_v46  ;;  %9313 = vmatmul.bf16.gmra.mxu1 %v16200_v54  ;;  %v7123_v37 = vsel %vm7122_vm10, 1, %v16952_v19  ;;  %v8222_v16 = vpack.c.bf16 %v8194_v2, %v8193_v51  ;;  %v16214_v7 = vadd.s32 272, %v14437_v40 }
 0x6c6   : > { %vm7402_vm11 = vcmp.lt.s32.totalorder %v7366_v33, 16  ;;  %v7099_v26 = vshrl.u32 %v7098_v5, 4  ;;  %v7117_v31 = vshrl.u32 %v7112_v4, 16  ;;  %v7125_v14 = vadd.s32 %v7123_v37, %v7121_v25  ;;  %v8518_v4 = vld [vmem:[#allocation3 + $0x71] sm:$0xff] }
 0x6c7   : > { %v7438_v60 = vsel %vm7402_vm11, %v6105_v27, 0.0  ;;  %v6070_v56 = vadd.f32 %v16026_v29, %v5958_v44  ;;  %v5882_v62 = vpop.f32.mrf.mxu3  ;;  %v7136_v42 = vand.u32 65535, %v16214_v7  ;;  %v7137_v43 = vshrl.u32 %v16214_v7, 16  ;;  %v17148_v5 = vld [vmem:[#allocation49_spill] sm:$0xff] }
 0x6c8   : > { %7516 = vst [vmem:[#allocation3 + $0x10b] sm:$0xff] %v7438_v60  ;;  %v7100_v46 = vmul.u32 18, %v7099_v26  ;;  %v5883_v32 = vadd.f32 %v5882_v62, %v5705_v20  ;;  %v7126_v18 = vadd.s32 %v7125_v14, %v7115_v52  ;;  %v16220_v47 = vadd.s32 280, %v14437_v40 }
 0x6c9   : > { %v7750_v57 = vpop.f32.mrf.mxu0  ;;  %v7139_v27 = vmul.u32 14564, %v7136_v42  ;;  %v7140_v3 = vmul.u32 58254, %v7136_v42  ;;  %v7141_v44 = vmul.u32 14564, %v7137_v43  ;;  %v8547_v37 = vpack.c.bf16 %v8519_v45, %v8518_v4 }
 0x6ca   : > { %v16222_v2 = vadd.f32 %v8061_v15, %v7750_v57  ;;  %v7101_v22 = vsub.s32 %v16175_v39, %v7100_v46  ;;  %v5959_v25 = vadd.f32 %v5883_v32, %v17148_v5  ;;  %v7127_v51 = vadd.s32 %v7126_v18, %v7117_v31  ;;  %v8063_v33 = vpop.f32.mrf.mxu1  ;;  %v12788_v39 = vld [vmem:[%s16887_s6 + $0x118] sm:$0xff] }
 0x6cb   : > { %v6106_v26 = vmax.f32 %v6070_v56, 0.0  ;;  %v7142_v52 = vmul.u32 58254, %v7137_v43  ;;  %v7143_v40 = vshll.u32 %v7140_v3, 16  ;;  %v7145_v20 = vshll.u32 %v7141_v44, 16  ;;  %9605 = vmatpush.bf16.msra.mxu2 %v12788_v39  ;;  %v9171_v18 = vld [vmem:[#allocation3 + $0x8a] sm:$0xff] }
 0x6cc   : > { %8987 = vmatmul.bf16.gmra.mxu0 %v16166_v63  ;;  %vm7223_vm12 = vcmp.ne.s32.totalorder %v7101_v22, 0  ;;  %vm7259_vm13 = vcmp.lt.s32.totalorder %v7101_v22, 0  ;;  %v7331_v15 = vadd.s32 18, %v7101_v22  ;;  %v7144_v14 = vshrl.u32 %v7140_v3, 16 }
 0x6cd   : > { %8340 = vmatmul.bf16.gmra.mxu2 %v8222_v16  ;;  %vm7295_vm14 = vmand %vm7259_vm13, %vm7223_vm12  ;;  %v7128_v31 = vshrl.u32 %v7127_v51, 4  ;;  %vm7147_vm15 = vc.u32 %v7139_v27, %v7143_v40  ;;  %v7149_v60 = vadd.s32 %v7143_v40, %v7139_v27  ;;  %v7165_v16 = vand.u32 65535, %v16220_v47  ;;  %v9170_v51 = vld [vmem:[#allocation3 + $0x82] sm:$0xff] }
 0x6ce   : > { %8666 = vmatmul.bf16.gmra.mxu3 %v8547_v37  ;;  %v7367_v56 = vsel %vm7295_vm14, %v7331_v15, %v7101_v22  ;;  %v6071_v63 = vadd.f32 %v16026_v29, %v5959_v25  ;;  %v5708_v62 = vpop.f32.mrf.mxu2  ;;  %v7148_v45 = vsel %vm7147_vm15, 1, %v16952_v19  ;;  %v7166_v42 = vshrl.u32 %v16220_v47, 16 }
 0x6cf   : > { %vm7403_vm1 = vcmp.lt.s32.totalorder %v7367_v56, 16  ;;  %v7129_v43 = vmul.u32 18, %v7128_v31  ;;  %v7150_v32 = vadd.s32 %v7148_v45, %v7142_v52  ;;  %vm7151_vm2 = vc.u32 %v7149_v60, %v7145_v20 }
 0x6d0   : > { %v5885_v46 = vpop.f32.mrf.mxu3  ;;  %v7439_v57 = vsel %vm7403_vm1, %v6106_v26, 0.0  ;;  %v7146_v27 = vshrl.u32 %v7141_v44, 16  ;;  %v7152_v3 = vsel %vm7151_vm2, 1, %v16952_v19  ;;  %v7169_v37 = vmul.u32 58254, %v7165_v16 }
 0x6d1   : > { %v5886_v4 = vadd.f32 %v5885_v46, %v5708_v62  ;;  %v7752_v22 = vpop.f32.mrf.mxu0  ;;  %7517 = vst [vmem:[#allocation3 + $0x113] sm:$0xff] %v7439_v57  ;;  %v7130_v29 = vsub.s32 %v16186_v61, %v7129_v43  ;;  %v7154_v5 = vadd.s32 %v7152_v3, %v7150_v32  ;;  %v6107_v40 = vmax.f32 %v6071_v63, 0.0  ;;  %v8196_v63 = vld [vmem:[#allocation3 + $0x88] sm:$0xff] }
 0x6d2   : > { %v16236_v25 = vadd.f32 %v8063_v33, %v7752_v22  ;;  %v8066_v15 = vpop.f32.mrf.mxu1  ;;  %v16238_v39 = vpack.c.bf16 %v9171_v18, %v9170_v51  ;;  %v7168_v52 = vmul.u32 14564, %v7165_v16  ;;  %v7170_v20 = vmul.u32 14564, %v7166_v42  ;;  %v8195_v18 = vld [vmem:[#allocation3 + $0x80] sm:$0xff] }
 0x6d3   : > { %vm7224_vm3 = vcmp.ne.s32.totalorder %v7130_v29, 0  ;;  %vm7260_vm4 = vcmp.lt.s32.totalorder %v7130_v29, 0  ;;  %v7332_v44 = vadd.s32 18, %v7130_v29  ;;  %v7155_v26 = vadd.s32 %v7154_v5, %v7144_v14 }
 0x6d4   : > { %vm7296_vm0 = vmand %vm7260_vm4, %vm7224_vm3  ;;  %v7171_v31 = vmul.u32 58254, %v7166_v42  ;;  %v7172_v60 = vshll.u32 %v7169_v37, 16  ;;  %v7174_v56 = vshll.u32 %v7170_v20, 16  ;;  %v5960_v33 = vadd.f32 %v5886_v4, %v14746_v35  ;;  %v8521_v42 = vld [vmem:[#allocation3 + $0x89] sm:$0xff] }
 0x6d5   : > { %v7368_v61 = vsel %vm7296_vm0, %v7332_v44, %v7130_v29  ;;  %v7156_v62 = vadd.s32 %v7155_v26, %v7146_v27  ;;  %9318 = vmatmul.bf16.gmra.mxu1 %v16238_v39  ;;  %v7173_v57 = vshrl.u32 %v7169_v37, 16  ;;  %v8223_v4 = vpack.c.bf16 %v8196_v63, %v8195_v18  ;;  %v12854_v27 = vld [vmem:[%s16886_s5] ss:$0 sm:$0xff]  ;;  %v17149_v63 = vld [vmem:[#allocation50_spill] sm:$0xff] }
 0x6d6   : > { %vm7404_vm5 = vcmp.lt.s32.totalorder %v7368_v61, 16  ;;  %v5710_v45 = vpop.f32.mrf.mxu2  ;;  %vm7176_vm6 = vc.u32 %v7168_v52, %v7172_v60  ;;  %v7178_v16 = vadd.s32 %v7172_v60, %v7168_v52  ;;  %v6072_v22 = vadd.f32 %v12854_v27, %v5960_v33 }
 0x6d7   : > { %v7440_v43 = vsel %vm7404_vm5, %v6107_v40, 0.0  ;;  %v7157_v46 = vshrl.u32 %v7156_v62, 4  ;;  %v7177_v14 = vsel %vm7176_vm6, 1, %v16952_v19  ;;  %v8520_v40 = vld [vmem:[#allocation3 + $0x81] sm:$0xff]  ;;  %v7175_v44 = vshrl.u32 %v7170_v20, 16 }
 0x6d8   : > { %v5887_v32 = vpop.f32.mrf.mxu3  ;;  %7518 = vst [vmem:[#allocation3 + $0x11b] sm:$0xff] %v7440_v43  ;;  %v7179_v3 = vadd.s32 %v7177_v14, %v7171_v31  ;;  %vm7180_vm7 = vc.u32 %v7178_v16, %v7174_v56  ;;  %v8548_v37 = vpack.c.bf16 %v8521_v42, %v8520_v40  ;;  %v6108_v61 = vmax.f32 %v6072_v22, 0.0 }
 0x6d9   : > { %v7755_v35 = vpop.f32.mrf.mxu0  ;;  %v7158_v29 = vmul.u32 18, %v7157_v46  ;;  %v7181_v5 = vsel %vm7180_vm7, 1, %v16952_v19  ;;  %v5888_v52 = vadd.f32 %v5887_v32, %v5710_v45  ;;  %v9173_v46 = vld [vmem:[#allocation3 + $0x9a] sm:$0xff] }
 0x6da   : > { %v16247_v51 = vadd.f32 %v8066_v15, %v7755_v35  ;;  %v7183_v26 = vadd.s32 %v7181_v5, %v7179_v3  ;;  %v8068_v60 = vpop.f32.mrf.mxu1  ;;  %v8198_v5 = vld [vmem:[#allocation3 + $0x98] sm:$0xff] }
 0x6db   : > { %v7159_v31 = vsub.s32 %v16214_v7, %v7158_v29  ;;  %v5961_v19 = vadd.f32 %v5888_v52, %v14819_v53  ;;  %v9172_v53 = vld [vmem:[#allocation3 + $0x92] sm:$0xff] }
 0x6dc   : > { %8992 = vmatmul.bf16.gmra.mxu0 %v16200_v54  ;;  %v7184_v56 = vadd.s32 %v7183_v26, %v7173_v57  ;;  %v9200_v3 = vpack.c.bf16 %v9173_v46, %v9172_v53  ;;  %v9174_v46 = vld [vmem:[#allocation3 + $0xa2] sm:$0xff] }
 0x6dd   : > { %8345 = vmatmul.bf16.gmra.mxu2 %v8223_v4  ;;  %vm7225_vm8 = vcmp.ne.s32.totalorder %v7159_v31, 0  ;;  %vm7261_vm9 = vcmp.lt.s32.totalorder %v7159_v31, 0  ;;  %v7333_v33 = vadd.s32 18, %v7159_v31  ;;  %v6073_v18 = vadd.f32 %v12854_v27, %v5961_v19 }
 0x6de   : > { %8671 = vmatmul.bf16.gmra.mxu3 %v8548_v37  ;;  %vm7297_vm10 = vmand %vm7261_vm9, %vm7225_vm8  ;;  %v7185_v15 = vadd.s32 %v7184_v56, %v7175_v44  ;;  %v8306_v62 = vpop.f32.mrf.mxu2  ;;  %v8523_v44 = vld [vmem:[#allocation3 + $0x99] sm:$0xff]  ;;  %v8522_v56 = vld [vmem:[#allocation3 + $0x91] sm:$0xff] }
 0x6df   : > { %v7369_v20 = vsel %vm7297_vm10, %v7333_v33, %v7159_v31  ;;  %v8396_v45 = vadd.f32 %v8306_v62, %v17149_v63  ;;  %v6109_v4 = vmax.f32 %v6073_v18, 0.0  ;;  %v8549_v19 = vpack.c.bf16 %v8523_v44, %v8522_v56  ;;  %v9175_v63 = vld [vmem:[#allocation3 + $0xaa] sm:$0xff] }
 0x6e0   : > { %v8632_v16 = vpop.f32.mrf.mxu3  ;;  %vm7405_vm11 = vcmp.lt.s32.totalorder %v7369_v20, 16  ;;  %v7186_v7 = vshrl.u32 %v7185_v15, 4 }
 0x6e1   : > { %v7757_v43 = vpop.f32.mrf.mxu0  ;;  %v7441_v54 = vsel %vm7405_vm11, %v6108_v61, 0.0  ;;  %v8722_v32 = vadd.f32 %v8632_v16, %v8396_v45 }
 0x6e2   : > { %v16253_v14 = vadd.f32 %v8068_v60, %v7757_v43  ;;  %7519 = vst [vmem:[#allocation3 + $0x123] sm:$0xff] %v7441_v54  ;;  %v7187_v42 = vmul.u32 18, %v7186_v7  ;;  %v16255_v57 = vpop.f32.mrf.mxu1  ;;  %v8197_v60 = vld [vmem:[#allocation3 + $0x90] sm:$0xff]  ;;  %v12787_v7 = vld [vmem:[%s16887_s6 + $0x110] sm:$0xff]  ;;  %v9201_v54 = vpack.c.bf16 %v9175_v63, %v9174_v46 }
 0x6e3   : > { %9606 = vmatpush.bf16.msra.mxu2 %v12787_v7 }
 0x6e4   : > { %v7188_v35 = vsub.s32 %v16220_v47, %v7187_v42  ;;  %v8224_v47 = vpack.c.bf16 %v8198_v5, %v8197_v60  ;;  %v8525_v42 = vld [vmem:[#allocation3 + $0xa9] sm:$0xff]  ;;  %v8524_v5 = vld [vmem:[#allocation3 + $0xa1] sm:$0xff] }
 0x6e5   : > { %9323 = vmatmul.bf16.gmra.mxu1 %v9200_v3  ;;  %v9177_v60 = vld [vmem:[#allocation3 + $0xba] sm:$0xff] }
 0x6e6   : > { %vm7226_vm12 = vcmp.ne.s32.totalorder %v7188_v35, 0  ;;  %vm7262_vm13 = vcmp.lt.s32.totalorder %v7188_v35, 0  ;;  %v7334_v22 = vadd.s32 18, %v7188_v35  ;;  %v8308_v29 = vpop.f32.mrf.mxu2 }
 0x6e7   : > { %vm7298_vm14 = vmand %vm7262_vm13, %vm7226_vm12  ;;  %v8397_v40 = vadd.f32 %v8308_v29, %v14934_v41 }
 0x6e8   : > { %v8634_v52 = vpop.f32.mrf.mxu3  ;;  %v7370_v27 = vsel %vm7298_vm14, %v7334_v22, %v7188_v35  ;;  %v8199_v35 = vld [vmem:[#allocation3 + $0xa0] sm:$0xff] }
 0x6e9   : > { %v8958_v26 = vpop.f32.mrf.mxu0  ;;  %vm7406_vm15 = vcmp.lt.s32.totalorder %v7370_v27, 16  ;;  %v8723_v37 = vadd.f32 %v8634_v52, %v8397_v40  ;;  %v8550_v52 = vpack.c.bf16 %v8525_v42, %v8524_v5 }
 0x6ea   : > { %v16259_v31 = vadd.f32 %v8958_v26, %v8722_v32  ;;  %v7442_v61 = vsel %vm7406_vm15, %v6109_v4, 0.0  ;;  %v16261_v33 = vpop.f32.mrf.mxu1  ;;  %v8200_v32 = vld [vmem:[#allocation3 + $0xa8] sm:$0xff] }
 0x6eb   : > { %7520 = vst [vmem:[#allocation3 + $0x12b] sm:$0xff] %v7442_v61  ;;  %v8225_v29 = vpack.c.bf16 %v8200_v32, %v8199_v35  ;;  %v9176_v61 = vld [vmem:[#allocation3 + $0xb2] sm:$0xff]  ;;  %v9179_v35 = vld [vmem:[#allocation3 + $0xca] sm:$0xff] }
 0x6ec   : > { %8997 = vmatmul.bf16.gmra.mxu0 %v16238_v39 }
 0x6ed   : > { %8350 = vmatmul.bf16.gmra.mxu2 %v8224_v47 }
 0x6ee   : > { %8676 = vmatmul.bf16.gmra.mxu3 %v8549_v19  ;;  %v8311_v41 = vpop.f32.mrf.mxu2  ;;  %v9202_v19 = vpack.c.bf16 %v9177_v60, %v9176_v61  ;;  %v8529_v60 = vld [vmem:[#allocation3 + $0xc9] sm:$0xff]  ;;  %v8203_v61 = vld [vmem:[#allocation3 + $0xc0] sm:$0xff] }
 0x6ef   : > { %v8398_v15 = vadd.f32 %v8311_v41, %v14987_v17 }
 0x6f0   : > { %v8637_v62 = vpop.f32.mrf.mxu3 }
 0x6f1   : > { %v8960_v20 = vpop.f32.mrf.mxu0  ;;  %v8724_v45 = vadd.f32 %v8637_v62, %v8398_v15  ;;  %v8202_v15 = vld [vmem:[#allocation3 + $0xb8] sm:$0xff] }
 0x6f2   : > { %v16265_v16 = vadd.f32 %v8960_v20, %v8723_v37  ;;  %v16270_v43 = vpop.f32.mrf.mxu1  ;;  %v8527_v20 = vld [vmem:[#allocation3 + $0xb9] sm:$0xff] }
 0x6f5   : > { %9328 = vmatmul.bf16.gmra.mxu1 %v9201_v54 }
 0x6f6   : > { %v8313_v39 = vpop.f32.mrf.mxu2 }
 0x6f7   : > { %v8399_v17 = vadd.f32 %v8313_v39, %v15052_v0  ;;  %v8526_v39 = vld [vmem:[#allocation3 + $0xb1] sm:$0xff] }
 0x6f8   : > { %v8639_v18 = vpop.f32.mrf.mxu3 }
 0x6f9   : > { %v8963_v53 = vpop.f32.mrf.mxu0  ;;  %v8725_v4 = vadd.f32 %v8639_v18, %v8399_v17  ;;  %v8551_v17 = vpack.c.bf16 %v8527_v20, %v8526_v39  ;;  %v9181_v39 = vld [vmem:[#allocation3 + $0xda] sm:$0xff] }
 0x6fa   : > { %v16273_v22 = vadd.f32 %v8963_v53, %v8724_v45  ;;  %v16275_v40 = vpop.f32.mrf.mxu1  ;;  %v8201_v45 = vld [vmem:[#allocation3 + $0xb0] sm:$0xff] }
 0x6fb   : > { %v8226_v46 = vpack.c.bf16 %v8202_v15, %v8201_v45 }
 0x6fc   : > { %9002 = vmatmul.bf16.gmra.mxu0 %v9200_v3 }
 0x6fd   : > { %8355 = vmatmul.bf16.gmra.mxu2 %v8225_v29 }
 0x6fe   : > { %8681 = vmatmul.bf16.gmra.mxu3 %v8550_v52  ;;  %v8316_v44 = vpop.f32.mrf.mxu2  ;;  %v9178_v52 = vld [vmem:[#allocation3 + $0xc2] sm:$0xff] }
 0x6ff   : > { %v8400_v27 = vadd.f32 %v8316_v44, %v15102_v59  ;;  %v12786_v44 = vld [vmem:[%s16887_s6 + $0x108] sm:$0xff] }
 0x700   : > { %v8642_v26 = vpop.f32.mrf.mxu3  ;;  %9607 = vmatpush.bf16.msra.mxu2 %v12786_v44  ;;  %v8531_v44 = vld [vmem:[#allocation3 + $0xd9] sm:$0xff] }
 0x701   : > { %v8965_v0 = vpop.f32.mrf.mxu0  ;;  %v8726_v37 = vadd.f32 %v8642_v26, %v8400_v27  ;;  %v9203_v27 = vpack.c.bf16 %v9179_v35, %v9178_v52  ;;  %v8204_v26 = vld [vmem:[#allocation3 + $0xc8] sm:$0xff] }
 0x702   : > { %v16278_v47 = vadd.f32 %v8965_v0, %v8725_v4  ;;  %v16280_v56 = vpop.f32.mrf.mxu1 }
 0x705   : > { %9333 = vmatmul.bf16.gmra.mxu1 %v9202_v19 }
 0x706   : > { %v8318_v41 = vpop.f32.mrf.mxu2 }
 0x707   : > { %v8401_v62 = vadd.f32 %v8318_v41, %v15148_v36 }
 0x708   : > { %v8644_v3 = vpop.f32.mrf.mxu3 }
 0x709   : > { %v8968_v63 = vpop.f32.mrf.mxu0  ;;  %v8727_v59 = vadd.f32 %v8644_v3, %v8401_v62  ;;  %v8227_v62 = vpack.c.bf16 %v8204_v26, %v8203_v61  ;;  %v8528_v3 = vld [vmem:[#allocation3 + $0xc1] sm:$0xff]  ;;  %v8205_v26 = vld [vmem:[#allocation3 + $0xd0] sm:$0xff] }
 0x70a   : > { %v16283_v7 = vadd.f32 %v8968_v63, %v8726_v37  ;;  %v16285_v32 = vpop.f32.mrf.mxu1  ;;  %v8552_v63 = vpack.c.bf16 %v8529_v60, %v8528_v3  ;;  %v8530_v60 = vld [vmem:[#allocation3 + $0xd1] sm:$0xff] }
 0x70b   : > { %v8553_v61 = vpack.c.bf16 %v8531_v44, %v8530_v60 }
 0x70c   : > { %9007 = vmatmul.bf16.gmra.mxu0 %v9201_v54 }
 0x70d   : > { %8360 = vmatmul.bf16.gmra.mxu2 %v8226_v46 }
 0x70e   : > { %8686 = vmatmul.bf16.gmra.mxu3 %v8551_v17 }
 0x70f   : > { %v8321_v18 = vpop.f32.mrf.mxu2 }
 0x710   : > { %v8402_v42 = vadd.f32 %v8321_v18, %v15209_v23  ;;  %v8647_v53 = vpop.f32.mrf.mxu3 }
 0x711   : > { %v8970_v36 = vpop.f32.mrf.mxu0 }
 0x712   : > { %v8728_v4 = vadd.f32 %v8647_v53, %v8402_v42  ;;  %v16288_v29 = vadd.f32 %v8970_v36, %v8727_v59  ;;  %v16290_v5 = vpop.f32.mrf.mxu1  ;;  %v9180_v53 = vld [vmem:[#allocation3 + $0xd2] sm:$0xff] }
 0x713   : > { %v9204_v36 = vpack.c.bf16 %v9181_v39, %v9180_v53  ;;  %v8208_v53 = vld [vmem:[#allocation3 + $0xe8] sm:$0xff] }
 0x715   : > { %9338 = vmatmul.bf16.gmra.mxu1 %v9203_v27 }
 0x717   : > { %v8323_v54 = vpop.f32.mrf.mxu2 }
 0x718   : > { %v8403_v23 = vadd.f32 %v8323_v54, %v15263_v50  ;;  %v8649_v0 = vpop.f32.mrf.mxu3 }
 0x719   : > { %v8973_v37 = vpop.f32.mrf.mxu0 }
 0x71a   : > { %v8729_v41 = vadd.f32 %v8649_v0, %v8403_v23  ;;  %v16296_v15 = vadd.f32 %v8973_v37, %v8728_v4  ;;  %v16298_v20 = vpop.f32.mrf.mxu1  ;;  %v8206_v4 = vld [vmem:[#allocation3 + $0xd8] sm:$0xff] }
 0x71b   : > { %v8228_v0 = vpack.c.bf16 %v8206_v4, %v8205_v26  ;;  %v8533_v4 = vld [vmem:[#allocation3 + $0xe9] sm:$0xff]  ;;  %v8532_v26 = vld [vmem:[#allocation3 + $0xe1] sm:$0xff] }
 0x71c   : > { %9012 = vmatmul.bf16.gmra.mxu0 %v9202_v19  ;;  %v8554_v60 = vpack.c.bf16 %v8533_v4, %v8532_v26 }
 0x71d   : > { %8365 = vmatmul.bf16.gmra.mxu2 %v8227_v62 }
 0x71e   : > { %8691 = vmatmul.bf16.gmra.mxu3 %v8552_v63  ;;  %v9183_v63 = vld [vmem:[#allocation3 + $0xea] sm:$0xff] }
 0x720   : > { %v8326_v45 = vpop.f32.mrf.mxu2 }
 0x721   : > { %v8404_v59 = vadd.f32 %v8326_v45, %v15300_v1  ;;  %v8652_v46 = vpop.f32.mrf.mxu3  ;;  %v8975_v50 = vpop.f32.mrf.mxu0 }
 0x722   : > { %v16301_v18 = vadd.f32 %v8975_v50, %v8729_v41  ;;  %v16303_v42 = vpop.f32.mrf.mxu1  ;;  %v9182_v50 = vld [vmem:[#allocation3 + $0xe2] sm:$0xff] }
 0x723   : > { %v8730_v17 = vadd.f32 %v8652_v46, %v8404_v59  ;;  %v9205_v39 = vpack.c.bf16 %v9183_v63, %v9182_v50 }
 0x725   : > { %9343 = vmatmul.bf16.gmra.mxu1 %v9204_v36 }
 0x728   : > { %v8328_v35 = vpop.f32.mrf.mxu2 }
 0x729   : > { %v8405_v52 = vadd.f32 %v8328_v35, %v15352_v8  ;;  %v8654_v19 = vpop.f32.mrf.mxu3  ;;  %v8978_v54 = vpop.f32.mrf.mxu0 }
 0x72a   : > { %v16306_v23 = vadd.f32 %v8978_v54, %v8730_v17  ;;  %v16308_v37 = vpop.f32.mrf.mxu1 }
 0x72b   : > { %v8731_v1 = vadd.f32 %v8654_v19, %v8405_v52  ;;  %v8207_v19 = vld [vmem:[#allocation3 + $0xe0] sm:$0xff] }
 0x72c   : > { %9017 = vmatmul.bf16.gmra.mxu0 %v9203_v27  ;;  %v8229_v54 = vpack.c.bf16 %v8208_v53, %v8207_v19  ;;  %v8535_v19 = vld [vmem:[#allocation3 + $0xf9] sm:$0xff] }
 0x72d   : > { %8370 = vmatmul.bf16.gmra.mxu2 %v8228_v0 }
 0x72e   : > { %8696 = vmatmul.bf16.gmra.mxu3 %v8553_v61 }
 0x730   : > { %v8331_v41 = vpop.f32.mrf.mxu2 }
 0x731   : > { %v8406_v62 = vadd.f32 %v8331_v41, %v15397_v12  ;;  %v8657_v3 = vpop.f32.mrf.mxu3  ;;  %v8980_v8 = vpop.f32.mrf.mxu0 }
 0x732   : > { %v16311_v59 = vadd.f32 %v8980_v8, %v8731_v1  ;;  %v16313_v46 = vpop.f32.mrf.mxu1  ;;  %v12785_v1 = vld [vmem:[%s16887_s6 + $0x100] sm:$0xff]  ;;  %v9185_v8 = vld [vmem:[#allocation3 + $0xfa] sm:$0xff] }
 0x733   : > { %v8732_v45 = vadd.f32 %v8657_v3, %v8406_v62  ;;  %9608 = vmatpush.bf16.msra.mxu2 %v12785_v1 }
 0x735   : > { %9348 = vmatmul.bf16.gmra.mxu1 %v9205_v39 }
 0x738   : > { %v8333_v17 = vpop.f32.mrf.mxu2 }
 0x739   : > { %v8407_v35 = vadd.f32 %v8333_v17, %v15472_v28  ;;  %v8659_v27 = vpop.f32.mrf.mxu3  ;;  %v8983_v52 = vpop.f32.mrf.mxu0  ;;  %v12800_v28 = vld [vmem:[%s16887_s6 + $0x178] sm:$0xff]  ;;  %v9184_v17 = vld [vmem:[#allocation3 + $0xf2] sm:$0xff] }
 0x73a   : > { %v16316_v44 = vadd.f32 %v8983_v52, %v8732_v45  ;;  %v16321_v0 = vpop.f32.mrf.mxu1  ;;  %9927 = vmatpush.bf16.msra.mxu3 %v12800_v28  ;;  %v16334_v53 = vpack.c.bf16 %v9185_v8, %v9184_v17  ;;  %v8534_v28 = vld [vmem:[#allocation3 + $0xf1] sm:$0xff]  ;;  %v12808_v8 = vld [vmem:[%s16887_s6 + $0x1b8] sm:$0xff] }
 0x73b   : > { %v8733_v12 = vadd.f32 %v8659_v27, %v8407_v35  ;;  %v8210_v27 = vld [vmem:[#allocation3 + $0xf8] sm:$0xff]  ;;  %10253 = vmatpush.bf16.msrb.mxu0 %v12808_v8  ;;  %v17151_v17 = vld [vmem:[#allocation8_spill] sm:$0xff] }
 0x73c   : > { %9022 = vmatmul.bf16.gmra.mxu0 %v9204_v36  ;;  %v12799_v36 = vld [vmem:[%s16887_s6 + $0x170] sm:$0xff]  ;;  %v8212_v8 = vld [vmem:[#allocation3 + $0x108] sm:$0xff] }
 0x73d   : > { %8375 = vmatmul.bf16.gmra.mxu2 %v8229_v54  ;;  %v8209_v54 = vld [vmem:[#allocation3 + $0xf0] sm:$0xff] }
 0x73e   : > { %8701 = vmatmul.bf16.gmra.mxu3 %v8554_v60  ;;  %v8230_v60 = vpack.c.bf16 %v8210_v27, %v8209_v54  ;;  %v9187_v27 = vld [vmem:[#allocation3 + $0x10a] sm:$0xff]  ;;  %v12807_v54 = vld [vmem:[%s16887_s6 + $0x1b0] sm:$0xff] }
 0x73f   : > { %9928 = vmatpush.bf16.msra.mxu3 %v12799_v36  ;;  %10254 = vmatpush.bf16.msrb.mxu0 %v12807_v54 }
 0x740   : > { %v8336_v61 = vpop.f32.mrf.mxu2 }
 0x741   : > { %v8408_v41 = vadd.f32 %v8336_v61, %v15518_v6  ;;  %v8662_v62 = vpop.f32.mrf.mxu3  ;;  %v8985_v3 = vpop.f32.mrf.mxu0  ;;  %v12798_v6 = vld [vmem:[%s16887_s6 + $0x168] sm:$0xff]  ;;  %v12816_v61 = vld [vmem:[%s16887_s6 + $0x1f8] sm:$0xff] }
 0x742   : > { %v16327_v45 = vadd.f32 %v8985_v3, %v8733_v12  ;;  %v16332_v50 = vpop.f32.mrf.mxu1  ;;  %10579 = vmatpush.bf16.msrb.mxu1 %v12816_v61  ;;  %v12815_v3 = vld [vmem:[%s16887_s6 + $0x1f0] sm:$0xff] }
 0x743   : > { %v8734_v63 = vadd.f32 %v8662_v62, %v8408_v41  ;;  %9929 = vmatpush.bf16.msra.mxu3 %v12798_v6  ;;  %v12797_v41 = vld [vmem:[%s16887_s6 + $0x160] sm:$0xff] }
 0x745   : > { %9353 = vmatmul.bf16.gmra.mxu1 %v16334_v53 }
 0x746   : > { %10580 = vmatpush.bf16.msrb.mxu1 %v12815_v3 }
 0x747   : > { %9930 = vmatpush.bf16.msra.mxu3 %v12797_v41  ;;  %v12813_v41 = vld [vmem:[%s16887_s6 + $0x1e0] sm:$0xff] }
 0x748   : > { %v8338_v35 = vpop.f32.mrf.mxu2 }
 0x749   : > { %v8409_v4 = vadd.f32 %v8338_v35, %v15591_v49  ;;  %v8664_v52 = vpop.f32.mrf.mxu3  ;;  %v8988_v12 = vpop.f32.mrf.mxu0  ;;  %v8555_v49 = vpack.c.bf16 %v8535_v19, %v8534_v28  ;;  %v12814_v19 = vld [vmem:[%s16887_s6 + $0x1e8] sm:$0xff]  ;;  %v9186_v28 = vld [vmem:[#allocation3 + $0x102] sm:$0xff] }
 0x74a   : > { %v16341_v1 = vadd.f32 %v8988_v12, %v8734_v63  ;;  %v16349_v62 = vpop.f32.mrf.mxu1  ;;  %v12796_v63 = vld [vmem:[%s16887_s6 + $0x158] sm:$0xff]  ;;  %v12795_v12 = vld [vmem:[%s16887_s6 + $0x150] sm:$0xff]  ;;  %v16374_v61 = vpack.c.bf16 %v9187_v27, %v9186_v28  ;;  %10581 = vmatpush.bf16.msrb.mxu1 %v12814_v19 }
 0x74b   : > { %v8735_v26 = vadd.f32 %v8664_v52, %v8409_v4  ;;  %17150 = vst [vmem:[#allocation36_spill] sm:$0xff] %v16349_v62  ;;  %9931 = vmatpush.bf16.msra.mxu3 %v12796_v63  ;;  %v17154_v63 = vld [vmem:[#allocation5_spill] sm:$0xff]  ;;  %v8536_v27 = vld [vmem:[#allocation3 + $0x101] sm:$0xff] }
 0x74c   : > { %9027 = vmatmul.bf16.gmra.mxu0 %v9205_v39  ;;  %v9482_v62 = vld [vmem:[#allocation3 + $0x13] sm:$0xff] }
 0x74d   : > { %8380 = vmatmul.bf16.gmra.mxu2 %v8230_v60 }
 0x74e   : > { %8706 = vmatmul.bf16.gmra.mxu3 %v8555_v49  ;;  %v12794_v49 = vld [vmem:[%s16887_s6 + $0x148] sm:$0xff]  ;;  %10582 = vmatpush.bf16.msrb.mxu1 %v12813_v41 }
 0x74f   : > { %9932 = vmatpush.bf16.msra.mxu3 %v12795_v12  ;;  %v12812_v12 = vld [vmem:[%s16887_s6 + $0x1d8] sm:$0xff] }
 0x750   : > { %v8341_v36 = vpop.f32.mrf.mxu2 }
 0x751   : > { %v8410_v6 = vadd.f32 %v8341_v36, %v17151_v17  ;;  %v8667_v39 = vpop.f32.mrf.mxu3  ;;  %v8990_v35 = vpop.f32.mrf.mxu0 }
 0x752   : > { %v16361_v52 = vadd.f32 %v8990_v35, %v8735_v26  ;;  %v16372_v60 = vpop.f32.mrf.mxu1  ;;  %v12806_v26 = vld [vmem:[%s16887_s6 + $0x1a8] sm:$0xff]  ;;  %v8211_v35 = vld [vmem:[#allocation3 + $0x100] sm:$0xff]  ;;  %10583 = vmatpush.bf16.msrb.mxu1 %v12812_v12 }
 0x753   : > { %v8736_v4 = vadd.f32 %v8667_v39, %v8410_v6  ;;  %17153 = vst [vmem:[#allocation10_spill] sm:$0xff] %v16372_v60  ;;  %v8537_v6 = vld [vmem:[#allocation3 + $0x109] sm:$0xff]  ;;  %10255 = vmatpush.bf16.msrb.mxu0 %v12806_v26  ;;  %v8231_v28 = vpack.c.bf16 %v8212_v8, %v8211_v35  ;;  %9933 = vmatpush.bf16.msra.mxu3 %v12794_v49  ;;  %v9189_v35 = vld [vmem:[#allocation3 + $0x11a] sm:$0xff] }
 0x754   : > { %17152 = vst [vmem:[#allocation6_spill] sm:$0xff] %v16361_v52  ;;  %v12805_v26 = vld [vmem:[%s16887_s6 + $0x1a0] sm:$0xff]  ;;  %v8556_v41 = vpack.c.bf16 %v8537_v6, %v8536_v27  ;;  %v12824_v49 = vld [vmem:[%s16887_s6 + $0x238] sm:$0xff]  ;;  %v12810_v12 = vld [vmem:[%s16887_s6 + $0x1c8] sm:$0xff] }
 0x755   : > { %9358 = vmatmul.bf16.gmra.mxu1 %v16374_v61  ;;  %v12804_v8 = vld [vmem:[%s16887_s6 + $0x198] sm:$0xff]  ;;  %10905 = vmatpush.bf16.msrb.mxu2 %v12824_v49 }
 0x757   : > { %10256 = vmatpush.bf16.msrb.mxu0 %v12805_v26 }
 0x758   : > { %v8343_v3 = vpop.f32.mrf.mxu2 }
 0x759   : > { %v8411_v36 = vadd.f32 %v8343_v3, %v17154_v63  ;;  %v8669_v17 = vpop.f32.mrf.mxu3  ;;  %v8993_v39 = vpop.f32.mrf.mxu0  ;;  %v12793_v3 = vld [vmem:[%s16887_s6 + $0x140] sm:$0xff] }
 0x75a   : > { %v16387_v54 = vadd.f32 %v8993_v39, %v8736_v4  ;;  %v16398_v63 = vpop.f32.mrf.mxu1  ;;  %v12811_v4 = vld [vmem:[%s16887_s6 + $0x1d0] sm:$0xff]  ;;  %9934 = vmatpush.bf16.msra.mxu3 %v12793_v3 }
 0x75b   : > { %v8737_v19 = vadd.f32 %v8669_v17, %v8411_v36  ;;  %17156 = vst [vmem:[#allocation34_spill] sm:$0xff] %v16398_v63  ;;  %v17157_v17 = vld [vmem:[#allocation31_spill] sm:$0xff]  ;;  %10584 = vmatpush.bf16.msrb.mxu1 %v12811_v4  ;;  %10257 = vmatpush.bf16.msrb.mxu0 %v12804_v8  ;;  %v12809_v4 = vld [vmem:[%s16887_s6 + $0x1c0] sm:$0xff] }
 0x75c   : > { %17155 = vst [vmem:[#allocation33_spill] sm:$0xff] %v16387_v54  ;;  %9032 = vmatmul.bf16.gmra.mxu0 %v16334_v53  ;;  %v12803_v3 = vld [vmem:[%s16887_s6 + $0x190] sm:$0xff]  ;;  %v8213_v63 = vld [vmem:[#allocation3 + $0x110] sm:$0xff] }
 0x75d   : > { %8385 = vmatmul.bf16.gmra.mxu2 %v8231_v28 }
 0x75e   : > { %8711 = vmatmul.bf16.gmra.mxu3 %v8556_v41  ;;  %v9188_v41 = vld [vmem:[#allocation3 + $0x112] sm:$0xff] }
 0x75f   : > { %v9208_v49 = vpack.c.bf16 %v9189_v35, %v9188_v41  ;;  %10585 = vmatpush.bf16.msrb.mxu1 %v12810_v12  ;;  %10258 = vmatpush.bf16.msrb.mxu0 %v12803_v3  ;;  %v12801_v3 = vld [vmem:[%s16887_s6 + $0x180] sm:$0xff] }
 0x760   : > { %v8346_v36 = vpop.f32.mrf.mxu2 }
 0x761   : > { %v8412_v53 = vadd.f32 %v8346_v36, %v17157_v17  ;;  %v8672_v6 = vpop.f32.mrf.mxu3  ;;  %v8995_v39 = vpop.f32.mrf.mxu0  ;;  %v8214_v36 = vld [vmem:[#allocation3 + $0x118] sm:$0xff]  ;;  %v17160_v17 = vld [vmem:[#allocation32_spill] sm:$0xff] }
 0x762   : > { %v16411_v28 = vadd.f32 %v8995_v39, %v8737_v19  ;;  %v16419_v26 = vpop.f32.mrf.mxu1  ;;  %v12802_v19 = vld [vmem:[%s16887_s6 + $0x188] sm:$0xff]  ;;  %v8232_v41 = vpack.c.bf16 %v8214_v36, %v8213_v63  ;;  %v9191_v63 = vld [vmem:[#allocation3 + $0x12a] sm:$0xff] }
 0x763   : > { %v8738_v27 = vadd.f32 %v8672_v6, %v8412_v53  ;;  %17159 = vst [vmem:[#allocation42_spill] sm:$0xff] %v16419_v26  ;;  %v8539_v39 = vld [vmem:[#allocation3 + $0x119] sm:$0xff]  ;;  %10586 = vmatpush.bf16.msrb.mxu1 %v12809_v4  ;;  %10259 = vmatpush.bf16.msrb.mxu0 %v12802_v19 }
 0x764   : > { %17158 = vst [vmem:[#allocation37_spill] sm:$0xff] %v16411_v28  ;;  %v8538_v28 = vld [vmem:[#allocation3 + $0x111] sm:$0xff]  ;;  %v17163_v4 = vld [vmem:[#allocation7_spill] sm:$0xff] }
 0x765   : > { %9363 = vmatmul.bf16.gmra.mxu1 %v9208_v49  ;;  %v8557_v54 = vpack.c.bf16 %v8539_v39, %v8538_v28  ;;  %v9483_v39 = vld [vmem:[#allocation3 + $0x1b] sm:$0xff] }
 0x766   : > { %v9518_v52 = vpack.c.bf16 %v9483_v39, %v9482_v62  ;;  %v12823_v62 = vld [vmem:[%s16887_s6 + $0x230] sm:$0xff]  ;;  %v9811_v39 = vld [vmem:[#allocation3 + $0x2c] sm:$0xff] }
 0x767   : > { %10260 = vmatpush.bf16.msrb.mxu0 %v12801_v3  ;;  %v9809_v3 = vld [vmem:[#allocation3 + $0x1c] sm:$0xff]  ;;  %10906 = vmatpush.bf16.msrb.mxu2 %v12823_v62 }
 0x768   : > { %v8348_v8 = vpop.f32.mrf.mxu2 }
 0x769   : > { %v8413_v53 = vadd.f32 %v8348_v8, %v17160_v17  ;;  %v8674_v6 = vpop.f32.mrf.mxu3  ;;  %v8998_v26 = vpop.f32.mrf.mxu0 }
 0x76a   : > { %v16428_v12 = vadd.f32 %v8998_v26, %v8738_v27  ;;  %v16433_v60 = vpop.f32.mrf.mxu1 }
 0x76b   : > { %v8739_v35 = vadd.f32 %v8674_v6, %v8413_v53  ;;  %17162 = vst [vmem:[#allocation12_spill] sm:$0xff] %v16433_v60  ;;  %v9190_v53 = vld [vmem:[#allocation3 + $0x122] sm:$0xff] }
 0x76c   : > { %17161 = vst [vmem:[#allocation11_spill] sm:$0xff] %v16428_v12  ;;  %9037 = vmatmul.bf16.gmra.mxu0 %v16374_v61  ;;  %v9209_v12 = vpack.c.bf16 %v9191_v63, %v9190_v53 }
 0x76d   : > { %8390 = vmatmul.bf16.gmra.mxu2 %v8232_v41  ;;  %v17165_v41 = vld [vmem:[#allocation9_spill] sm:$0xff] }
 0x76e   : > { %8716 = vmatmul.bf16.gmra.mxu3 %v8557_v54 }
 0x770   : > { %v8351_v8 = vpop.f32.mrf.mxu2 }
 0x771   : > { %v8414_v17 = vadd.f32 %v8351_v8, %v17163_v4  ;;  %v8677_v27 = vpop.f32.mrf.mxu3  ;;  %v9000_v26 = vpop.f32.mrf.mxu0 }
 0x772   : > { %v16437_v19 = vadd.f32 %v9000_v26, %v8739_v35  ;;  %v16439_v6 = vpop.f32.mrf.mxu1 }
 0x773   : > { %v8740_v36 = vadd.f32 %v8677_v27, %v8414_v17  ;;  %17164 = vst [vmem:[#allocation35_spill] sm:$0xff] %v16439_v6  ;;  %v9808_v17 = vld [vmem:[#allocation3 + $0x14] sm:$0xff] }
 0x774   : > { %v9844_v35 = vpack.c.bf16 %v9809_v3, %v9808_v17  ;;  %v9484_v17 = vld [vmem:[#allocation3 + $0x23] sm:$0xff] }
 0x775   : > { %9368 = vmatmul.bf16.gmra.mxu1 %v9209_v12 }
 0x778   : > { %v8353_v28 = vpop.f32.mrf.mxu2 }
 0x779   : > { %v8415_v61 = vadd.f32 %v8353_v28, %v17165_v41  ;;  %v8679_v54 = vpop.f32.mrf.mxu3  ;;  %v9003_v60 = vpop.f32.mrf.mxu0  ;;  %v10461_v28 = vld [vmem:[#allocation3 + $0x2d] sm:$0xff] }
 0x77a   : > { %v16442_v4 = vadd.f32 %v9003_v60, %v8740_v36  ;;  %v16444_v27 = vpop.f32.mrf.mxu1  ;;  %v10460_v60 = vld [vmem:[#allocation3 + $0x25] sm:$0xff] }
 0x77b   : > { %v8741_v8 = vadd.f32 %v8679_v54, %v8415_v61  ;;  %17166 = vst [vmem:[#allocation39_spill] sm:$0xff] %v16444_v27  ;;  %v10496_v36 = vpack.c.bf16 %v10461_v28, %v10460_v60  ;;  %v10462_v27 = vld [vmem:[#allocation3 + $0x35] sm:$0xff] }
 0x77c   : > { %9042 = vmatmul.bf16.gmra.mxu0 %v9208_v49  ;;  %v9485_v49 = vld [vmem:[#allocation3 + $0x2b] sm:$0xff] }
 0x77d   : > { %9609 = vmatmul.bf16.vlgmr.msra.gmra.mxu2 %v9518_v52 }
 0x77e   : > { %9935 = vmatmul.bf16.vlgmr.msra.gmra.mxu3 %v9844_v35 }
 0x780   : > { %v8356_v12 = vpop.f32.mrf.mxu2 }
 0x781   : > { %v8416_v26 = vadd.f32 %v8356_v12, %v15974_v11  ;;  %v8682_v63 = vpop.f32.mrf.mxu3  ;;  %v9005_v53 = vpop.f32.mrf.mxu0 }
 0x782   : > { %v16447_v6 = vadd.f32 %v9005_v53, %v8741_v8  ;;  %v16452_v61 = vpop.f32.mrf.mxu1  ;;  %v9810_v8 = vld [vmem:[#allocation3 + $0x24] sm:$0xff] }
 0x783   : > { %v8742_v41 = vadd.f32 %v8682_v63, %v8416_v26  ;;  %17167 = vst [vmem:[#allocation38_spill] sm:$0xff] %v16452_v61  ;;  %v9519_v26 = vpack.c.bf16 %v9485_v49, %v9484_v17  ;;  %v9845_v63 = vpack.c.bf16 %v9811_v39, %v9810_v8  ;;  %v9487_v49 = vld [vmem:[#allocation3 + $0x3b] sm:$0xff]  ;;  %v9486_v8 = vld [vmem:[#allocation3 + $0x33] sm:$0xff] }
 0x784   : > { %v9813_v39 = vld [vmem:[#allocation3 + $0x3c] sm:$0xff] }
 0x785   : > { %10587 = vmatmul.bf16.vlgmr.msrb.gmra.mxu1 %v10496_v36  ;;  %v10463_v36 = vld [vmem:[#allocation3 + $0x3d] sm:$0xff] }
 0x788   : > { %v8358_v52 = vpop.f32.mrf.mxu2 }
 0x789   : > { %v8417_v11 = vadd.f32 %v8358_v52, %v16018_v10  ;;  %v8684_v54 = vpop.f32.mrf.mxu3  ;;  %v9008_v3 = vpop.f32.mrf.mxu0 }
 0x78a   : > { %v16455_v12 = vadd.f32 %v9008_v3, %v8742_v41  ;;  %v16458_v61 = vpop.f32.mrf.mxu1 }
 0x78b   : > { %v8743_v35 = vadd.f32 %v8684_v54, %v8417_v11  ;;  %17168 = vst [vmem:[#allocation43_spill] sm:$0xff] %v16458_v61  ;;  %v10497_v11 = vpack.c.bf16 %v10463_v36, %v10462_v27 }
 0x78c   : > { %10261 = vmatmul.bf16.vlgmr.msrb.gmra.mxu0 %v9845_v63 }
 0x78d   : > { %9614 = vmatmul.bf16.gmra.mxu2 %v9519_v26 }
 0x78e   : > { %9940 = vmatmul.bf16.gmra.mxu3 %v9845_v63 }
 0x790   : > { %v8361_v53 = vpop.f32.mrf.mxu2 }
 0x791   : > { %v8418_v28 = vadd.f32 %v8361_v53, %v16041_v38  ;;  %v8687_v62 = vpop.f32.mrf.mxu3  ;;  %v9010_v60 = vpop.f32.mrf.mxu0  ;;  %v9812_v38 = vld [vmem:[#allocation3 + $0x34] sm:$0xff]  ;;  %v9520_v53 = vpack.c.bf16 %v9487_v49, %v9486_v8 }
 0x792   : > { %v16460_v52 = vadd.f32 %v9010_v60, %v8743_v35  ;;  %v9846_v61 = vpack.c.bf16 %v9813_v39, %v9812_v38  ;;  %v9488_v38 = vld [vmem:[#allocation3 + $0x43] sm:$0xff] }
 0x793   : > { %v8744_v10 = vadd.f32 %v8687_v62, %v8418_v28  ;;  %v16465_v28 = vpop.f32.mrf.mxu1 }
 0x795   : > { %10592 = vmatmul.bf16.gmra.mxu1 %v10497_v11 }
 0x798   : > { %v8363_v41 = vpop.f32.mrf.mxu2 }
 0x799   : > { %v8419_v54 = vadd.f32 %v8363_v41, %v16066_v55  ;;  %v8689_v3 = vpop.f32.mrf.mxu3  ;;  %v9013_v17 = vpop.f32.mrf.mxu0  ;;  %v10465_v55 = vld [vmem:[#allocation3 + $0x4d] sm:$0xff]  ;;  %v10464_v41 = vld [vmem:[#allocation3 + $0x45] sm:$0xff] }
 0x79a   : > { %v16463_v63 = vadd.f32 %v9013_v17, %v8744_v10  ;;  %v12822_v10 = vld [vmem:[%s16887_s6 + $0x228] sm:$0xff]  ;;  %v10498_v49 = vpack.c.bf16 %v10465_v55, %v10464_v41 }
 0x79b   : > { %v8745_v26 = vadd.f32 %v8689_v3, %v8419_v54  ;;  %10907 = vmatpush.bf16.msrb.mxu2 %v12822_v10  ;;  %v16473_v39 = vpop.f32.mrf.mxu1  ;;  %v9489_v54 = vld [vmem:[#allocation3 + $0x4b] sm:$0xff] }
 0x79c   : > { %10266 = vmatmul.bf16.gmra.mxu0 %v9846_v61  ;;  %17170 = vst [vmem:[#allocation14_spill] sm:$0xff] %v16473_v39  ;;  %v9815_v3 = vld [vmem:[#allocation3 + $0x4c] sm:$0xff] }
 0x79d   : > { %9619 = vmatmul.bf16.gmra.mxu2 %v9520_v53 }
 0x79e   : > { %9945 = vmatmul.bf16.gmra.mxu3 %v9846_v61 }
 0x7a0   : > { %v8366_v27 = vpop.f32.mrf.mxu2 }
 0x7a1   : > { %v8420_v35 = vadd.f32 %v8366_v27, %v16077_v34  ;;  %v8692_v62 = vpop.f32.mrf.mxu3  ;;  %v9015_v60 = vpop.f32.mrf.mxu0 }
 0x7a2   : > { %v16468_v11 = vadd.f32 %v9015_v60, %v8745_v26  ;;  %v9814_v26 = vld [vmem:[#allocation3 + $0x44] sm:$0xff] }
 0x7a3   : > { %v8746_v36 = vadd.f32 %v8692_v62, %v8420_v35  ;;  %v9521_v35 = vpack.c.bf16 %v9489_v54, %v9488_v38  ;;  %v9847_v62 = vpack.c.bf16 %v9815_v3, %v9814_v26  ;;  %v16478_v55 = vpop.f32.mrf.mxu1  ;;  %v9491_v54 = vld [vmem:[#allocation3 + $0x5b] sm:$0xff]  ;;  %v9490_v26 = vld [vmem:[#allocation3 + $0x53] sm:$0xff] }
 0x7a4   : > { %17169 = vst [vmem:[#allocation13_spill] sm:$0xff] %v16468_v11  ;;  %v10466_v11 = vld [vmem:[#allocation3 + $0x55] sm:$0xff] }
 0x7a5   : > { %10597 = vmatmul.bf16.gmra.mxu1 %v10498_v49  ;;  %17171 = vst [vmem:[#allocation40_spill] sm:$0xff] %v16478_v55  ;;  %v9817_v3 = vld [vmem:[#allocation3 + $0x5c] sm:$0xff] }
 0x7a8   : > { %v8368_v61 = vpop.f32.mrf.mxu2 }
 0x7a9   : > { %v8421_v34 = vadd.f32 %v8368_v61, %v16102_v24  ;;  %v8694_v17 = vpop.f32.mrf.mxu3  ;;  %v9018_v8 = vpop.f32.mrf.mxu0  ;;  %v10467_v24 = vld [vmem:[#allocation3 + $0x5d] sm:$0xff] }
 0x7aa   : > { %v16476_v27 = vadd.f32 %v9018_v8, %v8746_v36 }
 0x7ab   : > { %v8747_v53 = vadd.f32 %v8694_v17, %v8421_v34  ;;  %v10499_v34 = vpack.c.bf16 %v10467_v24, %v10466_v11 }
 0x7ac   : > { %10271 = vmatmul.bf16.gmra.mxu0 %v9847_v62 }
 0x7ad   : > { %9624 = vmatmul.bf16.gmra.mxu2 %v9521_v35  ;;  %v9816_v35 = vld [vmem:[#allocation3 + $0x54] sm:$0xff] }
 0x7ae   : > { %9950 = vmatmul.bf16.gmra.mxu3 %v9847_v62  ;;  %v16484_v62 = vpop.f32.mrf.mxu1 }
 0x7b0   : > { %v8371_v60 = vpop.f32.mrf.mxu2 }
 0x7b1   : > { %v8422_v41 = vadd.f32 %v8371_v60, %v16120_v30  ;;  %v8697_v10 = vpop.f32.mrf.mxu3  ;;  %v9020_v49 = vpop.f32.mrf.mxu0 }
 0x7b2   : > { %v16481_v39 = vadd.f32 %v9020_v49, %v8747_v53  ;;  %v9848_v53 = vpack.c.bf16 %v9817_v3, %v9816_v35  ;;  %v9819_v3 = vld [vmem:[#allocation3 + $0x6c] sm:$0xff]  ;;  %v9492_v35 = vld [vmem:[#allocation3 + $0x63] sm:$0xff] }
 0x7b3   : > { %v8748_v61 = vadd.f32 %v8697_v10, %v8422_v41  ;;  %v9522_v41 = vpack.c.bf16 %v9491_v54, %v9490_v26  ;;  %v9493_v54 = vld [vmem:[#allocation3 + $0x6b] sm:$0xff] }
 0x7b4   : > { %17172 = vst [vmem:[#allocation44_spill] sm:$0xff] %v16481_v39  ;;  %v10468_v39 = vld [vmem:[#allocation3 + $0x65] sm:$0xff] }
 0x7b5   : > { %10602 = vmatmul.bf16.gmra.mxu1 %v10499_v34 }
 0x7b6   : > { %v16491_v55 = vpop.f32.mrf.mxu1 }
 0x7b8   : > { %v8373_v36 = vpop.f32.mrf.mxu2 }
 0x7b9   : > { %v8423_v17 = vadd.f32 %v8373_v36, %v16137_v9  ;;  %v8699_v8 = vpop.f32.mrf.mxu3  ;;  %v9023_v38 = vpop.f32.mrf.mxu0  ;;  %v10469_v9 = vld [vmem:[#allocation3 + $0x6d] sm:$0xff] }
 0x7ba   : > { %v16486_v60 = vadd.f32 %v9023_v38, %v8748_v61 }
 0x7bb   : > { %v8749_v30 = vadd.f32 %v8699_v8, %v8423_v17  ;;  %v10500_v17 = vpack.c.bf16 %v10469_v9, %v10468_v39 }
 0x7bc   : > { %10276 = vmatmul.bf16.gmra.mxu0 %v9848_v53 }
 0x7bd   : > { %9629 = vmatmul.bf16.gmra.mxu2 %v9522_v41 }
 0x7be   : > { %9955 = vmatmul.bf16.gmra.mxu3 %v9848_v53  ;;  %v16499_v39 = vpop.f32.mrf.mxu1 }
 0x7c0   : > { %v8376_v11 = vpop.f32.mrf.mxu2 }
 0x7c1   : > { %v8424_v10 = vadd.f32 %v8376_v11, %v16149_v58  ;;  %v8702_v49 = vpop.f32.mrf.mxu3  ;;  %v9025_v24 = vpop.f32.mrf.mxu0  ;;  %v9818_v58 = vld [vmem:[#allocation3 + $0x64] sm:$0xff]  ;;  %v9523_v11 = vpack.c.bf16 %v9493_v54, %v9492_v35  ;;  %v10470_v54 = vld [vmem:[#allocation3 + $0x75] sm:$0xff] }
 0x7c2   : > { %v16489_v36 = vadd.f32 %v9025_v24, %v8749_v30  ;;  %v9849_v30 = vpack.c.bf16 %v9819_v3, %v9818_v58 }
 0x7c3   : > { %v8750_v34 = vadd.f32 %v8702_v49, %v8424_v10  ;;  %v12821_v10 = vld [vmem:[%s16887_s6 + $0x220] sm:$0xff] }
 0x7c4   : > { %10908 = vmatpush.bf16.msrb.mxu2 %v12821_v10  ;;  %v9494_v10 = vld [vmem:[#allocation3 + $0x73] sm:$0xff] }
 0x7c5   : > { %10607 = vmatmul.bf16.gmra.mxu1 %v10500_v17  ;;  %v10471_v17 = vld [vmem:[#allocation3 + $0x7d] sm:$0xff] }
 0x7c6   : > { %v10501_v3 = vpack.c.bf16 %v10471_v17, %v10470_v54  ;;  %v16504_v35 = vpop.f32.mrf.mxu1 }
 0x7c7   : > { %17175 = vst [vmem:[#allocation45_spill] sm:$0xff] %v16504_v35  ;;  %v10472_v35 = vld [vmem:[#allocation3 + $0x85] sm:$0xff] }
 0x7c8   : > { %v8378_v61 = vpop.f32.mrf.mxu2 }
 0x7c9   : > { %v8425_v8 = vadd.f32 %v8378_v61, %v16169_v21  ;;  %v8704_v38 = vpop.f32.mrf.mxu3  ;;  %v9028_v26 = vpop.f32.mrf.mxu0 }
 0x7ca   : > { %v16494_v53 = vadd.f32 %v9028_v26, %v8750_v34  ;;  %v9821_v26 = vld [vmem:[#allocation3 + $0x7c] sm:$0xff] }
 0x7cb   : > { %v8751_v41 = vadd.f32 %v8704_v38, %v8425_v8  ;;  %v9495_v38 = vld [vmem:[#allocation3 + $0x7b] sm:$0xff] }
 0x7cc   : > { %17173 = vst [vmem:[#allocation15_spill] sm:$0xff] %v16494_v53  ;;  %10281 = vmatmul.bf16.gmra.mxu0 %v9849_v30 }
 0x7cd   : > { %9634 = vmatmul.bf16.gmra.mxu2 %v9523_v11 }
 0x7ce   : > { %9960 = vmatmul.bf16.gmra.mxu3 %v9849_v30 }
 0x7d0   : > { %v8381_v21 = vpop.f32.mrf.mxu2 }
 0x7d1   : > { %v8426_v49 = vadd.f32 %v8381_v21, %v16193_v48  ;;  %v8707_v24 = vpop.f32.mrf.mxu3  ;;  %v9030_v9 = vpop.f32.mrf.mxu0  ;;  %v9820_v48 = vld [vmem:[#allocation3 + $0x74] sm:$0xff] }
 0x7d2   : > { %v16502_v61 = vadd.f32 %v9030_v9, %v8751_v41  ;;  %v9850_v41 = vpack.c.bf16 %v9821_v26, %v9820_v48  ;;  %v9823_v26 = vld [vmem:[#allocation3 + $0x8c] sm:$0xff]  ;;  %v9496_v48 = vld [vmem:[#allocation3 + $0x83] sm:$0xff] }
 0x7d3   : > { %v8752_v34 = vadd.f32 %v8707_v24, %v8426_v49  ;;  %v9524_v49 = vpack.c.bf16 %v9495_v38, %v9494_v10  ;;  %v9497_v38 = vld [vmem:[#allocation3 + $0x8b] sm:$0xff] }
 0x7d4   : > { %17174 = vst [vmem:[#allocation16_spill] sm:$0xff] %v16502_v61  ;;  %v16510_v61 = vpop.f32.mrf.mxu1 }
 0x7d5   : > { %10612 = vmatmul.bf16.gmra.mxu1 %v10501_v3  ;;  %v10473_v3 = vld [vmem:[#allocation3 + $0x8d] sm:$0xff] }
 0x7d8   : > { %v8383_v8 = vpop.f32.mrf.mxu2 }
 0x7d9   : > { %v8427_v58 = vadd.f32 %v8383_v8, %v16207_v13  ;;  %v8709_v11 = vpop.f32.mrf.mxu3  ;;  %v9033_v30 = vpop.f32.mrf.mxu0 }
 0x7da   : > { %v16507_v53 = vadd.f32 %v9033_v30, %v8752_v34 }
 0x7db   : > { %v8753_v21 = vadd.f32 %v8709_v11, %v8427_v58  ;;  %v10502_v58 = vpack.c.bf16 %v10473_v3, %v10472_v35  ;;  %v12820_v35 = vld [vmem:[%s16887_s6 + $0x218] sm:$0xff]  ;;  %v10475_v3 = vld [vmem:[#allocation3 + $0x9d] sm:$0xff] }
 0x7dc   : > { %17176 = vst [vmem:[#allocation48_spill] sm:$0xff] %v16507_v53  ;;  %10286 = vmatmul.bf16.gmra.mxu0 %v9850_v41  ;;  %10909 = vmatpush.bf16.msrb.mxu2 %v12820_v35 }
 0x7dd   : > { %9639 = vmatmul.bf16.gmra.mxu2 %v9524_v49 }
 0x7de   : > { %9965 = vmatmul.bf16.gmra.mxu3 %v9850_v41 }
 0x7e0   : > { %v8386_v24 = vpop.f32.mrf.mxu2 }
 0x7e1   : > { %v8428_v9 = vadd.f32 %v8386_v24, %v16222_v2  ;;  %v8712_v17 = vpop.f32.mrf.mxu3  ;;  %v9035_v54 = vpop.f32.mrf.mxu0  ;;  %v9822_v2 = vld [vmem:[#allocation3 + $0x84] sm:$0xff]  ;;  %v9525_v24 = vpack.c.bf16 %v9497_v38, %v9496_v48 }
 0x7e2   : > { %v16512_v8 = vadd.f32 %v9035_v54, %v8753_v21  ;;  %v9851_v53 = vpack.c.bf16 %v9823_v26, %v9822_v2 }
 0x7e3   : > { %v8754_v13 = vadd.f32 %v8712_v17, %v8428_v9  ;;  %v16517_v9 = vpop.f32.mrf.mxu1 }
 0x7e5   : > { %10617 = vmatmul.bf16.gmra.mxu1 %v10502_v58 }
 0x7e8   : > { %v8388_v34 = vpop.f32.mrf.mxu2 }
 0x7e9   : > { %v8429_v11 = vadd.f32 %v8388_v34, %v16236_v25  ;;  %v8714_v30 = vpop.f32.mrf.mxu3  ;;  %v9038_v10 = vpop.f32.mrf.mxu0  ;;  %v10474_v34 = vld [vmem:[#allocation3 + $0x95] sm:$0xff] }
 0x7ea   : > { %v16515_v41 = vadd.f32 %v9038_v10, %v8754_v13  ;;  %v10503_v38 = vpack.c.bf16 %v10475_v3, %v10474_v34 }
 0x7eb   : > { %v8755_v49 = vadd.f32 %v8714_v30, %v8429_v11  ;;  %v16525_v26 = vpop.f32.mrf.mxu1  ;;  %v9499_v11 = vld [vmem:[#allocation3 + $0x9b] sm:$0xff] }
 0x7ec   : > { %17177 = vst [vmem:[#allocation47_spill] sm:$0xff] %v16515_v41  ;;  %10291 = vmatmul.bf16.gmra.mxu0 %v9851_v53  ;;  %v9825_v30 = vld [vmem:[#allocation3 + $0x9c] sm:$0xff] }
 0x7ed   : > { %9644 = vmatmul.bf16.gmra.mxu2 %v9525_v24  ;;  %v9498_v24 = vld [vmem:[#allocation3 + $0x93] sm:$0xff] }
 0x7ee   : > { %9970 = vmatmul.bf16.gmra.mxu3 %v9851_v53 }
 0x7f0   : > { %v8391_v21 = vpop.f32.mrf.mxu2 }
 0x7f1   : > { %v8430_v25 = vadd.f32 %v8391_v21, %v16247_v51  ;;  %v8717_v17 = vpop.f32.mrf.mxu3  ;;  %v9040_v54 = vpop.f32.mrf.mxu0  ;;  %v9824_v51 = vld [vmem:[#allocation3 + $0x94] sm:$0xff] }
 0x7f2   : > { %v16523_v58 = vadd.f32 %v9040_v54, %v8755_v49  ;;  %v9852_v49 = vpack.c.bf16 %v9825_v30, %v9824_v51  ;;  %v9500_v51 = vld [vmem:[#allocation3 + $0xa3] sm:$0xff] }
 0x7f3   : > { %v8756_v13 = vadd.f32 %v8717_v17, %v8430_v25  ;;  %v9526_v25 = vpack.c.bf16 %v9499_v11, %v9498_v24  ;;  %v9374_v17 = vadd.f32 %v16255_v57, %v16259_v31  ;;  %v16532_v3 = vpop.f32.mrf.mxu1  ;;  %v9375_v11 = vadd.f32 %v16261_v33, %v16265_v16 }
 0x7f4   : > { %17178 = vst [vmem:[#allocation46_spill] sm:$0xff] %v16523_v58  ;;  %v9376_v33 = vadd.f32 %v16270_v43, %v16273_v22  ;;  %v9377_v43 = vadd.f32 %v16275_v40, %v16278_v47  ;;  %v9378_v40 = vadd.f32 %v16280_v56, %v16283_v7 }
 0x7f5   : > { %10622 = vmatmul.bf16.gmra.mxu1 %v10503_v38 }
 0x7f8   : > { %v8393_v53 = vpop.f32.mrf.mxu2 }
 0x7f9   : > { %v8431_v10 = vadd.f32 %v8393_v53, %v16253_v14  ;;  %v8719_v48 = vpop.f32.mrf.mxu3  ;;  %v9043_v2 = vpop.f32.mrf.mxu0  ;;  %v10477_v53 = vld [vmem:[#allocation3 + $0xad] sm:$0xff] }
 0x7fa   : > { %v16528_v21 = vadd.f32 %v9043_v2, %v8756_v13  ;;  %v10476_v13 = vld [vmem:[#allocation3 + $0xa5] sm:$0xff] }
 0x7fb   : > { %v8757_v35 = vadd.f32 %v8719_v48, %v8431_v10  ;;  %v10504_v10 = vpack.c.bf16 %v10477_v53, %v10476_v13  ;;  %v9501_v48 = vld [vmem:[#allocation3 + $0xab] sm:$0xff]  ;;  %v10479_v13 = vld [vmem:[#allocation3 + $0xbd] sm:$0xff] }
 0x7fc   : > { %10296 = vmatmul.bf16.gmra.mxu0 %v9852_v49  ;;  %v9827_v2 = vld [vmem:[#allocation3 + $0xac] sm:$0xff] }
 0x7fd   : > { %9649 = vmatmul.bf16.gmra.mxu2 %v9526_v25  ;;  %v9826_v25 = vld [vmem:[#allocation3 + $0xa4] sm:$0xff] }
 0x7fe   : > { %9975 = vmatmul.bf16.gmra.mxu3 %v9852_v49  ;;  %v16538_v49 = vpop.f32.mrf.mxu1 }
 0x800   : > { %v9610_v54 = vpop.f32.mrf.mxu2 }
 0x801   : > { %v9700_v34 = vadd.f32 %v9610_v54, %v9374_v17  ;;  %v9936_v14 = vpop.f32.mrf.mxu3  ;;  %v9045_v38 = vpop.f32.mrf.mxu0 }
 0x802   : > { %v16534_v41 = vadd.f32 %v9045_v38, %v8757_v35  ;;  %v9527_v35 = vpack.c.bf16 %v9501_v48, %v9500_v51 }
 0x803   : > { %v10026_v58 = vadd.f32 %v9936_v14, %v9700_v34  ;;  %v9853_v34 = vpack.c.bf16 %v9827_v2, %v9826_v25 }
 0x805   : > { %10627 = vmatmul.bf16.gmra.mxu1 %v10504_v10 }
 0x806   : > { %v16549_v48 = vpop.f32.mrf.mxu1 }
 0x808   : > { %v9612_v30 = vpop.f32.mrf.mxu2 }
 0x809   : > { %v9701_v57 = vadd.f32 %v9612_v30, %v9375_v11  ;;  %v9938_v31 = vpop.f32.mrf.mxu3  ;;  %v10262_v24 = vpop.f32.mrf.mxu0  ;;  %v10478_v30 = vld [vmem:[#allocation3 + $0xb5] sm:$0xff] }
 0x80a   : > { %v16540_v54 = vadd.f32 %v10262_v24, %v10026_v58  ;;  %v12819_v58 = vld [vmem:[%s16887_s6 + $0x210] sm:$0xff]  ;;  %v10505_v2 = vpack.c.bf16 %v10479_v13, %v10478_v30  ;;  %v10481_v30 = vld [vmem:[#allocation3 + $0xcd] sm:$0xff] }
 0x80b   : > { %v10027_v17 = vadd.f32 %v9938_v31, %v9701_v57  ;;  %10910 = vmatpush.bf16.msrb.mxu2 %v12819_v58  ;;  %v9503_v57 = vld [vmem:[#allocation3 + $0xbb] sm:$0xff] }
 0x80c   : > { %10301 = vmatmul.bf16.gmra.mxu0 %v9853_v34  ;;  %v9829_v31 = vld [vmem:[#allocation3 + $0xbc] sm:$0xff] }
 0x80d   : > { %9654 = vmatmul.bf16.gmra.mxu2 %v9527_v35  ;;  %v9828_v35 = vld [vmem:[#allocation3 + $0xb4] sm:$0xff] }
 0x80e   : > { %9980 = vmatmul.bf16.gmra.mxu3 %v9853_v34 }
 0x810   : > { %v9615_v16 = vpop.f32.mrf.mxu2 }
 0x811   : > { %v9702_v14 = vadd.f32 %v9615_v16, %v9376_v33  ;;  %v9941_v38 = vpop.f32.mrf.mxu3  ;;  %v10264_v53 = vpop.f32.mrf.mxu0 }
 0x812   : > { %v16544_v11 = vadd.f32 %v10264_v53, %v10027_v17  ;;  %v9502_v17 = vld [vmem:[#allocation3 + $0xb3] sm:$0xff] }
 0x813   : > { %v10028_v10 = vadd.f32 %v9941_v38, %v9702_v14  ;;  %v9528_v16 = vpack.c.bf16 %v9503_v57, %v9502_v17  ;;  %v9854_v14 = vpack.c.bf16 %v9829_v31, %v9828_v35  ;;  %v16555_v38 = vpop.f32.mrf.mxu1  ;;  %v9379_v57 = vadd.f32 %v16285_v32, %v16288_v29  ;;  %v9504_v35 = vld [vmem:[#allocation3 + $0xc3] sm:$0xff] }
 0x814   : > { %v9380_v32 = vadd.f32 %v16290_v5, %v16296_v15  ;;  %v9381_v5 = vadd.f32 %v16298_v20, %v16301_v18  ;;  %v9382_v20 = vadd.f32 %v16303_v42, %v16306_v23 }
 0x815   : > { %10632 = vmatmul.bf16.gmra.mxu1 %v10505_v2 }
 0x818   : > { %v9617_v22 = vpop.f32.mrf.mxu2 }
 0x819   : > { %v9703_v24 = vadd.f32 %v9617_v22, %v9377_v43  ;;  %v9943_v51 = vpop.f32.mrf.mxu3  ;;  %v10267_v25 = vpop.f32.mrf.mxu0 }
 0x81a   : > { %v16553_v33 = vadd.f32 %v10267_v25, %v10028_v10  ;;  %v10480_v10 = vld [vmem:[#allocation3 + $0xc5] sm:$0xff] }
 0x81b   : > { %v10029_v34 = vadd.f32 %v9943_v51, %v9703_v24  ;;  %v10506_v22 = vpack.c.bf16 %v10481_v30, %v10480_v10  ;;  %v9505_v24 = vld [vmem:[#allocation3 + $0xcb] sm:$0xff]  ;;  %v16563_v25 = vpop.f32.mrf.mxu1  ;;  %v10483_v30 = vld [vmem:[#allocation3 + $0xdd] sm:$0xff] }
 0x81c   : > { %10306 = vmatmul.bf16.gmra.mxu0 %v9854_v14  ;;  %v9831_v51 = vld [vmem:[#allocation3 + $0xcc] sm:$0xff] }
 0x81d   : > { %9659 = vmatmul.bf16.gmra.mxu2 %v9528_v16  ;;  %v9830_v16 = vld [vmem:[#allocation3 + $0xc4] sm:$0xff] }
 0x81e   : > { %9985 = vmatmul.bf16.gmra.mxu3 %v9854_v14 }
 0x820   : > { %v9620_v47 = vpop.f32.mrf.mxu2 }
 0x821   : > { %v9704_v53 = vadd.f32 %v9620_v47, %v9378_v40  ;;  %v9946_v13 = vpop.f32.mrf.mxu3  ;;  %v10269_v58 = vpop.f32.mrf.mxu0  ;;  %v9855_v47 = vpack.c.bf16 %v9831_v51, %v9830_v16  ;;  %v9507_v51 = vld [vmem:[#allocation3 + $0xdb] sm:$0xff]  ;;  %v9506_v16 = vld [vmem:[#allocation3 + $0xd3] sm:$0xff] }
 0x822   : > { %v16559_v43 = vadd.f32 %v10269_v58, %v10029_v34  ;;  %v9529_v34 = vpack.c.bf16 %v9505_v24, %v9504_v35 }
 0x823   : > { %v10030_v2 = vadd.f32 %v9946_v13, %v9704_v53  ;;  %v16569_v10 = vpop.f32.mrf.mxu1 }
 0x825   : > { %10637 = vmatmul.bf16.gmra.mxu1 %v10506_v22 }
 0x828   : > { %v9622_v31 = vpop.f32.mrf.mxu2 }
 0x829   : > { %v9705_v56 = vadd.f32 %v9622_v31, %v9379_v57  ;;  %v9948_v7 = vpop.f32.mrf.mxu3  ;;  %v10272_v17 = vpop.f32.mrf.mxu0  ;;  %v12818_v31 = vld [vmem:[%s16887_s6 + $0x208] sm:$0xff] }
 0x82a   : > { %v16565_v40 = vadd.f32 %v10272_v17, %v10030_v2  ;;  %v10482_v2 = vld [vmem:[#allocation3 + $0xd5] sm:$0xff]  ;;  %10911 = vmatpush.bf16.msrb.mxu2 %v12818_v31 }
 0x82b   : > { %v10031_v14 = vadd.f32 %v9948_v7, %v9705_v56  ;;  %v10507_v24 = vpack.c.bf16 %v10483_v30, %v10482_v2  ;;  %v9833_v56 = vld [vmem:[#allocation3 + $0xdc] sm:$0xff]  ;;  %v10485_v2 = vld [vmem:[#allocation3 + $0xed] sm:$0xff] }
 0x82c   : > { %10311 = vmatmul.bf16.gmra.mxu0 %v9855_v47 }
 0x82d   : > { %9664 = vmatmul.bf16.gmra.mxu2 %v9529_v34 }
 0x82e   : > { %9990 = vmatmul.bf16.gmra.mxu3 %v9855_v47 }
 0x830   : > { %v9625_v29 = vpop.f32.mrf.mxu2 }
 0x831   : > { %v9706_v53 = vadd.f32 %v9625_v29, %v9380_v32  ;;  %v9951_v13 = vpop.f32.mrf.mxu3  ;;  %v10274_v58 = vpop.f32.mrf.mxu0  ;;  %v9530_v32 = vpack.c.bf16 %v9507_v51, %v9506_v16  ;;  %v9383_v51 = vadd.f32 %v16308_v37, %v16311_v59  ;;  %v9508_v16 = vld [vmem:[#allocation3 + $0xe3] sm:$0xff] }
 0x832   : > { %v16571_v57 = vadd.f32 %v10274_v58, %v10031_v14  ;;  %v9832_v14 = vld [vmem:[#allocation3 + $0xd4] sm:$0xff] }
 0x833   : > { %v10032_v22 = vadd.f32 %v9951_v13, %v9706_v53  ;;  %v9856_v29 = vpack.c.bf16 %v9833_v56, %v9832_v14  ;;  %v16580_v53 = vpop.f32.mrf.mxu1  ;;  %v9834_v14 = vld [vmem:[#allocation3 + $0xe4] sm:$0xff] }
 0x835   : > { %10642 = vmatmul.bf16.gmra.mxu1 %v10507_v24 }
 0x838   : > { %v9627_v15 = vpop.f32.mrf.mxu2 }
 0x839   : > { %v9707_v7 = vadd.f32 %v9627_v15, %v9381_v5  ;;  %v9953_v17 = vpop.f32.mrf.mxu3  ;;  %v10277_v35 = vpop.f32.mrf.mxu0 }
 0x83a   : > { %v16578_v47 = vadd.f32 %v10277_v35, %v10032_v22  ;;  %v10484_v22 = vld [vmem:[#allocation3 + $0xe5] sm:$0xff] }
 0x83b   : > { %v10033_v34 = vadd.f32 %v9953_v17, %v9707_v7  ;;  %v10508_v5 = vpack.c.bf16 %v10485_v2, %v10484_v22  ;;  %v16586_v15 = vpop.f32.mrf.mxu1  ;;  %v9509_v7 = vld [vmem:[#allocation3 + $0xeb] sm:$0xff]  ;;  %v10487_v2 = vld [vmem:[#allocation3 + $0xfd] sm:$0xff] }
 0x83c   : > { %10316 = vmatmul.bf16.gmra.mxu0 %v9856_v29  ;;  %v9835_v17 = vld [vmem:[#allocation3 + $0xec] sm:$0xff] }
 0x83d   : > { %9669 = vmatmul.bf16.gmra.mxu2 %v9530_v32 }
 0x83e   : > { %9995 = vmatmul.bf16.gmra.mxu3 %v9856_v29 }
 0x840   : > { %v9630_v18 = vpop.f32.mrf.mxu2 }
 0x841   : > { %v9708_v13 = vadd.f32 %v9630_v18, %v9382_v20  ;;  %v9956_v58 = vpop.f32.mrf.mxu3  ;;  %v10279_v30 = vpop.f32.mrf.mxu0  ;;  %v9857_v20 = vpack.c.bf16 %v9835_v17, %v9834_v14  ;;  %v9384_v18 = vadd.f32 %v16313_v46, %v16316_v44  ;;  %v9511_v17 = vld [vmem:[#allocation3 + $0xfb] sm:$0xff] }
 0x842   : > { %v16584_v24 = vadd.f32 %v10279_v30, %v10033_v34  ;;  %v9531_v34 = vpack.c.bf16 %v9509_v7, %v9508_v16  ;;  %v9836_v16 = vld [vmem:[#allocation3 + $0xf4] sm:$0xff] }
 0x843   : > { %v10034_v31 = vadd.f32 %v9956_v58, %v9708_v13  ;;  %v16594_v59 = vpop.f32.mrf.mxu1 }
 0x845   : > { %10647 = vmatmul.bf16.gmra.mxu1 %v10508_v5 }
 0x848   : > { %v9632_v56 = vpop.f32.mrf.mxu2 }
 0x849   : > { %v9709_v42 = vadd.f32 %v9632_v56, %v9383_v51  ;;  %v9958_v23 = vpop.f32.mrf.mxu3  ;;  %v10282_v35 = vpop.f32.mrf.mxu0  ;;  %v9385_v56 = vadd.f32 %v16321_v0, %v16327_v45  ;;  %v9386_v0 = vadd.f32 %v16332_v50, %v16341_v1  ;;  %v9512_v50 = vld [vmem:[#allocation3 + $0x103] sm:$0xff] }
 0x84a   : > { %v16590_v29 = vadd.f32 %v10282_v35, %v10034_v31  ;;  %v10486_v31 = vld [vmem:[#allocation3 + $0xf5] sm:$0xff]  ;;  %v9838_v1 = vld [vmem:[#allocation3 + $0x104] sm:$0xff] }
 0x84b   : > { %v10035_v32 = vadd.f32 %v9958_v23, %v9709_v42  ;;  %v10509_v51 = vpack.c.bf16 %v10487_v2, %v10486_v31  ;;  %v9837_v42 = vld [vmem:[#allocation3 + $0xfc] sm:$0xff]  ;;  %v9510_v35 = vld [vmem:[#allocation3 + $0xf3] sm:$0xff]  ;;  %v16600_v14 = vpop.f32.mrf.mxu1 }
 0x84c   : > { %10321 = vmatmul.bf16.gmra.mxu0 %v9857_v20 }
 0x84d   : > { %9674 = vmatmul.bf16.gmra.mxu2 %v9531_v34 }
 0x84e   : > { %10000 = vmatmul.bf16.gmra.mxu3 %v9857_v20 }
 0x850   : > { %v9635_v37 = vpop.f32.mrf.mxu2 }
 0x851   : > { %v9710_v13 = vadd.f32 %v9635_v37, %v9384_v18  ;;  %v9961_v58 = vpop.f32.mrf.mxu3  ;;  %v10284_v30 = vpop.f32.mrf.mxu0  ;;  %v9858_v18 = vpack.c.bf16 %v9837_v42, %v9836_v16  ;;  %v12817_v37 = vld [vmem:[%s16887_s6 + $0x200] sm:$0xff] }
 0x852   : > { %v16596_v5 = vadd.f32 %v10284_v30, %v10035_v32  ;;  %v9532_v32 = vpack.c.bf16 %v9511_v17, %v9510_v35  ;;  %10912 = vmatpush.bf16.msrb.mxu2 %v12817_v37  ;;  %v10489_v30 = vld [vmem:[#allocation3 + $0x10d] sm:$0xff] }
 0x853   : > { %v10036_v22 = vadd.f32 %v9961_v58, %v9710_v13  ;;  %v16613_v31 = vpop.f32.mrf.mxu1 }
 0x855   : > { %10652 = vmatmul.bf16.gmra.mxu1 %v10509_v51 }
 0x858   : > { %v9637_v7 = vpop.f32.mrf.mxu2 }
 0x859   : > { %v9711_v46 = vadd.f32 %v9637_v7, %v9385_v56  ;;  %v9963_v44 = vpop.f32.mrf.mxu3  ;;  %v10287_v23 = vpop.f32.mrf.mxu0  ;;  %v17179_v56 = vld [vmem:[#allocation6_spill] sm:$0xff]  ;;  %v17180_v7 = vld [vmem:[#allocation36_spill] sm:$0xff] }
 0x85a   : > { %v16602_v20 = vadd.f32 %v10287_v23, %v10036_v22  ;;  %v10488_v22 = vld [vmem:[#allocation3 + $0x105] sm:$0xff]  ;;  %v9387_v17 = vadd.f32 %v17180_v7, %v17179_v56  ;;  %v17185_v56 = vld [vmem:[#allocation34_spill] sm:$0xff] }
 0x85b   : > { %v10037_v34 = vadd.f32 %v9963_v44, %v9711_v46  ;;  %v10510_v51 = vpack.c.bf16 %v10489_v30, %v10488_v22  ;;  %v9513_v46 = vld [vmem:[#allocation3 + $0x10b] sm:$0xff]  ;;  %v10490_v30 = vld [vmem:[#allocation3 + $0x115] sm:$0xff] }
 0x85c   : > { %10326 = vmatmul.bf16.gmra.mxu0 %v9858_v18  ;;  %v9839_v44 = vld [vmem:[#allocation3 + $0x10c] sm:$0xff]  ;;  %v9533_v35 = vpack.c.bf16 %v9513_v46, %v9512_v50  ;;  %v9841_v46 = vld [vmem:[#allocation3 + $0x11c] sm:$0xff] }
 0x85d   : > { %9679 = vmatmul.bf16.gmra.mxu2 %v9532_v32  ;;  %v9859_v16 = vpack.c.bf16 %v9839_v44, %v9838_v1  ;;  %v17181_v32 = vld [vmem:[#allocation33_spill] sm:$0xff] }
 0x85e   : > { %10005 = vmatmul.bf16.gmra.mxu3 %v9858_v18  ;;  %v17182_v18 = vld [vmem:[#allocation10_spill] sm:$0xff] }
 0x85f   : > { %v9388_v37 = vadd.f32 %v17182_v18, %v17181_v32  ;;  %v9514_v1 = vld [vmem:[#allocation3 + $0x113] sm:$0xff]  ;;  %v17187_v18 = vld [vmem:[#allocation11_spill] sm:$0xff] }
 0x860   : > { %v9640_v45 = vpop.f32.mrf.mxu2 }
 0x861   : > { %v16609_v13 = vadd.f32 %v9640_v45, %v9386_v0  ;;  %v10289_v58 = vpop.f32.mrf.mxu0 }
 0x862   : > { %v16611_v2 = vadd.f32 %v10289_v58, %v10037_v34  ;;  %v16619_v34 = vpop.f32.mrf.mxu1  ;;  %v10491_v58 = vld [vmem:[#allocation3 + $0x11d] sm:$0xff] }
 0x863   : > { %v10511_v22 = vpack.c.bf16 %v10491_v58, %v10490_v30 }
 0x865   : > { %10657 = vmatmul.bf16.gmra.mxu1 %v10510_v51  ;;  %v17184_v51 = vld [vmem:[#allocation37_spill] sm:$0xff] }
 0x866   : > { %v9389_v7 = vadd.f32 %v17185_v56, %v17184_v51  ;;  %v10493_v51 = vld [vmem:[#allocation3 + $0x12d] sm:$0xff] }
 0x868   : > { %v9642_v42 = vpop.f32.mrf.mxu2 }
 0x869   : > { %v16617_v23 = vadd.f32 %v9642_v42, %v9387_v17  ;;  %v9515_v42 = vld [vmem:[#allocation3 + $0x11b] sm:$0xff] }
 0x86a   : > { %v16627_v44 = vpop.f32.mrf.mxu1 }
 0x86c   : > { %10331 = vmatmul.bf16.gmra.mxu0 %v9859_v16 }
 0x86d   : > { %9684 = vmatmul.bf16.gmra.mxu2 %v9533_v35  ;;  %v9840_v35 = vld [vmem:[#allocation3 + $0x114] sm:$0xff] }
 0x86e   : > { %10010 = vmatmul.bf16.gmra.mxu3 %v9859_v16  ;;  %v9534_v16 = vpack.c.bf16 %v9515_v42, %v9514_v1  ;;  %v9860_v32 = vpack.c.bf16 %v9841_v46, %v9840_v35  ;;  %v9517_v46 = vld [vmem:[#allocation3 + $0x12b] sm:$0xff] }
 0x86f   : > { %v9842_v1 = vld [vmem:[#allocation3 + $0x124] sm:$0xff]  ;;  %v9843_v35 = vld [vmem:[#allocation3 + $0x12c] sm:$0xff] }
 0x870   : > { %v9645_v0 = vpop.f32.mrf.mxu2 }
 0x871   : > { %v16623_v45 = vadd.f32 %v9645_v0, %v9388_v37  ;;  %v17188_v37 = vld [vmem:[#allocation42_spill] sm:$0xff] }
 0x872   : > { %v9390_v0 = vadd.f32 %v17188_v37, %v17187_v18  ;;  %v16635_v56 = vpop.f32.mrf.mxu1  ;;  %v9861_v37 = vpack.c.bf16 %v9843_v35, %v9842_v1 }
 0x873   : > { %17183 = vst [vmem:[#allocation17_spill] sm:$0xff] %v16623_v45 }
 0x875   : > { %10662 = vmatmul.bf16.gmra.mxu1 %v10511_v22  ;;  %v10492_v22 = vld [vmem:[#allocation3 + $0x125] sm:$0xff] }
 0x876   : > { %v10512_v45 = vpack.c.bf16 %v10493_v51, %v10492_v22  ;;  %v10494_v51 = vld [vmem:[#allocation3 + $0x135] sm:$0xff] }
 0x878   : > { %v9647_v17 = vpop.f32.mrf.mxu2 }
 0x879   : > { %v16629_v50 = vadd.f32 %v9647_v17, %v9389_v7  ;;  %v17190_v7 = vld [vmem:[#allocation12_spill] sm:$0xff] }
 0x87a   : > { %v9391_v17 = vadd.f32 %v17190_v7, %v16437_v19  ;;  %v10495_v19 = vld [vmem:[#allocation3 + $0x13d] sm:$0xff] }
 0x87b   : > { %17186 = vst [vmem:[#allocation18_spill] sm:$0xff] %v16629_v50  ;;  %v10168_v50 = vld [vmem:[#allocation3 + $0x134] sm:$0xff] }
 0x87c   : > { %10336 = vmatmul.bf16.gmra.mxu0 %v9860_v32 }
 0x87d   : > { %9689 = vmatmul.bf16.gmra.mxu2 %v9534_v16 }
 0x87e   : > { %10015 = vmatmul.bf16.gmra.mxu3 %v9860_v32  ;;  %v9516_v32 = vld [vmem:[#allocation3 + $0x123] sm:$0xff] }
 0x87f   : > { %v9535_v18 = vpack.c.bf16 %v9517_v46, %v9516_v32  ;;  %v17194_v46 = vld [vmem:[#allocation39_spill] sm:$0xff]  ;;  %v10787_v32 = vld [vmem:[#allocation3 + $0x2e] sm:$0xff] }
 0x880   : > { %v9650_v58 = vpop.f32.mrf.mxu2  ;;  %v9393_v1 = vadd.f32 %v17194_v46, %v16447_v6 }
 0x881   : > { %v16633_v30 = vadd.f32 %v9650_v58, %v9390_v0  ;;  %v16641_v0 = vpop.f32.mrf.mxu1  ;;  %v17192_v58 = vld [vmem:[#allocation35_spill] sm:$0xff] }
 0x883   : > { %17189 = vst [vmem:[#allocation19_spill] sm:$0xff] %v16633_v30  ;;  %v10513_v30 = vpack.c.bf16 %v10495_v19, %v10494_v51 }
 0x885   : > { %10667 = vmatmul.bf16.gmra.mxu1 %v10512_v45  ;;  %v9392_v45 = vadd.f32 %v17192_v58, %v16442_v4  ;;  %v10786_v4 = vld [vmem:[#allocation3 + $0x26] sm:$0xff] }
 0x886   : > { %v10822_v58 = vpack.c.bf16 %v10787_v32, %v10786_v4 }
 0x888   : > { %v9652_v42 = vpop.f32.mrf.mxu2 }
 0x889   : > { %v16639_v16 = vadd.f32 %v9652_v42, %v9391_v17  ;;  %v10169_v17 = vld [vmem:[#allocation3 + $0x13c] sm:$0xff]  ;;  %v16647_v42 = vpop.f32.mrf.mxu1 }
 0x88b   : > { %17191 = vst [vmem:[#allocation20_spill] sm:$0xff] %v16639_v16 }
 0x88c   : > { %10341 = vmatmul.bf16.gmra.mxu0 %v9861_v37 }
 0x88d   : > { %9694 = vmatmul.bf16.gmra.mxu2 %v9535_v18 }
 0x88e   : > { %10020 = vmatmul.bf16.gmra.mxu3 %v9861_v37  ;;  %v10187_v37 = vpack.c.bf16 %v10169_v17, %v10168_v50  ;;  %v9396_v50 = vadd.f32 %v16465_v28, %v16463_v63  ;;  %v17200_v63 = vld [vmem:[#allocation44_spill] sm:$0xff] }
 0x88f   : > { %v9399_v28 = vadd.f32 %v16484_v62, %v17200_v63  ;;  %v10794_v62 = vld [vmem:[#allocation3 + $0x66] sm:$0xff] }
 0x890   : > { %v9655_v22 = vpop.f32.mrf.mxu2 }
 0x891   : > { %v16645_v7 = vadd.f32 %v9655_v22, %v9392_v45  ;;  %v17195_v45 = vld [vmem:[#allocation38_spill] sm:$0xff] }
 0x892   : > { %v9394_v22 = vadd.f32 %v17195_v45, %v16455_v12  ;;  %v17197_v12 = vld [vmem:[#allocation13_spill] sm:$0xff] }
 0x893   : > { %17193 = vst [vmem:[#allocation21_spill] sm:$0xff] %v16645_v7  ;;  %v17196_v7 = vld [vmem:[#allocation43_spill] sm:$0xff]  ;;  %v10791_v45 = vld [vmem:[#allocation3 + $0x4e] sm:$0xff] }
 0x894   : > { %v9395_v16 = vadd.f32 %v17196_v7, %v16460_v52  ;;  %v10790_v52 = vld [vmem:[#allocation3 + $0x46] sm:$0xff] }
 0x895   : > { %10672 = vmatmul.bf16.gmra.mxu1 %v10513_v30  ;;  %v10789_v30 = vld [vmem:[#allocation3 + $0x3e] sm:$0xff]  ;;  %v10824_v7 = vpack.c.bf16 %v10791_v45, %v10790_v52  ;;  %v10795_v52 = vld [vmem:[#allocation3 + $0x6e] sm:$0xff] }
 0x898   : > { %v9657_v35 = vpop.f32.mrf.mxu2 }
 0x899   : > { %v16651_v18 = vadd.f32 %v9657_v35, %v9393_v1  ;;  %v10788_v1 = vld [vmem:[#allocation3 + $0x36] sm:$0xff] }
 0x89a   : > { %v10823_v35 = vpack.c.bf16 %v10789_v30, %v10788_v1 }
 0x89c   : > { %10346 = vmatmul.bf16.gmra.mxu0 %v10187_v37  ;;  %v17198_v37 = vld [vmem:[#allocation14_spill] sm:$0xff] }
 0x89d   : > { %10913 = vmatmul.bf16.vlgmr.msrb.gmra.mxu2 %v10822_v58  ;;  %v9397_v4 = vadd.f32 %v17198_v37, %v17197_v12  ;;  %v9400_v37 = vadd.f32 %v16491_v55, %v16486_v60  ;;  %v17203_v55 = vld [vmem:[#allocation16_spill] sm:$0xff] }
 0x89e   : > { %v9403_v60 = vadd.f32 %v16510_v61, %v17203_v55  ;;  %v10798_v61 = vld [vmem:[#allocation3 + $0x86] sm:$0xff] }
 0x8a0   : > { %v9660_v51 = vpop.f32.mrf.mxu2 }
 0x8a1   : > { %v16655_v19 = vadd.f32 %v9660_v51, %v9394_v22 }
 0x8a8   : > { %v9662_v6 = vpop.f32.mrf.mxu2 }
 0x8a9   : > { %v16659_v46 = vadd.f32 %v9662_v6, %v9395_v16  ;;  %v17199_v16 = vld [vmem:[#allocation40_spill] sm:$0xff] }
 0x8aa   : > { %v9398_v51 = vadd.f32 %v17199_v16, %v16476_v27  ;;  %v9401_v27 = vadd.f32 %v16499_v39, %v16489_v36  ;;  %v10826_v16 = vpack.c.bf16 %v10795_v52, %v10794_v62  ;;  %v10796_v36 = vld [vmem:[#allocation3 + $0x76] sm:$0xff]  ;;  %v9405_v52 = vadd.f32 %v16525_v26, %v16512_v8 }
 0x8ab   : > { %v10800_v8 = vld [vmem:[#allocation3 + $0x96] sm:$0xff] }
 0x8ad   : > { %10918 = vmatmul.bf16.gmra.mxu2 %v10823_v35  ;;  %v10793_v35 = vld [vmem:[#allocation3 + $0x5e] sm:$0xff] }
 0x8b0   : > { %v9665_v17 = vpop.f32.mrf.mxu2 }
 0x8b1   : > { %v16663_v32 = vadd.f32 %v9665_v17, %v9396_v50  ;;  %v10792_v17 = vld [vmem:[#allocation3 + $0x56] sm:$0xff] }
 0x8b2   : > { %v10825_v12 = vpack.c.bf16 %v10793_v35, %v10792_v17  ;;  %v10797_v17 = vld [vmem:[#allocation3 + $0x7e] sm:$0xff] }
 0x8b3   : > { %v10827_v39 = vpack.c.bf16 %v10797_v17, %v10796_v36  ;;  %v10801_v36 = vld [vmem:[#allocation3 + $0x9e] sm:$0xff] }
 0x8b4   : > { %v10829_v26 = vpack.c.bf16 %v10801_v36, %v10800_v8  ;;  %v10680_v8 = vadd.f32 %v16580_v53, %v16553_v33  ;;  %v10682_v33 = vadd.f32 %v16594_v59, %v16565_v40 }
 0x8b8   : > { %v9667_v58 = vpop.f32.mrf.mxu2 }
 0x8b9   : > { %v16667_v22 = vadd.f32 %v9667_v58, %v9397_v4 }
 0x8bd   : > { %10923 = vmatmul.bf16.gmra.mxu2 %v10824_v7 }
 0x8c0   : > { %v9670_v6 = vpop.f32.mrf.mxu2 }
 0x8c1   : > { %v16671_v30 = vadd.f32 %v9670_v6, %v9398_v51  ;;  %v17201_v51 = vld [vmem:[#allocation15_spill] sm:$0xff]  ;;  %v17202_v6 = vld [vmem:[#allocation45_spill] sm:$0xff] }
 0x8c2   : > { %v9402_v63 = vadd.f32 %v17202_v6, %v17201_v51 }
 0x8c8   : > { %v9672_v1 = vpop.f32.mrf.mxu2 }
 0x8c9   : > { %v16675_v50 = vadd.f32 %v9672_v1, %v9399_v28 }
 0x8cd   : > { %10928 = vmatmul.bf16.gmra.mxu2 %v10825_v12 }
 0x8d0   : > { %v9675_v4 = vpop.f32.mrf.mxu2 }
 0x8d1   : > { %v16679_v58 = vadd.f32 %v9675_v4, %v9400_v37  ;;  %v17204_v37 = vld [vmem:[#allocation48_spill] sm:$0xff] }
 0x8d2   : > { %v9404_v4 = vadd.f32 %v16517_v9, %v17204_v37  ;;  %v17206_v9 = vld [vmem:[#allocation46_spill] sm:$0xff]  ;;  %v9408_v37 = vadd.f32 %v16549_v48, %v16528_v21  ;;  %v16722_v21 = vld [vmem:[%s16890_s9] ss:$0 sm:$0xff] }
 0x8d8   : > { %v9677_v45 = vpop.f32.mrf.mxu2 }
 0x8d9   : > { %v16683_v7 = vadd.f32 %v9677_v45, %v9401_v27 }
 0x8dd   : > { %10933 = vmatmul.bf16.gmra.mxu2 %v10826_v16  ;;  %v10799_v16 = vld [vmem:[#allocation3 + $0x8e] sm:$0xff] }
 0x8de   : > { %v10828_v6 = vpack.c.bf16 %v10799_v16, %v10798_v61  ;;  %v10802_v16 = vld [vmem:[#allocation3 + $0xa6] sm:$0xff] }
 0x8e0   : > { %v9680_v28 = vpop.f32.mrf.mxu2 }
 0x8e1   : > { %v16687_v1 = vadd.f32 %v9680_v28, %v9402_v63  ;;  %v17205_v63 = vld [vmem:[#allocation47_spill] sm:$0xff] }
 0x8e2   : > { %v9406_v28 = vadd.f32 %v16532_v3, %v17205_v63  ;;  %v9409_v3 = vadd.f32 %v16555_v38, %v16534_v41 }
 0x8e8   : > { %v9682_v35 = vpop.f32.mrf.mxu2 }
 0x8e9   : > { %v16691_v12 = vadd.f32 %v9682_v35, %v9403_v60  ;;  %v9407_v35 = vadd.f32 %v16538_v49, %v17206_v9  ;;  %v10804_v9 = vld [vmem:[#allocation3 + $0xb6] sm:$0xff] }
 0x8ed   : > { %10938 = vmatmul.bf16.gmra.mxu2 %v10827_v39 }
 0x8f0   : > { %v9685_v27 = vpop.f32.mrf.mxu2 }
 0x8f1   : > { %v16695_v45 = vadd.f32 %v9685_v27, %v9404_v4 }
 0x8f8   : > { %v9687_v62 = vpop.f32.mrf.mxu2 }
 0x8f9   : > { %v16699_v51 = vadd.f32 %v9687_v62, %v9405_v52  ;;  %v10803_v62 = vld [vmem:[#allocation3 + $0xae] sm:$0xff] }
 0x8fa   : > { %v10830_v61 = vpack.c.bf16 %v10803_v62, %v10802_v16  ;;  %v10806_v16 = vld [vmem:[#allocation3 + $0xc6] sm:$0xff] }
 0x8fd   : > { %10943 = vmatmul.bf16.gmra.mxu2 %v10828_v6  ;;  %v10678_v6 = vadd.f32 %v16563_v25, %v16540_v54  ;;  %v10679_v54 = vadd.f32 %v16569_v10, %v16544_v11  ;;  %v10681_v11 = vadd.f32 %v16586_v15, %v16559_v43  ;;  %v10683_v43 = vadd.f32 %v16600_v14, %v16571_v57 }
 0x900   : > { %v9690_v55 = vpop.f32.mrf.mxu2 }
 0x901   : > { %v16703_v60 = vadd.f32 %v9690_v55, %v9406_v28  ;;  %v10805_v28 = vld [vmem:[#allocation3 + $0xbe] sm:$0xff] }
 0x908   : > { %v9692_v17 = vpop.f32.mrf.mxu2 }
 0x909   : > { %v16707_v39 = vadd.f32 %v9692_v17, %v9407_v35  ;;  %v10831_v17 = vpack.c.bf16 %v10805_v28, %v10804_v9  ;;  %v10808_v9 = vld [vmem:[#allocation3 + $0xd6] sm:$0xff] }
 0x90d   : > { %10948 = vmatmul.bf16.gmra.mxu2 %v10829_v26 }
 0x910   : > { %v9695_v4 = vpop.f32.mrf.mxu2 }
 0x911   : > { %v16711_v27 = vadd.f32 %v9695_v4, %v9408_v37 }
 0x918   : > { %v9697_v52 = vpop.f32.mrf.mxu2 }
 0x919   : > { %v16715_v49 = vadd.f32 %v9697_v52, %v9409_v3  ;;  %v10807_v52 = vld [vmem:[#allocation3 + $0xce] sm:$0xff] }
 0x91d   : > { %10953 = vmatmul.bf16.gmra.mxu2 %v10830_v61 }
 0x920   : > { %v10914_v48 = vpop.f32.mrf.mxu2 }
 0x921   : > { %v11004_v63 = vadd.f32 %v10914_v48, %v10678_v6  ;;  %v10832_v6 = vpack.c.bf16 %v10807_v52, %v10806_v16 }
 0x923   : > { %v11116_v41 = vadd.f32 %v16722_v21, %v11004_v63 }
 0x925   : > { %v11152_v38 = vmax.f32 %v11116_v41, 0.0 }
 0x927   : > { %11188 = vst [vmem:[%s16729_s18] sm:$0xff] %v11152_v38 }
 0x928   : > { %v10916_v25 = vpop.f32.mrf.mxu2 }
 0x929   : > { %v11005_v55 = vadd.f32 %v10916_v25, %v10679_v54  ;;  %v10809_v54 = vld [vmem:[#allocation3 + $0xde] sm:$0xff]  ;;  %v16750_v25 = vpop.f32.mrf.mxu3 }
 0x92a   : > { %v10833_v59 = vpack.c.bf16 %v10809_v54, %v10808_v9 }
 0x92b   : > { %v11117_v35 = vadd.f32 %v16722_v21, %v11005_v55  ;;  %v16752_v55 = vpop.f32.mrf.mxu0 }
 0x92d   : > { %v11153_v36 = vmax.f32 %v11117_v35, 0.0  ;;  %10958 = vmatmul.bf16.gmra.mxu2 %v10831_v17  ;;  %v10684_v17 = vadd.f32 %v16613_v31, %v16578_v47  ;;  %v10810_v31 = vld [vmem:[#allocation3 + $0xe6] sm:$0xff] }
 0x92f   : > { %11189 = vst [vmem:[%s16729_s18 + $0x8] sm:$0xff] %v11153_v36  ;;  %v16758_v36 = vpop.f32.mrf.mxu1 }
 0x930   : > { %v10919_v26 = vpop.f32.mrf.mxu2 }
 0x931   : > { %v11006_v37 = vadd.f32 %v10919_v26, %v10680_v8  ;;  %v16760_v8 = vpop.f32.mrf.mxu3 }
 0x933   : > { %v11118_v4 = vadd.f32 %v16722_v21, %v11006_v37  ;;  %v16763_v37 = vpop.f32.mrf.mxu0 }
 0x935   : > { %v11154_v3 = vmax.f32 %v11118_v4, 0.0 }
 0x937   : > { %11190 = vst [vmem:[%s16729_s18 + $0x10] sm:$0xff] %v11154_v3  ;;  %v10685_v3 = vadd.f32 %v16619_v34, %v16584_v24  ;;  %v16768_v47 = vpop.f32.mrf.mxu1 }
 0x938   : > { %v10921_v10 = vpop.f32.mrf.mxu2 }
 0x939   : > { %v11007_v62 = vadd.f32 %v10921_v10, %v10681_v11  ;;  %v10811_v10 = vld [vmem:[#allocation3 + $0xee] sm:$0xff] }
 0x93a   : > { %v10834_v16 = vpack.c.bf16 %v10811_v10, %v10810_v31  ;;  %v10038_v31 = vadd.f32 %v16750_v25, %v16609_v13 }
 0x93b   : > { %v11119_v61 = vadd.f32 %v16722_v21, %v11007_v62 }
 0x93d   : > { %v11155_v48 = vmax.f32 %v11119_v61, 0.0  ;;  %10963 = vmatmul.bf16.gmra.mxu2 %v10832_v6  ;;  %v9971_v61 = vpop.f32.mrf.mxu3 }
 0x93f   : > { %11191 = vst [vmem:[%s16729_s18 + $0x18] sm:$0xff] %v11155_v48  ;;  %v10297_v48 = vpop.f32.mrf.mxu0 }
 0x940   : > { %v10924_v53 = vpop.f32.mrf.mxu2 }
 0x941   : > { %v11008_v63 = vadd.f32 %v10924_v53, %v10682_v33  ;;  %v10686_v33 = vadd.f32 %v16627_v44, %v16590_v29  ;;  %v10812_v44 = vld [vmem:[#allocation3 + $0xf6] sm:$0xff] }
 0x943   : > { %v11120_v41 = vadd.f32 %v16722_v21, %v11008_v63  ;;  %v16775_v63 = vpop.f32.mrf.mxu1 }
 0x945   : > { %v11156_v38 = vmax.f32 %v11120_v41, 0.0 }
 0x947   : > { %11192 = vst [vmem:[%s16729_s18 + $0x20] sm:$0xff] %v11156_v38  ;;  %v16777_v38 = vpop.f32.mrf.mxu3 }
 0x948   : > { %v10926_v15 = vpop.f32.mrf.mxu2 }
 0x949   : > { %v11009_v28 = vadd.f32 %v10926_v15, %v10683_v43  ;;  %v10687_v43 = vadd.f32 %v16635_v56, %v16596_v5  ;;  %v16782_v15 = vpop.f32.mrf.mxu0 }
 0x94b   : > { %v11121_v40 = vadd.f32 %v16722_v21, %v11009_v28  ;;  %v10813_v28 = vld [vmem:[#allocation3 + $0xfe] sm:$0xff] }
 0x94d   : > { %v11157_v35 = vmax.f32 %v11121_v40, 0.0  ;;  %10968 = vmatmul.bf16.gmra.mxu2 %v10833_v59  ;;  %v10835_v40 = vpack.c.bf16 %v10813_v28, %v10812_v44 }
 0x94f   : > { %11193 = vst [vmem:[%s16729_s18 + $0x28] sm:$0xff] %v11157_v35  ;;  %v10625_v35 = vpop.f32.mrf.mxu1 }
 0x950   : > { %v10929_v57 = vpop.f32.mrf.mxu2 }
 0x951   : > { %v11010_v14 = vadd.f32 %v10929_v57, %v10684_v17  ;;  %v10688_v17 = vadd.f32 %v16641_v0, %v16602_v20  ;;  %v10302_v56 = vpop.f32.mrf.mxu0  ;;  %v10814_v0 = vld [vmem:[#allocation3 + $0x106] sm:$0xff] }
 0x953   : > { %v11122_v26 = vadd.f32 %v16722_v21, %v11010_v14  ;;  %v9976_v14 = vpop.f32.mrf.mxu3 }
 0x955   : > { %v11158_v4 = vmax.f32 %v11122_v26, 0.0 }
 0x957   : > { %11194 = vst [vmem:[%s16729_s18 + $0x30] sm:$0xff] %v11158_v4 }
 0x958   : > { %v10931_v11 = vpop.f32.mrf.mxu2 }
 0x959   : > { %v11011_v52 = vadd.f32 %v10931_v11, %v10685_v3  ;;  %v10689_v3 = vadd.f32 %v16647_v42, %v16611_v2  ;;  %v16792_v11 = vpop.f32.mrf.mxu1 }
 0x95b   : > { %v11123_v62 = vadd.f32 %v16722_v21, %v11011_v52  ;;  %v10815_v52 = vld [vmem:[#allocation3 + $0x10e] sm:$0xff] }
 0x95d   : > { %v11159_v6 = vmax.f32 %v11123_v62, 0.0  ;;  %10973 = vmatmul.bf16.gmra.mxu2 %v10834_v16  ;;  %v10364_v62 = vadd.f32 %v16752_v55, %v10038_v31  ;;  %v9978_v16 = vpop.f32.mrf.mxu3 }
 0x95f   : > { %11195 = vst [vmem:[%s16729_s18 + $0x38] sm:$0xff] %v11159_v6  ;;  %v10690_v2 = vadd.f32 %v16758_v36, %v10364_v62  ;;  %v17207_v36 = vld [vmem:[#allocation17_spill] sm:$0xff] }
 0x960   : > { %v10934_v53 = vpop.f32.mrf.mxu2 }
 0x961   : > { %v11012_v24 = vadd.f32 %v10934_v53, %v10686_v33  ;;  %v10836_v33 = vpack.c.bf16 %v10815_v52, %v10814_v0  ;;  %v10304_v53 = vpop.f32.mrf.mxu0  ;;  %v10630_v25 = vpop.f32.mrf.mxu1 }
 0x963   : > { %v11124_v34 = vadd.f32 %v16722_v21, %v11012_v24 }
 0x965   : > { %v11160_v41 = vmax.f32 %v11124_v34, 0.0  ;;  %v10039_v34 = vadd.f32 %v16760_v8, %v16617_v23 }
 0x967   : > { %11196 = vst [vmem:[%s16729_s18 + $0x40] sm:$0xff] %v11160_v41  ;;  %v10365_v41 = vadd.f32 %v16763_v37, %v10039_v34 }
 0x968   : > { %v10936_v54 = vpop.f32.mrf.mxu2 }
 0x969   : > { %v11013_v29 = vadd.f32 %v10936_v54, %v10687_v43  ;;  %v9981_v43 = vpop.f32.mrf.mxu3  ;;  %v10307_v28 = vpop.f32.mrf.mxu0 }
 0x96b   : > { %v11125_v9 = vadd.f32 %v16722_v21, %v11013_v29  ;;  %v10691_v29 = vadd.f32 %v16768_v47, %v10365_v41 }
 0x96d   : > { %v11161_v59 = vmax.f32 %v11125_v9, 0.0  ;;  %10978 = vmatmul.bf16.gmra.mxu2 %v10835_v40  ;;  %v10817_v9 = vld [vmem:[#allocation3 + $0x11e] sm:$0xff]  ;;  %v10040_v40 = vadd.f32 %v9971_v61, %v17207_v36 }
 0x96f   : > { %11197 = vst [vmem:[%s16729_s18 + $0x48] sm:$0xff] %v11161_v59  ;;  %v10366_v23 = vadd.f32 %v10297_v48, %v10040_v40 }
 0x970   : > { %v10939_v57 = vpop.f32.mrf.mxu2 }
 0x971   : > { %v11014_v5 = vadd.f32 %v10939_v57, %v10688_v17  ;;  %v10816_v17 = vld [vmem:[#allocation3 + $0x116] sm:$0xff]  ;;  %v10633_v57 = vpop.f32.mrf.mxu1 }
 0x972   : > { %v10837_v37 = vpack.c.bf16 %v10817_v9, %v10816_v17 }
 0x973   : > { %v11126_v26 = vadd.f32 %v16722_v21, %v11014_v5 }
 0x975   : > { %v11162_v4 = vmax.f32 %v11126_v26, 0.0  ;;  %v9983_v26 = vpop.f32.mrf.mxu3 }
 0x977   : > { %11198 = vst [vmem:[%s16729_s18 + $0x50] sm:$0xff] %v11162_v4  ;;  %v10692_v4 = vadd.f32 %v16775_v63, %v10366_v23  ;;  %v10820_v23 = vld [vmem:[#allocation3 + $0x136] sm:$0xff] }
 0x978   : > { %v10941_v10 = vpop.f32.mrf.mxu2 }
 0x979   : > { %v11015_v20 = vadd.f32 %v10941_v10, %v10689_v3  ;;  %v10309_v3 = vpop.f32.mrf.mxu0  ;;  %v17208_v10 = vld [vmem:[#allocation18_spill] sm:$0xff]  ;;  %v10635_v0 = vpop.f32.mrf.mxu1 }
 0x97a   : > { %v10041_v52 = vadd.f32 %v16777_v38, %v17208_v10 }
 0x97b   : > { %v11127_v6 = vadd.f32 %v16722_v21, %v11015_v20 }
 0x97c   : > { %v10367_v31 = vadd.f32 %v16782_v15, %v10041_v52 }
 0x97d   : > { %v11163_v24 = vmax.f32 %v11127_v6, 0.0  ;;  %10983 = vmatmul.bf16.gmra.mxu2 %v10836_v33  ;;  %v10818_v33 = vld [vmem:[#allocation3 + $0x126] sm:$0xff] }
 0x97e   : > { %v10693_v62 = vadd.f32 %v10625_v35, %v10367_v31 }
 0x97f   : > { %11199 = vst [vmem:[%s16729_s18 + $0x58] sm:$0xff] %v11163_v24  ;;  %v10819_v24 = vld [vmem:[#allocation3 + $0x12e] sm:$0xff] }
 0x980   : > { %v10944_v42 = vpop.f32.mrf.mxu2 }
 0x981   : > { %v11016_v13 = vadd.f32 %v10944_v42, %v10690_v2  ;;  %v17209_v2 = vld [vmem:[#allocation19_spill] sm:$0xff]  ;;  %v9986_v42 = vpop.f32.mrf.mxu3 }
 0x982   : > { %v10042_v63 = vadd.f32 %v9976_v14, %v17209_v2 }
 0x983   : > { %v11128_v55 = vadd.f32 %v16722_v21, %v11016_v13  ;;  %v10312_v13 = vpop.f32.mrf.mxu0 }
 0x984   : > { %v10368_v41 = vadd.f32 %v10302_v56, %v10042_v63 }
 0x985   : > { %v11164_v54 = vmax.f32 %v11128_v55, 0.0  ;;  %v10838_v55 = vpack.c.bf16 %v10819_v24, %v10818_v33 }
 0x987   : > { %11200 = vst [vmem:[%s16729_s18 + $0x60] sm:$0xff] %v11164_v54  ;;  %v10694_v54 = vadd.f32 %v16792_v11, %v10368_v41 }
 0x988   : > { %v10946_v44 = vpop.f32.mrf.mxu2 }
 0x989   : > { %v11017_v59 = vadd.f32 %v10946_v44, %v10691_v29  ;;  %v10638_v29 = vpop.f32.mrf.mxu1  ;;  %v17210_v44 = vld [vmem:[#allocation20_spill] sm:$0xff]  ;;  %v9988_v14 = vpop.f32.mrf.mxu3 }
 0x98a   : > { %v10043_v9 = vadd.f32 %v9978_v16, %v17210_v44 }
 0x98b   : > { %v11129_v8 = vadd.f32 %v16722_v21, %v11017_v59  ;;  %v10314_v17 = vpop.f32.mrf.mxu0 }
 0x98c   : > { %v10369_v40 = vadd.f32 %v10304_v53, %v10043_v9 }
 0x98d   : > { %v11165_v5 = vmax.f32 %v11129_v8, 0.0  ;;  %10988 = vmatmul.bf16.gmra.mxu2 %v10837_v37  ;;  %v10821_v8 = vld [vmem:[#allocation3 + $0x13e] sm:$0xff] }
 0x98e   : > { %v10695_v37 = vadd.f32 %v10630_v25, %v10369_v40  ;;  %v10839_v10 = vpack.c.bf16 %v10821_v8, %v10820_v23 }
 0x98f   : > { %11201 = vst [vmem:[%s16729_s18 + $0x68] sm:$0xff] %v11165_v5 }
 0x990   : > { %v10949_v47 = vpop.f32.mrf.mxu2 }
 0x991   : > { %v11018_v61 = vadd.f32 %v10949_v47, %v10692_v4  ;;  %v17211_v4 = vld [vmem:[#allocation21_spill] sm:$0xff]  ;;  %v10640_v52 = vpop.f32.mrf.mxu1  ;;  %v9991_v53 = vpop.f32.mrf.mxu3 }
 0x992   : > { %v10044_v47 = vadd.f32 %v9981_v43, %v17211_v4 }
 0x993   : > { %v11130_v48 = vadd.f32 %v16722_v21, %v11018_v61 }
 0x994   : > { %v10370_v61 = vadd.f32 %v10307_v28, %v10044_v47 }
 0x995   : > { %v11166_v20 = vmax.f32 %v11130_v48, 0.0  ;;  %v10317_v48 = vpop.f32.mrf.mxu0 }
 0x997   : > { %11202 = vst [vmem:[%s16729_s18 + $0x70] sm:$0xff] %v11166_v20  ;;  %v10696_v20 = vadd.f32 %v10633_v57, %v10370_v61 }
 0x998   : > { %v10951_v6 = vpop.f32.mrf.mxu2 }
 0x999   : > { %v11019_v34 = vadd.f32 %v10951_v6, %v10693_v62  ;;  %v10045_v6 = vadd.f32 %v9983_v26, %v16651_v18  ;;  %v10643_v24 = vpop.f32.mrf.mxu1  ;;  %v9993_v28 = vpop.f32.mrf.mxu3 }
 0x99a   : > { %v10049_v4 = vadd.f32 %v9993_v28, %v16667_v22 }
 0x99b   : > { %v11131_v38 = vadd.f32 %v16722_v21, %v11019_v34  ;;  %v10371_v33 = vadd.f32 %v10309_v3, %v10045_v6 }
 0x99d   : > { %v11167_v15 = vmax.f32 %v11131_v38, 0.0  ;;  %10993 = vmatmul.bf16.gmra.mxu2 %v10838_v55  ;;  %v10697_v63 = vadd.f32 %v10635_v0, %v10371_v33  ;;  %v10319_v34 = vpop.f32.mrf.mxu0  ;;  %v10046_v38 = vadd.f32 %v9986_v42, %v16655_v19 }
 0x99f   : > { %11203 = vst [vmem:[%s16729_s18 + $0x78] sm:$0xff] %v11167_v15  ;;  %v10372_v57 = vadd.f32 %v10312_v13, %v10046_v38 }
 0x9a0   : > { %v10954_v35 = vpop.f32.mrf.mxu2 }
 0x9a1   : > { %v11020_v36 = vadd.f32 %v10954_v35, %v10694_v54  ;;  %v10645_v26 = vpop.f32.mrf.mxu1  ;;  %v10698_v3 = vadd.f32 %v10638_v29, %v10372_v57  ;;  %v10047_v35 = vadd.f32 %v9988_v14, %v16659_v46  ;;  %v9996_v44 = vpop.f32.mrf.mxu3 }
 0x9a3   : > { %v11132_v59 = vadd.f32 %v16722_v21, %v11020_v36  ;;  %v10373_v36 = vadd.f32 %v10314_v17, %v10047_v35 }
 0x9a5   : > { %v11168_v56 = vmax.f32 %v11132_v59, 0.0  ;;  %v10322_v0 = vpop.f32.mrf.mxu0  ;;  %v10699_v42 = vadd.f32 %v10640_v52, %v10373_v36 }
 0x9a7   : > { %11204 = vst [vmem:[%s16729_s18 + $0x80] sm:$0xff] %v11168_v56  ;;  %v10048_v56 = vadd.f32 %v9991_v53, %v16663_v32 }
 0x9a8   : > { %v10956_v5 = vpop.f32.mrf.mxu2 }
 0x9a9   : > { %v11021_v11 = vadd.f32 %v10956_v5, %v10695_v37  ;;  %v10648_v13 = vpop.f32.mrf.mxu1  ;;  %v10374_v8 = vadd.f32 %v10317_v48, %v10048_v56  ;;  %v9998_v29 = vpop.f32.mrf.mxu3  ;;  %v10050_v48 = vadd.f32 %v9996_v44, %v16671_v30 }
 0x9aa   : > { %v10051_v28 = vadd.f32 %v9998_v29, %v16675_v50 }
 0x9ab   : > { %v11133_v16 = vadd.f32 %v16722_v21, %v11021_v11  ;;  %v10700_v5 = vadd.f32 %v10643_v24, %v10374_v8 }
 0x9ad   : > { %v11169_v31 = vmax.f32 %v11133_v16, 0.0  ;;  %10998 = vmatmul.bf16.gmra.mxu2 %v10839_v10  ;;  %v10324_v14 = vpop.f32.mrf.mxu0  ;;  %v10375_v10 = vadd.f32 %v10319_v34, %v10049_v4 }
 0x9ae   : > { %v10377_v34 = vadd.f32 %v10324_v14, %v10051_v28 }
 0x9af   : > { %11205 = vst [vmem:[%s16729_s18 + $0x88] sm:$0xff] %v11169_v31  ;;  %v10701_v53 = vadd.f32 %v10645_v26, %v10375_v10 }
 0x9b0   : > { %v10959_v62 = vpop.f32.mrf.mxu2 }
 0x9b1   : > { %v11022_v25 = vadd.f32 %v10959_v62, %v10696_v20  ;;  %v10650_v11 = vpop.f32.mrf.mxu1  ;;  %v10001_v32 = vpop.f32.mrf.mxu3  ;;  %v10376_v62 = vadd.f32 %v10322_v0, %v10050_v48 }
 0x9b3   : > { %v11134_v43 = vadd.f32 %v16722_v21, %v11022_v25 }
 0x9b5   : > { %v11170_v2 = vmax.f32 %v11134_v43, 0.0  ;;  %v10327_v16 = vpop.f32.mrf.mxu0  ;;  %v10702_v43 = vadd.f32 %v10648_v13, %v10376_v62 }
 0x9b7   : > { %11206 = vst [vmem:[%s16729_s18 + $0x90] sm:$0xff] %v11170_v2 }
 0x9b8   : > { %v10961_v41 = vpop.f32.mrf.mxu2 }
 0x9b9   : > { %v11023_v55 = vadd.f32 %v10961_v41, %v10697_v63  ;;  %v10653_v22 = vpop.f32.mrf.mxu1  ;;  %v10003_v33 = vpop.f32.mrf.mxu3 }
 0x9ba   : > { %v10053_v36 = vadd.f32 %v10003_v33, %v16683_v7 }
 0x9bb   : > { %v11135_v15 = vadd.f32 %v16722_v21, %v11023_v55  ;;  %v10703_v55 = vadd.f32 %v10650_v11, %v10377_v34 }
 0x9bd   : > { %v11171_v18 = vmax.f32 %v11135_v15, 0.0  ;;  %v10329_v24 = vpop.f32.mrf.mxu0  ;;  %v10052_v15 = vadd.f32 %v10001_v32, %v16679_v58 }
 0x9bf   : > { %11207 = vst [vmem:[%s16729_s18 + $0x98] sm:$0xff] %v11171_v18 }
 0x9c0   : > { %v10964_v54 = vpop.f32.mrf.mxu2 }
 0x9c1   : > { %v11024_v9 = vadd.f32 %v10964_v54, %v10698_v3  ;;  %v10655_v38 = vpop.f32.mrf.mxu1  ;;  %v10006_v18 = vpop.f32.mrf.mxu3  ;;  %v10378_v54 = vadd.f32 %v10327_v16, %v10052_v15 }
 0x9c2   : > { %v10054_v8 = vadd.f32 %v10006_v18, %v16687_v1 }
 0x9c3   : > { %v11136_v40 = vadd.f32 %v16722_v21, %v11024_v9  ;;  %v10704_v44 = vadd.f32 %v10653_v22, %v10378_v54 }
 0x9c5   : > { %v11172_v19 = vmax.f32 %v11136_v40, 0.0  ;;  %v10332_v3 = vpop.f32.mrf.mxu0 }
 0x9c6   : > { %v10380_v14 = vadd.f32 %v10332_v3, %v10054_v8 }
 0x9c7   : > { %11208 = vst [vmem:[%s16729_s18 + $0xa0] sm:$0xff] %v11172_v19  ;;  %v10379_v19 = vadd.f32 %v10329_v24, %v10053_v36 }
 0x9c8   : > { %v10966_v59 = vpop.f32.mrf.mxu2 }
 0x9c9   : > { %v11025_v23 = vadd.f32 %v10966_v59, %v10699_v42  ;;  %v10658_v9 = vpop.f32.mrf.mxu1  ;;  %v10008_v42 = vpop.f32.mrf.mxu3  ;;  %v10705_v56 = vadd.f32 %v10655_v38, %v10379_v19 }
 0x9ca   : > { %v10706_v4 = vadd.f32 %v10658_v9, %v10380_v14  ;;  %v10055_v11 = vadd.f32 %v10008_v42, %v16691_v12 }
 0x9cb   : > { %v11137_v46 = vadd.f32 %v16722_v21, %v11025_v23 }
 0x9cd   : > { %v11173_v37 = vmax.f32 %v11137_v46, 0.0  ;;  %v10334_v13 = vpop.f32.mrf.mxu0 }
 0x9cf   : > { %11209 = vst [vmem:[%s16729_s18 + $0xa8] sm:$0xff] %v11173_v37 }
 0x9d0   : > { %v10969_v17 = vpop.f32.mrf.mxu2 }
 0x9d1   : > { %v11026_v47 = vadd.f32 %v10969_v17, %v10700_v5  ;;  %v10660_v46 = vpop.f32.mrf.mxu1  ;;  %v10011_v7 = vpop.f32.mrf.mxu3 }
 0x9d3   : > { %v11138_v52 = vadd.f32 %v16722_v21, %v11026_v47 }
 0x9d5   : > { %v11174_v61 = vmax.f32 %v11138_v52, 0.0  ;;  %v10337_v17 = vpop.f32.mrf.mxu0  ;;  %v10381_v52 = vadd.f32 %v10334_v13, %v10055_v11 }
 0x9d7   : > { %11210 = vst [vmem:[%s16729_s18 + $0xb0] sm:$0xff] %v11174_v61 }
 0x9d8   : > { %v10971_v31 = vpop.f32.mrf.mxu2 }
 0x9d9   : > { %v11027_v20 = vadd.f32 %v10971_v31, %v10701_v53  ;;  %v10663_v1 = vpop.f32.mrf.mxu1  ;;  %v10013_v16 = vpop.f32.mrf.mxu3  ;;  %v10707_v53 = vadd.f32 %v10660_v46, %v10381_v52 }
 0x9da   : > { %v10057_v24 = vadd.f32 %v10013_v16, %v16699_v51 }
 0x9db   : > { %v11139_v6 = vadd.f32 %v16722_v21, %v11027_v20  ;;  %v10056_v20 = vadd.f32 %v10011_v7, %v16695_v45 }
 0x9dd   : > { %v11175_v25 = vmax.f32 %v11139_v6, 0.0  ;;  %v10339_v31 = vpop.f32.mrf.mxu0  ;;  %v10382_v6 = vadd.f32 %v10337_v17, %v10056_v20 }
 0x9de   : > { %v10383_v34 = vadd.f32 %v10339_v31, %v10057_v24 }
 0x9df   : > { %11211 = vst [vmem:[%s16729_s18 + $0xb8] sm:$0xff] %v11175_v25  ;;  %v10708_v33 = vadd.f32 %v10663_v1, %v10382_v6 }
 0x9e0   : > { %v10974_v2 = vpop.f32.mrf.mxu2 }
 0x9e1   : > { %v11028_v63 = vadd.f32 %v10974_v2, %v10702_v43  ;;  %v10665_v25 = vpop.f32.mrf.mxu1  ;;  %v10016_v2 = vpop.f32.mrf.mxu3 }
 0x9e3   : > { %v11140_v41 = vadd.f32 %v16722_v21, %v11028_v63 }
 0x9e5   : > { %v11176_v30 = vmax.f32 %v11140_v41, 0.0  ;;  %v10342_v63 = vpop.f32.mrf.mxu0 }
 0x9e7   : > { %11212 = vst [vmem:[%s16729_s18 + $0xc0] sm:$0xff] %v11176_v30  ;;  %v10709_v30 = vadd.f32 %v10665_v25, %v10383_v34 }
 0x9e8   : > { %v10976_v57 = vpop.f32.mrf.mxu2 }
 0x9e9   : > { %v11029_v26 = vadd.f32 %v10976_v57, %v10703_v55  ;;  %v10668_v38 = vpop.f32.mrf.mxu1  ;;  %v10058_v57 = vadd.f32 %v10016_v2, %v16703_v60  ;;  %v10018_v18 = vpop.f32.mrf.mxu3 }
 0x9eb   : > { %v11141_v35 = vadd.f32 %v16722_v21, %v11029_v26  ;;  %v10384_v26 = vadd.f32 %v10342_v63, %v10058_v57 }
 0x9ed   : > { %v11177_v50 = vmax.f32 %v11141_v35, 0.0  ;;  %v10344_v3 = vpop.f32.mrf.mxu0  ;;  %v10710_v35 = vadd.f32 %v10668_v38, %v10384_v26 }
 0x9ef   : > { %11213 = vst [vmem:[%s16729_s18 + $0xc8] sm:$0xff] %v11177_v50 }
 0x9f0   : > { %v10979_v0 = vpop.f32.mrf.mxu2 }
 0x9f1   : > { %v11030_v40 = vadd.f32 %v10979_v0, %v10704_v44  ;;  %v10059_v44 = vadd.f32 %v10018_v18, %v16707_v39  ;;  %v10670_v0 = vpop.f32.mrf.mxu1  ;;  %v10021_v60 = vpop.f32.mrf.mxu3 }
 0x9f3   : > { %v11142_v58 = vadd.f32 %v16722_v21, %v11030_v40  ;;  %v10385_v36 = vadd.f32 %v10344_v3, %v10059_v44 }
 0x9f5   : > { %v11178_v59 = vmax.f32 %v11142_v58, 0.0  ;;  %v10347_v42 = vpop.f32.mrf.mxu0  ;;  %v10711_v58 = vadd.f32 %v10670_v0, %v10385_v36 }
 0x9f7   : > { %11214 = vst [vmem:[%s16729_s18 + $0xd0] sm:$0xff] %v11178_v59  ;;  %v10060_v59 = vadd.f32 %v10021_v60, %v16711_v27 }
 0x9f8   : > { %v10981_v23 = vpop.f32.mrf.mxu2 }
 0x9f9   : > { %v11031_v29 = vadd.f32 %v10981_v23, %v10705_v56  ;;  %v10673_v23 = vpop.f32.mrf.mxu1  ;;  %v10386_v8 = vadd.f32 %v10347_v42, %v10060_v59  ;;  %v10023_v46 = vpop.f32.mrf.mxu3 }
 0x9fb   : > { %v11143_v37 = vadd.f32 %v16722_v21, %v11031_v29  ;;  %v10712_v14 = vadd.f32 %v10673_v23, %v10386_v8 }
 0x9fd   : > { %v11179_v5 = vmax.f32 %v11143_v37, 0.0  ;;  %v10349_v37 = vpop.f32.mrf.mxu0 }
 0x9ff   : > { %11215 = vst [vmem:[%s16729_s18 + $0xd8] sm:$0xff] %v11179_v5  ;;  %v10061_v5 = vadd.f32 %v10023_v46, %v16715_v49 }
 0xa00   : > { %v10984_v47 = vpop.f32.mrf.mxu2 }
 0xa01   : > { %v11032_v10 = vadd.f32 %v10984_v47, %v10706_v4  ;;  %v10387_v4 = vadd.f32 %v10349_v37, %v10061_v5  ;;  %v10675_v27 = vpop.f32.mrf.mxu1 }
 0xa03   : > { %v11144_v32 = vadd.f32 %v16722_v21, %v11032_v10  ;;  %v10713_v10 = vadd.f32 %v10675_v27, %v10387_v4 }
 0xa05   : > { %v11180_v61 = vmax.f32 %v11144_v32, 0.0 }
 0xa07   : > { %11216 = vst [vmem:[%s16729_s18 + $0xe0] sm:$0xff] %v11180_v61 }
 0xa08   : > { %v10986_v48 = vpop.f32.mrf.mxu2 }
 0xa09   : > { %v11033_v62 = vadd.f32 %v10986_v48, %v10707_v53 }
 0xa0b   : > { %v11145_v22 = vadd.f32 %v16722_v21, %v11033_v62 }
 0xa0d   : > { %v11181_v12 = vmax.f32 %v11145_v22, 0.0 }
 0xa0f   : > { %11217 = vst [vmem:[%s16729_s18 + $0xe8] sm:$0xff] %v11181_v12 }
 0xa10   : > { %v10989_v43 = vpop.f32.mrf.mxu2 }
 0xa11   : > { %v11034_v28 = vadd.f32 %v10989_v43, %v10708_v33 }
 0xa13   : > { %v11146_v41 = vadd.f32 %v16722_v21, %v11034_v28 }
 0xa15   : > { %v11182_v45 = vmax.f32 %v11146_v41, 0.0 }
 0xa17   : > { %11218 = vst [vmem:[%s16729_s18 + $0xf0] sm:$0xff] %v11182_v45 }
 0xa18   : > { %v10991_v55 = vpop.f32.mrf.mxu2 }
 0xa19   : > { %v11035_v15 = vadd.f32 %v10991_v55, %v10709_v30 }
 0xa1b   : > { %v11147_v51 = vadd.f32 %v16722_v21, %v11035_v15 }
 0xa1d   : > { %v11183_v54 = vmax.f32 %v11147_v51, 0.0 }
 0xa1f   : > { %11219 = vst [vmem:[%s16729_s18 + $0xf8] sm:$0xff] %v11183_v54 }
 0xa20   : > { %v10994_v50 = vpop.f32.mrf.mxu2 }
 0xa21   : > { %v11036_v9 = vadd.f32 %v10994_v50, %v10710_v35 }
 0xa23   : > { %v11148_v40 = vadd.f32 %v16722_v21, %v11036_v9 }
 0xa25   : > { %v11184_v19 = vmax.f32 %v11148_v40, 0.0 }
 0xa27   : > { %11220 = vst [vmem:[%s16729_s18 + $0x100] sm:$0xff] %v11184_v19 }
 0xa28   : > { %v10996_v13 = vpop.f32.mrf.mxu2 }
 0xa29   : > { %v11037_v56 = vadd.f32 %v10996_v13, %v10711_v58 }
 0xa2b   : > { %v11149_v39 = vadd.f32 %v16722_v21, %v11037_v56 }
 0xa2d   : > { %v11185_v29 = vmax.f32 %v11149_v39, 0.0 }
 0xa2f   : > { %11221 = vst [vmem:[%s16729_s18 + $0x108] sm:$0xff] %v11185_v29 }
 0xa30   : > { %v10999_v7 = vpop.f32.mrf.mxu2 }
 0xa31   : > { %v11038_v17 = vadd.f32 %v10999_v7, %v10712_v14 }
 0xa33   : > { %v11150_v47 = vadd.f32 %v16722_v21, %v11038_v17 }
 0xa35   : > { %v11186_v11 = vmax.f32 %v11150_v47, 0.0 }
 0xa37   : > { %11222 = vst [vmem:[%s16729_s18 + $0x110] sm:$0xff] %v11186_v11 }
 0xa38   : > { %v11001_v52 = vpop.f32.mrf.mxu2 }
 0xa39   : > { %v11039_v32 = vadd.f32 %v11001_v52, %v10713_v10 }
 0xa3b   : > { %v11151_v1 = vadd.f32 %v16722_v21, %v11039_v32 }
 0xa3d   : > { %v11187_v61 = vmax.f32 %v11151_v1, 0.0 }
 0xa3f   : > { %11223 = vst [vmem:[%s16729_s18 + $0x118] sm:$0xff] %v11187_v61 }
 0xa40 PF: > { %s20_s13 = sadd.s32 1, %s12861_s13  }
 0xa41   : > { %p17_p4 = scmp.ge.s32.totalorder %s20_s13, 4  }
 0xa43   :  { %19 = sbr.rel (!%p17_p4) target bundleno = 1 (0x1), region = 117 }

</bundles_post_ra>
